<compile_context>
chip_gen: v7x
topology: tpu7x:2x2x1
jax: 0.10.0
libtpu: 0.0.40
codegen_flags: <defaults>
</compile_context>

<pallas_src>
import functools

import jax
import jax.numpy as jnp
from jax.experimental import pallas as pl
from jax.experimental.pallas import tpu as pltpu

_BN_EPS = 1e-5
_LANE = 128


def _round_up(n, m):
    return ((n + m - 1) // m) * m


# ---------------------------------------------------------------------------
# Kernels
# ---------------------------------------------------------------------------

def _sameconv_kernel(alpha_ref, mean_ref, istd_ref, x_ref, w_ref,
                     y_ref, sum_ref, ssq_ref, xp_ref):
    """One grid step = one batch image.

    1. Apply the *previous* block's BatchNorm + PReLU to the raw input
       (identity for the first block: mean=0, istd=1, alpha=1).
    2. ReflectionPad2d(1) into VMEM scratch.
    3. 3x3 conv as 9 per-tap MXU dots with f32 accumulation.
    4. Emit the raw (pre-BN) conv output in bf16 plus this image's
       per-channel sum / sum-of-squares (combined across N in the wrapper).
    """
    H, W, Ci = x_ref.shape
    Co = w_ref.shape[-1]
    alpha = alpha_ref[0]

    # Previous block's BN + PReLU, fused into this conv's input path (f32).
    x = x_ref[...].astype(jnp.float32)
    xn = (x - mean_ref[...]) * istd_ref[...]
    xn = jnp.where(xn > 0, xn, alpha * xn).astype(jnp.bfloat16)

    # ReflectionPad2d(1) into VMEM scratch.  Rows first, then columns from
    # the row-padded buffer -> corners come out correct (xp[0,0] = x[1,1]).
    xp_ref[1:H + 1, 1:W + 1, :] = xn
    xp_ref[0:1, 1:W + 1, :] = xn[1:2]
    xp_ref[H + 1:H + 2, 1:W + 1, :] = xn[H - 2:H - 1]
    xp_ref[:, 0:1, :] = xp_ref[:, 2:3, :]
    xp_ref[:, W + 1:W + 2, :] = xp_ref[:, W - 1:W, :]

    # 3x3 conv = 9 per-tap (H*W, Ci) x (Ci, Co) matmuls, f32 accumulation.
    acc = jnp.zeros((H * W, Co), jnp.float32)
    for t in range(9):
        dh, dw = t // 3, t % 3
        tap = xp_ref[dh:dh + H, dw:dw + W, :].reshape(H * W, Ci)
        acc = acc + jnp.dot(tap, w_ref[t], preferred_element_type=jnp.float32)

    # Per-image BatchNorm partial statistics (global combine in wrapper).
    sum_ref[...] = jnp.sum(acc, axis=0, keepdims=True)
    ssq_ref[...] = jnp.sum(acc * acc, axis=0, keepdims=True)

    # Lane-dense bf16 writeback of the raw conv output.
    y_ref[...] = acc.astype(y_ref.dtype).reshape(H, W, Co)


def _bn_prelu_kernel(alpha_ref, mean_ref, istd_ref, y_ref, o_ref):
    """Final BatchNorm (given global mean / inv-std) + PReLU, one image/step."""
    alpha = alpha_ref[0]
    y = y_ref[...].astype(jnp.float32)
    yn = (y - mean_ref[...]) * istd_ref[...]
    o_ref[...] = jnp.where(yn > 0, yn, alpha * yn).astype(o_ref.dtype)


# ---------------------------------------------------------------------------
# pallas_call wrappers
# ---------------------------------------------------------------------------

def _vmem_capacity_bytes():
    try:
        cap = getattr(pltpu.get_tpu_info(), "vmem_capacity_bytes", None)
        if cap:
            return int(cap)
    except Exception:
        pass
    return 64 * 1024 * 1024  # conservative: whole physical VMEM/TC on v7x


def _vmem_limit_bytes(H, W, Ci, Co):
    """Per-step footprint with margin, clamped to 3/4 of physical VMEM."""
    bf16, f32 = 2, 4
    per_step = (
        2 * H * W * Ci * bf16              # input block (double-buffered)
        + 2 * H * W * Co * bf16            # output block (double-buffered)
        + 2 * 9 * Ci * Co * bf16           # folded weights
        + (H + 2) * (W + 2) * Ci * bf16    # reflect-pad scratch
        + 4 * H * W * max(Ci, Co) * f32    # f32 acc + elementwise temporaries
    )
    est = 2 * per_step                     # margin for compiler scratch/relayout
    cap = _vmem_capacity_bytes()           # 128 MiB v5e/v6e, 64 MiB v7x
    return int(min(max(est, 16 * 1024 * 1024), (cap * 3) // 4))


def _conv_pass(alpha, mean, istd, x, wf):
    """Conv (with fused pre-BN/PReLU of the previous block) + BN partials."""
    N, H, W, Ci = x.shape
    Co = wf.shape[-1]
    return pl.pallas_call(
        _sameconv_kernel,
        out_shape=(
            jax.ShapeDtypeStruct((N, H, W, Co), jnp.bfloat16),  # raw conv out
            jax.ShapeDtypeStruct((N, 1, Co), jnp.float32),      # per-image sum
            jax.ShapeDtypeStruct((N, 1, Co), jnp.float32),      # per-image sumsq
        ),
        grid=(N,),
        in_specs=[
            pl.BlockSpec(memory_space=pltpu.MemorySpace.SMEM),           # alpha
            pl.BlockSpec((1, Ci), lambda n: (0, 0)),                     # mean
            pl.BlockSpec((1, Ci), lambda n: (0, 0)),                     # inv-std
            pl.BlockSpec((None, H, W, Ci), lambda n: (n, 0, 0, 0)),      # x
            pl.BlockSpec((9, Ci, Co), lambda n: (0, 0, 0)),              # weights
        ],
        out_specs=(
            pl.BlockSpec((None, H, W, Co), lambda n: (n, 0, 0, 0)),
            pl.BlockSpec((None, 1, Co), lambda n: (n, 0, 0)),
            pl.BlockSpec((None, 1, Co), lambda n: (n, 0, 0)),
        ),
        scratch_shapes=[pltpu.VMEM((H + 2, W + 2, Ci), jnp.bfloat16)],
        compiler_params=pltpu.CompilerParams(
            dimension_semantics=("parallel",),
            vmem_limit_bytes=_vmem_limit_bytes(H, W, Ci, Co)),
    )(alpha, mean, istd, x, wf)


def _bn_prelu_pass(alpha, mean, istd, y):
    N, H, W, C = y.shape
    return pl.pallas_call(
        _bn_prelu_kernel,
        out_shape=jax.ShapeDtypeStruct((N, H, W, C), jnp.bfloat16),
        grid=(N,),
        in_specs=[
            pl.BlockSpec(memory_space=pltpu.MemorySpace.SMEM),
            pl.BlockSpec((1, C), lambda n: (0, 0)),
            pl.BlockSpec((1, C), lambda n: (0, 0)),
            pl.BlockSpec((None, H, W, C), lambda n: (n, 0, 0, 0)),
        ],
        out_specs=pl.BlockSpec((None, H, W, C), lambda n: (n, 0, 0, 0)),
        compiler_params=pltpu.CompilerParams(
            dimension_semantics=("parallel",),
            vmem_limit_bytes=_vmem_limit_bytes(H, W, C, C)),
    )(alpha, mean, istd, y)


def _batch_stats(sums, ssqs, count):
    """Combine per-image partials into global BN mean / inv-std (f32, tiny)."""
    # TODO(synk): single-pass E[x^2]-E[x]^2 can cancel when |mean| >> std; the
    # clamp keeps it safe, a Welford-style combine would be tighter.
    s = jnp.sum(sums, axis=0)          # (1, C)
    q = jnp.sum(ssqs, axis=0)          # (1, C)
    mean = s / count
    var = jnp.maximum(q / count - mean * mean, 0.0)
    istd = jax.lax.rsqrt(var + _BN_EPS)
    return mean, istd


@functools.partial(jax.jit, static_argnames=("cout",))
def convolution_forward(x_nchw, w1f, a1, w2f, a2, *, cout):
    """`Convolution.forward`: NCHW f32 in -> NCHW f32 out."""
    N, Cin, H, W = x_nchw.shape
    assert H >= 2 and W >= 2, "ReflectionPad2d(1) requires H >= 2 and W >= 2"
    Ci_p, Cp = w1f.shape[1], w1f.shape[2]

    # NCHW f32 -> NHWC bf16 (cast before the transpose to halve its traffic),
    # channels zero-padded to a multiple of 128 lanes.
    # TODO(synk): keep activations NHWC/bf16 end-to-end across the model so
    # these boundary transposes disappear entirely.
    x = jnp.transpose(x_nchw.astype(jnp.bfloat16), (0, 2, 3, 1))
    x = jnp.pad(x, ((0, 0), (0, 0), (0, 0), (0, Ci_p - Cin)))

    count = jnp.float32(N * H * W)
    id_alpha = jnp.ones((1,), jnp.float32)
    zeros_i = jnp.zeros((1, Ci_p), jnp.float32)
    ones_i = jnp.ones((1, Ci_p), jnp.float32)

    # Block 1: conv1 (identity pre-normalization) + BN1 partial stats.
    y1, s1, q1 = _conv_pass(id_alpha, zeros_i, ones_i, x, w1f)
    mean1, istd1 = _batch_stats(s1, q1, count)

    # Block 2: BN1 + PReLU1 fused into conv2's input path + BN2 partial stats.
    y2, s2, q2 = _conv_pass(a1, mean1, istd1, y1, w2f)
    mean2, istd2 = _batch_stats(s2, q2, count)

    # Final BN2 + PReLU2 (lane-dense bf16 output).
    out = _bn_prelu_pass(a2, mean2, istd2, y2)          # (N, H, W, Cp) bf16

    out = jnp.transpose(out[..., :cout], (0, 3, 1, 2))  # -> NCHW
    return out.astype(jnp.float32)


# ---------------------------------------------------------------------------
# Parameters, weight folding, pure-JAX reference
# ---------------------------------------------------------------------------

def fold_conv_weight(w, ci_pad, co_pad):
    """PyTorch (Co, Ci, 3, 3) -> (9, ci_pad, co_pad) bf16, tap order (kh, kw)."""
    co, ci = w.shape[0], w.shape[1]
    wf = jnp.transpose(w, (2, 3, 1, 0)).reshape(9, ci, co)
    wf = jnp.pad(wf, ((0, 0), (0, ci_pad - ci), (0, co_pad - co)))
    return wf.astype(jnp.bfloat16)


def init_params(key, in_channels, out_channels):
    """Deterministic synthetic parameters matching the PyTorch module shapes."""
    k1, k2 = jax.random.split(key)

    def conv_w(k, cin, cout):
        fan_in = cin * 9
        w = jax.random.normal(k, (cout, cin, 3, 3), jnp.float32) * (fan_in ** -0.5)
        # Round through bf16 so the reference sees exactly the kernel's weights.
        return w.astype(jnp.bfloat16).astype(jnp.float32)

    w1 = conv_w(k1, in_channels, out_channels)
    w2 = conv_w(k2, out_channels, out_channels)
    a1 = jnp.full((1,), 0.25, jnp.float32)   # PReLU default shared slope
    a2 = jnp.full((1,), 0.25, jnp.float32)
    # BatchNorm gamma=1 / beta=0 (PyTorch default init) is implicit.
    return w1, a1, w2, a2


def reference_forward(x_nchw, w1, a1, w2, a2):
    """Pure-JAX f32 reference mirroring the PyTorch module (training-mode BN)."""
    def sameconv(x, w, alpha):
        xp = jnp.pad(x, ((0, 0), (0, 0), (1, 1), (1, 1)), mode="reflect")
        y = jax.lax.conv_general_dilated(
            xp, w, window_strides=(1, 1), padding="VALID",
            dimension_numbers=("NCHW", "OIHW", "NCHW"),
            precision=jax.lax.Precision.HIGHEST)
        mean = jnp.mean(y, axis=(0, 2, 3), keepdims=True)
        var = jnp.mean(jnp.square(y - mean), axis=(0, 2, 3), keepdims=True)
        yn = (y - mean) * jax.lax.rsqrt(var + _BN_EPS)
        return jnp.where(yn > 0, yn, alpha * yn)

    y1 = sameconv(x_nchw, w1, a1[0])
    return sameconv(y1, w2, a2[0])


if __name__ == "__main__":
    key = jax.random.PRNGKey(0)
    kx, kp = jax.random.split(key)

    N, Cin, Cout, H, W = 2, 4, 8, 16, 16
    x = jax.random.normal(kx, (N, Cin, H, W), jnp.float32)
    w1, a1, w2, a2 = init_params(kp, Cin, Cout)

    ci_pad = _round_up(Cin, _LANE)
    co_pad = _round_up(Cout, _LANE)
    w1f = fold_conv_weight(w1, ci_pad, co_pad)
    w2f = fold_conv_weight(w2, co_pad, co_pad)

    out = convolution_forward(x, w1f, a1, w2f, a2, cout=Cout)
    out = jax.block_until_ready(out)

    assert out.shape == (N, Cout, H, W), out.shape
    assert bool(jnp.all(jnp.isfinite(out)))

    # Correctness vs pure-JAX f32 reference (bf16 activation path -> loose tol).
    ref = reference_forward(x, w1, a1, w2, a2)
    err = float(jnp.max(jnp.abs(out - ref)))
    assert err < 8e-2, f"max |err| vs reference = {err}"

    print("KERNEL_OK")
</pallas_src>

<mosaic_0001>
module attributes {stable_mosaic.version = 11 : i64} {
  func.func @_sameconv_kernel(%arg0: i32, %arg1: memref<1xf32, #tpu.memory_space<smem>>, %arg2: memref<1x128xf32, #tpu.memory_space<vmem>>, %arg3: memref<1x128xf32, #tpu.memory_space<vmem>>, %arg4: memref<1x16x16x128xbf16, #tpu.memory_space<vmem>>, %arg5: memref<9x128x128xbf16, #tpu.memory_space<vmem>>, %arg6: memref<1x16x16x128xbf16, #tpu.memory_space<vmem>>, %arg7: memref<1x1x128xf32, #tpu.memory_space<vmem>>, %arg8: memref<1x1x128xf32, #tpu.memory_space<vmem>>, %arg9: memref<18x18x128xbf16, #tpu.memory_space<vmem>>) attributes {dimension_semantics = [#tpu.dimension_semantics<parallel>], iteration_bounds = array<i64: 2>, scalar_prefetch = 0 : i64, scratch_operands = 1 : i64, tpu.core_type = #tpu.core_type<tc>, window_params = [{transform_indices = @transform_0, window_bounds = array<i64: 1>}, {pipeline_mode = #tpu.pipeline_mode<synchronous>, transform_indices = @transform_1, window_bounds = array<i64: 1, 128>}, {pipeline_mode = #tpu.pipeline_mode<synchronous>, transform_indices = @transform_2, window_bounds = array<i64: 1, 128>}, {transform_indices = @transform_3, window_bounds = array<i64: 1, 16, 16, 128>}, {pipeline_mode = #tpu.pipeline_mode<synchronous>, transform_indices = @transform_4, window_bounds = array<i64: 9, 128, 128>}, {transform_indices = @transform_5, window_bounds = array<i64: 1, 16, 16, 128>}, {transform_indices = @transform_6, window_bounds = array<i64: 1, 1, 128>}, {transform_indices = @transform_7, window_bounds = array<i64: 1, 1, 128>}]} {
    %c0 = arith.constant 0 : index
    %0 = memref.load %arg1[%c0] : memref<1xf32, #tpu.memory_space<smem>>
    %c0_0 = arith.constant 0 : index
    %c0_1 = arith.constant 0 : index
    %c0_2 = arith.constant 0 : index
    %c0_3 = arith.constant 0 : index
    %1 = vector.load %arg4[%c0_0, %c0_1, %c0_2, %c0_3] : memref<1x16x16x128xbf16, #tpu.memory_space<vmem>>, vector<1x16x16x128xbf16>
    %2 = vector.shape_cast %1 : vector<1x16x16x128xbf16> to vector<16x16x128xbf16>
    %3 = arith.extf %2 : vector<16x16x128xbf16> to vector<16x16x128xf32>
    %c0_4 = arith.constant 0 : index
    %c0_5 = arith.constant 0 : index
    %4 = vector.load %arg2[%c0_4, %c0_5] : memref<1x128xf32, #tpu.memory_space<vmem>>, vector<1x128xf32>
    %5 = vector.shape_cast %4 : vector<1x128xf32> to vector<1x1x128xf32>
    %6 = vector.broadcast %5 : vector<1x1x128xf32> to vector<16x16x128xf32>
    %7 = arith.subf %3, %6 : vector<16x16x128xf32>
    %c0_6 = arith.constant 0 : index
    %c0_7 = arith.constant 0 : index
    %8 = vector.load %arg3[%c0_6, %c0_7] : memref<1x128xf32, #tpu.memory_space<vmem>>, vector<1x128xf32>
    %9 = vector.shape_cast %8 : vector<1x128xf32> to vector<1x1x128xf32>
    %10 = vector.broadcast %9 : vector<1x1x128xf32> to vector<16x16x128xf32>
    %11 = arith.mulf %7, %10 : vector<16x16x128xf32>
    %cst = arith.constant 0.000000e+00 : f32
    %12 = vector.broadcast %cst : f32 to vector<16x16x128xf32>
    %13 = arith.cmpf ogt, %11, %12 : vector<16x16x128xf32>
    %14 = vector.broadcast %0 : f32 to vector<16x16x128xf32>
    %15 = arith.mulf %14, %11 : vector<16x16x128xf32>
    %16 = arith.select %13, %11, %15 : vector<16x16x128xi1>, vector<16x16x128xf32>
    %17 = arith.truncf %16 : vector<16x16x128xf32> to vector<16x16x128xbf16>
    %c1 = arith.constant 1 : index
    %c1_8 = arith.constant 1 : index
    %c0_9 = arith.constant 0 : index
    %18 = vector.load %arg9[%c1, %c1_8, %c0_9] : memref<18x18x128xbf16, #tpu.memory_space<vmem>>, vector<16x16x128xbf16>
    tpu.vector_store %arg9[%c1, %c1_8, %c0_9], %17 {strides = array<i32>} : memref<18x18x128xbf16, #tpu.memory_space<vmem>>, vector<16x16x128xbf16>,
    %19 = vector.extract_strided_slice %17 {offsets = [1, 0, 0], sizes = [1, 16, 128], strides = [1, 1, 1]} : vector<16x16x128xbf16> to vector<1x16x128xbf16>
    %c0_10 = arith.constant 0 : index
    %c1_11 = arith.constant 1 : index
    %c0_12 = arith.constant 0 : index
    %20 = vector.load %arg9[%c0_10, %c1_11, %c0_12] : memref<18x18x128xbf16, #tpu.memory_space<vmem>>, vector<1x16x128xbf16>
    tpu.vector_store %arg9[%c0_10, %c1_11, %c0_12], %19 {strides = array<i32>} : memref<18x18x128xbf16, #tpu.memory_space<vmem>>, vector<1x16x128xbf16>,
    %21 = vector.extract_strided_slice %17 {offsets = [14, 0, 0], sizes = [1, 16, 128], strides = [1, 1, 1]} : vector<16x16x128xbf16> to vector<1x16x128xbf16>
    %c17 = arith.constant 17 : index
    %c1_13 = arith.constant 1 : index
    %c0_14 = arith.constant 0 : index
    %22 = vector.load %arg9[%c17, %c1_13, %c0_14] : memref<18x18x128xbf16, #tpu.memory_space<vmem>>, vector<1x16x128xbf16>
    tpu.vector_store %arg9[%c17, %c1_13, %c0_14], %21 {strides = array<i32>} : memref<18x18x128xbf16, #tpu.memory_space<vmem>>, vector<1x16x128xbf16>,
    %c0_15 = arith.constant 0 : index
    %c2 = arith.constant 2 : index
    %c0_16 = arith.constant 0 : index
    %23 = vector.load %arg9[%c0_15, %c2, %c0_16] : memref<18x18x128xbf16, #tpu.memory_space<vmem>>, vector<18x1x128xbf16>
    %c0_17 = arith.constant 0 : index
    %c0_18 = arith.constant 0 : index
    %c0_19 = arith.constant 0 : index
    %24 = vector.load %arg9[%c0_17, %c0_18, %c0_19] : memref<18x18x128xbf16, #tpu.memory_space<vmem>>, vector<18x1x128xbf16>
    tpu.vector_store %arg9[%c0_17, %c0_18, %c0_19], %23 {strides = array<i32>} : memref<18x18x128xbf16, #tpu.memory_space<vmem>>, vector<18x1x128xbf16>,
    %c0_20 = arith.constant 0 : index
    %c15 = arith.constant 15 : index
    %c0_21 = arith.constant 0 : index
    %25 = vector.load %arg9[%c0_20, %c15, %c0_21] : memref<18x18x128xbf16, #tpu.memory_space<vmem>>, vector<18x1x128xbf16>
    %c0_22 = arith.constant 0 : index
    %c17_23 = arith.constant 17 : index
    %c0_24 = arith.constant 0 : index
    %26 = vector.load %arg9[%c0_22, %c17_23, %c0_24] : memref<18x18x128xbf16, #tpu.memory_space<vmem>>, vector<18x1x128xbf16>
    tpu.vector_store %arg9[%c0_22, %c17_23, %c0_24], %25 {strides = array<i32>} : memref<18x18x128xbf16, #tpu.memory_space<vmem>>, vector<18x1x128xbf16>,
    %cst_25 = arith.constant 0.000000e+00 : f32
    %27 = vector.broadcast %cst_25 : f32 to vector<256x128xf32>
    %c0_26 = arith.constant 0 : index
    %c0_27 = arith.constant 0 : index
    %c0_28 = arith.constant 0 : index
    %28 = vector.load %arg9[%c0_26, %c0_27, %c0_28] : memref<18x18x128xbf16, #tpu.memory_space<vmem>>, vector<16x16x128xbf16>
    %29 = vector.shape_cast %28 : vector<16x16x128xbf16> to vector<256x128xbf16>
    %c0_29 = arith.constant 0 : index
    %c0_30 = arith.constant 0 : index
    %c0_31 = arith.constant 0 : index
    %30 = vector.load %arg5[%c0_29, %c0_30, %c0_31] : memref<9x128x128xbf16, #tpu.memory_space<vmem>>, vector<1x128x128xbf16>
    %31 = vector.shape_cast %30 : vector<1x128x128xbf16> to vector<128x128xbf16>
    %cst_32 = arith.constant dense<0.000000e+00> : vector<256x128xf32>
    %32 = tpu.matmul %29, %31, %cst_32 {dimension_numbers = #tpu.dot_dimension_numbers<[1], [0], [0], [1], [0, 0, 1, 1], [], []>} : vector<256x128xbf16>, vector<128x128xbf16>, vector<256x128xf32> -> vector<256x128xf32>
    %33 = arith.addf %27, %32 : vector<256x128xf32>
    %c0_33 = arith.constant 0 : index
    %c1_34 = arith.constant 1 : index
    %c0_35 = arith.constant 0 : index
    %34 = vector.load %arg9[%c0_33, %c1_34, %c0_35] : memref<18x18x128xbf16, #tpu.memory_space<vmem>>, vector<16x16x128xbf16>
    %35 = vector.shape_cast %34 : vector<16x16x128xbf16> to vector<256x128xbf16>
    %c1_36 = arith.constant 1 : index
    %c0_37 = arith.constant 0 : index
    %c0_38 = arith.constant 0 : index
    %36 = vector.load %arg5[%c1_36, %c0_37, %c0_38] : memref<9x128x128xbf16, #tpu.memory_space<vmem>>, vector<1x128x128xbf16>
    %37 = vector.shape_cast %36 : vector<1x128x128xbf16> to vector<128x128xbf16>
    %cst_39 = arith.constant dense<0.000000e+00> : vector<256x128xf32>
    %38 = tpu.matmul %35, %37, %cst_39 {dimension_numbers = #tpu.dot_dimension_numbers<[1], [0], [0], [1], [0, 0, 1, 1], [], []>} : vector<256x128xbf16>, vector<128x128xbf16>, vector<256x128xf32> -> vector<256x128xf32>
    %39 = arith.addf %33, %38 : vector<256x128xf32>
    %c0_40 = arith.constant 0 : index
    %c2_41 = arith.constant 2 : index
    %c0_42 = arith.constant 0 : index
    %40 = vector.load %arg9[%c0_40, %c2_41, %c0_42] : memref<18x18x128xbf16, #tpu.memory_space<vmem>>, vector<16x16x128xbf16>
    %41 = vector.shape_cast %40 : vector<16x16x128xbf16> to vector<256x128xbf16>
    %c2_43 = arith.constant 2 : index
    %c0_44 = arith.constant 0 : index
    %c0_45 = arith.constant 0 : index
    %42 = vector.load %arg5[%c2_43, %c0_44, %c0_45] : memref<9x128x128xbf16, #tpu.memory_space<vmem>>, vector<1x128x128xbf16>
    %43 = vector.shape_cast %42 : vector<1x128x128xbf16> to vector<128x128xbf16>
    %cst_46 = arith.constant dense<0.000000e+00> : vector<256x128xf32>
    %44 = tpu.matmul %41, %43, %cst_46 {dimension_numbers = #tpu.dot_dimension_numbers<[1], [0], [0], [1], [0, 0, 1, 1], [], []>} : vector<256x128xbf16>, vector<128x128xbf16>, vector<256x128xf32> -> vector<256x128xf32>
    %45 = arith.addf %39, %44 : vector<256x128xf32>
    %c1_47 = arith.constant 1 : index
    %c0_48 = arith.constant 0 : index
    %c0_49 = arith.constant 0 : index
    %46 = vector.load %arg9[%c1_47, %c0_48, %c0_49] : memref<18x18x128xbf16, #tpu.memory_space<vmem>>, vector<16x16x128xbf16>
    %47 = vector.shape_cast %46 : vector<16x16x128xbf16> to vector<256x128xbf16>
    %c3 = arith.constant 3 : index
    %c0_50 = arith.constant 0 : index
    %c0_51 = arith.constant 0 : index
    %48 = vector.load %arg5[%c3, %c0_50, %c0_51] : memref<9x128x128xbf16, #tpu.memory_space<vmem>>, vector<1x128x128xbf16>
    %49 = vector.shape_cast %48 : vector<1x128x128xbf16> to vector<128x128xbf16>
    %cst_52 = arith.constant dense<0.000000e+00> : vector<256x128xf32>
    %50 = tpu.matmul %47, %49, %cst_52 {dimension_numbers = #tpu.dot_dimension_numbers<[1], [0], [0], [1], [0, 0, 1, 1], [], []>} : vector<256x128xbf16>, vector<128x128xbf16>, vector<256x128xf32> -> vector<256x128xf32>
    %51 = arith.addf %45, %50 : vector<256x128xf32>
    %c1_53 = arith.constant 1 : index
    %c1_54 = arith.constant 1 : index
    %c0_55 = arith.constant 0 : index
    %52 = vector.load %arg9[%c1_53, %c1_54, %c0_55] : memref<18x18x128xbf16, #tpu.memory_space<vmem>>, vector<16x16x128xbf16>
    %53 = vector.shape_cast %52 : vector<16x16x128xbf16> to vector<256x128xbf16>
    %c4 = arith.constant 4 : index
    %c0_56 = arith.constant 0 : index
    %c0_57 = arith.constant 0 : index
    %54 = vector.load %arg5[%c4, %c0_56, %c0_57] : memref<9x128x128xbf16, #tpu.memory_space<vmem>>, vector<1x128x128xbf16>
    %55 = vector.shape_cast %54 : vector<1x128x128xbf16> to vector<128x128xbf16>
    %cst_58 = arith.constant dense<0.000000e+00> : vector<256x128xf32>
    %56 = tpu.matmul %53, %55, %cst_58 {dimension_numbers = #tpu.dot_dimension_numbers<[1], [0], [0], [1], [0, 0, 1, 1], [], []>} : vector<256x128xbf16>, vector<128x128xbf16>, vector<256x128xf32> -> vector<256x128xf32>
    %57 = arith.addf %51, %56 : vector<256x128xf32>
    %c1_59 = arith.constant 1 : index
    %c2_60 = arith.constant 2 : index
    %c0_61 = arith.constant 0 : index
    %58 = vector.load %arg9[%c1_59, %c2_60, %c0_61] : memref<18x18x128xbf16, #tpu.memory_space<vmem>>, vector<16x16x128xbf16>
    %59 = vector.shape_cast %58 : vector<16x16x128xbf16> to vector<256x128xbf16>
    %c5 = arith.constant 5 : index
    %c0_62 = arith.constant 0 : index
    %c0_63 = arith.constant 0 : index
    %60 = vector.load %arg5[%c5, %c0_62, %c0_63] : memref<9x128x128xbf16, #tpu.memory_space<vmem>>, vector<1x128x128xbf16>
    %61 = vector.shape_cast %60 : vector<1x128x128xbf16> to vector<128x128xbf16>
    %cst_64 = arith.constant dense<0.000000e+00> : vector<256x128xf32>
    %62 = tpu.matmul %59, %61, %cst_64 {dimension_numbers = #tpu.dot_dimension_numbers<[1], [0], [0], [1], [0, 0, 1, 1], [], []>} : vector<256x128xbf16>, vector<128x128xbf16>, vector<256x128xf32> -> vector<256x128xf32>
    %63 = arith.addf %57, %62 : vector<256x128xf32>
    %c2_65 = arith.constant 2 : index
    %c0_66 = arith.constant 0 : index
    %c0_67 = arith.constant 0 : index
    %64 = vector.load %arg9[%c2_65, %c0_66, %c0_67] : memref<18x18x128xbf16, #tpu.memory_space<vmem>>, vector<16x16x128xbf16>
    %65 = vector.shape_cast %64 : vector<16x16x128xbf16> to vector<256x128xbf16>
    %c6 = arith.constant 6 : index
    %c0_68 = arith.constant 0 : index
    %c0_69 = arith.constant 0 : index
    %66 = vector.load %arg5[%c6, %c0_68, %c0_69] : memref<9x128x128xbf16, #tpu.memory_space<vmem>>, vector<1x128x128xbf16>
    %67 = vector.shape_cast %66 : vector<1x128x128xbf16> to vector<128x128xbf16>
    %cst_70 = arith.constant dense<0.000000e+00> : vector<256x128xf32>
    %68 = tpu.matmul %65, %67, %cst_70 {dimension_numbers = #tpu.dot_dimension_numbers<[1], [0], [0], [1], [0, 0, 1, 1], [], []>} : vector<256x128xbf16>, vector<128x128xbf16>, vector<256x128xf32> -> vector<256x128xf32>
    %69 = arith.addf %63, %68 : vector<256x128xf32>
    %c2_71 = arith.constant 2 : index
    %c1_72 = arith.constant 1 : index
    %c0_73 = arith.constant 0 : index
    %70 = vector.load %arg9[%c2_71, %c1_72, %c0_73] : memref<18x18x128xbf16, #tpu.memory_space<vmem>>, vector<16x16x128xbf16>
    %71 = vector.shape_cast %70 : vector<16x16x128xbf16> to vector<256x128xbf16>
    %c7 = arith.constant 7 : index
    %c0_74 = arith.constant 0 : index
    %c0_75 = arith.constant 0 : index
    %72 = vector.load %arg5[%c7, %c0_74, %c0_75] : memref<9x128x128xbf16, #tpu.memory_space<vmem>>, vector<1x128x128xbf16>
    %73 = vector.shape_cast %72 : vector<1x128x128xbf16> to vector<128x128xbf16>
    %cst_76 = arith.constant dense<0.000000e+00> : vector<256x128xf32>
    %74 = tpu.matmul %71, %73, %cst_76 {dimension_numbers = #tpu.dot_dimension_numbers<[1], [0], [0], [1], [0, 0, 1, 1], [], []>} : vector<256x128xbf16>, vector<128x128xbf16>, vector<256x128xf32> -> vector<256x128xf32>
    %75 = arith.addf %69, %74 : vector<256x128xf32>
    %c2_77 = arith.constant 2 : index
    %c2_78 = arith.constant 2 : index
    %c0_79 = arith.constant 0 : index
    %76 = vector.load %arg9[%c2_77, %c2_78, %c0_79] : memref<18x18x128xbf16, #tpu.memory_space<vmem>>, vector<16x16x128xbf16>
    %77 = vector.shape_cast %76 : vector<16x16x128xbf16> to vector<256x128xbf16>
    %c8 = arith.constant 8 : index
    %c0_80 = arith.constant 0 : index
    %c0_81 = arith.constant 0 : index
    %78 = vector.load %arg5[%c8, %c0_80, %c0_81] : memref<9x128x128xbf16, #tpu.memory_space<vmem>>, vector<1x128x128xbf16>
    %79 = vector.shape_cast %78 : vector<1x128x128xbf16> to vector<128x128xbf16>
    %cst_82 = arith.constant dense<0.000000e+00> : vector<256x128xf32>
    %80 = tpu.matmul %77, %79, %cst_82 {dimension_numbers = #tpu.dot_dimension_numbers<[1], [0], [0], [1], [0, 0, 1, 1], [], []>} : vector<256x128xbf16>, vector<128x128xbf16>, vector<256x128xf32> -> vector<256x128xf32>
    %81 = arith.addf %75, %80 : vector<256x128xf32>
    %cst_83 = arith.constant dense<0.000000e+00> : vector<128xf32>
    %82 = vector.multi_reduction <add>, %81, %cst_83 [0] : vector<256x128xf32> to vector<128xf32>
    %83 = vector.shape_cast %82 : vector<128xf32> to vector<1x128xf32>
    %c0_84 = arith.constant 0 : index
    %c0_85 = arith.constant 0 : index
    %c0_86 = arith.constant 0 : index
    %84 = vector.load %arg7[%c0_84, %c0_85, %c0_86] : memref<1x1x128xf32, #tpu.memory_space<vmem>>, vector<1x1x128xf32>
    %85 = vector.shape_cast %84 : vector<1x1x128xf32> to vector<1x128xf32>
    %86 = vector.shape_cast %83 : vector<1x128xf32> to vector<1x1x128xf32>
    tpu.vector_store %arg7[%c0_84, %c0_85, %c0_86], %86 {strides = array<i32>} : memref<1x1x128xf32, #tpu.memory_space<vmem>>, vector<1x1x128xf32>,
    %87 = arith.mulf %81, %81 : vector<256x128xf32>
    %cst_87 = arith.constant dense<0.000000e+00> : vector<128xf32>
    %88 = vector.multi_reduction <add>, %87, %cst_87 [0] : vector<256x128xf32> to vector<128xf32>
    %89 = vector.shape_cast %88 : vector<128xf32> to vector<1x128xf32>
    %c0_88 = arith.constant 0 : index
    %c0_89 = arith.constant 0 : index
    %c0_90 = arith.constant 0 : index
    %90 = vector.load %arg8[%c0_88, %c0_89, %c0_90] : memref<1x1x128xf32, #tpu.memory_space<vmem>>, vector<1x1x128xf32>
    %91 = vector.shape_cast %90 : vector<1x1x128xf32> to vector<1x128xf32>
    %92 = vector.shape_cast %89 : vector<1x128xf32> to vector<1x1x128xf32>
    tpu.vector_store %arg8[%c0_88, %c0_89, %c0_90], %92 {strides = array<i32>} : memref<1x1x128xf32, #tpu.memory_space<vmem>>, vector<1x1x128xf32>,
    %93 = arith.truncf %81 : vector<256x128xf32> to vector<256x128xbf16>
    %94 = vector.shape_cast %93 : vector<256x128xbf16> to vector<16x16x128xbf16>
    %c0_91 = arith.constant 0 : index
    %c0_92 = arith.constant 0 : index
    %c0_93 = arith.constant 0 : index
    %c0_94 = arith.constant 0 : index
    %95 = vector.load %arg6[%c0_91, %c0_92, %c0_93, %c0_94] : memref<1x16x16x128xbf16, #tpu.memory_space<vmem>>, vector<1x16x16x128xbf16>
    %96 = vector.shape_cast %95 : vector<1x16x16x128xbf16> to vector<16x16x128xbf16>
    %97 = vector.shape_cast %94 : vector<16x16x128xbf16> to vector<1x16x16x128xbf16>
    tpu.vector_store %arg6[%c0_91, %c0_92, %c0_93, %c0_94], %97 {strides = array<i32>} : memref<1x16x16x128xbf16, #tpu.memory_space<vmem>>, vector<1x16x16x128xbf16>,
    return
  }
  func.func @transform_0(%arg0: i32) -> i32 {
    %c0_i32 = arith.constant 0 : i32
    %c0_i32_0 = arith.constant 0 : i32
    return %c0_i32 : i32
  }
  func.func @transform_1(%arg0: i32) -> (i32, i32) {
    %c0_i32 = arith.constant 0 : i32
    %c0_i32_0 = arith.constant 0 : i32
    %c0_i32_1 = arith.constant 0 : i32
    return %c0_i32, %c0_i32_0 : i32, i32
  }
  func.func @transform_2(%arg0: i32) -> (i32, i32) {
    %c0_i32 = arith.constant 0 : i32
    %c0_i32_0 = arith.constant 0 : i32
    %c0_i32_1 = arith.constant 0 : i32
    return %c0_i32, %c0_i32_0 : i32, i32
  }
  func.func @transform_3(%arg0: i32) -> (i32, i32, i32, i32) {
    %c0_i32 = arith.constant 0 : i32
    %c0_i32_0 = arith.constant 0 : i32
    %c0_i32_1 = arith.constant 0 : i32
    %c0_i32_2 = arith.constant 0 : i32
    return %arg0, %c0_i32, %c0_i32_0, %c0_i32_1 : i32, i32, i32, i32
  }
  func.func @transform_4(%arg0: i32) -> (i32, i32, i32) {
    %c0_i32 = arith.constant 0 : i32
    %c0_i32_0 = arith.constant 0 : i32
    %c0_i32_1 = arith.constant 0 : i32
    %c0_i32_2 = arith.constant 0 : i32
    return %c0_i32, %c0_i32_0, %c0_i32_1 : i32, i32, i32
  }
  func.func @transform_5(%arg0: i32) -> (i32, i32, i32, i32) {
    %c0_i32 = arith.constant 0 : i32
    %c0_i32_0 = arith.constant 0 : i32
    %c0_i32_1 = arith.constant 0 : i32
    %c0_i32_2 = arith.constant 0 : i32
    return %arg0, %c0_i32, %c0_i32_0, %c0_i32_1 : i32, i32, i32, i32
  }
  func.func @transform_6(%arg0: i32) -> (i32, i32, i32) {
    %c0_i32 = arith.constant 0 : i32
    %c0_i32_0 = arith.constant 0 : i32
    %c0_i32_1 = arith.constant 0 : i32
    return %arg0, %c0_i32, %c0_i32_0 : i32, i32, i32
  }
  func.func @transform_7(%arg0: i32) -> (i32, i32, i32) {
    %c0_i32 = arith.constant 0 : i32
    %c0_i32_0 = arith.constant 0 : i32
    %c0_i32_1 = arith.constant 0 : i32
    return %arg0, %c0_i32, %c0_i32_0 : i32, i32, i32
  }
}

module attributes {stable_mosaic.version = 11 : i64} {
  func.func @_bn_prelu_kernel(%arg0: i32, %arg1: memref<1xf32, #tpu.memory_space<smem>>, %arg2: memref<1x128xf32, #tpu.memory_space<vmem>>, %arg3: memref<1x128xf32, #tpu.memory_space<vmem>>, %arg4: memref<1x16x16x128xbf16, #tpu.memory_space<vmem>>, %arg5: memref<1x16x16x128xbf16, #tpu.memory_space<vmem>>) attributes {dimension_semantics = [#tpu.dimension_semantics<parallel>], iteration_bounds = array<i64: 2>, scalar_prefetch = 0 : i64, scratch_operands = 0 : i64, tpu.core_type = #tpu.core_type<tc>, window_params = [{transform_indices = @transform_0, window_bounds = array<i64: 1>}, {pipeline_mode = #tpu.pipeline_mode<synchronous>, transform_indices = @transform_1, window_bounds = array<i64: 1, 128>}, {pipeline_mode = #tpu.pipeline_mode<synchronous>, transform_indices = @transform_2, window_bounds = array<i64: 1, 128>}, {transform_indices = @transform_3, window_bounds = array<i64: 1, 16, 16, 128>}, {transform_indices = @transform_4, window_bounds = array<i64: 1, 16, 16, 128>}]} {
    %c0 = arith.constant 0 : index
    %0 = memref.load %arg1[%c0] : memref<1xf32, #tpu.memory_space<smem>>
    %c0_0 = arith.constant 0 : index
    %c0_1 = arith.constant 0 : index
    %c0_2 = arith.constant 0 : index
    %c0_3 = arith.constant 0 : index
    %1 = vector.load %arg4[%c0_0, %c0_1, %c0_2, %c0_3] : memref<1x16x16x128xbf16, #tpu.memory_space<vmem>>, vector<1x16x16x128xbf16>
    %2 = vector.shape_cast %1 : vector<1x16x16x128xbf16> to vector<16x16x128xbf16>
    %3 = arith.extf %2 : vector<16x16x128xbf16> to vector<16x16x128xf32>
    %c0_4 = arith.constant 0 : index
    %c0_5 = arith.constant 0 : index
    %4 = vector.load %arg2[%c0_4, %c0_5] : memref<1x128xf32, #tpu.memory_space<vmem>>, vector<1x128xf32>
    %5 = vector.shape_cast %4 : vector<1x128xf32> to vector<1x1x128xf32>
    %6 = vector.broadcast %5 : vector<1x1x128xf32> to vector<16x16x128xf32>
    %7 = arith.subf %3, %6 : vector<16x16x128xf32>
    %c0_6 = arith.constant 0 : index
    %c0_7 = arith.constant 0 : index
    %8 = vector.load %arg3[%c0_6, %c0_7] : memref<1x128xf32, #tpu.memory_space<vmem>>, vector<1x128xf32>
    %9 = vector.shape_cast %8 : vector<1x128xf32> to vector<1x1x128xf32>
    %10 = vector.broadcast %9 : vector<1x1x128xf32> to vector<16x16x128xf32>
    %11 = arith.mulf %7, %10 : vector<16x16x128xf32>
    %cst = arith.constant 0.000000e+00 : f32
    %12 = vector.broadcast %cst : f32 to vector<16x16x128xf32>
    %13 = arith.cmpf ogt, %11, %12 : vector<16x16x128xf32>
    %14 = vector.broadcast %0 : f32 to vector<16x16x128xf32>
    %15 = arith.mulf %14, %11 : vector<16x16x128xf32>
    %16 = arith.select %13, %11, %15 : vector<16x16x128xi1>, vector<16x16x128xf32>
    %17 = arith.truncf %16 : vector<16x16x128xf32> to vector<16x16x128xbf16>
    %c0_8 = arith.constant 0 : index
    %c0_9 = arith.constant 0 : index
    %c0_10 = arith.constant 0 : index
    %c0_11 = arith.constant 0 : index
    %18 = vector.load %arg5[%c0_8, %c0_9, %c0_10, %c0_11] : memref<1x16x16x128xbf16, #tpu.memory_space<vmem>>, vector<1x16x16x128xbf16>
    %19 = vector.shape_cast %18 : vector<1x16x16x128xbf16> to vector<16x16x128xbf16>
    %20 = vector.shape_cast %17 : vector<16x16x128xbf16> to vector<1x16x16x128xbf16>
    tpu.vector_store %arg5[%c0_8, %c0_9, %c0_10, %c0_11], %20 {strides = array<i32>} : memref<1x16x16x128xbf16, #tpu.memory_space<vmem>>, vector<1x16x16x128xbf16>,
    return
  }
  func.func @transform_0(%arg0: i32) -> i32 {
    %c0_i32 = arith.constant 0 : i32
    %c0_i32_0 = arith.constant 0 : i32
    return %c0_i32 : i32
  }
  func.func @transform_1(%arg0: i32) -> (i32, i32) {
    %c0_i32 = arith.constant 0 : i32
    %c0_i32_0 = arith.constant 0 : i32
    %c0_i32_1 = arith.constant 0 : i32
    return %c0_i32, %c0_i32_0 : i32, i32
  }
  func.func @transform_2(%arg0: i32) -> (i32, i32) {
    %c0_i32 = arith.constant 0 : i32
    %c0_i32_0 = arith.constant 0 : i32
    %c0_i32_1 = arith.constant 0 : i32
    return %c0_i32, %c0_i32_0 : i32, i32
  }
  func.func @transform_3(%arg0: i32) -> (i32, i32, i32, i32) {
    %c0_i32 = arith.constant 0 : i32
    %c0_i32_0 = arith.constant 0 : i32
    %c0_i32_1 = arith.constant 0 : i32
    %c0_i32_2 = arith.constant 0 : i32
    return %arg0, %c0_i32, %c0_i32_0, %c0_i32_1 : i32, i32, i32, i32
  }
  func.func @transform_4(%arg0: i32) -> (i32, i32, i32, i32) {
    %c0_i32 = arith.constant 0 : i32
    %c0_i32_0 = arith.constant 0 : i32
    %c0_i32_1 = arith.constant 0 : i32
    %c0_i32_2 = arith.constant 0 : i32
    return %arg0, %c0_i32, %c0_i32_0, %c0_i32_1 : i32, i32, i32, i32
  }
}

module attributes {stable_mosaic.version = 11 : i64} {
  func.func @_sameconv_kernel(%arg0: i32, %arg1: memref<1xf32, #tpu.memory_space<smem>>, %arg2: memref<1x128xf32, #tpu.memory_space<vmem>>, %arg3: memref<1x128xf32, #tpu.memory_space<vmem>>, %arg4: memref<1x16x16x128xbf16, #tpu.memory_space<vmem>>, %arg5: memref<9x128x128xbf16, #tpu.memory_space<vmem>>, %arg6: memref<1x16x16x128xbf16, #tpu.memory_space<vmem>>, %arg7: memref<1x1x128xf32, #tpu.memory_space<vmem>>, %arg8: memref<1x1x128xf32, #tpu.memory_space<vmem>>, %arg9: memref<18x18x128xbf16, #tpu.memory_space<vmem>>) attributes {dimension_semantics = [#tpu.dimension_semantics<parallel>], iteration_bounds = array<i64: 2>, scalar_prefetch = 0 : i64, scratch_operands = 1 : i64, tpu.core_type = #tpu.core_type<tc>, window_params = [{transform_indices = @transform_0, window_bounds = array<i64: 1>}, {pipeline_mode = #tpu.pipeline_mode<synchronous>, transform_indices = @transform_1, window_bounds = array<i64: 1, 128>}, {pipeline_mode = #tpu.pipeline_mode<synchronous>, transform_indices = @transform_2, window_bounds = array<i64: 1, 128>}, {transform_indices = @transform_3, window_bounds = array<i64: 1, 16, 16, 128>}, {pipeline_mode = #tpu.pipeline_mode<synchronous>, transform_indices = @transform_4, window_bounds = array<i64: 9, 128, 128>}, {transform_indices = @transform_5, window_bounds = array<i64: 1, 16, 16, 128>}, {transform_indices = @transform_6, window_bounds = array<i64: 1, 1, 128>}, {transform_indices = @transform_7, window_bounds = array<i64: 1, 1, 128>}]} {
    %c0 = arith.constant 0 : index
    %0 = memref.load %arg1[%c0] : memref<1xf32, #tpu.memory_space<smem>>
    %c0_0 = arith.constant 0 : index
    %c0_1 = arith.constant 0 : index
    %c0_2 = arith.constant 0 : index
    %c0_3 = arith.constant 0 : index
    %1 = vector.load %arg4[%c0_0, %c0_1, %c0_2, %c0_3] : memref<1x16x16x128xbf16, #tpu.memory_space<vmem>>, vector<1x16x16x128xbf16>
    %2 = vector.shape_cast %1 : vector<1x16x16x128xbf16> to vector<16x16x128xbf16>
    %3 = arith.extf %2 : vector<16x16x128xbf16> to vector<16x16x128xf32>
    %c0_4 = arith.constant 0 : index
    %c0_5 = arith.constant 0 : index
    %4 = vector.load %arg2[%c0_4, %c0_5] : memref<1x128xf32, #tpu.memory_space<vmem>>, vector<1x128xf32>
    %5 = vector.shape_cast %4 : vector<1x128xf32> to vector<1x1x128xf32>
    %6 = vector.broadcast %5 : vector<1x1x128xf32> to vector<16x16x128xf32>
    %7 = arith.subf %3, %6 : vector<16x16x128xf32>
    %c0_6 = arith.constant 0 : index
    %c0_7 = arith.constant 0 : index
    %8 = vector.load %arg3[%c0_6, %c0_7] : memref<1x128xf32, #tpu.memory_space<vmem>>, vector<1x128xf32>
    %9 = vector.shape_cast %8 : vector<1x128xf32> to vector<1x1x128xf32>
    %10 = vector.broadcast %9 : vector<1x1x128xf32> to vector<16x16x128xf32>
    %11 = arith.mulf %7, %10 : vector<16x16x128xf32>
    %cst = arith.constant 0.000000e+00 : f32
    %12 = vector.broadcast %cst : f32 to vector<16x16x128xf32>
    %13 = arith.cmpf ogt, %11, %12 : vector<16x16x128xf32>
    %14 = vector.broadcast %0 : f32 to vector<16x16x128xf32>
    %15 = arith.mulf %14, %11 : vector<16x16x128xf32>
    %16 = arith.select %13, %11, %15 : vector<16x16x128xi1>, vector<16x16x128xf32>
    %17 = arith.truncf %16 : vector<16x16x128xf32> to vector<16x16x128xbf16>
    %c1 = arith.constant 1 : index
    %c1_8 = arith.constant 1 : index
    %c0_9 = arith.constant 0 : index
    %18 = vector.load %arg9[%c1, %c1_8, %c0_9] : memref<18x18x128xbf16, #tpu.memory_space<vmem>>, vector<16x16x128xbf16>
    tpu.vector_store %arg9[%c1, %c1_8, %c0_9], %17 {strides = array<i32>} : memref<18x18x128xbf16, #tpu.memory_space<vmem>>, vector<16x16x128xbf16>,
    %19 = vector.extract_strided_slice %17 {offsets = [1, 0, 0], sizes = [1, 16, 128], strides = [1, 1, 1]} : vector<16x16x128xbf16> to vector<1x16x128xbf16>
    %c0_10 = arith.constant 0 : index
    %c1_11 = arith.constant 1 : index
    %c0_12 = arith.constant 0 : index
    %20 = vector.load %arg9[%c0_10, %c1_11, %c0_12] : memref<18x18x128xbf16, #tpu.memory_space<vmem>>, vector<1x16x128xbf16>
    tpu.vector_store %arg9[%c0_10, %c1_11, %c0_12], %19 {strides = array<i32>} : memref<18x18x128xbf16, #tpu.memory_space<vmem>>, vector<1x16x128xbf16>,
    %21 = vector.extract_strided_slice %17 {offsets = [14, 0, 0], sizes = [1, 16, 128], strides = [1, 1, 1]} : vector<16x16x128xbf16> to vector<1x16x128xbf16>
    %c17 = arith.constant 17 : index
    %c1_13 = arith.constant 1 : index
    %c0_14 = arith.constant 0 : index
    %22 = vector.load %arg9[%c17, %c1_13, %c0_14] : memref<18x18x128xbf16, #tpu.memory_space<vmem>>, vector<1x16x128xbf16>
    tpu.vector_store %arg9[%c17, %c1_13, %c0_14], %21 {strides = array<i32>} : memref<18x18x128xbf16, #tpu.memory_space<vmem>>, vector<1x16x128xbf16>,
    %c0_15 = arith.constant 0 : index
    %c2 = arith.constant 2 : index
    %c0_16 = arith.constant 0 : index
    %23 = vector.load %arg9[%c0_15, %c2, %c0_16] : memref<18x18x128xbf16, #tpu.memory_space<vmem>>, vector<18x1x128xbf16>
    %c0_17 = arith.constant 0 : index
    %c0_18 = arith.constant 0 : index
    %c0_19 = arith.constant 0 : index
    %24 = vector.load %arg9[%c0_17, %c0_18, %c0_19] : memref<18x18x128xbf16, #tpu.memory_space<vmem>>, vector<18x1x128xbf16>
    tpu.vector_store %arg9[%c0_17, %c0_18, %c0_19], %23 {strides = array<i32>} : memref<18x18x128xbf16, #tpu.memory_space<vmem>>, vector<18x1x128xbf16>,
    %c0_20 = arith.constant 0 : index
    %c15 = arith.constant 15 : index
    %c0_21 = arith.constant 0 : index
    %25 = vector.load %arg9[%c0_20, %c15, %c0_21] : memref<18x18x128xbf16, #tpu.memory_space<vmem>>, vector<18x1x128xbf16>
    %c0_22 = arith.constant 0 : index
    %c17_23 = arith.constant 17 : index
    %c0_24 = arith.constant 0 : index
    %26 = vector.load %arg9[%c0_22, %c17_23, %c0_24] : memref<18x18x128xbf16, #tpu.memory_space<vmem>>, vector<18x1x128xbf16>
    tpu.vector_store %arg9[%c0_22, %c17_23, %c0_24], %25 {strides = array<i32>} : memref<18x18x128xbf16, #tpu.memory_space<vmem>>, vector<18x1x128xbf16>,
    %cst_25 = arith.constant 0.000000e+00 : f32
    %27 = vector.broadcast %cst_25 : f32 to vector<256x128xf32>
    %c0_26 = arith.constant 0 : index
    %c0_27 = arith.constant 0 : index
    %c0_28 = arith.constant 0 : index
    %28 = vector.load %arg9[%c0_26, %c0_27, %c0_28] : memref<18x18x128xbf16, #tpu.memory_space<vmem>>, vector<16x16x128xbf16>
    %29 = vector.shape_cast %28 : vector<16x16x128xbf16> to vector<256x128xbf16>
    %c0_29 = arith.constant 0 : index
    %c0_30 = arith.constant 0 : index
    %c0_31 = arith.constant 0 : index
    %30 = vector.load %arg5[%c0_29, %c0_30, %c0_31] : memref<9x128x128xbf16, #tpu.memory_space<vmem>>, vector<1x128x128xbf16>
    %31 = vector.shape_cast %30 : vector<1x128x128xbf16> to vector<128x128xbf16>
    %cst_32 = arith.constant dense<0.000000e+00> : vector<256x128xf32>
    %32 = tpu.matmul %29, %31, %cst_32 {dimension_numbers = #tpu.dot_dimension_numbers<[1], [0], [0], [1], [0, 0, 1, 1], [], []>} : vector<256x128xbf16>, vector<128x128xbf16>, vector<256x128xf32> -> vector<256x128xf32>
    %33 = arith.addf %27, %32 : vector<256x128xf32>
    %c0_33 = arith.constant 0 : index
    %c1_34 = arith.constant 1 : index
    %c0_35 = arith.constant 0 : index
    %34 = vector.load %arg9[%c0_33, %c1_34, %c0_35] : memref<18x18x128xbf16, #tpu.memory_space<vmem>>, vector<16x16x128xbf16>
    %35 = vector.shape_cast %34 : vector<16x16x128xbf16> to vector<256x128xbf16>
    %c1_36 = arith.constant 1 : index
    %c0_37 = arith.constant 0 : index
    %c0_38 = arith.constant 0 : index
    %36 = vector.load %arg5[%c1_36, %c0_37, %c0_38] : memref<9x128x128xbf16, #tpu.memory_space<vmem>>, vector<1x128x128xbf16>
    %37 = vector.shape_cast %36 : vector<1x128x128xbf16> to vector<128x128xbf16>
    %cst_39 = arith.constant dense<0.000000e+00> : vector<256x128xf32>
    %38 = tpu.matmul %35, %37, %cst_39 {dimension_numbers = #tpu.dot_dimension_numbers<[1], [0], [0], [1], [0, 0, 1, 1], [], []>} : vector<256x128xbf16>, vector<128x128xbf16>, vector<256x128xf32> -> vector<256x128xf32>
    %39 = arith.addf %33, %38 : vector<256x128xf32>
    %c0_40 = arith.constant 0 : index
    %c2_41 = arith.constant 2 : index
    %c0_42 = arith.constant 0 : index
    %40 = vector.load %arg9[%c0_40, %c2_41, %c0_42] : memref<18x18x128xbf16, #tpu.memory_space<vmem>>, vector<16x16x128xbf16>
    %41 = vector.shape_cast %40 : vector<16x16x128xbf16> to vector<256x128xbf16>
    %c2_43 = arith.constant 2 : index
    %c0_44 = arith.constant 0 : index
    %c0_45 = arith.constant 0 : index
    %42 = vector.load %arg5[%c2_43, %c0_44, %c0_45] : memref<9x128x128xbf16, #tpu.memory_space<vmem>>, vector<1x128x128xbf16>
    %43 = vector.shape_cast %42 : vector<1x128x128xbf16> to vector<128x128xbf16>
    %cst_46 = arith.constant dense<0.000000e+00> : vector<256x128xf32>
    %44 = tpu.matmul %41, %43, %cst_46 {dimension_numbers = #tpu.dot_dimension_numbers<[1], [0], [0], [1], [0, 0, 1, 1], [], []>} : vector<256x128xbf16>, vector<128x128xbf16>, vector<256x128xf32> -> vector<256x128xf32>
    %45 = arith.addf %39, %44 : vector<256x128xf32>
    %c1_47 = arith.constant 1 : index
    %c0_48 = arith.constant 0 : index
    %c0_49 = arith.constant 0 : index
    %46 = vector.load %arg9[%c1_47, %c0_48, %c0_49] : memref<18x18x128xbf16, #tpu.memory_space<vmem>>, vector<16x16x128xbf16>
    %47 = vector.shape_cast %46 : vector<16x16x128xbf16> to vector<256x128xbf16>
    %c3 = arith.constant 3 : index
    %c0_50 = arith.constant 0 : index
    %c0_51 = arith.constant 0 : index
    %48 = vector.load %arg5[%c3, %c0_50, %c0_51] : memref<9x128x128xbf16, #tpu.memory_space<vmem>>, vector<1x128x128xbf16>
    %49 = vector.shape_cast %48 : vector<1x128x128xbf16> to vector<128x128xbf16>
    %cst_52 = arith.constant dense<0.000000e+00> : vector<256x128xf32>
    %50 = tpu.matmul %47, %49, %cst_52 {dimension_numbers = #tpu.dot_dimension_numbers<[1], [0], [0], [1], [0, 0, 1, 1], [], []>} : vector<256x128xbf16>, vector<128x128xbf16>, vector<256x128xf32> -> vector<256x128xf32>
    %51 = arith.addf %45, %50 : vector<256x128xf32>
    %c1_53 = arith.constant 1 : index
    %c1_54 = arith.constant 1 : index
    %c0_55 = arith.constant 0 : index
    %52 = vector.load %arg9[%c1_53, %c1_54, %c0_55] : memref<18x18x128xbf16, #tpu.memory_space<vmem>>, vector<16x16x128xbf16>
    %53 = vector.shape_cast %52 : vector<16x16x128xbf16> to vector<256x128xbf16>
    %c4 = arith.constant 4 : index
    %c0_56 = arith.constant 0 : index
    %c0_57 = arith.constant 0 : index
    %54 = vector.load %arg5[%c4, %c0_56, %c0_57] : memref<9x128x128xbf16, #tpu.memory_space<vmem>>, vector<1x128x128xbf16>
    %55 = vector.shape_cast %54 : vector<1x128x128xbf16> to vector<128x128xbf16>
    %cst_58 = arith.constant dense<0.000000e+00> : vector<256x128xf32>
    %56 = tpu.matmul %53, %55, %cst_58 {dimension_numbers = #tpu.dot_dimension_numbers<[1], [0], [0], [1], [0, 0, 1, 1], [], []>} : vector<256x128xbf16>, vector<128x128xbf16>, vector<256x128xf32> -> vector<256x128xf32>
    %57 = arith.addf %51, %56 : vector<256x128xf32>
    %c1_59 = arith.constant 1 : index
    %c2_60 = arith.constant 2 : index
    %c0_61 = arith.constant 0 : index
    %58 = vector.load %arg9[%c1_59, %c2_60, %c0_61] : memref<18x18x128xbf16, #tpu.memory_space<vmem>>, vector<16x16x128xbf16>
    %59 = vector.shape_cast %58 : vector<16x16x128xbf16> to vector<256x128xbf16>
    %c5 = arith.constant 5 : index
    %c0_62 = arith.constant 0 : index
    %c0_63 = arith.constant 0 : index
    %60 = vector.load %arg5[%c5, %c0_62, %c0_63] : memref<9x128x128xbf16, #tpu.memory_space<vmem>>, vector<1x128x128xbf16>
    %61 = vector.shape_cast %60 : vector<1x128x128xbf16> to vector<128x128xbf16>
    %cst_64 = arith.constant dense<0.000000e+00> : vector<256x128xf32>
    %62 = tpu.matmul %59, %61, %cst_64 {dimension_numbers = #tpu.dot_dimension_numbers<[1], [0], [0], [1], [0, 0, 1, 1], [], []>} : vector<256x128xbf16>, vector<128x128xbf16>, vector<256x128xf32> -> vector<256x128xf32>
    %63 = arith.addf %57, %62 : vector<256x128xf32>
    %c2_65 = arith.constant 2 : index
    %c0_66 = arith.constant 0 : index
    %c0_67 = arith.constant 0 : index
    %64 = vector.load %arg9[%c2_65, %c0_66, %c0_67] : memref<18x18x128xbf16, #tpu.memory_space<vmem>>, vector<16x16x128xbf16>
    %65 = vector.shape_cast %64 : vector<16x16x128xbf16> to vector<256x128xbf16>
    %c6 = arith.constant 6 : index
    %c0_68 = arith.constant 0 : index
    %c0_69 = arith.constant 0 : index
    %66 = vector.load %arg5[%c6, %c0_68, %c0_69] : memref<9x128x128xbf16, #tpu.memory_space<vmem>>, vector<1x128x128xbf16>
    %67 = vector.shape_cast %66 : vector<1x128x128xbf16> to vector<128x128xbf16>
    %cst_70 = arith.constant dense<0.000000e+00> : vector<256x128xf32>
    %68 = tpu.matmul %65, %67, %cst_70 {dimension_numbers = #tpu.dot_dimension_numbers<[1], [0], [0], [1], [0, 0, 1, 1], [], []>} : vector<256x128xbf16>, vector<128x128xbf16>, vector<256x128xf32> -> vector<256x128xf32>
    %69 = arith.addf %63, %68 : vector<256x128xf32>
    %c2_71 = arith.constant 2 : index
    %c1_72 = arith.constant 1 : index
    %c0_73 = arith.constant 0 : index
    %70 = vector.load %arg9[%c2_71, %c1_72, %c0_73] : memref<18x18x128xbf16, #tpu.memory_space<vmem>>, vector<16x16x128xbf16>
    %71 = vector.shape_cast %70 : vector<16x16x128xbf16> to vector<256x128xbf16>
    %c7 = arith.constant 7 : index
    %c0_74 = arith.constant 0 : index
    %c0_75 = arith.constant 0 : index
    %72 = vector.load %arg5[%c7, %c0_74, %c0_75] : memref<9x128x128xbf16, #tpu.memory_space<vmem>>, vector<1x128x128xbf16>
    %73 = vector.shape_cast %72 : vector<1x128x128xbf16> to vector<128x128xbf16>
    %cst_76 = arith.constant dense<0.000000e+00> : vector<256x128xf32>
    %74 = tpu.matmul %71, %73, %cst_76 {dimension_numbers = #tpu.dot_dimension_numbers<[1], [0], [0], [1], [0, 0, 1, 1], [], []>} : vector<256x128xbf16>, vector<128x128xbf16>, vector<256x128xf32> -> vector<256x128xf32>
    %75 = arith.addf %69, %74 : vector<256x128xf32>
    %c2_77 = arith.constant 2 : index
    %c2_78 = arith.constant 2 : index
    %c0_79 = arith.constant 0 : index
    %76 = vector.load %arg9[%c2_77, %c2_78, %c0_79] : memref<18x18x128xbf16, #tpu.memory_space<vmem>>, vector<16x16x128xbf16>
    %77 = vector.shape_cast %76 : vector<16x16x128xbf16> to vector<256x128xbf16>
    %c8 = arith.constant 8 : index
    %c0_80 = arith.constant 0 : index
    %c0_81 = arith.constant 0 : index
    %78 = vector.load %arg5[%c8, %c0_80, %c0_81] : memref<9x128x128xbf16, #tpu.memory_space<vmem>>, vector<1x128x128xbf16>
    %79 = vector.shape_cast %78 : vector<1x128x128xbf16> to vector<128x128xbf16>
    %cst_82 = arith.constant dense<0.000000e+00> : vector<256x128xf32>
    %80 = tpu.matmul %77, %79, %cst_82 {dimension_numbers = #tpu.dot_dimension_numbers<[1], [0], [0], [1], [0, 0, 1, 1], [], []>} : vector<256x128xbf16>, vector<128x128xbf16>, vector<256x128xf32> -> vector<256x128xf32>
    %81 = arith.addf %75, %80 : vector<256x128xf32>
    %cst_83 = arith.constant dense<0.000000e+00> : vector<128xf32>
    %82 = vector.multi_reduction <add>, %81, %cst_83 [0] : vector<256x128xf32> to vector<128xf32>
    %83 = vector.shape_cast %82 : vector<128xf32> to vector<1x128xf32>
    %c0_84 = arith.constant 0 : index
    %c0_85 = arith.constant 0 : index
    %c0_86 = arith.constant 0 : index
    %84 = vector.load %arg7[%c0_84, %c0_85, %c0_86] : memref<1x1x128xf32, #tpu.memory_space<vmem>>, vector<1x1x128xf32>
    %85 = vector.shape_cast %84 : vector<1x1x128xf32> to vector<1x128xf32>
    %86 = vector.shape_cast %83 : vector<1x128xf32> to vector<1x1x128xf32>
    tpu.vector_store %arg7[%c0_84, %c0_85, %c0_86], %86 {strides = array<i32>} : memref<1x1x128xf32, #tpu.memory_space<vmem>>, vector<1x1x128xf32>,
    %87 = arith.mulf %81, %81 : vector<256x128xf32>
    %cst_87 = arith.constant dense<0.000000e+00> : vector<128xf32>
    %88 = vector.multi_reduction <add>, %87, %cst_87 [0] : vector<256x128xf32> to vector<128xf32>
    %89 = vector.shape_cast %88 : vector<128xf32> to vector<1x128xf32>
    %c0_88 = arith.constant 0 : index
    %c0_89 = arith.constant 0 : index
    %c0_90 = arith.constant 0 : index
    %90 = vector.load %arg8[%c0_88, %c0_89, %c0_90] : memref<1x1x128xf32, #tpu.memory_space<vmem>>, vector<1x1x128xf32>
    %91 = vector.shape_cast %90 : vector<1x1x128xf32> to vector<1x128xf32>
    %92 = vector.shape_cast %89 : vector<1x128xf32> to vector<1x1x128xf32>
    tpu.vector_store %arg8[%c0_88, %c0_89, %c0_90], %92 {strides = array<i32>} : memref<1x1x128xf32, #tpu.memory_space<vmem>>, vector<1x1x128xf32>,
    %93 = arith.truncf %81 : vector<256x128xf32> to vector<256x128xbf16>
    %94 = vector.shape_cast %93 : vector<256x128xbf16> to vector<16x16x128xbf16>
    %c0_91 = arith.constant 0 : index
    %c0_92 = arith.constant 0 : index
    %c0_93 = arith.constant 0 : index
    %c0_94 = arith.constant 0 : index
    %95 = vector.load %arg6[%c0_91, %c0_92, %c0_93, %c0_94] : memref<1x16x16x128xbf16, #tpu.memory_space<vmem>>, vector<1x16x16x128xbf16>
    %96 = vector.shape_cast %95 : vector<1x16x16x128xbf16> to vector<16x16x128xbf16>
    %97 = vector.shape_cast %94 : vector<16x16x128xbf16> to vector<1x16x16x128xbf16>
    tpu.vector_store %arg6[%c0_91, %c0_92, %c0_93, %c0_94], %97 {strides = array<i32>} : memref<1x16x16x128xbf16, #tpu.memory_space<vmem>>, vector<1x16x16x128xbf16>,
    return
  }
  func.func @transform_0(%arg0: i32) -> i32 {
    %c0_i32 = arith.constant 0 : i32
    %c0_i32_0 = arith.constant 0 : i32
    return %c0_i32 : i32
  }
  func.func @transform_1(%arg0: i32) -> (i32, i32) {
    %c0_i32 = arith.constant 0 : i32
    %c0_i32_0 = arith.constant 0 : i32
    %c0_i32_1 = arith.constant 0 : i32
    return %c0_i32, %c0_i32_0 : i32, i32
  }
  func.func @transform_2(%arg0: i32) -> (i32, i32) {
    %c0_i32 = arith.constant 0 : i32
    %c0_i32_0 = arith.constant 0 : i32
    %c0_i32_1 = arith.constant 0 : i32
    return %c0_i32, %c0_i32_0 : i32, i32
  }
  func.func @transform_3(%arg0: i32) -> (i32, i32, i32, i32) {
    %c0_i32 = arith.constant 0 : i32
    %c0_i32_0 = arith.constant 0 : i32
    %c0_i32_1 = arith.constant 0 : i32
    %c0_i32_2 = arith.constant 0 : i32
    return %arg0, %c0_i32, %c0_i32_0, %c0_i32_1 : i32, i32, i32, i32
  }
  func.func @transform_4(%arg0: i32) -> (i32, i32, i32) {
    %c0_i32 = arith.constant 0 : i32
    %c0_i32_0 = arith.constant 0 : i32
    %c0_i32_1 = arith.constant 0 : i32
    %c0_i32_2 = arith.constant 0 : i32
    return %c0_i32, %c0_i32_0, %c0_i32_1 : i32, i32, i32
  }
  func.func @transform_5(%arg0: i32) -> (i32, i32, i32, i32) {
    %c0_i32 = arith.constant 0 : i32
    %c0_i32_0 = arith.constant 0 : i32
    %c0_i32_1 = arith.constant 0 : i32
    %c0_i32_2 = arith.constant 0 : i32
    return %arg0, %c0_i32, %c0_i32_0, %c0_i32_1 : i32, i32, i32, i32
  }
  func.func @transform_6(%arg0: i32) -> (i32, i32, i32) {
    %c0_i32 = arith.constant 0 : i32
    %c0_i32_0 = arith.constant 0 : i32
    %c0_i32_1 = arith.constant 0 : i32
    return %arg0, %c0_i32, %c0_i32_0 : i32, i32, i32
  }
  func.func @transform_7(%arg0: i32) -> (i32, i32, i32) {
    %c0_i32 = arith.constant 0 : i32
    %c0_i32_0 = arith.constant 0 : i32
    %c0_i32_1 = arith.constant 0 : i32
    return %arg0, %c0_i32, %c0_i32_0 : i32, i32, i32
  }
}

</mosaic_0001>

<bundles_post_ra>
// kernel: convolution_forward.5
= control target key start
LH: loop header
LB: loop body
LE: loop exit
PB: predicated region body
PF: predicated region fallthrough
CT: control target
= control target key end

     0   :  { %s951_s17 = smov 0   ;;  %s1120_s0 = inlined_call_operand.<no memory space> [shape: f32[1], index: 0, kind: input, shape index: {}]   ;;  %s1121_s1 = inlined_call_operand.vmem [shape: f32[1,128], index: 1, kind: input, shape index: {}]   ;;  %s1122_s2 = inlined_call_operand.vmem [shape: f32[1,128], index: 2, kind: input, shape index: {}]   ;;  %s1123_s3 = inlined_call_operand.vmem [shape: bf16[2,16,16,128], index: 3, kind: input, shape index: {}]   ;;  %s1124_s4 = inlined_call_operand.vmem [shape: bf16[2,16,16,128], index: 4, kind: output, shape index: {}]  }
   0x1   :  { %9 = sst [smem:[#allocation2]] %s1120_s0 }
   0x2 LB: > { %s654_s18 = sadd.s32 4294967295, %s921_s17   ;;  %p658_p0 = scmp.ge.s32.totalorder %s921_s17, 1  ;;  %s921_s17 = sphi %s951_s17, %s15_s17  }
   0x3   : > { %p163_p1 = scmp.lt.s32.totalorder %s921_s17, 3 }
   0x5   : > { %p164_p2 = pnand %p658_p0, %p163_p1 }
   0x6   : > { %p189_p3 = scmp.lt.s32.totalorder (!%p164_p2), %s654_s18, 1  ;;  %s199_s19 = sld [smem:[#allocation2]] (!%p164_p2)  ;;  %v972_v0 = vld [vmem:[%s1121_s1] ss:$0 sm:$0xff] (!%p164_p2) }
   0x7   : > { %167 = sbr.rel (%p164_p2) target bundleno = 77 (0x4d), region = 36  ;;  %v983_v10 = vld [vmem:[%s1122_s2] ss:$0 sm:$0xff] (!%p164_p2) }
   0xc   : > { %v975_v2 = vstv (!%p164_p2), %s199_s19 }
   0xe   : > { %s1126_s18 = smov (!%p189_p3, %s654_s18), 1 }
   0xf   : > { %s699_s0 = sshll.u32 %s1126_s18, 7 }
  0x10   : > { %s967_s22 = scalar_lea.vmem %s1123_s3, %s699_s0  ;;  %s1010_s29 = scalar_lea.vmem %s1124_s4, %s699_s0 }
  0x11   : > { %v734_v1 = vld [vmem:[%s967_s22] sm:$0xff]   ;;  %v877_v3 = vld [vmem:[%s967_s22 + $0x8] sm:$0xff]   ;;  %v878_v4 = vld [vmem:[%s967_s22 + $0x10] sm:$0xff]  }
  0x12   : > { %v735_v5 = vunpack.c.l.bf16 %v734_v1  ;;  %v736_v6 = vunpack.c.h.bf16 %v734_v1  ;;  %v739_v7 = vunpack.c.l.bf16 %v877_v3  ;;  %v740_v8 = vunpack.c.h.bf16 %v877_v3  ;;  %v879_v9 = vld [vmem:[%s967_s22 + $0x18] sm:$0xff]   ;;  %v880_v37 = vld [vmem:[%s967_s22 + $0x20] sm:$0xff]   ;;  %v881_v42 = vld [vmem:[%s967_s22 + $0x28] sm:$0xff]  }
  0x13   : > { %v743_v11 = vunpack.c.l.bf16 %v878_v4  ;;  %v744_v12 = vunpack.c.h.bf16 %v878_v4  ;;  %v747_v13 = vunpack.c.l.bf16 %v879_v9  ;;  %v748_v14 = vunpack.c.h.bf16 %v879_v9  ;;  %v882_v53 = vld [vmem:[%s967_s22 + $0x30] sm:$0xff]   ;;  %v883_v54 = vld [vmem:[%s967_s22 + $0x38] sm:$0xff]  }
  0x14   : > { %v271_v15 = vsub.f32 %v735_v5, %v972_v0  ;;  %v272_v16 = vsub.f32 %v736_v6, %v972_v0  ;;  %v273_v17 = vsub.f32 %v739_v7, %v972_v0  ;;  %v274_v18 = vsub.f32 %v740_v8, %v972_v0 }
  0x15   : > { %v275_v19 = vsub.f32 %v743_v11, %v972_v0  ;;  %v276_v20 = vsub.f32 %v744_v12, %v972_v0  ;;  %v277_v21 = vsub.f32 %v747_v13, %v972_v0  ;;  %v278_v22 = vsub.f32 %v748_v14, %v972_v0 }
  0x16   : > { %v310_v23 = vmul.f32 %v983_v10, %v271_v15  ;;  %v311_v24 = vmul.f32 %v983_v10, %v272_v16  ;;  %v312_v25 = vmul.f32 %v983_v10, %v273_v17  ;;  %v313_v26 = vmul.f32 %v983_v10, %v274_v18 }
  0x17   : > { %v314_v27 = vmul.f32 %v983_v10, %v275_v19  ;;  %v315_v28 = vmul.f32 %v983_v10, %v276_v20  ;;  %v316_v29 = vmul.f32 %v983_v10, %v277_v21  ;;  %v317_v30 = vmul.f32 %v983_v10, %v278_v22  ;;  %v884_v22 = vld [vmem:[%s967_s22 + $0x40] sm:$0xff]  }
  0x18   : > { %vm342_vm0 = vcmp.gt.f32.partialorder %v310_v23, 0.0  ;;  %vm343_vm1 = vcmp.gt.f32.partialorder %v311_v24, 0.0  ;;  %v375_v31 = vmul.f32 %v975_v2, %v310_v23  ;;  %v376_v32 = vmul.f32 %v975_v2, %v311_v24 }
  0x19   : > { %vm344_vm2 = vcmp.gt.f32.partialorder %v312_v25, 0.0  ;;  %vm345_vm3 = vcmp.gt.f32.partialorder %v313_v26, 0.0  ;;  %v377_v33 = vmul.f32 %v975_v2, %v312_v25  ;;  %v378_v34 = vmul.f32 %v975_v2, %v313_v26 }
  0x1a   : > { %v407_v35 = vsel %vm342_vm0, %v310_v23, %v375_v31  ;;  %v408_v36 = vsel %vm343_vm1, %v311_v24, %v376_v32  ;;  %vm346_vm4 = vcmp.gt.f32.partialorder %v314_v27, 0.0  ;;  %vm347_vm5 = vcmp.gt.f32.partialorder %v315_v28, 0.0 }
  0x1b   : > { %v800_v38 = vpack.c.bf16 %v408_v36, %v407_v35  ;;  %v409_v39 = vsel %vm344_vm2, %v312_v25, %v377_v33  ;;  %v410_v40 = vsel %vm345_vm3, %v313_v26, %v378_v34  ;;  %v379_v41 = vmul.f32 %v975_v2, %v314_v27  ;;  %v885_v26 = vld [vmem:[%s967_s22 + $0x48] sm:$0xff]  }
  0x1c   : > { %v805_v43 = vpack.c.bf16 %v410_v40, %v409_v39  ;;  %v380_v44 = vmul.f32 %v975_v2, %v315_v28  ;;  %vm348_vm6 = vcmp.gt.f32.partialorder %v316_v29, 0.0  ;;  %vm349_vm7 = vcmp.gt.f32.partialorder %v317_v30, 0.0 }
  0x1d   : > { %801 = vst [vmem:[%s1010_s29] sm:$0xff] %v800_v38   ;;  %v411_v45 = vsel %vm346_vm4, %v314_v27, %v379_v41  ;;  %v381_v46 = vmul.f32 %v975_v2, %v316_v29  ;;  %v382_v47 = vmul.f32 %v975_v2, %v317_v30  ;;  %v751_v48 = vunpack.c.l.bf16 %v880_v37  ;;  %v886_v38 = vld [vmem:[%s967_s22 + $0x50] sm:$0xff]  }
  0x1e   : > { %892 = vst [vmem:[%s1010_s29 + $0x8] sm:$0xff] %v805_v43   ;;  %v412_v49 = vsel %vm347_vm5, %v315_v28, %v380_v44  ;;  %v752_v50 = vunpack.c.h.bf16 %v880_v37  ;;  %v755_v51 = vunpack.c.l.bf16 %v881_v42  ;;  %v756_v52 = vunpack.c.h.bf16 %v881_v42 }
  0x1f   : > { %v810_v55 = vpack.c.bf16 %v412_v49, %v411_v45  ;;  %v413_v56 = vsel %vm348_vm6, %v316_v29, %v381_v46  ;;  %v414_v57 = vsel %vm349_vm7, %v317_v30, %v382_v47  ;;  %v279_v58 = vsub.f32 %v751_v48, %v972_v0 }
  0x20   : > { %v815_v59 = vpack.c.bf16 %v414_v57, %v413_v56  ;;  %v280_v60 = vsub.f32 %v752_v50, %v972_v0  ;;  %v281_v61 = vsub.f32 %v755_v51, %v972_v0  ;;  %v282_v62 = vsub.f32 %v756_v52, %v972_v0 }
  0x21   : > { %893 = vst [vmem:[%s1010_s29 + $0x10] sm:$0xff] %v810_v55   ;;  %v318_v63 = vmul.f32 %v983_v10, %v279_v58  ;;  %v759_v1 = vunpack.c.l.bf16 %v882_v53  ;;  %v760_v3 = vunpack.c.h.bf16 %v882_v53  ;;  %v763_v4 = vunpack.c.l.bf16 %v883_v54 }
  0x22   : > { %894 = vst [vmem:[%s1010_s29 + $0x18] sm:$0xff] %v815_v59   ;;  %v319_v5 = vmul.f32 %v983_v10, %v280_v60  ;;  %v320_v6 = vmul.f32 %v983_v10, %v281_v61  ;;  %v321_v7 = vmul.f32 %v983_v10, %v282_v62  ;;  %v764_v8 = vunpack.c.h.bf16 %v883_v54  ;;  %v887_v59 = vld [vmem:[%s967_s22 + $0x58] sm:$0xff]  }
  0x23   : > { %vm350_vm8 = vcmp.gt.f32.partialorder %v318_v63, 0.0  ;;  %v383_v9 = vmul.f32 %v975_v2, %v318_v63  ;;  %v283_v11 = vsub.f32 %v759_v1, %v972_v0  ;;  %v284_v12 = vsub.f32 %v760_v3, %v972_v0 }
  0x24   : > { %vm351_vm9 = vcmp.gt.f32.partialorder %v319_v5, 0.0  ;;  %v384_v13 = vmul.f32 %v975_v2, %v319_v5  ;;  %vm352_vm10 = vcmp.gt.f32.partialorder %v320_v6, 0.0  ;;  %vm353_vm11 = vcmp.gt.f32.partialorder %v321_v7, 0.0 }
  0x25   : > { %v415_v14 = vsel %vm350_vm8, %v318_v63, %v383_v9  ;;  %v385_v15 = vmul.f32 %v975_v2, %v320_v6  ;;  %v386_v16 = vmul.f32 %v975_v2, %v321_v7  ;;  %v322_v17 = vmul.f32 %v983_v10, %v283_v11  ;;  %v889_v9 = vld [vmem:[%s967_s22 + $0x68] sm:$0xff]  }
  0x26   : > { %v416_v18 = vsel %vm351_vm9, %v319_v5, %v384_v13  ;;  %v323_v19 = vmul.f32 %v983_v10, %v284_v12  ;;  %v285_v20 = vsub.f32 %v763_v4, %v972_v0  ;;  %v286_v21 = vsub.f32 %v764_v8, %v972_v0  ;;  %v888_v4 = vld [vmem:[%s967_s22 + $0x60] sm:$0xff]  }
  0x27   : > { %v820_v23 = vpack.c.bf16 %v416_v18, %v415_v14  ;;  %v417_v24 = vsel %vm352_vm10, %v320_v6, %v385_v15  ;;  %v418_v25 = vsel %vm353_vm11, %v321_v7, %v386_v16  ;;  %vm354_vm12 = vcmp.gt.f32.partialorder %v322_v17, 0.0 }
  0x28   : > { %v825_v27 = vpack.c.bf16 %v418_v25, %v417_v24  ;;  %vm355_vm13 = vcmp.gt.f32.partialorder %v323_v19, 0.0  ;;  %v387_v28 = vmul.f32 %v975_v2, %v322_v17  ;;  %v388_v29 = vmul.f32 %v975_v2, %v323_v19  ;;  %v890_v25 = vld [vmem:[%s967_s22 + $0x70] sm:$0xff]  }
  0x29   : > { %895 = vst [vmem:[%s1010_s29 + $0x20] sm:$0xff] %v820_v23   ;;  %v324_v30 = vmul.f32 %v983_v10, %v285_v20  ;;  %v325_v31 = vmul.f32 %v983_v10, %v286_v21  ;;  %v767_v32 = vunpack.c.l.bf16 %v884_v22  ;;  %v768_v33 = vunpack.c.h.bf16 %v884_v22 }
  0x2a   : > { %896 = vst [vmem:[%s1010_s29 + $0x28] sm:$0xff] %v825_v27   ;;  %v419_v34 = vsel %vm354_vm12, %v322_v17, %v387_v28  ;;  %v420_v35 = vsel %vm355_vm13, %v323_v19, %v388_v29  ;;  %v771_v36 = vunpack.c.l.bf16 %v885_v26  ;;  %v772_v37 = vunpack.c.h.bf16 %v885_v26 }
  0x2b   : > { %v830_v39 = vpack.c.bf16 %v420_v35, %v419_v34  ;;  %vm356_vm14 = vcmp.gt.f32.partialorder %v324_v30, 0.0  ;;  %vm357_vm15 = vcmp.gt.f32.partialorder %v325_v31, 0.0  ;;  %v389_v40 = vmul.f32 %v975_v2, %v324_v30 }
  0x2c   : > { %v390_v41 = vmul.f32 %v975_v2, %v325_v31  ;;  %v287_v42 = vsub.f32 %v767_v32, %v972_v0  ;;  %v288_v43 = vsub.f32 %v768_v33, %v972_v0  ;;  %v289_v44 = vsub.f32 %v771_v36, %v972_v0 }
  0x2d   : > { %897 = vst [vmem:[%s1010_s29 + $0x30] sm:$0xff] %v830_v39   ;;  %v421_v45 = vsel %vm356_vm14, %v324_v30, %v389_v40  ;;  %v290_v46 = vsub.f32 %v772_v37, %v972_v0  ;;  %v775_v47 = vunpack.c.l.bf16 %v886_v38  ;;  %v776_v48 = vunpack.c.h.bf16 %v886_v38 }
  0x2e   : > { %v422_v49 = vsel %vm357_vm15, %v325_v31, %v390_v41  ;;  %v326_v50 = vmul.f32 %v983_v10, %v287_v42  ;;  %v327_v51 = vmul.f32 %v983_v10, %v288_v43  ;;  %v328_v52 = vmul.f32 %v983_v10, %v289_v44  ;;  %v891_v44 = vld [vmem:[%s967_s22 + $0x78] sm:$0xff]  }
  0x2f   : > { %v835_v53 = vpack.c.bf16 %v422_v49, %v421_v45  ;;  %v329_v54 = vmul.f32 %v983_v10, %v290_v46  ;;  %v291_v55 = vsub.f32 %v775_v47, %v972_v0  ;;  %v292_v56 = vsub.f32 %v776_v48, %v972_v0 }
  0x30   : > { %vm358_vm0 = vcmp.gt.f32.partialorder %v326_v50, 0.0  ;;  %vm359_vm1 = vcmp.gt.f32.partialorder %v327_v51, 0.0  ;;  %v391_v57 = vmul.f32 %v975_v2, %v326_v50  ;;  %v392_v58 = vmul.f32 %v975_v2, %v327_v51 }
  0x31   : > { %898 = vst [vmem:[%s1010_s29 + $0x38] sm:$0xff] %v835_v53   ;;  %vm360_vm2 = vcmp.gt.f32.partialorder %v328_v52, 0.0  ;;  %vm361_vm3 = vcmp.gt.f32.partialorder %v329_v54, 0.0  ;;  %v393_v60 = vmul.f32 %v975_v2, %v328_v52  ;;  %v394_v61 = vmul.f32 %v975_v2, %v329_v54 }
  0x32   : > { %v423_v62 = vsel %vm358_vm0, %v326_v50, %v391_v57  ;;  %v424_v63 = vsel %vm359_vm1, %v327_v51, %v392_v58  ;;  %v330_v1 = vmul.f32 %v983_v10, %v291_v55  ;;  %v331_v3 = vmul.f32 %v983_v10, %v292_v56 }
  0x33   : > { %v840_v5 = vpack.c.bf16 %v424_v63, %v423_v62  ;;  %v425_v6 = vsel %vm360_vm2, %v328_v52, %v393_v60  ;;  %v426_v7 = vsel %vm361_vm3, %v329_v54, %v394_v61  ;;  %v779_v8 = vunpack.c.l.bf16 %v887_v59 }
  0x34   : > { %v845_v11 = vpack.c.bf16 %v426_v7, %v425_v6  ;;  %vm362_vm4 = vcmp.gt.f32.partialorder %v330_v1, 0.0  ;;  %vm363_vm5 = vcmp.gt.f32.partialorder %v331_v3, 0.0  ;;  %v395_v12 = vmul.f32 %v975_v2, %v330_v1 }
  0x35   : > { %899 = vst [vmem:[%s1010_s29 + $0x40] sm:$0xff] %v840_v5   ;;  %v396_v13 = vmul.f32 %v975_v2, %v331_v3  ;;  %v780_v14 = vunpack.c.h.bf16 %v887_v59  ;;  %v293_v15 = vsub.f32 %v779_v8, %v972_v0  ;;  %v783_v16 = vunpack.c.l.bf16 %v888_v4 }
  0x36   : > { %900 = vst [vmem:[%s1010_s29 + $0x48] sm:$0xff] %v845_v11   ;;  %v427_v17 = vsel %vm362_vm4, %v330_v1, %v395_v12  ;;  %v784_v18 = vunpack.c.h.bf16 %v888_v4  ;;  %v787_v19 = vunpack.c.l.bf16 %v889_v9  ;;  %v788_v20 = vunpack.c.h.bf16 %v889_v9 }
  0x37   : > { %v428_v21 = vsel %vm363_vm5, %v331_v3, %v396_v13  ;;  %v294_v22 = vsub.f32 %v780_v14, %v972_v0  ;;  %v332_v23 = vmul.f32 %v983_v10, %v293_v15  ;;  %v295_v24 = vsub.f32 %v783_v16, %v972_v0 }
  0x38   : > { %v850_v26 = vpack.c.bf16 %v428_v21, %v427_v17  ;;  %v296_v27 = vsub.f32 %v784_v18, %v972_v0  ;;  %v297_v28 = vsub.f32 %v787_v19, %v972_v0  ;;  %v298_v29 = vsub.f32 %v788_v20, %v972_v0 }
  0x39   : > { %v333_v30 = vmul.f32 %v983_v10, %v294_v22  ;;  %vm364_vm6 = vcmp.gt.f32.partialorder %v332_v23, 0.0  ;;  %v397_v31 = vmul.f32 %v975_v2, %v332_v23  ;;  %v334_v32 = vmul.f32 %v983_v10, %v295_v24 }
  0x3a   : > { %901 = vst [vmem:[%s1010_s29 + $0x50] sm:$0xff] %v850_v26   ;;  %v335_v33 = vmul.f32 %v983_v10, %v296_v27  ;;  %v336_v34 = vmul.f32 %v983_v10, %v297_v28  ;;  %v337_v35 = vmul.f32 %v983_v10, %v298_v29  ;;  %v791_v36 = vunpack.c.l.bf16 %v890_v25 }
  0x3b   : > { %vm365_vm7 = vcmp.gt.f32.partialorder %v333_v30, 0.0  ;;  %v398_v37 = vmul.f32 %v975_v2, %v333_v30  ;;  %v429_v38 = vsel %vm364_vm6, %v332_v23, %v397_v31  ;;  %vm366_vm8 = vcmp.gt.f32.partialorder %v334_v32, 0.0 }
  0x3c   : > { %vm367_vm9 = vcmp.gt.f32.partialorder %v335_v33, 0.0  ;;  %v399_v39 = vmul.f32 %v975_v2, %v334_v32  ;;  %v400_v40 = vmul.f32 %v975_v2, %v335_v33  ;;  %vm368_vm10 = vcmp.gt.f32.partialorder %v336_v34, 0.0 }
  0x3d   : > { %v430_v41 = vsel %vm365_vm7, %v333_v30, %v398_v37  ;;  %vm369_vm11 = vcmp.gt.f32.partialorder %v337_v35, 0.0  ;;  %v401_v42 = vmul.f32 %v975_v2, %v336_v34  ;;  %v402_v43 = vmul.f32 %v975_v2, %v337_v35 }
  0x3e   : > { %v855_v45 = vpack.c.bf16 %v430_v41, %v429_v38  ;;  %v431_v46 = vsel %vm366_vm8, %v334_v32, %v399_v39  ;;  %v432_v47 = vsel %vm367_vm9, %v335_v33, %v400_v40  ;;  %v792_v48 = vunpack.c.h.bf16 %v890_v25 }
  0x3f   : > { %v860_v49 = vpack.c.bf16 %v432_v47, %v431_v46  ;;  %v433_v50 = vsel %vm368_vm10, %v336_v34, %v401_v42  ;;  %v434_v51 = vsel %vm369_vm11, %v337_v35, %v402_v43  ;;  %v299_v52 = vsub.f32 %v791_v36, %v972_v0 }
  0x40   : > { %902 = vst [vmem:[%s1010_s29 + $0x58] sm:$0xff] %v855_v45   ;;  %v865_v53 = vpack.c.bf16 %v434_v51, %v433_v50  ;;  %v300_v54 = vsub.f32 %v792_v48, %v972_v0  ;;  %v795_v55 = vunpack.c.l.bf16 %v891_v44  ;;  %v796_v56 = vunpack.c.h.bf16 %v891_v44 }
  0x41   : > { %903 = vst [vmem:[%s1010_s29 + $0x60] sm:$0xff] %v860_v49   ;;  %v338_v57 = vmul.f32 %v983_v10, %v299_v52 }
  0x42   : > { %904 = vst [vmem:[%s1010_s29 + $0x68] sm:$0xff] %v865_v53   ;;  %v339_v58 = vmul.f32 %v983_v10, %v300_v54  ;;  %v301_v59 = vsub.f32 %v795_v55, %v972_v0  ;;  %v302_v60 = vsub.f32 %v796_v56, %v972_v0 }
  0x43   : > { %vm370_vm12 = vcmp.gt.f32.partialorder %v338_v57, 0.0  ;;  %v403_v61 = vmul.f32 %v975_v2, %v338_v57 }
  0x44   : > { %vm371_vm13 = vcmp.gt.f32.partialorder %v339_v58, 0.0  ;;  %v404_v62 = vmul.f32 %v975_v2, %v339_v58  ;;  %v340_v63 = vmul.f32 %v983_v10, %v301_v59  ;;  %v341_v1 = vmul.f32 %v983_v10, %v302_v60 }
  0x45   : > { %v435_v3 = vsel %vm370_vm12, %v338_v57, %v403_v61 }
  0x46   : > { %v436_v4 = vsel %vm371_vm13, %v339_v58, %v404_v62  ;;  %vm372_vm14 = vcmp.gt.f32.partialorder %v340_v63, 0.0  ;;  %vm373_vm15 = vcmp.gt.f32.partialorder %v341_v1, 0.0  ;;  %v405_v5 = vmul.f32 %v975_v2, %v340_v63 }
  0x47   : > { %v870_v6 = vpack.c.bf16 %v436_v4, %v435_v3  ;;  %v406_v0 = vmul.f32 %v975_v2, %v341_v1 }
  0x48   : > { %v437_v7 = vsel %vm372_vm14, %v340_v63, %v405_v5 }
  0x49   : > { %905 = vst [vmem:[%s1010_s29 + $0x70] sm:$0xff] %v870_v6   ;;  %v438_v8 = vsel %vm373_vm15, %v341_v1, %v406_v0 }
  0x4a   : > { %v875_v9 = vpack.c.bf16 %v438_v8, %v437_v7 }
  0x4c   : > { %906 = vst [vmem:[%s1010_s29 + $0x78] sm:$0xff] %v875_v9  }
  0x4d PF: > { %s15_s17 = sadd.s32 1, %s921_s17  }
  0x4e   : > { %p12_p4 = scmp.ge.s32.totalorder %s15_s17, 4  }
  0x50   :  { %14 = sbr.rel (!%p12_p4) target bundleno = 2 (0x2), region = 66 }

// kernel: convolution_forward.3
= control target key start
LH: loop header
LB: loop body
LE: loop exit
PB: predicated region body
PF: predicated region fallthrough
CT: control target
= control target key end

     0   :  { %s8489_s26 = smov 0   ;;  %s10692_s0 = inlined_call_operand.<no memory space> [shape: f32[1], index: 0, kind: input, shape index: {}]   ;;  %s10693_s1 = inlined_call_operand.vmem [shape: f32[1,128], index: 1, kind: input, shape index: {}]   ;;  %s10694_s2 = inlined_call_operand.vmem [shape: f32[1,128], index: 2, kind: input, shape index: {}]   ;;  %s10695_s3 = inlined_call_operand.vmem [shape: bf16[2,16,16,128], index: 3, kind: input, shape index: {}]   ;;  %s10696_s4 = inlined_call_operand.vmem [shape: bf16[9,128,128], index: 4, kind: input, shape index: {}]   ;;  %s10697_s5 = inlined_call_operand.vmem [shape: bf16[2,16,16,128], index: 5, kind: output, shape index: {0}]   ;;  %s10698_s6 = inlined_call_operand.vmem [shape: f32[2,1,128], index: 6, kind: output, shape index: {1}]   ;;  %s10699_s7 = inlined_call_operand.vmem [shape: f32[2,1,128], index: 7, kind: output, shape index: {2}]  }
   0x1   :  { %13 = sst [smem:[#allocation3]] %s10692_s0 }
   0x2 LB: > { %s6560_s27 = sadd.s32 4294967295, %s8444_s26   ;;  %p6564_p0 = scmp.ge.s32.totalorder %s8444_s26, 1  ;;  %s8444_s26 = sphi %s8489_s26, %s19_s26  }
   0x3   : > { %p243_p1 = scmp.lt.s32.totalorder %s8444_s26, 3 }
   0x5   : > { %p244_p2 = pnand %p6564_p0, %p243_p1 }
   0x7   : > { %247 = sbr.rel (%p244_p2) target bundleno = 751 (0x2ef), region = 40 }
   0xe   : > { %v8233_v0 = vld [vmem:[%s10696_s4 + $0x40] sm:$0xff]   ;;  %v8235_v2 = vld [vmem:[%s10696_s4 + $0x48] sm:$0xff]   ;;  %p281_p3 = scmp.lt.s32.totalorder %s6560_s27, 1  ;;  %v8237_v4 = vld [vmem:[%s10696_s4 + $0x50] sm:$0xff]   ;;  %s298_s8 = sld [smem:[#allocation3]]  ;;  %vm958_vm0 = vcmask 1043456  }
   0xf   : > { %v8234_v1 = vld [vmem:[%s10696_s4 + $0x100] sm:$0xff]   ;;  %7521 = vmatprep.subr.bf16.mxu1 %v8233_v0  ;;  %v8236_v3 = vld [vmem:[%s10696_s4 + $0x108] sm:$0xff]   ;;  %v8238_v5 = vld [vmem:[%s10696_s4 + $0x110] sm:$0xff]   ;;  %vm634_vm1 = vsmask.f32 256  ;;  %vm965_vm6 = vcmask 1040384  }
  0x10   : > { %7713 = vmatprep.subr.bf16.mxu0 %v8234_v1  ;;  %7522 = vmatpush3.bf16.msra.mxu1 %v8233_v0  ;;  %s10807_s27 = smov (!%p281_p3, %s6560_s27), 1  ;;  %v8239_v6 = vld [vmem:[%s10696_s4 + $0x58] sm:$0xff]   ;;  %v8241_v8 = vld [vmem:[%s10696_s4 + $0x60] sm:$0xff]   ;;  %v8243_v10 = vld [vmem:[%s10696_s4 + $0x68] sm:$0xff]   ;;  %vm635_vm4 = vsmask.f32 4368 }
  0x11   : > { %7714 = vmatpush3.bf16.msra.mxu0 %v8234_v1  ;;  %7523 = vmatprep.subr.bf16.mxu1 %v8235_v2  ;;  %v8240_v7 = vld [vmem:[%s10696_s4 + $0x118] sm:$0xff]   ;;  %s7065_s20 = sshll.u32 %s10807_s27, 7  ;;  %v8242_v9 = vld [vmem:[%s10696_s4 + $0x120] sm:$0xff]   ;;  %v8244_v13 = vld [vmem:[%s10696_s4 + $0x128] sm:$0xff]   ;;  %vm959_vm5 = vsmask.f32 7938  ;;  %s296_s30 = scalar_lea.vmem %s10699_s7, %s10807_s27 }
  0x12   : > { %7715 = vmatprep.subr.bf16.mxu0 %v8236_v3  ;;  %s8535_s29 = scalar_lea.vmem %s10695_s3, %s7065_s20  ;;  %v8544_v12 = vld [vmem:[%s10693_s1] ss:$0 sm:$0xff]  ;;  %v8245_v19 = vld [vmem:[%s10696_s4 + $0x70] sm:$0xff]   ;;  %v8247_v27 = vld [vmem:[%s10696_s4 + $0x78] sm:$0xff]   ;;  %vm1443_vm15 = vsmask.f32 3328  ;;  %s10659_s24 = scalar_lea.vmem %s10697_s5, %s7065_s20 }
  0x13   : > { %v7275_v11 = vld [vmem:[%s8535_s29 + $0x8] sm:$0xff]   ;;  %v8552_v16 = vld [vmem:[%s10694_s2] ss:$0 sm:$0xff]  ;;  %v8246_v21 = vld [vmem:[%s10696_s4 + $0x130] sm:$0xff]  }
  0x14   : > { %7524 = vmatpush3.bf16.msra.mxu1 %v8235_v2  ;;  %v7137_v14 = vunpack.c.l.bf16 %v7275_v11  ;;  %v7138_v15 = vunpack.c.h.bf16 %v7275_v11  ;;  %v7132_v20 = vld [vmem:[%s8535_s29] sm:$0xff]   ;;  %v8565_v26 = vstv %s298_s8  ;;  %v8248_v28 = vld [vmem:[%s10696_s4 + $0x138] sm:$0xff]   ;;  %v7276_v39 = vld [vmem:[%s8535_s29 + $0x10] sm:$0xff]  }
  0x15   : > { %7716 = vmatpush3.bf16.msra.mxu0 %v8236_v3  ;;  %7525 = vmatprep.subr.bf16.mxu1 %v8237_v4  ;;  %v7133_v24 = vunpack.c.l.bf16 %v7132_v20  ;;  %v7134_v25 = vunpack.c.h.bf16 %v7132_v20  ;;  %v7141_v40 = vunpack.c.l.bf16 %v7276_v39  ;;  %v7142_v41 = vunpack.c.h.bf16 %v7276_v39  ;;  %vm8582_vm7 = vmor %vm634_vm1, %vm635_vm4  ;;  %v8589_v47 = vld [vmem:[%s10696_s4] sm:$0xff]   ;;  %v7277_v48 = vld [vmem:[%s8535_s29 + $0x18] sm:$0xff]  }
  0x16   : > { %7717 = vmatprep.subr.bf16.mxu0 %v8238_v5  ;;  %v372_v17 = vsub.f32 %v7137_v14, %v8544_v12  ;;  %v373_v18 = vsub.f32 %v7138_v15, %v8544_v12  ;;  %vm8594_vm8 = vmand %vm958_vm0, %vm959_vm5  ;;  %v1075_v50 = vld [vmem:[#allocation2] sm:$0xf]  ;;  %v1079_v51 = vld [vmem:[#allocation2 + $0x8] sm:$0x1]  ;;  %v7145_v63 = vunpack.c.l.bf16 %v7277_v48  ;;  %v7146_v0 = vunpack.c.h.bf16 %v7277_v48 }
  0x17   : > { %v370_v31 = vsub.f32 %v7133_v24, %v8544_v12  ;;  %v371_v32 = vsub.f32 %v7134_v25, %v8544_v12  ;;  %v8603_v54 = vld [vmem:[%s10696_s4 + $0x140] sm:$0xff]   ;;  %vm8607_vm11 = vmand %vm965_vm6, %vm634_vm1  ;;  %v374_v58 = vsub.f32 %v7141_v40, %v8544_v12  ;;  %v375_v59 = vsub.f32 %v7142_v41, %v8544_v12  ;;  %v970_v62 = vld [vmem:[#allocation2 + $0x18] sm:$0xf] }
  0x18   : > { %7526 = vmatpush3.bf16.msra.mxu1 %v8237_v4  ;;  %v411_v22 = vmul.f32 %v8552_v16, %v372_v17  ;;  %v412_v23 = vmul.f32 %v8552_v16, %v373_v18  ;;  %v7278_v15 = vld [vmem:[%s8535_s29 + $0x20] sm:$0xff]   ;;  %v7279_v40 = vld [vmem:[%s8535_s29 + $0x28] sm:$0xff]   ;;  %vm8638_vm14 = vmand %vm965_vm6, %vm959_vm5  ;;  %vm1444_vm0 = vsmask.f32 7440 }
  0x19   : > { %7718 = vmatpush3.bf16.msra.mxu0 %v8238_v5  ;;  %7527 = vmatprep.subr.bf16.mxu1 %v8239_v6  ;;  %v409_v37 = vmul.f32 %v8552_v16, %v370_v31  ;;  %v410_v38 = vmul.f32 %v8552_v16, %v371_v32  ;;  %v377_v31 = vsub.f32 %v7146_v0, %v8544_v12  ;;  %v7149_v32 = vunpack.c.l.bf16 %v7278_v15  ;;  %vm8735_vm1 = vmor %vm1443_vm15, %vm1444_vm0  ;;  %v1083_v42 = vld [vmem:[#allocation2 + $0xcc] sm:$0xf] }
  0x1a   : > { %7719 = vmatprep.subr.bf16.mxu0 %v8240_v7  ;;  %vm443_vm2 = vcmp.gt.f32.partialorder %v411_v22, 0.0  ;;  %vm444_vm3 = vcmp.gt.f32.partialorder %v412_v23, 0.0  ;;  %v476_v29 = vmul.f32 %v8565_v26, %v411_v22  ;;  %v477_v30 = vmul.f32 %v8565_v26, %v412_v23 }
  0x1b   : > { %vm441_vm9 = vcmp.gt.f32.partialorder %v409_v37, 0.0  ;;  %vm442_vm10 = vcmp.gt.f32.partialorder %v410_v38, 0.0  ;;  %v474_v52 = vmul.f32 %v8565_v26, %v409_v37  ;;  %v475_v53 = vmul.f32 %v8565_v26, %v410_v38 }
  0x1c   : > { %7528 = vmatpush3.bf16.msra.mxu1 %v8239_v6  ;;  %v508_v33 = vsel %vm443_vm2, %v411_v22, %v476_v29  ;;  %v509_v34 = vsel %vm444_vm3, %v412_v23, %v477_v30  ;;  %v967_v29 = vld [vmem:[#allocation2 + $0x14] sm:$0x1]  ;;  %vm2474_vm15 = vcmask 1046532  }
  0x1d   : > { %7720 = vmatpush3.bf16.msra.mxu0 %v8240_v7  ;;  %7529 = vmatprep.subr.bf16.mxu1 %v8241_v8  ;;  %v7069_v35 = vpack.c.bf16 %v508_v33, %v508_v33  ;;  %v7070_v36 = vpack.c.bf16 %v509_v34, %v509_v34  ;;  %v506_v60 = vsel %vm441_vm9, %v409_v37, %v474_v52  ;;  %v974_v7 = vld [vmem:[#allocation2 + $0x20] sm:$0x1]  ;;  %v7150_v33 = vunpack.c.h.bf16 %v7278_v15 }
  0x1e   : > { %7721 = vmatprep.subr.bf16.mxu0 %v8242_v9  ;;  %v507_v61 = vsel %vm442_vm10, %v410_v38, %v475_v53  ;;  %v7067_v5 = vpack.c.bf16 %v506_v60, %v506_v60  ;;  %v8654_v53 = vmul.f32 %v8552_v16, %v377_v31 }
  0x1f   : > { %v655_v43 = vshrl.u32 %v7069_v35, 16  ;;  %v658_v44 = vshll.u32 %v7069_v35, 16  ;;  %v663_v45 = vshrl.u32 %v7070_v36, 16  ;;  %v666_v46 = vshll.u32 %v7070_v36, 16 }
  0x20   : > { %7530 = vmatpush3.bf16.msra.mxu1 %v8241_v8  ;;  %v7068_v6 = vpack.c.bf16 %v507_v61, %v507_v61  ;;  %v413_v8 = vmul.f32 %v8552_v16, %v374_v58  ;;  %v638_v17 = vshrl.u32 %v7067_v5, 16  ;;  %v641_v18 = vshll.u32 %v7067_v5, 16 }
  0x21   : > { %7722 = vmatpush3.bf16.msra.mxu0 %v8242_v9  ;;  %7531 = vmatprep.subr.bf16.mxu1 %v8243_v10  ;;  %v657_v55 = vrot.slane %v655_v43, 7  ;;  %v665_v56 = vrot.slane %v663_v45, 7  ;;  %v414_v9 = vmul.f32 %v8552_v16, %v375_v59  ;;  %vm448_vm3 = vcmp.gt.f32.partialorder %v8654_v53, 0.0 }
  0x22   : > { %7723 = vmatprep.subr.bf16.mxu0 %v8244_v13  ;;  %v649_v20 = vshll.u32 %v7068_v6, 16  ;;  %vm445_vm12 = vcmp.gt.f32.partialorder %v413_v8, 0.0  ;;  %v478_v22 = vmul.f32 %v8565_v26, %v413_v8  ;;  %v640_v23 = vrot.slane %v638_v17, 7 }
  0x23   : > { %v660_v1 = vor.u32 %v658_v44, %v657_v55  ;;  %v661_v2 = vrot.slane %v657_v55, 4  ;;  %v668_v3 = vor.u32 %v666_v46, %v665_v56  ;;  %v670_v4 = vrot.slane %v665_v56, 4 }
  0x24   : > { %7532 = vmatpush3.bf16.msra.mxu1 %v8243_v10  ;;  %vm446_vm13 = vcmp.gt.f32.partialorder %v414_v9, 0.0  ;;  %v479_v25 = vmul.f32 %v8565_v26, %v414_v9  ;;  %v510_v30 = vsel %vm445_vm12, %v413_v8, %v478_v22  ;;  %v643_v34 = vor.u32 %v641_v18, %v640_v23 }
  0x25   : > { %7724 = vmatpush3.bf16.msra.mxu0 %v8244_v13  ;;  %7533 = vmatprep.subr.bf16.mxu1 %v8245_v19  ;;  %v669_v10 = vsel %vm8582_vm7, %v661_v2, %v668_v3  ;;  %v1076_v11 = vsel %vm8594_vm8, %v660_v1, %v1075_v50  ;;  %v1080_v13 = vsel %vm8607_vm11, %v670_v4, %v1079_v51  ;;  %v644_v35 = vrot.slane %v640_v23, 4 }
  0x26   : > { %7725 = vmatprep.subr.bf16.mxu0 %v8246_v21  ;;  %v971_v14 = vsel %vm8594_vm8, %v660_v1, %v970_v62  ;;  %973 = vst [vmem:[#allocation2 + $0x1c] sm:$0xf] %v669_v10  ;;  %1077 = vst [vmem:[#allocation2] sm:$0xf] %v1076_v11  ;;  %v511_v38 = vsel %vm446_vm13, %v414_v9, %v479_v25  ;;  %v8633_v39 = vpack.c.bf16 %v510_v30, %v510_v30  ;;  %vm2473_vm13 = vcmask 1042432  }
  0x27   : > { %1078 = vst [vmem:[#allocation2 + $0x4] sm:$0xf] %v669_v10  ;;  %1081 = vst [vmem:[#allocation2 + $0x8] sm:$0x1] %v1080_v13  ;;  %v8651_v52 = vpack.c.bf16 %v511_v38, %v511_v38  ;;  %v378_v55 = vsub.f32 %v7149_v32, %v8544_v12  ;;  %v379_v56 = vsub.f32 %v7150_v33, %v8544_v12  ;;  %v7153_v62 = vunpack.c.l.bf16 %v7279_v40 }
  0x28   : > { %7534 = vmatpush3.bf16.msra.mxu1 %v8245_v19  ;;  %v646_v19 = vshrl.u32 %v7068_v6, 16  ;;  %972 = vst [vmem:[#allocation2 + $0x18] sm:$0xf] %v971_v14  ;;  %v8692_v33 = vmul.f32 %v8565_v26, %v8654_v53  ;;  %vm9034_vm0 = vmor %vm2473_vm13, %vm2474_vm15 }
  0x29   : > { %7726 = vmatpush3.bf16.msra.mxu0 %v8246_v21  ;;  %7535 = vmatprep.subr.bf16.mxu1 %v8247_v27  ;;  %v975_v21 = vsel %vm8607_vm11, %v670_v4, %v974_v7  ;;  %v8659_v4 = vmul.f32 %v8552_v16, %v378_v55  ;;  %v8662_v5 = vmul.f32 %v8552_v16, %v379_v56 }
  0x2a   : > { %7727 = vmatprep.subr.bf16.mxu0 %v8248_v28  ;;  %v648_v24 = vrot.slane %v646_v19, 7  ;;  %976 = vst [vmem:[#allocation2 + $0x20] sm:$0x1] %v975_v21 }
  0x2b   : > { %v8712_v55 = vmul.f32 %v8565_v26, %v8662_v5  ;;  %vm449_vm4 = vcmp.gt.f32.partialorder %v8659_v4, 0.0  ;;  %vm450_vm5 = vcmp.gt.f32.partialorder %v8662_v5, 0.0 }
  0x2c   : > { %7536 = vmatpush3.bf16.msra.mxu1 %v8247_v27  ;;  %v376_v27 = vsub.f32 %v7145_v63, %v8544_v12  ;;  %v651_v36 = vor.u32 %v649_v20, %v648_v24  ;;  %v653_v37 = vrot.slane %v648_v24, 4  ;;  %v7154_v63 = vunpack.c.h.bf16 %v7279_v40 }
  0x2d   : > { %7728 = vmatpush3.bf16.msra.mxu0 %v8248_v28  ;;  %7569 = vmatprep.subr.bf16.mxu1 %v8589_v47  ;;  %v961_v28 = vld [vmem:[#allocation2 + $0xc] sm:$0xf]  ;;  %v1090_v48 = vld [vmem:[#allocation2] sm:$0x2]  ;;  %v1180_v50 = vld [vmem:[#allocation2] sm:$0x1] }
  0x2e   : > { %7761 = vmatprep.subr.bf16.mxu0 %v8603_v54  ;;  %v652_v43 = vsel %vm8582_vm7, %v644_v35, %v651_v36  ;;  %v962_v44 = vsel %vm8594_vm8, %v643_v34, %v961_v28  ;;  %v968_v45 = vsel %vm8607_vm11, %v653_v37, %v967_v29  ;;  %v8649_v46 = vmul.f32 %v8552_v16, %v376_v27  ;;  %v1234_v51 = vld [vmem:[#allocation2 + $0x4] sm:$0x8]  ;;  %v1325_v60 = vld [vmem:[#allocation2 + $0x8] sm:$0x1]  ;;  %v1236_v9 = vld [vmem:[#allocation2 + $0x1c] sm:$0x8] }
  0x2f   : > { %963 = vst [vmem:[#allocation2 + $0xc] sm:$0xf] %v962_v44  ;;  %964 = vst [vmem:[#allocation2 + $0x10] sm:$0xf] %v652_v43  ;;  %v6603_v58 = vrot.slane %v1090_v48, 9  ;;  %v6621_v59 = vrot.slane %v1234_v51, 11  ;;  %v380_v34 = vsub.f32 %v7153_v62, %v8544_v12  ;;  %v381_v35 = vsub.f32 %v7154_v63, %v8544_v12 }
  0x30   : > { %969 = vst [vmem:[#allocation2 + $0x14] sm:$0x1] %v968_v45  ;;  %v1380_v61 = vld [vmem:[#allocation2 + $0x4] sm:$0xf]  ;;  %v1092_v2 = vld [vmem:[#allocation2 + $0x18] sm:$0x2]  ;;  %v8688_v32 = vmul.f32 %v8565_v26, %v8649_v46  ;;  %v8708_v51 = vmul.f32 %v8565_v26, %v8659_v4 }
  0x31   : > { %v1456_v0 = vshll.u32 %v1380_v61, 16  ;;  %v1460_v1 = vshrl.u32 %v1380_v61, 16  ;;  %v1186_v3 = vld [vmem:[#allocation2 + $0x18] sm:$0x1]  ;;  %v1181_v6 = vsel %vm8607_vm11, %v6603_v58, %v1180_v50  ;;  %v1326_v7 = vsel %vm8638_vm14, %v6621_v59, %v1325_v60  ;;  %v1331_v10 = vld [vmem:[#allocation2 + $0x20] sm:$0x1] }
  0x32   : > { %v6605_v8 = vrot.slane %v1092_v2, 9  ;;  %1182 = vst [vmem:[#allocation2] sm:$0x1] %v1181_v6  ;;  %1327 = vst [vmem:[#allocation2 + $0x8] sm:$0x1] %v1326_v7  ;;  %v6623_v15 = vrot.slane %v1236_v9, 11  ;;  %v8724_v2 = vmul.f32 %v8552_v16, %v381_v35 }
  0x33   : > { %v8669_v13 = vrot.slane %v1456_v0, 5  ;;  %v1462_v14 = vrot.slane %v1460_v1, 4  ;;  %v8671_v17 = vld [vmem:[#allocation2 + $0x1c] sm:$0xf]  ;;  %v8721_v1 = vmul.f32 %v8552_v16, %v380_v34  ;;  %vm447_vm2 = vcmp.gt.f32.partialorder %v8649_v46, 0.0 }
  0x34   : > { %v1187_v19 = vsel %vm8607_vm11, %v6605_v8, %v1186_v3  ;;  %v3378_v20 = vshll.u32 %v8671_v17, 16  ;;  %v3382_v21 = vshrl.u32 %v8671_v17, 16  ;;  %v10700_v22 = vrot.slane %v8671_v17, 5  ;;  %v8679_v23 = vld [vmem:[#allocation2 + $0x1c] sm:$0xf] }
  0x35   : > { %v1463_v24 = vor.u32 %v1462_v14, %v8669_v13  ;;  %1188 = vst [vmem:[#allocation2 + $0x18] sm:$0x1] %v1187_v19  ;;  %v1332_v25 = vsel %vm8638_vm14, %v6623_v15, %v1331_v10  ;;  %v1504_v27 = vshll.u32 %v8679_v23, 16  ;;  %vm451_vm6 = vcmp.gt.f32.partialorder %v8721_v1, 0.0 }
  0x36   : > { %v1091_v29 = vld [vmem:[#allocation2 + $0xc] sm:$0x2]  ;;  %v1183_v30 = vld [vmem:[#allocation2 + $0xc] sm:$0x1]  ;;  %v1235_v31 = vld [vmem:[#allocation2 + $0x10] sm:$0x8] }
  0x37   : > { %1333 = vst [vmem:[#allocation2 + $0x20] sm:$0x1] %v1332_v25  ;;  %v8696_v36 = vrot.slane %v1463_v24, 4  ;;  %v6604_v37 = vrot.slane %v1091_v29, 9  ;;  %v6622_v38 = vrot.slane %v1235_v31, 11  ;;  %v8698_v43 = vrot.slane %v3378_v20, 5 }
  0x38   : > { %v1328_v40 = vld [vmem:[#allocation2 + $0x14] sm:$0x1]  ;;  %v8700_v44 = vld [vmem:[#allocation2 + $0x10] sm:$0xf]  ;;  %v3384_v48 = vrot.slane %v3382_v21, 4  ;;  %v8704_v50 = vrot.slane %v10700_v22, 4 }
  0x39   : > { %v1382_v45 = vld [vmem:[#allocation2 + $0x10] sm:$0xf]  ;;  %v1184_v56 = vsel %vm8607_vm11, %v6604_v37, %v1183_v30  ;;  %v1329_v58 = vsel %vm8638_vm14, %v6622_v38, %v1328_v40  ;;  %v3354_v59 = vshll.u32 %v8700_v44, 16  ;;  %v3358_v60 = vshrl.u32 %v8700_v44, 16  ;;  %v1379_v61 = vld [vmem:[#allocation2] sm:$0xf] }
  0x3a   : > { %v1427_v62 = vld [vmem:[#allocation2 + $0x8] sm:$0x1]  ;;  %1185 = vst [vmem:[#allocation2 + $0xc] sm:$0x1] %v1184_v56  ;;  %1330 = vst [vmem:[#allocation2 + $0x14] sm:$0x1] %v1329_v58  ;;  %v3385_v8 = vor.u32 %v3384_v48, %v8698_v43  ;;  %v8743_v37 = vmul.f32 %v8565_v26, %v8721_v1 }
  0x3b   : > { %v1480_v63 = vshll.u32 %v1382_v45, 16  ;;  %v1484_v0 = vshrl.u32 %v1382_v45, 16  ;;  %v1447_v3 = vshrl.u32 %v1379_v61, 16  ;;  %v1450_v6 = vshll.u32 %v1379_v61, 16  ;;  %v8747_v56 = vld [vmem:[%s8535_s29 + $0x30] sm:$0xff]  }
  0x3c   : > { %v1466_v7 = vshll.u32 %v1427_v62, 16  ;;  %v8727_v9 = vrot.slane %v3354_v59, 5  ;;  %v3360_v10 = vrot.slane %v3358_v60, 4  ;;  %v3299_v19 = vld [vmem:[#allocation2 + $0x18] sm:$0xf]  ;;  %v3386_v45 = vrot.slane %v3385_v8, 4 }
  0x3d   : > { %v8729_v14 = vrot.slane %v1480_v63, 5  ;;  %v1486_v15 = vrot.slane %v1484_v0, 4  ;;  %v1449_v20 = vrot.slane %v1447_v3, 4  ;;  %v1452_v21 = vrot.slane %v1450_v6, 5  ;;  %v1383_v22 = vld [vmem:[#allocation2 + $0x18] sm:$0xf] }
  0x3e   : > { %v1468_v24 = vrot.slane %v1466_v7, 5  ;;  %v8731_v25 = vld [vmem:[#allocation2 + $0x20] sm:$0x1]  ;;  %v3369_v29 = vshrl.u32 %v3299_v19, 16  ;;  %v3361_v31 = vor.u32 %v3360_v10, %v8727_v9  ;;  %v3372_v35 = vshll.u32 %v3299_v19, 16 }
  0x3f   : > { %v1487_v34 = vor.u32 %v1486_v15, %v8729_v14  ;;  %v1453_v38 = vor.u32 %v1452_v21, %v1449_v20  ;;  %v3388_v48 = vshll.u32 %v8731_v25, 16  ;;  %v8757_v7 = vmul.f32 %v8565_v26, %v8724_v2 }
  0x40   : > { %v3371_v40 = vrot.slane %v3369_v29, 4  ;;  %v3362_v58 = vrot.slane %v3361_v31, 4  ;;  %v3374_v60 = vrot.slane %v3372_v35, 5  ;;  %v1469_v63 = vsel %vm8735_vm1, %v8696_v36, %v1468_v24 }
  0x41   : > { %v1488_v59 = vrot.slane %v1487_v34, 4  ;;  %v1454_v62 = vrot.slane %v1453_v38, 4  ;;  %v3296_v0 = vld [vmem:[#allocation2 + $0xc] sm:$0xf]  ;;  %v8753_v3 = vld [vmem:[#allocation2 + $0x14] sm:$0x1] }
  0x42   : > { %v3390_v6 = vrot.slane %v3388_v48, 5  ;;  %v3345_v8 = vshrl.u32 %v3296_v0, 16  ;;  %v3348_v10 = vshll.u32 %v3296_v0, 16  ;;  %v3364_v15 = vshll.u32 %v8753_v3, 16  ;;  %v1381_v19 = vld [vmem:[#allocation2 + $0xc] sm:$0xf] }
  0x43   : > { %v1459_v21 = vsel %vm8735_vm1, %v1454_v62, %v8669_v13  ;;  %v1428_v36 = vld [vmem:[#allocation2 + $0x14] sm:$0x1]  ;;  %v1471_v24 = vshrl.u32 %v1381_v19, 16  ;;  %v1474_v29 = vshll.u32 %v1381_v19, 16  ;;  %v3375_v31 = vor.u32 %v3374_v60, %v3371_v40  ;;  %v1429_v40 = vld [vmem:[#allocation2 + $0x20] sm:$0x1] }
  0x44   : > { %v6655_v34 = vcombine.low %v1459_v21, %v1469_v63  ;;  %v3347_v35 = vrot.slane %v3345_v8, 4  ;;  %v3350_v38 = vrot.slane %v3348_v10, 5  ;;  %v3366_v48 = vrot.slane %v3364_v15, 5 }
  0x45   : > { %v4119_v0 = vrot.slane %v8753_v3, 5  ;;  %v1473_v61 = vrot.slane %v1471_v24, 4  ;;  %v1476_v18 = vrot.slane %v1474_v29, 5  ;;  %v1490_v11 = vshll.u32 %v1428_v36, 16 }
  0x46   : > { %7537 = vmatprep.mubr.bf16.mxu1 %v6655_v34  ;;  %v3351_v20 = vor.u32 %v3350_v38, %v3347_v35  ;;  %v3367_v28 = vsel %vm8735_vm1, %v3362_v58, %v3366_v48  ;;  %v3376_v13 = vrot.slane %v3375_v31, 4  ;;  %v3391_v62 = vsel %vm8735_vm1, %v3386_v45, %v3390_v6 }
  0x47   : > { %v1477_v60 = vor.u32 %v1476_v18, %v1473_v61  ;;  %v1492_v63 = vrot.slane %v1490_v11, 5  ;;  %v1495_v8 = vshrl.u32 %v1383_v22, 16  ;;  %v1498_v10 = vshll.u32 %v1383_v22, 16  ;;  %v8251_v22 = vld [vmem:[%s10696_s4 + $0x148] sm:$0xff]  }
  0x48   : > { %v3352_v15 = vrot.slane %v3351_v20, 4  ;;  %v3381_v19 = vsel %vm8735_vm1, %v3376_v13, %v8698_v43  ;;  %v1506_v21 = vrot.slane %v1504_v27, 5  ;;  %v10729_v36 = vshrl.u32 %v8679_v23, 16  ;;  %v8252_v23 = vld [vmem:[%s10696_s4 + $0x8] sm:$0xff]   ;;  %v977_v20 = vld [vmem:[#allocation2 + $0x24] sm:$0xf] }
  0x49   : > { %v1478_v24 = vrot.slane %v1477_v60, 4  ;;  %v1493_v45 = vsel %vm8735_vm1, %v1488_v59, %v1492_v63  ;;  %v6816_v6 = vcombine.low %v3381_v19, %v3391_v62  ;;  %v1497_v18 = vrot.slane %v1495_v8, 4  ;;  %v981_v62 = vld [vmem:[#allocation2 + $0x2c] sm:$0x1] }
  0x4a   : > { %v1510_v58 = vrot.slane %v10729_v36, 4  ;;  %v3357_v11 = vsel %vm8735_vm1, %v3352_v15, %v8727_v9  ;;  %v1500_v43 = vrot.slane %v1498_v10, 5  ;;  %v1514_v27 = vshll.u32 %v1429_v40, 16 }
  0x4b   : > { %v6815_v29 = vcombine.low %v3357_v11, %v3367_v28  ;;  %v1483_v59 = vsel %vm8735_vm1, %v1478_v24, %v8729_v14  ;;  %v10730_v31 = vshrl.u32 %v8633_v39, 16  ;;  %v680_v34 = vshrl.u32 %v8651_v52, 16 }
  0x4c   : > { %v1511_v61 = vor.u32 %v1510_v58, %v1506_v21  ;;  %v6656_v35 = vcombine.low %v1483_v59, %v1493_v45  ;;  %v1501_v38 = vor.u32 %v1500_v43, %v1497_v18  ;;  %v1516_v13 = vrot.slane %v1514_v27, 5  ;;  %v8255_v45 = vld [vmem:[%s10696_s4 + $0x10] sm:$0xff]   ;;  %v8254_v59 = vld [vmem:[%s10696_s4 + $0x158] sm:$0xff]  }
  0x4d   : > { %v674_v9 = vrot.slane %v10730_v31, 7  ;;  %7729 = vmatprep.mubr.bf16.mxu0 %v6815_v29  ;;  %v10731_v40 = vshll.u32 %v8633_v39, 16  ;;  %v682_v28 = vrot.slane %v680_v34, 7  ;;  %v683_v8 = vshll.u32 %v8651_v52, 16  ;;  %v984_v43 = vld [vmem:[#allocation2 + $0x30] sm:$0xf] }
  0x4e   : > { %v1512_v48 = vrot.slane %v1511_v61, 4  ;;  %7538 = vmatmul.mubr.bf16.vlgmr.msra.gmra.mrb[0].mxu1 %v6656_v35  ;;  %7730 = vmatmul.mubr.bf16.vlgmr.msra.gmra.mrb[0].mxu0 %v6816_v6  ;;  %v1502_v14 = vrot.slane %v1501_v38, 4  ;;  %v512_v52 = vsel %vm447_vm2, %v8649_v46, %v8688_v32  ;;  %v515_v61 = vsel %vm450_vm5, %v8662_v5, %v8712_v55  ;;  %v988_v29 = vld [vmem:[#allocation2 + $0x38] sm:$0x1] }
  0x4f   : > { %v677_v60 = vor.u32 %v10731_v40, %v674_v9  ;;  %v678_v63 = vrot.slane %v674_v9, 4  ;;  %7570 = vmatpush3.bf16.msra.mxu1 %v8589_v47  ;;  %7762 = vmatpush3.bf16.msra.mxu0 %v8603_v54  ;;  %v685_v39 = vor.u32 %v683_v8, %v682_v28  ;;  %v687_v15 = vrot.slane %v682_v28, 4  ;;  %v8253_v47 = vld [vmem:[%s10696_s4 + $0x150] sm:$0xff]   ;;  %v8258_v55 = vld [vmem:[%s10696_s4 + $0x18] sm:$0xff]   ;;  %v8256_v8 = vld [vmem:[%s10696_s4 + $0x160] sm:$0xff]  }
  0x50   : > { %v1517_v10 = vsel %vm8735_vm1, %v1512_v48, %v1516_v13  ;;  %7763 = vmatprep.subr.bf16.mxu0 %v8251_v22  ;;  %v1507_v36 = vsel %vm8735_vm1, %v1502_v14, %v1506_v21  ;;  %7571 = vmatprep.subr.bf16.mxu1 %v8252_v23  ;;  %v513_v54 = vsel %vm448_vm3, %v8654_v53, %v8692_v33  ;;  %vm452_vm9 = vcmp.gt.f32.partialorder %v8724_v2, 0.0  ;;  %v991_v28 = vld [vmem:[#allocation2 + $0x3c] sm:$0xf] }
  0x51   : > { %v978_v19 = vsel %vm8594_vm8, %v677_v60, %v977_v20  ;;  %v7073_v58 = vpack.c.bf16 %v512_v52, %v512_v52  ;;  %v6657_v24 = vcombine.low %v1507_v36, %v1517_v10  ;;  %v686_v46 = vsel %vm8582_vm7, %v678_v63, %v685_v39  ;;  %v8261_v10 = vld [vmem:[%s10696_s4 + $0x20] sm:$0xff]  }
  0x52   : > { %979 = vst [vmem:[#allocation2 + $0x24] sm:$0xf] %v978_v19  ;;  %v982_v32 = vsel %vm8607_vm11, %v687_v15, %v981_v62  ;;  %v7074_v21 = vpack.c.bf16 %v513_v54, %v513_v54  ;;  %980 = vst [vmem:[#allocation2 + $0x28] sm:$0xf] %v686_v46  ;;  %v514_v53 = vsel %vm449_vm4, %v8659_v4, %v8708_v51 }
  0x53   : > { %983 = vst [vmem:[#allocation2 + $0x2c] sm:$0x1] %v982_v32  ;;  %v689_v6 = vshrl.u32 %v7073_v58, 16  ;;  %v692_v18 = vshll.u32 %v7073_v58, 16  ;;  %7764 = vmatpush3.bf16.msra.mxu0 %v8251_v22  ;;  %7541 = vmatprep.mubr.bf16.mxu1 %v6657_v24  ;;  %v7075_v27 = vpack.c.bf16 %v514_v53, %v514_v53  ;;  %v7076_v31 = vpack.c.bf16 %v515_v61, %v515_v61  ;;  %v8257_v61 = vld [vmem:[%s10696_s4 + $0x168] sm:$0xff]  }
  0x54   : > { %v697_v33 = vshrl.u32 %v7074_v21, 16  ;;  %v700_v11 = vshll.u32 %v7074_v21, 16  ;;  %7765 = vmatprep.subr.bf16.mxu0 %v8253_v47  ;;  %7572 = vmatpush3.bf16.msra.mxu1 %v8252_v23  ;;  %v516_v5 = vsel %vm451_vm6, %v8721_v1, %v8743_v37  ;;  %v517_v60 = vsel %vm452_vm9, %v8724_v2, %v8757_v7 }
  0x55   : > { %v691_v20 = vrot.slane %v689_v6, 7  ;;  %7573 = vmatprep.subr.bf16.mxu1 %v8255_v45  ;;  %v706_v51 = vshrl.u32 %v7075_v27, 16  ;;  %v709_v22 = vshll.u32 %v7075_v27, 16  ;;  %v714_v34 = vshrl.u32 %v7076_v31, 16  ;;  %v8870_v27 = vld [vmem:[%s8535_s29 + $0x38] sm:$0xff]  }
  0x56   : > { %v699_v4 = vrot.slane %v697_v33, 7  ;;  %v717_v35 = vshll.u32 %v7076_v31, 16  ;;  %v8845_v14 = vpack.c.bf16 %v516_v5, %v516_v5  ;;  %v8856_v36 = vpack.c.bf16 %v517_v60, %v517_v60 }
  0x57   : > { %v694_v23 = vor.u32 %v692_v18, %v691_v20  ;;  %v695_v9 = vrot.slane %v691_v20, 4  ;;  %7766 = vmatpush3.bf16.msra.mxu0 %v8253_v47  ;;  %v708_v40 = vrot.slane %v706_v51, 7  ;;  %v716_v63 = vrot.slane %v714_v34, 7  ;;  %v995_v18 = vld [vmem:[#allocation2 + $0x44] sm:$0x1]  ;;  %v8263_v20 = vld [vmem:[%s10696_s4 + $0x28] sm:$0xff]  }
  0x58   : > { %v702_v13 = vor.u32 %v700_v11, %v699_v4  ;;  %v704_v62 = vrot.slane %v699_v4, 4  ;;  %7767 = vmatprep.subr.bf16.mxu0 %v8254_v59  ;;  %7574 = vmatpush3.bf16.msra.mxu1 %v8255_v45  ;;  %v723_v5 = vshrl.u32 %v8845_v14, 16  ;;  %v731_v34 = vshrl.u32 %v8856_v36, 16 }
  0x59   : > { %v1093_v38 = vld [vmem:[#allocation2 + $0x24] sm:$0x2]  ;;  %v1189_v48 = vld [vmem:[#allocation2 + $0x24] sm:$0x1]  ;;  %v985_v37 = vsel %vm8594_vm8, %v694_v23, %v984_v43  ;;  %v1237_v39 = vld [vmem:[#allocation2 + $0x28] sm:$0x8]  ;;  %v711_v52 = vor.u32 %v709_v22, %v708_v40  ;;  %7575 = vmatprep.subr.bf16.mxu1 %v8258_v55  ;;  %v719_v6 = vor.u32 %v717_v35, %v716_v63  ;;  %v10732_v60 = vunpack.c.l.bf16 %v8747_v56 }
  0x5a   : > { %v6606_v1 = vrot.slane %v1093_v38, 9  ;;  %v1334_v2 = vld [vmem:[#allocation2 + $0x2c] sm:$0x1]  ;;  %v8850_v7 = vld [vmem:[#allocation2 + $0x28] sm:$0xf]  ;;  %v703_v15 = vsel %vm8582_vm7, %v695_v9, %v702_v13  ;;  %v989_v19 = vsel %vm8607_vm11, %v704_v62, %v988_v29  ;;  %v6624_v54 = vrot.slane %v1237_v39, 11 }
  0x5b   : > { %986 = vst [vmem:[#allocation2 + $0x30] sm:$0xf] %v985_v37  ;;  %v3402_v58 = vshll.u32 %v8850_v7, 16  ;;  %v3406_v24 = vshrl.u32 %v8850_v7, 16  ;;  %v1386_v46 = vld [vmem:[#allocation2 + $0x28] sm:$0xf]  ;;  %7768 = vmatpush3.bf16.msra.mxu0 %v8254_v59  ;;  %v992_v4 = vsel %vm8594_vm8, %v711_v52, %v991_v28  ;;  %v7158_v38 = vunpack.c.h.bf16 %v8747_v56 }
  0x5c   : > { %v1190_v47 = vsel %vm8607_vm11, %v6606_v1, %v1189_v48  ;;  %987 = vst [vmem:[#allocation2 + $0x34] sm:$0xf] %v703_v15  ;;  %990 = vst [vmem:[#allocation2 + $0x38] sm:$0x1] %v989_v19  ;;  %v1528_v32 = vshll.u32 %v1386_v46, 16  ;;  %v1532_v21 = vshrl.u32 %v1386_v46, 16  ;;  %v1335_v53 = vsel %vm8638_vm14, %v6624_v54, %v1334_v2  ;;  %7769 = vmatprep.subr.bf16.mxu0 %v8256_v8 }
  0x5d   : > { %1191 = vst [vmem:[#allocation2 + $0x24] sm:$0x1] %v1190_v47  ;;  %v712_v45 = vrot.slane %v708_v40, 4  ;;  %v8864_v33 = vrot.slane %v3402_v58, 5  ;;  %v3408_v11 = vrot.slane %v3406_v24, 4  ;;  %v721_v43 = vrot.slane %v716_v63, 4  ;;  %7576 = vmatpush3.bf16.msra.mxu1 %v8258_v55 }
  0x5e   : > { %1336 = vst [vmem:[#allocation2 + $0x2c] sm:$0x1] %v1335_v53  ;;  %v8875_v29 = vrot.slane %v1528_v32, 5  ;;  %v1534_v59 = vrot.slane %v1532_v21, 4  ;;  %7577 = vmatprep.subr.bf16.mxu1 %v8261_v10  ;;  %993 = vst [vmem:[#allocation2 + $0x3c] sm:$0xf] %v992_v4  ;;  %v382_v1 = vsub.f32 %v10732_v60, %v8544_v12  ;;  %v7161_v37 = vunpack.c.l.bf16 %v8870_v27 }
  0x5f   : > { %v720_v31 = vsel %vm8582_vm7, %v712_v45, %v719_v6  ;;  %v3409_v51 = vor.u32 %v3408_v11, %v8864_v33  ;;  %v996_v22 = vsel %vm8607_vm11, %v721_v43, %v995_v18  ;;  %v726_v55 = vshll.u32 %v8845_v14, 16  ;;  %v8259_v23 = vld [vmem:[%s10696_s4 + $0x170] sm:$0xff]   ;;  %7770 = vmatpush3.bf16.msra.mxu0 %v8256_v8  ;;  %v8260_v54 = vld [vmem:[%s10696_s4 + $0x178] sm:$0xff]  }
  0x60   : > { %994 = vst [vmem:[#allocation2 + $0x40] sm:$0xf] %v720_v31  ;;  %v1535_v9 = vor.u32 %v1534_v59, %v8875_v29  ;;  %997 = vst [vmem:[#allocation2 + $0x44] sm:$0x1] %v996_v22  ;;  %v734_v35 = vshll.u32 %v8856_v36, 16  ;;  %v8895_v40 = vrot.slane %v723_v5, 7  ;;  %7771 = vmatprep.subr.bf16.mxu0 %v8257_v61  ;;  %v8904_v39 = vsub.f32 %v7158_v38, %v8544_v12 }
  0x61   : > { %v8893_v48 = vrot.slane %v3409_v51, 4  ;;  %7578 = vmatpush3.bf16.msra.mxu1 %v8261_v10  ;;  %v7162_v2 = vunpack.c.h.bf16 %v8870_v27  ;;  %v8912_v10 = vmul.f32 %v8552_v16, %v382_v1  ;;  %v998_v1 = vld [vmem:[#allocation2 + $0x48] sm:$0xf] }
  0x62   : > { %v1094_v13 = vld [vmem:[#allocation2 + $0x30] sm:$0x2]  ;;  %v1192_v62 = vld [vmem:[#allocation2 + $0x30] sm:$0x1]  ;;  %v8901_v63 = vrot.slane %v1535_v9, 4  ;;  %7579 = vmatprep.subr.bf16.mxu1 %v8263_v20  ;;  %v8908_v56 = vor.u32 %v726_v55, %v8895_v40  ;;  %v729_v47 = vrot.slane %v8895_v40, 4 }
  0x63   : > { %v6607_v28 = vrot.slane %v1094_v13, 9  ;;  %v1238_v8 = vld [vmem:[#allocation2 + $0x34] sm:$0x8]  ;;  %v1337_v14 = vld [vmem:[#allocation2 + $0x38] sm:$0x1]  ;;  %7772 = vmatpush3.bf16.msra.mxu0 %v8257_v61  ;;  %vm453_vm10 = vcmp.gt.f32.partialorder %v8912_v10, 0.0 }
  0x64   : > { %v3302_v15 = vld [vmem:[#allocation2 + $0x24] sm:$0xf]  ;;  %v6625_v52 = vrot.slane %v1238_v8, 11  ;;  %v3306_v32 = vld [vmem:[#allocation2 + $0x34] sm:$0xf]  ;;  %7773 = vmatprep.subr.bf16.mxu0 %v8259_v23 }
  0x65   : > { %v1385_v19 = vld [vmem:[#allocation2 + $0x24] sm:$0xf]  ;;  %v3393_v12 = vshrl.u32 %v3302_v15, 16  ;;  %v3396_v58 = vshll.u32 %v3302_v15, 16  ;;  %v3304_v21 = vld [vmem:[#allocation2 + $0x2c] sm:$0x1]  ;;  %v1193_v6 = vsel %vm8607_vm11, %v6607_v28, %v1192_v62  ;;  %7580 = vmatpush3.bf16.msra.mxu1 %v8263_v20 }
  0x66   : > { %v1519_v24 = vshrl.u32 %v1385_v19, 16  ;;  %v1522_v46 = vshll.u32 %v1385_v19, 16  ;;  %v1430_v45 = vld [vmem:[#allocation2 + $0x2c] sm:$0x1]  ;;  %v1338_v18 = vsel %vm8638_vm14, %v6625_v52, %v1337_v14  ;;  %v3426_v16 = vshll.u32 %v3306_v32, 16  ;;  %v8262_v19 = vld [vmem:[%s10696_s4 + $0x180] sm:$0xff]  }
  0x67   : > { %v3430_v53 = vshrl.u32 %v3306_v32, 16  ;;  %v3395_v11 = vrot.slane %v3393_v12, 4  ;;  %v3398_v43 = vrot.slane %v3396_v58, 5  ;;  %v3412_v59 = vshll.u32 %v3304_v21, 16  ;;  %1194 = vst [vmem:[#allocation2 + $0x30] sm:$0x1] %v1193_v6  ;;  %7774 = vmatpush3.bf16.msra.mxu0 %v8259_v23 }
  0x68   : > { %v1521_v31 = vrot.slane %v1519_v24, 4  ;;  %1339 = vst [vmem:[#allocation2 + $0x38] sm:$0x1] %v1338_v18  ;;  %v1388_v4 = vld [vmem:[#allocation2 + $0x34] sm:$0xf]  ;;  %v1524_v61 = vrot.slane %v1522_v46, 5  ;;  %7775 = vmatprep.subr.bf16.mxu0 %v8260_v54 }
  0x69   : > { %v1538_v51 = vshll.u32 %v1430_v45, 16  ;;  %v8921_v22 = vrot.slane %v3426_v16, 5  ;;  %v3432_v5 = vrot.slane %v3430_v53, 4  ;;  %v1095_v55 = vld [vmem:[#allocation2 + $0x3c] sm:$0x2]  ;;  %v3399_v9 = vor.u32 %v3398_v43, %v3395_v11 }
  0x6a   : > { %v3414_v38 = vrot.slane %v3412_v59, 5  ;;  %v1552_v13 = vshll.u32 %v1388_v4, 16  ;;  %v1556_v62 = vshrl.u32 %v1388_v4, 16  ;;  %v1195_v60 = vld [vmem:[#allocation2 + $0x3c] sm:$0x1]  ;;  %v1525_v20 = vor.u32 %v1524_v61, %v1521_v31 }
  0x6b   : > { %v1540_v28 = vrot.slane %v1538_v51, 5  ;;  %v3433_v8 = vor.u32 %v3432_v5, %v8921_v22  ;;  %v6608_v14 = vrot.slane %v1095_v55, 9  ;;  %v1239_v15 = vld [vmem:[#allocation2 + $0x40] sm:$0x8]  ;;  %v3400_v52 = vrot.slane %v3399_v9, 4  ;;  %7776 = vmatpush3.bf16.msra.mxu0 %v8260_v54 }
  0x6c   : > { %v3415_v12 = vsel %vm8735_vm1, %v8893_v48, %v3414_v38  ;;  %v8930_v58 = vrot.slane %v1552_v13, 5  ;;  %v1558_v24 = vrot.slane %v1556_v62, 4  ;;  %v3309_v23 = vld [vmem:[#allocation2 + $0x40] sm:$0xf]  ;;  %v1526_v46 = vrot.slane %v1525_v20, 4  ;;  %7809 = vmatprep.subr.bf16.mxu0 %v8262_v19 }
  0x6d   : > { %v1541_v32 = vsel %vm8735_vm1, %v8901_v63, %v1540_v28  ;;  %v8935_v21 = vrot.slane %v3433_v8, 4  ;;  %v1196_v45 = vsel %vm8607_vm11, %v6608_v14, %v1195_v60  ;;  %v3405_v6 = vsel %vm8735_vm1, %v3400_v52, %v8864_v33  ;;  %v1340_v16 = vld [vmem:[#allocation2 + $0x44] sm:$0x1]  ;;  %v8954_v4 = vld [vmem:[%s10694_s2] ss:$0 sm:$0xff] }
  0x6e   : > { %v1559_v48 = vor.u32 %v1558_v24, %v8930_v58  ;;  %1197 = vst [vmem:[#allocation2 + $0x3c] sm:$0x1] %v1196_v45  ;;  %v6626_v18 = vrot.slane %v1239_v15, 11  ;;  %v3450_v53 = vshll.u32 %v3309_v23, 16  ;;  %v6817_v11 = vcombine.low %v3405_v6, %v3415_v12  ;;  %v3305_v43 = vld [vmem:[#allocation2 + $0x30] sm:$0xf] }
  0x6f   : > { %v1531_v63 = vsel %vm8735_vm1, %v1526_v46, %v8875_v29  ;;  %v8946_v59 = vld [vmem:[#allocation2 + $0x38] sm:$0x1]  ;;  %v1387_v31 = vld [vmem:[#allocation2 + $0x30] sm:$0xf]  ;;  %v999_v33 = vsel %vm8594_vm8, %v8908_v56, %v998_v1  ;;  %v8958_v54 = vmul.f32 %v8954_v4, %v8904_v39  ;;  %v3417_v29 = vshrl.u32 %v3305_v43, 16 }
  0x70   : > { %v6658_v61 = vcombine.low %v1531_v63, %v1541_v32  ;;  %v3420_v51 = vshll.u32 %v3305_v43, 16  ;;  %v3436_v5 = vshll.u32 %v8946_v59, 16  ;;  %v1431_v55 = vld [vmem:[#allocation2 + $0x38] sm:$0x1]  ;;  %1000 = vst [vmem:[#allocation2 + $0x48] sm:$0xf] %v999_v33  ;;  %7733 = vmatprep.mubr.bf16.mxu0 %v6817_v11  ;;  %v1341_v39 = vsel %vm8638_vm14, %v6626_v18, %v1340_v16 }
  0x71   : > { %v1543_v9 = vshrl.u32 %v1387_v31, 16  ;;  %v1546_v56 = vshll.u32 %v1387_v31, 16  ;;  %v1560_v38 = vrot.slane %v1559_v48, 4  ;;  %v1562_v13 = vshll.u32 %v1431_v55, 16  ;;  %v1390_v62 = vld [vmem:[#allocation2 + $0x40] sm:$0xf] }
  0x72   : > { %7542 = vmatmul.mubr.bf16.gmra.mrb[4].mxu1 %v6658_v61  ;;  %v3419_v60 = vrot.slane %v3417_v29, 4  ;;  %v3422_v1 = vrot.slane %v3420_v51, 5  ;;  %v3438_v20 = vrot.slane %v3436_v5, 5  ;;  %1342 = vst [vmem:[#allocation2 + $0x44] sm:$0x1] %v1341_v39  ;;  %v8963_v15 = vrot.slane %v3450_v53, 5 }
  0x73   : > { %v1545_v28 = vrot.slane %v1543_v9, 4  ;;  %v1548_v8 = vrot.slane %v1546_v56, 5  ;;  %v1564_v14 = vrot.slane %v1562_v13, 5  ;;  %v3454_v12 = vshrl.u32 %v3309_v23, 16  ;;  %v8265_v46 = vld [vmem:[%s10696_s4 + $0x30] sm:$0xff]  }
  0x74   : > { %v3423_v19 = vor.u32 %v3422_v1, %v3419_v60  ;;  %v3439_v52 = vsel %vm8735_vm1, %v8935_v21, %v3438_v20  ;;  %v1576_v24 = vshll.u32 %v1390_v62, 16  ;;  %v1580_v18 = vshrl.u32 %v1390_v62, 16  ;;  %7581 = vmatprep.subr.bf16.mxu1 %v8265_v46  ;;  %v1002_v13 = vld [vmem:[#allocation2 + $0x50] sm:$0x1] }
  0x75   : > { %v1549_v32 = vor.u32 %v1548_v8, %v1545_v28  ;;  %v1565_v45 = vsel %vm8735_vm1, %v1560_v38, %v1564_v14  ;;  %v3308_v6 = vld [vmem:[#allocation2 + $0x3c] sm:$0xf]  ;;  %v733_v16 = vrot.slane %v731_v34, 7  ;;  %v3456_v21 = vrot.slane %v3454_v12, 4  ;;  %7582 = vmatpush3.bf16.msra.mxu1 %v8265_v46 }
  0x76   : > { %v1389_v48 = vld [vmem:[#allocation2 + $0x3c] sm:$0xf]  ;;  %v3424_v53 = vrot.slane %v3423_v19, 4  ;;  %v3441_v11 = vshrl.u32 %v3308_v6, 16  ;;  %v3444_v63 = vshll.u32 %v3308_v6, 16  ;;  %v1578_v33 = vrot.slane %v1576_v24, 5 }
  0x77   : > { %v1550_v23 = vrot.slane %v1549_v32, 4  ;;  %v1567_v43 = vshrl.u32 %v1389_v48, 16  ;;  %v1570_v31 = vshll.u32 %v1389_v48, 16  ;;  %v3457_v5 = vor.u32 %v3456_v21, %v8963_v15  ;;  %v1096_v55 = vld [vmem:[#allocation2 + $0x48] sm:$0x2] }
  0x78   : > { %v3429_v61 = vsel %vm8735_vm1, %v3424_v53, %v8921_v22  ;;  %v3443_v29 = vrot.slane %v3441_v11, 4  ;;  %v3446_v51 = vrot.slane %v3444_v63, 5  ;;  %v1198_v62 = vld [vmem:[#allocation2 + $0x48] sm:$0x1]  ;;  %v1582_v22 = vrot.slane %v1580_v18, 4 }
  0x79   : > { %v6818_v34 = vcombine.low %v3429_v61, %v3439_v52  ;;  %v1555_v9 = vsel %vm8735_vm1, %v1550_v23, %v8930_v58  ;;  %v1569_v56 = vrot.slane %v1567_v43, 4  ;;  %v1572_v38 = vrot.slane %v1570_v31, 5  ;;  %v3310_v1 = vld [vmem:[#allocation2 + $0x44] sm:$0x1]  ;;  %v4050_v18 = vld [vmem:[#allocation2 + $0xc] sm:$0xe] }
  0x7a   : > { %v6659_v60 = vcombine.low %v1555_v9, %v1565_v45  ;;  %v3447_v20 = vor.u32 %v3446_v51, %v3443_v29  ;;  %v3458_v39 = vrot.slane %v3457_v5, 4  ;;  %v1432_v28 = vld [vmem:[#allocation2 + $0x44] sm:$0x1]  ;;  %v3460_v8 = vshll.u32 %v3310_v1, 16  ;;  %v9013_v31 = vld [vmem:[%s10693_s1] ss:$0 sm:$0xff] }
  0x7b   : > { %7734 = vmatmul.mubr.bf16.gmra.mrb[4].mxu0 %v6818_v34  ;;  %v1573_v14 = vor.u32 %v1572_v38, %v1569_v56  ;;  %v1586_v19 = vshll.u32 %v1432_v28, 16  ;;  %v736_v52 = vor.u32 %v734_v35, %v733_v16  ;;  %v1583_v58 = vor.u32 %v1582_v22, %v1578_v33  ;;  %v9021_v29 = vld [vmem:[#allocation2 + $0x18] sm:$0xe]  ;;  %v9024_v51 = vld [vmem:[%s8535_s29 + $0x48] sm:$0xff]  }
  0x7c   : > { %7545 = vmatprep.mubr.bf16.mxu1 %v6659_v60  ;;  %v3448_v12 = vrot.slane %v3447_v20, 4  ;;  %v738_v24 = vrot.slane %v733_v16, 4  ;;  %v6609_v46 = vrot.slane %v1096_v55, 9  ;;  %v3462_v32 = vrot.slane %v3460_v8, 5 }
  0x7d   : > { %v1574_v45 = vrot.slane %v1573_v14, 4  ;;  %v1588_v6 = vrot.slane %v1586_v19, 5  ;;  %v737_v48 = vsel %vm8582_vm7, %v729_v47, %v736_v52  ;;  %v1584_v35 = vrot.slane %v1583_v58, 4  ;;  %v9002_v47 = vld [vmem:[%s8535_s29 + $0x40] sm:$0xff]  }
  0x7e   : > { %v3453_v36 = vsel %vm8735_vm1, %v3448_v12, %v8963_v15  ;;  %1001 = vst [vmem:[#allocation2 + $0x4c] sm:$0xf] %v737_v48  ;;  %v1003_v16 = vsel %vm8607_vm11, %v738_v24, %v1002_v13  ;;  %v1199_v53 = vsel %vm8607_vm11, %v6609_v46, %v1198_v62  ;;  %v3463_v11 = vsel %vm8735_vm1, %v3458_v39, %v3462_v32 }
  0x7f   : > { %v1579_v40 = vsel %vm8735_vm1, %v1574_v45, %v1578_v33  ;;  %1004 = vst [vmem:[#allocation2 + $0x50] sm:$0x1] %v1003_v16  ;;  %1200 = vst [vmem:[#allocation2 + $0x48] sm:$0x1] %v1199_v53  ;;  %vm454_vm12 = vcmp.gt.f32.partialorder %v8958_v54, 0.0  ;;  %v6819_v15 = vcombine.low %v3453_v36, %v3463_v11  ;;  %v1589_v63 = vsel %vm8735_vm1, %v1584_v35, %v1588_v6 }
  0x80   : > { %v486_v21 = vmul.f32 %v8565_v26, %v8912_v10  ;;  %v487_v23 = vmul.f32 %v8565_v26, %v8958_v54  ;;  %v6660_v43 = vcombine.low %v1579_v40, %v1589_v63  ;;  %v384_v33 = vsub.f32 %v7161_v37, %v9013_v31 }
  0x81   : > { %v385_v61 = vsub.f32 %v7162_v2, %v9013_v31  ;;  %7737 = vmatprep.mubr.bf16.mxu0 %v6819_v15  ;;  %v6839_v34 = vrot.slane %v4050_v18, 9  ;;  %v4116_v38 = vrot.slane %v8700_v44, 5  ;;  %v6840_v13 = vrot.slane %v9021_v29, 9 }
  0x82   : > { %v518_v5 = vsel %vm453_vm10, %v8912_v10, %v486_v21  ;;  %v519_v55 = vsel %vm454_vm12, %v8958_v54, %v487_v23  ;;  %7546 = vmatmul.mubr.bf16.gmra.mrb[8].mxu1 %v6660_v43  ;;  %v9029_v37 = vmul.f32 %v8954_v4, %v384_v33  ;;  %v7165_v10 = vunpack.c.l.bf16 %v9002_v47 }
  0x83   : > { %v7079_v9 = vpack.c.bf16 %v518_v5, %v518_v5  ;;  %v7080_v56 = vpack.c.bf16 %v519_v55, %v519_v55  ;;  %v9032_v27 = vmul.f32 %v8954_v4, %v385_v61  ;;  %v7166_v54 = vunpack.c.h.bf16 %v9002_v47  ;;  %v1005_v5 = vld [vmem:[#allocation2 + $0x54] sm:$0xf] }
  0x84   : > { %v488_v20 = vmul.f32 %v8565_v26, %v9029_v37  ;;  %v10735_v28 = vrot.slane %v8731_v25, 5  ;;  %v7169_v8 = vunpack.c.l.bf16 %v9024_v51  ;;  %v9060_v58 = vsel %vm9034_vm0, %v6839_v34, %v4116_v38 }
  0x85   : > { %v1240_v62 = vld [vmem:[#allocation2 + $0x4c] sm:$0x8]  ;;  %v9046_v39 = vmul.f32 %v8565_v26, %v9032_v27  ;;  %v386_v24 = vsub.f32 %v7165_v10, %v9013_v31  ;;  %v740_v21 = vshrl.u32 %v7079_v9, 16  ;;  %v743_v33 = vshll.u32 %v7079_v9, 16 }
  0x86   : > { %v3312_v60 = vld [vmem:[#allocation2 + $0x4c] sm:$0xf]  ;;  %v9053_v22 = vsel %vm9034_vm0, %v8704_v50, %v10735_v28  ;;  %v6627_v14 = vrot.slane %v1240_v62, 11  ;;  %v1343_v19 = vld [vmem:[#allocation2 + $0x50] sm:$0x1]  ;;  %v748_v61 = vshrl.u32 %v7080_v56, 16 }
  0x87   : > { %v1392_v1 = vld [vmem:[#allocation2 + $0x4c] sm:$0xf]  ;;  %v3311_v52 = vld [vmem:[#allocation2 + $0x48] sm:$0xf]  ;;  %v3474_v12 = vshll.u32 %v3312_v60, 16  ;;  %v3478_v32 = vshrl.u32 %v3312_v60, 16 }
  0x88   : > { %v3465_v25 = vshrl.u32 %v3311_v52, 16  ;;  %v3468_v46 = vshll.u32 %v3311_v52, 16  ;;  %v1391_v45 = vld [vmem:[#allocation2 + $0x48] sm:$0xf]  ;;  %v1600_v50 = vshll.u32 %v1392_v1, 16  ;;  %v1344_v6 = vsel %vm8638_vm14, %v6627_v14, %v1343_v19 }
  0x89   : > { %v9065_v48 = vrot.slane %v3474_v12, 5  ;;  %v1591_v18 = vshrl.u32 %v1391_v45, 16  ;;  %v1594_v36 = vshll.u32 %v1391_v45, 16  ;;  %1345 = vst [vmem:[#allocation2 + $0x50] sm:$0x1] %v1344_v6  ;;  %v3480_v53 = vrot.slane %v3478_v32, 4 }
  0x8a   : > { %v3467_v35 = vrot.slane %v3465_v25, 4  ;;  %v3470_v16 = vrot.slane %v3468_v46, 5  ;;  %v1602_v11 = vrot.slane %v1600_v50, 5  ;;  %v1604_v63 = vshrl.u32 %v1392_v1, 16  ;;  %v1009_v60 = vld [vmem:[#allocation2 + $0x5c] sm:$0x1] }
  0x8b   : > { %v1593_v40 = vrot.slane %v1591_v18, 4  ;;  %v1596_v15 = vrot.slane %v1594_v36, 5  ;;  %v3481_v43 = vor.u32 %v3480_v53, %v9065_v48  ;;  %v742_v10 = vrot.slane %v740_v21, 7 }
  0x8c   : > { %v3471_v23 = vor.u32 %v3470_v16, %v3467_v35  ;;  %v1606_v34 = vrot.slane %v1604_v63, 4  ;;  %v751_v62 = vshll.u32 %v7080_v56, 16  ;;  %v750_v19 = vrot.slane %v748_v61, 7 }
  0x8d   : > { %v1597_v55 = vor.u32 %v1596_v15, %v1593_v40  ;;  %v3482_v14 = vrot.slane %v3481_v43, 4  ;;  %vm455_vm2 = vcmp.gt.f32.partialorder %v9029_v37, 0.0  ;;  %v745_v1 = vor.u32 %v743_v33, %v742_v10 }
  0x8e   : > { %v3472_v28 = vrot.slane %v3471_v23, 4  ;;  %v1607_v12 = vor.u32 %v1606_v34, %v1602_v11  ;;  %v746_v25 = vrot.slane %v742_v10, 4  ;;  %v753_v46 = vor.u32 %v751_v62, %v750_v19  ;;  %v1016_v10 = vld [vmem:[#allocation2 + $0x68] sm:$0x1] }
  0x8f   : > { %v1598_v52 = vrot.slane %v1597_v55, 4  ;;  %v755_v32 = vrot.slane %v750_v19, 4  ;;  %vm456_vm3 = vcmp.gt.f32.partialorder %v9032_v27, 0.0  ;;  %v1006_v18 = vsel %vm8594_vm8, %v745_v1, %v1005_v5 }
  0x90   : > { %v3477_v9 = vsel %vm8735_vm1, %v3472_v28, %v9065_v48  ;;  %v9073_v45 = vld [vmem:[#allocation2 + $0x50] sm:$0x1]  ;;  %v1608_v6 = vrot.slane %v1607_v12, 4  ;;  %v520_v36 = vsel %vm455_vm2, %v9029_v37, %v488_v20  ;;  %v754_v48 = vsel %vm8582_vm7, %v746_v25, %v753_v46  ;;  %1007 = vst [vmem:[#allocation2 + $0x54] sm:$0xf] %v1006_v18 }
  0x91   : > { %v1433_v56 = vld [vmem:[#allocation2 + $0x50] sm:$0x1]  ;;  %v1603_v50 = vsel %vm8735_vm1, %v1598_v52, %v1602_v11  ;;  %v3484_v35 = vshll.u32 %v9073_v45, 16  ;;  %v1010_v53 = vsel %vm8607_vm11, %v755_v32, %v1009_v60  ;;  %v8267_v11 = vld [vmem:[%s10696_s4 + $0x38] sm:$0xff]   ;;  %1008 = vst [vmem:[#allocation2 + $0x58] sm:$0xf] %v754_v48  ;;  %v521_v40 = vsel %vm456_vm3, %v9032_v27, %v9046_v39 }
  0x92   : > { %v1610_v16 = vshll.u32 %v1433_v56, 16  ;;  %1011 = vst [vmem:[#allocation2 + $0x5c] sm:$0x1] %v1010_v53  ;;  %v7081_v37 = vpack.c.bf16 %v520_v36, %v520_v36  ;;  %v4118_v20 = vrot.slane %v4116_v38, 4  ;;  %v387_v15 = vsub.f32 %v7166_v54, %v9013_v31  ;;  %7583 = vmatprep.subr.bf16.mxu1 %v8267_v11 }
  0x93   : > { %v3486_v63 = vrot.slane %v3484_v35, 5  ;;  %v7082_v23 = vpack.c.bf16 %v521_v40, %v521_v40  ;;  %v425_v43 = vmul.f32 %v8954_v4, %v386_v24  ;;  %7584 = vmatpush3.bf16.msra.mxu1 %v8267_v11  ;;  %v1012_v24 = vld [vmem:[#allocation2 + $0x60] sm:$0xf]  ;;  %v10736_v12 = vrot.slane %v8671_v17, 5  ;;  %v9129_v11 = vld [vmem:[#allocation2 + $0x24] sm:$0xe] }
  0x94   : > { %v1612_v21 = vrot.slane %v1610_v16, 5  ;;  %v757_v33 = vshrl.u32 %v7081_v37, 16  ;;  %v760_v61 = vshll.u32 %v7081_v37, 16  ;;  %v9100_v27 = vsel %vm9034_vm0, %v4118_v20, %v4119_v0 }
  0x95   : > { %v426_v44 = vmul.f32 %v8954_v4, %v387_v15  ;;  %v3487_v47 = vsel %vm8735_vm1, %v3482_v14, %v3486_v63  ;;  %v765_v54 = vshrl.u32 %v7082_v23, 16  ;;  %v768_v39 = vshll.u32 %v7082_v23, 16 }
  0x96   : > { %v1613_v38 = vsel %vm8735_vm1, %v1608_v6, %v1612_v21  ;;  %v6820_v5 = vcombine.low %v3477_v9, %v3487_v47  ;;  %v759_v34 = vrot.slane %v757_v33, 7  ;;  %v6871_v3 = vcombine.low %v9060_v58, %v9100_v27 }
  0x97   : > { %v6661_v55 = vcombine.low %v1603_v50, %v1613_v38  ;;  %v767_v0 = vrot.slane %v765_v54, 7  ;;  %vm457_vm4 = vcmp.gt.f32.partialorder %v425_v43, 0.0  ;;  %vm458_vm5 = vcmp.gt.f32.partialorder %v426_v44, 0.0  ;;  %v1097_v60 = vld [vmem:[#allocation2 + $0x54] sm:$0x2] }
  0x98   : > { %v490_v62 = vmul.f32 %v8565_v26, %v425_v43  ;;  %7738 = vmatmul.mubr.bf16.gmra.mrb[8].mxu0 %v6820_v5  ;;  %v1201_v28 = vld [vmem:[#allocation2 + $0x54] sm:$0x1]  ;;  %v762_v14 = vor.u32 %v760_v61, %v759_v34  ;;  %v763_v19 = vrot.slane %v759_v34, 4  ;;  %v491_v52 = vmul.f32 %v8565_v26, %v426_v44  ;;  %v1241_v9 = vld [vmem:[#allocation2 + $0x58] sm:$0x8] }
  0x99   : > { %7549 = vmatprep.mubr.bf16.mxu1 %v6661_v55  ;;  %v9117_v1 = vsel %vm9034_vm0, %v6840_v13, %v10736_v12  ;;  %v6610_v25 = vrot.slane %v1097_v60, 9  ;;  %v1346_v46 = vld [vmem:[#allocation2 + $0x5c] sm:$0x1]  ;;  %v770_v32 = vor.u32 %v768_v39, %v767_v0  ;;  %v772_v56 = vrot.slane %v767_v0, 4  ;;  %v9120_v18 = vld [vmem:[#allocation2 + $0x58] sm:$0xf] }
  0x9a   : > { %v522_v50 = vsel %vm457_vm4, %v425_v43, %v490_v62  ;;  %v6628_v6 = vrot.slane %v1241_v9, 11  ;;  %v1394_v36 = vld [vmem:[#allocation2 + $0x58] sm:$0xf]  ;;  %v1013_v17 = vsel %vm8594_vm8, %v762_v14, %v1012_v24  ;;  %v523_v29 = vsel %vm458_vm5, %v426_v44, %v491_v52  ;;  %v1019_v24 = vld [vmem:[#allocation2 + $0x6c] sm:$0xf] }
  0x9b   : > { %v7083_v35 = vpack.c.bf16 %v522_v50, %v522_v50  ;;  %v1202_v13 = vsel %vm8607_vm11, %v6610_v25, %v1201_v28  ;;  %v3498_v16 = vshll.u32 %v9120_v18, 16  ;;  %v3502_v48 = vshrl.u32 %v9120_v18, 16  ;;  %1014 = vst [vmem:[#allocation2 + $0x60] sm:$0xf] %v1013_v17 }
  0x9c   : > { %v1624_v53 = vshll.u32 %v1394_v36, 16  ;;  %1203 = vst [vmem:[#allocation2 + $0x54] sm:$0x1] %v1202_v13  ;;  %v1347_v40 = vsel %vm8638_vm14, %v6628_v6, %v1346_v46  ;;  %v1628_v37 = vshrl.u32 %v1394_v36, 16  ;;  %v771_v20 = vsel %vm8582_vm7, %v763_v19, %v770_v32 }
  0x9d   : > { %v1017_v15 = vsel %vm8607_vm11, %v772_v56, %v1016_v10  ;;  %1348 = vst [vmem:[#allocation2 + $0x5c] sm:$0x1] %v1347_v40  ;;  %v9137_v63 = vrot.slane %v3498_v16, 5  ;;  %v3504_v21 = vrot.slane %v3502_v48, 4  ;;  %1015 = vst [vmem:[#allocation2 + $0x64] sm:$0xf] %v771_v20  ;;  %v7084_v43 = vpack.c.bf16 %v523_v29, %v523_v29 }
  0x9e   : > { %v9139_v23 = vrot.slane %v1624_v53, 5  ;;  %1018 = vst [vmem:[#allocation2 + $0x68] sm:$0x1] %v1017_v15  ;;  %v1630_v33 = vrot.slane %v1628_v37, 4  ;;  %v774_v61 = vshrl.u32 %v7083_v35, 16  ;;  %v777_v44 = vshll.u32 %v7083_v35, 16 }
  0x9f   : > { %v6872_v47 = vcombine.low %v9117_v1, %v9053_v22  ;;  %v3505_v38 = vor.u32 %v3504_v21, %v9137_v63  ;;  %v782_v54 = vshrl.u32 %v7084_v43, 16  ;;  %v785_v39 = vshll.u32 %v7084_v43, 16 }
  0xa0   : > { %v7170_v5 = vunpack.c.h.bf16 %v9024_v51  ;;  %v1631_v55 = vor.u32 %v1630_v33, %v9139_v23  ;;  %v9146_v34 = vrot.slane %v774_v61, 7  ;;  %v388_v0 = vsub.f32 %v7169_v8, %v9013_v31 }
  0xa1   : > { %v6841_v10 = vrot.slane %v9129_v11, 9  ;;  %v9152_v62 = vrot.slane %v3505_v38, 4  ;;  %v784_v60 = vrot.slane %v782_v54, 7  ;;  %v4130_v14 = vrot.slane %v8850_v7, 5 }
  0xa2   : > { %v389_v28 = vsub.f32 %v7170_v5, %v9013_v31  ;;  %v9156_v19 = vrot.slane %v1631_v55, 4  ;;  %v1098_v52 = vld [vmem:[#allocation2 + $0x60] sm:$0x2]  ;;  %v1204_v12 = vld [vmem:[#allocation2 + $0x60] sm:$0x1]  ;;  %v779_v25 = vor.u32 %v777_v44, %v9146_v34  ;;  %v780_v9 = vrot.slane %v9146_v34, 4 }
  0xa3   : > { %v9161_v51 = vmul.f32 %v8954_v4, %v388_v0  ;;  %v3314_v8 = vld [vmem:[#allocation2 + $0x54] sm:$0xf]  ;;  %v6611_v32 = vrot.slane %v1098_v52, 9  ;;  %v787_v56 = vor.u32 %v785_v39, %v784_v60  ;;  %v789_v50 = vrot.slane %v784_v60, 4  ;;  %v8270_v44 = vld [vmem:[%s10696_s4 + $0x80] sm:$0xff]  }
  0xa4   : > { %v1393_v46 = vld [vmem:[#allocation2 + $0x54] sm:$0xf]  ;;  %v9164_v6 = vmul.f32 %v8954_v4, %v389_v28  ;;  %v9166_v36 = vld [vmem:[#allocation2 + $0x5c] sm:$0x1]  ;;  %v3489_v17 = vshrl.u32 %v3314_v8, 16  ;;  %v3492_v29 = vshll.u32 %v3314_v8, 16  ;;  %v1020_v13 = vsel %vm8594_vm8, %v779_v25, %v1019_v24  ;;  %7617 = vmatprep.subr.bf16.mxu1 %v8270_v44 }
  0xa5   : > { %v1434_v35 = vld [vmem:[#allocation2 + $0x5c] sm:$0x1]  ;;  %v9172_v16 = vmul.f32 %v8565_v26, %v9161_v51  ;;  %v3508_v48 = vshll.u32 %v9166_v36, 16  ;;  %v1615_v53 = vshrl.u32 %v1393_v46, 16  ;;  %v1618_v40 = vshll.u32 %v1393_v46, 16 }
  0xa6   : > { %v1634_v37 = vshll.u32 %v1434_v35, 16  ;;  %v1242_v20 = vld [vmem:[#allocation2 + $0x64] sm:$0x8]  ;;  %1021 = vst [vmem:[#allocation2 + $0x6c] sm:$0xf] %v1020_v13  ;;  %v3491_v15 = vrot.slane %v3489_v17, 4  ;;  %v1205_v43 = vsel %vm8607_vm11, %v6611_v32, %v1204_v12  ;;  %v493_v44 = vmul.f32 %v8565_v26, %v9164_v6 }
  0xa7   : > { %v3494_v21 = vrot.slane %v3492_v29, 5  ;;  %v6629_v33 = vrot.slane %v1242_v20, 11  ;;  %v1349_v61 = vld [vmem:[#allocation2 + $0x68] sm:$0x1]  ;;  %v3510_v38 = vrot.slane %v3508_v48, 5  ;;  %v1617_v54 = vrot.slane %v1615_v53, 4 }
  0xa8   : > { %v1620_v39 = vrot.slane %v1618_v40, 5  ;;  %v1636_v24 = vrot.slane %v1634_v37, 5  ;;  %1206 = vst [vmem:[#allocation2 + $0x60] sm:$0x1] %v1205_v43  ;;  %v9180_v5 = vld [vmem:[#allocation2 + $0x64] sm:$0xf]  ;;  %v788_v53 = vsel %vm8582_vm7, %v780_v9, %v787_v56 }
  0xa9   : > { %v3495_v55 = vor.u32 %v3494_v21, %v3491_v15  ;;  %v1350_v34 = vsel %vm8638_vm14, %v6629_v33, %v1349_v61  ;;  %v3522_v0 = vshll.u32 %v9180_v5, 16  ;;  %v3526_v60 = vshrl.u32 %v9180_v5, 16  ;;  %v1396_v28 = vld [vmem:[#allocation2 + $0x64] sm:$0xf]  ;;  %v1023_v52 = vld [vmem:[#allocation2 + $0x74] sm:$0x1] }
  0xaa   : > { %v3511_v12 = vsel %vm8735_vm1, %v9152_v62, %v3510_v38  ;;  %v1621_v25 = vor.u32 %v1620_v39, %v1617_v54  ;;  %v1637_v8 = vsel %vm8735_vm1, %v9156_v19, %v1636_v24  ;;  %1351 = vst [vmem:[#allocation2 + $0x68] sm:$0x1] %v1350_v34  ;;  %v1648_v46 = vshll.u32 %v1396_v28, 16  ;;  %1022 = vst [vmem:[#allocation2 + $0x70] sm:$0xf] %v788_v53 }
  0xab   : > { %v3496_v32 = vrot.slane %v3495_v55, 4  ;;  %v9192_v17 = vrot.slane %v3522_v0, 5  ;;  %v3528_v29 = vrot.slane %v3526_v60, 4  ;;  %v1652_v35 = vshrl.u32 %v1396_v28, 16 }
  0xac   : > { %v1622_v13 = vrot.slane %v1621_v25, 4  ;;  %v9194_v48 = vrot.slane %v1648_v46, 5  ;;  %v1024_v62 = vsel %vm8607_vm11, %v789_v50, %v1023_v52  ;;  %vm459_vm6 = vcmp.gt.f32.partialorder %v9161_v51, 0.0 }
  0xad   : > { %v3501_v19 = vsel %vm8735_vm1, %v3496_v32, %v9137_v63  ;;  %v3529_v40 = vor.u32 %v3528_v29, %v9192_v17  ;;  %v1654_v37 = vrot.slane %v1652_v35, 4  ;;  %1025 = vst [vmem:[#allocation2 + $0x74] sm:$0x1] %v1024_v62  ;;  %v1099_v20 = vld [vmem:[#allocation2 + $0x6c] sm:$0x2]  ;;  %vm460_vm9 = vcmp.gt.f32.partialorder %v9164_v6, 0.0 }
  0xae   : > { %v6821_v15 = vcombine.low %v3501_v19, %v3511_v12  ;;  %v1627_v9 = vsel %vm8735_vm1, %v1622_v13, %v9139_v23  ;;  %v6612_v56 = vrot.slane %v1099_v20, 9  ;;  %v1207_v21 = vld [vmem:[#allocation2 + $0x6c] sm:$0x1]  ;;  %v524_v60 = vsel %vm459_vm6, %v9161_v51, %v9172_v16 }
  0xaf   : > { %v6662_v50 = vcombine.low %v1627_v9, %v1637_v8  ;;  %v3317_v43 = vld [vmem:[#allocation2 + $0x60] sm:$0xf]  ;;  %v3530_v63 = vrot.slane %v3529_v40, 4  ;;  %v1655_v61 = vor.u32 %v1654_v37, %v9194_v48  ;;  %v525_v28 = vsel %vm460_vm9, %v9164_v6, %v493_v44 }
  0xb0   : > { %v1395_v33 = vld [vmem:[#allocation2 + $0x60] sm:$0xf]  ;;  %7741 = vmatprep.mubr.bf16.mxu0 %v6821_v15  ;;  %v3513_v38 = vshrl.u32 %v3317_v43, 16  ;;  %v3516_v54 = vshll.u32 %v3317_v43, 16  ;;  %v1208_v0 = vsel %vm8607_vm11, %v6612_v56, %v1207_v21  ;;  %v7085_v29 = vpack.c.bf16 %v524_v60, %v524_v60 }
  0xb1   : > { %v1639_v39 = vshrl.u32 %v1395_v33, 16  ;;  %v1642_v24 = vshll.u32 %v1395_v33, 16  ;;  %7550 = vmatmul.mubr.bf16.gmra.mrb[12].mxu1 %v6662_v50  ;;  %v9212_v23 = vld [vmem:[#allocation2 + $0x68] sm:$0x1]  ;;  %v1656_v34 = vrot.slane %v1655_v61, 4  ;;  %v7086_v35 = vpack.c.bf16 %v525_v28, %v525_v28 }
  0xb2   : > { %v1435_v55 = vld [vmem:[#allocation2 + $0x68] sm:$0x1]  ;;  %v3515_v52 = vrot.slane %v3513_v38, 4  ;;  %v3518_v12 = vrot.slane %v3516_v54, 5  ;;  %v3532_v25 = vshll.u32 %v9212_v23, 16  ;;  %v9230_v51 = vsel %vm9034_vm0, %v6841_v10, %v4130_v14  ;;  %v7284_v38 = vld [vmem:[%s8535_s29 + $0x50] sm:$0xff]  }
  0xb3   : > { %v1641_v8 = vrot.slane %v1639_v39, 4  ;;  %1209 = vst [vmem:[#allocation2 + $0x6c] sm:$0x1] %v1208_v0  ;;  %v1644_v46 = vrot.slane %v1642_v24, 5  ;;  %v1658_v32 = vshll.u32 %v1435_v55, 16  ;;  %v4132_v6 = vrot.slane %v4130_v14, 4 }
  0xb4   : > { %v3519_v13 = vor.u32 %v3518_v12, %v3515_v52  ;;  %v3534_v53 = vrot.slane %v3532_v25, 5  ;;  %v1243_v62 = vld [vmem:[#allocation2 + $0x70] sm:$0x8]  ;;  %v1352_v19 = vld [vmem:[#allocation2 + $0x74] sm:$0x1]  ;;  %v791_v15 = vshrl.u32 %v7085_v29, 16 }
  0xb5   : > { %v1645_v16 = vor.u32 %v1644_v46, %v1641_v8  ;;  %v1660_v40 = vrot.slane %v1658_v32, 5  ;;  %v6630_v37 = vrot.slane %v1243_v62, 11  ;;  %v1398_v20 = vld [vmem:[#allocation2 + $0x70] sm:$0xf]  ;;  %v794_v44 = vshll.u32 %v7085_v29, 16 }
  0xb6   : > { %v3520_v9 = vrot.slane %v3519_v13, 4  ;;  %v3535_v56 = vsel %vm8735_vm1, %v3530_v63, %v3534_v53  ;;  %v1672_v21 = vshll.u32 %v1398_v20, 16  ;;  %v1676_v50 = vshrl.u32 %v1398_v20, 16  ;;  %v1026_v63 = vld [vmem:[#allocation2 + $0x78] sm:$0xf] }
  0xb7   : > { %v1646_v11 = vrot.slane %v1645_v16, 4  ;;  %v1661_v10 = vsel %vm8735_vm1, %v1656_v34, %v1660_v40  ;;  %v1353_v7 = vsel %vm8638_vm14, %v6630_v37, %v1352_v19  ;;  %v793_v14 = vrot.slane %v791_v15, 7  ;;  %v1030_v52 = vld [vmem:[#allocation2 + $0x80] sm:$0x1]  ;;  %v8355_v46 = vld [vmem:[#allocation2 + $0x2c] sm:$0x1] }
  0xb8   : > { %v3525_v43 = vsel %vm8735_vm1, %v3520_v9, %v9192_v17  ;;  %1354 = vst [vmem:[#allocation2 + $0x74] sm:$0x1] %v1353_v7  ;;  %v9243_v33 = vrot.slane %v1672_v21, 5  ;;  %v1678_v61 = vrot.slane %v1676_v50, 4  ;;  %v799_v34 = vshrl.u32 %v7086_v35, 16  ;;  %v7285_v37 = vld [vmem:[%s8535_s29 + $0x58] sm:$0xff]  }
  0xb9   : > { %v6822_v54 = vcombine.low %v3525_v43, %v3535_v56  ;;  %v1651_v39 = vsel %vm8735_vm1, %v1646_v11, %v9194_v48  ;;  %v797_v55 = vrot.slane %v793_v14, 4  ;;  %v796_v12 = vor.u32 %v794_v44, %v793_v14  ;;  %v4053_v29 = vld [vmem:[#allocation2 + $0x30] sm:$0xe]  ;;  %v8264_v21 = vld [vmem:[%s10696_s4 + $0x188] sm:$0xff]   ;;  %v8356_v50 = vld [vmem:[#allocation2 + $0x34] sm:$0xf] }
  0xba   : > { %v1397_v24 = vld [vmem:[#allocation2 + $0x6c] sm:$0xf]  ;;  %v6663_v0 = vcombine.low %v1651_v39, %v1661_v10  ;;  %v1679_v17 = vor.u32 %v1678_v61, %v9243_v33  ;;  %v801_v25 = vrot.slane %v799_v34, 7  ;;  %v802_v8 = vshll.u32 %v7086_v35, 16 }
  0xbb   : > { %v1663_v60 = vshrl.u32 %v1397_v24, 16  ;;  %v1666_v28 = vshll.u32 %v1397_v24, 16  ;;  %7742 = vmatmul.mubr.bf16.gmra.mrb[12].mxu0 %v6822_v54  ;;  %v4133_v32 = vrot.slane %v8355_v46, 5  ;;  %v7173_v62 = vunpack.c.l.bf16 %v7284_v38  ;;  %v8266_v46 = vld [vmem:[%s10696_s4 + $0x190] sm:$0xff]  }
  0xbc   : > { %7553 = vmatprep.mubr.bf16.mxu1 %v6663_v0  ;;  %7777 = vmatprep.mubr.bf16.mxu0 %v6871_v3  ;;  %v1680_v53 = vrot.slane %v1679_v17, 4  ;;  %v804_v19 = vor.u32 %v802_v8, %v801_v25  ;;  %v806_v16 = vrot.slane %v801_v25, 4  ;;  %v1027_v40 = vsel %vm8594_vm8, %v796_v12, %v1026_v63  ;;  %v9285_v0 = vld [vmem:[#allocation2 + $0x3c] sm:$0xe]  ;;  %v9302_v25 = vld [vmem:[%s10694_s2] ss:$0 sm:$0xff] }
  0xbd   : > { %v1665_v48 = vrot.slane %v1663_v60, 4  ;;  %v1668_v13 = vrot.slane %v1666_v28, 5  ;;  %v4134_v35 = vsel %vm9034_vm0, %v4132_v6, %v4133_v32  ;;  %1028 = vst [vmem:[#allocation2 + $0x78] sm:$0xf] %v1027_v40  ;;  %v7174_v9 = vunpack.c.h.bf16 %v7284_v38 }
  0xbe   : > { %v6873_v15 = vcombine.low %v9230_v51, %v4134_v35  ;;  %v390_v58 = vsub.f32 %v7173_v62, %v9013_v31  ;;  %v805_v3 = vsel %vm8582_vm7, %v797_v55, %v804_v19  ;;  %v1031_v56 = vsel %vm8607_vm11, %v806_v16, %v1030_v52 }
  0xbf   : > { %v1669_v20 = vor.u32 %v1668_v13, %v1665_v48  ;;  %v1436_v27 = vld [vmem:[#allocation2 + $0x74] sm:$0x1]  ;;  %v6842_v6 = vrot.slane %v4053_v29, 9  ;;  %v4137_v11 = vrot.slane %v8356_v50, 5  ;;  %1029 = vst [vmem:[#allocation2 + $0x7c] sm:$0xf] %v805_v3  ;;  %v391_v51 = vsub.f32 %v7174_v9, %v9013_v31 }
  0xc0   : > { %v1682_v7 = vshll.u32 %v1436_v27, 16  ;;  %1032 = vst [vmem:[#allocation2 + $0x80] sm:$0x1] %v1031_v56  ;;  %v429_v14 = vmul.f32 %v8954_v4, %v390_v58  ;;  %v4140_v44 = vrot.slane %v8946_v59, 5  ;;  %v7177_v63 = vunpack.c.l.bf16 %v7285_v37  ;;  %v8268_v58 = vld [vmem:[%s10696_s4 + $0x198] sm:$0xff]  }
  0xc1   : > { %v1670_v10 = vrot.slane %v1669_v20, 4  ;;  %v9271_v43 = vsel %vm9034_vm0, %v6842_v6, %v4137_v11  ;;  %v4139_v61 = vrot.slane %v4137_v11, 4  ;;  %v430_v39 = vmul.f32 %v8954_v4, %v391_v51  ;;  %v8357_v4 = vld [vmem:[%s10696_s4 + $0x180] sm:$0xff]  }
  0xc2   : > { %v1684_v54 = vrot.slane %v1682_v7, 5  ;;  %vm461_vm10 = vcmp.gt.f32.partialorder %v429_v14, 0.0  ;;  %v494_v24 = vmul.f32 %v8565_v26, %v429_v14  ;;  %v7178_v59 = vunpack.c.h.bf16 %v7285_v37  ;;  %v1033_v7 = vld [vmem:[#allocation2 + $0x84] sm:$0xf] }
  0xc3   : > { %v1675_v38 = vsel %vm8735_vm1, %v1670_v10, %v9243_v33  ;;  %7778 = vmatmul.mubr.bf16.vlgmr.msra.gmra.mrb[0].mxu0 %v6872_v47  ;;  %v4141_v55 = vsel %vm9034_vm0, %v4139_v61, %v4140_v44  ;;  %v392_v34 = vsub.f32 %v7177_v63, %v9013_v31  ;;  %vm462_vm12 = vcmp.gt.f32.partialorder %v430_v39, 0.0  ;;  %v9295_v47 = vld [vmem:[%s8535_s29 + $0x60] sm:$0xff]  }
  0xc4   : > { %v1685_v33 = vsel %vm8735_vm1, %v1680_v53, %v1684_v54  ;;  %7810 = vmatpush3.bf16.msra.mxu0 %v8357_v4  ;;  %7781 = vmatprep.mubr.bf16.mxu0 %v6873_v15  ;;  %v495_v22 = vmul.f32 %v8565_v26, %v430_v39  ;;  %v6874_v1 = vcombine.low %v9271_v43, %v4141_v55  ;;  %v1100_v28 = vld [vmem:[#allocation2 + $0x78] sm:$0x2]  ;;  %v1210_v17 = vld [vmem:[#allocation2 + $0x78] sm:$0x1]  ;;  %v6843_v13 = vrot.slane %v9285_v0, 9  ;;  %v8271_v61 = vld [vmem:[%s10696_s4 + $0x1a0] sm:$0xff]  }
  0xc5   : > { %v6664_v60 = vcombine.low %v1675_v38, %v1685_v33  ;;  %7811 = vmatprep.subr.bf16.mxu0 %v8264_v21  ;;  %v526_v52 = vsel %vm461_vm10, %v429_v14, %v494_v24  ;;  %v393_v12 = vsub.f32 %v7178_v59, %v9013_v31  ;;  %v431_v8 = vmul.f32 %v9302_v25, %v392_v34  ;;  %v1037_v14 = vld [vmem:[#allocation2 + $0x8c] sm:$0x1]  ;;  %v8359_v38 = vld [vmem:[#allocation2 + $0x40] sm:$0xf] }
  0xc6   : > { %v6613_v32 = vrot.slane %v1100_v28, 9  ;;  %v527_v29 = vsel %vm462_vm12, %v430_v39, %v495_v22  ;;  %v7087_v48 = vpack.c.bf16 %v526_v52, %v526_v52  ;;  %v1244_v53 = vld [vmem:[#allocation2 + $0x7c] sm:$0x8]  ;;  %v7181_v35 = vunpack.c.l.bf16 %v9295_v47  ;;  %v8360_v39 = vld [vmem:[#allocation2 + $0x44] sm:$0x1] }
  0xc7   : > { %7554 = vmatmul.mubr.bf16.gmra.mrb[16].mxu1 %v6664_v60  ;;  %v1355_v62 = vld [vmem:[#allocation2 + $0x80] sm:$0x1]  ;;  %v1400_v31 = vld [vmem:[#allocation2 + $0x7c] sm:$0xf]  ;;  %v7088_v19 = vpack.c.bf16 %v527_v29, %v527_v29  ;;  %v432_v16 = vmul.f32 %v9302_v25, %v393_v12  ;;  %v496_v40 = vmul.f32 %v8565_v26, %v431_v8  ;;  %v6631_v20 = vrot.slane %v1244_v53, 11 }
  0xc8   : > { %v1211_v37 = vsel %vm8607_vm11, %v6613_v32, %v1210_v17  ;;  %v1696_v15 = vshll.u32 %v1400_v31, 16  ;;  %v1700_v9 = vshrl.u32 %v1400_v31, 16  ;;  %7812 = vmatpush3.bf16.msra.mxu0 %v8264_v21  ;;  %v808_v27 = vshrl.u32 %v7087_v48, 16 }
  0xc9   : > { %1212 = vst [vmem:[#allocation2 + $0x78] sm:$0x1] %v1211_v37  ;;  %v811_v3 = vshll.u32 %v7087_v48, 16  ;;  %v816_v56 = vshrl.u32 %v7088_v19, 16  ;;  %v819_v6 = vshll.u32 %v7088_v19, 16  ;;  %7813 = vmatprep.subr.bf16.mxu0 %v8266_v46  ;;  %v1356_v50 = vsel %vm8638_vm14, %v6631_v20, %v1355_v62  ;;  %v8275_v48 = vld [vmem:[%s10696_s4 + $0x1a8] sm:$0xff]  }
  0xca   : > { %v9319_v11 = vrot.slane %v1696_v15, 5  ;;  %v1702_v10 = vrot.slane %v1700_v9, 4  ;;  %vm463_vm13 = vcmp.gt.f32.partialorder %v431_v8, 0.0  ;;  %1357 = vst [vmem:[#allocation2 + $0x80] sm:$0x1] %v1356_v50  ;;  %v810_v21 = vrot.slane %v808_v27, 7 }
  0xcb   : > { %v818_v51 = vrot.slane %v816_v56, 7  ;;  %7782 = vmatmul.mubr.bf16.gmra.mrb[4].mxu0 %v6874_v1  ;;  %vm464_vm15 = vcmp.gt.f32.partialorder %v432_v16, 0.0  ;;  %v497_v43 = vmul.f32 %v8565_v26, %v432_v16  ;;  %v528_v63 = vsel %vm463_vm13, %v431_v8, %v496_v40  ;;  %v9346_v37 = vld [vmem:[%s10693_s1] ss:$0 sm:$0xff]  ;;  %v1040_v56 = vld [vmem:[#allocation2 + $0x90] sm:$0xf] }
  0xcc   : > { %v1703_v44 = vor.u32 %v1702_v10, %v9319_v11  ;;  %v4144_v54 = vrot.slane %v8359_v38, 5  ;;  %v4147_v24 = vrot.slane %v8360_v39, 5  ;;  %7814 = vmatpush3.bf16.msra.mxu0 %v8266_v46  ;;  %v813_v55 = vor.u32 %v811_v3, %v810_v21  ;;  %v1044_v10 = vld [vmem:[#allocation2 + $0x98] sm:$0x1] }
  0xcd   : > { %v814_v59 = vrot.slane %v810_v21, 4  ;;  %v821_v34 = vor.u32 %v819_v6, %v818_v51  ;;  %v823_v0 = vrot.slane %v818_v51, 4  ;;  %7815 = vmatprep.subr.bf16.mxu0 %v8268_v58  ;;  %v529_v4 = vsel %vm464_vm15, %v432_v16, %v497_v43 }
  0xce   : > { %v9326_v33 = vrot.slane %v1703_v44, 4  ;;  %v7089_v22 = vpack.c.bf16 %v528_v63, %v528_v63  ;;  %v4145_v1 = vsel %vm9034_vm0, %v6843_v13, %v4144_v54  ;;  %v1034_v28 = vsel %vm8594_vm8, %v813_v55, %v1033_v7 }
  0xcf   : > { %v822_v60 = vsel %vm8582_vm7, %v814_v59, %v821_v34  ;;  %v1038_v17 = vsel %vm8607_vm11, %v823_v0, %v1037_v14  ;;  %v7090_v52 = vpack.c.bf16 %v529_v4, %v529_v4  ;;  %1035 = vst [vmem:[#allocation2 + $0x84] sm:$0xf] %v1034_v28  ;;  %v4146_v32 = vrot.slane %v4144_v54, 4  ;;  %v4055_v54 = vld [vmem:[#allocation2 + $0x48] sm:$0xe] }
  0xd0   : > { %v1399_v12 = vld [vmem:[#allocation2 + $0x78] sm:$0xf]  ;;  %1036 = vst [vmem:[#allocation2 + $0x88] sm:$0xf] %v822_v60  ;;  %1039 = vst [vmem:[#allocation2 + $0x8c] sm:$0x1] %v1038_v17  ;;  %v7182_v29 = vunpack.c.h.bf16 %v9295_v47  ;;  %7816 = vmatpush3.bf16.msra.mxu0 %v8268_v58  ;;  %v394_v20 = vsub.f32 %v7181_v35, %v9346_v37 }
  0xd1   : > { %v825_v8 = vshrl.u32 %v7089_v22, 16  ;;  %v828_v46 = vshll.u32 %v7089_v22, 16  ;;  %v1687_v13 = vshrl.u32 %v1399_v12, 16  ;;  %v1690_v53 = vshll.u32 %v1399_v12, 16  ;;  %7817 = vmatprep.subr.bf16.mxu0 %v8271_v61  ;;  %v1437_v19 = vld [vmem:[#allocation2 + $0x80] sm:$0x1] }
  0xd2   : > { %v833_v62 = vshrl.u32 %v7090_v52, 16  ;;  %v836_v31 = vshll.u32 %v7090_v52, 16  ;;  %v4148_v40 = vsel %vm9034_vm0, %v4146_v32, %v4147_v24  ;;  %v395_v15 = vsub.f32 %v7182_v29, %v9346_v37  ;;  %v8279_v47 = vld [vmem:[%s10696_s4 + $0x1b0] sm:$0xff]  }
  0xd3   : > { %v827_v16 = vrot.slane %v825_v8, 7  ;;  %v1689_v9 = vrot.slane %v1687_v13, 4  ;;  %v1692_v58 = vrot.slane %v1690_v53, 5  ;;  %v1706_v27 = vshll.u32 %v1437_v19, 16  ;;  %v8283_v8 = vld [vmem:[%s10696_s4 + $0x1b8] sm:$0xff]  }
  0xd4   : > { %v835_v3 = vrot.slane %v833_v62, 7  ;;  %v6875_v7 = vcombine.low %v4145_v1, %v4148_v40  ;;  %v433_v21 = vmul.f32 %v9302_v25, %v394_v20  ;;  %7818 = vmatpush3.bf16.msra.mxu0 %v8271_v61  ;;  %v434_v63 = vmul.f32 %v9302_v25, %v395_v15  ;;  %v1047_v20 = vld [vmem:[#allocation2 + $0x9c] sm:$0xf]  ;;  %v8362_v15 = vld [vmem:[#allocation2 + $0x4c] sm:$0xf] }
  0xd5   : > { %v830_v6 = vor.u32 %v828_v46, %v827_v16  ;;  %v831_v50 = vrot.slane %v827_v16, 4  ;;  %v1693_v51 = vor.u32 %v1692_v58, %v1689_v9  ;;  %v1708_v14 = vrot.slane %v1706_v27, 5  ;;  %7819 = vmatprep.subr.bf16.mxu0 %v8275_v48 }
  0xd6   : > { %v838_v43 = vor.u32 %v836_v31, %v835_v3  ;;  %v840_v44 = vrot.slane %v835_v3, 4  ;;  %7785 = vmatprep.mubr.bf16.mxu0 %v6875_v7  ;;  %vm465_vm2 = vcmp.gt.f32.partialorder %v433_v21, 0.0  ;;  %v498_v38 = vmul.f32 %v8565_v26, %v433_v21  ;;  %v1101_v24 = vld [vmem:[#allocation2 + $0x84] sm:$0x2]  ;;  %v1213_v55 = vld [vmem:[#allocation2 + $0x84] sm:$0x1] }
  0xd7   : > { %v1041_v35 = vsel %vm8594_vm8, %v830_v6, %v1040_v56  ;;  %v1694_v61 = vrot.slane %v1693_v51, 4  ;;  %v1709_v39 = vsel %vm8735_vm1, %v9326_v33, %v1708_v14  ;;  %v6614_v0 = vrot.slane %v1101_v24, 9  ;;  %v1245_v4 = vld [vmem:[#allocation2 + $0x88] sm:$0x8]  ;;  %v1358_v22 = vld [vmem:[#allocation2 + $0x8c] sm:$0x1] }
  0xd8   : > { %v839_v59 = vsel %vm8582_vm7, %v831_v50, %v838_v43  ;;  %1042 = vst [vmem:[#allocation2 + $0x90] sm:$0xf] %v1041_v35  ;;  %v1045_v34 = vsel %vm8607_vm11, %v840_v44, %v1044_v10  ;;  %vm466_vm3 = vcmp.gt.f32.partialorder %v434_v63, 0.0  ;;  %v499_v1 = vmul.f32 %v8565_v26, %v434_v63  ;;  %7820 = vmatpush3.bf16.msra.mxu0 %v8275_v48  ;;  %v1402_v17 = vld [vmem:[#allocation2 + $0x88] sm:$0xf]  ;;  %v8288_v6 = vld [vmem:[%s10696_s4 + $0x1c0] sm:$0xff]  }
  0xd9   : > { %1043 = vst [vmem:[#allocation2 + $0x94] sm:$0xf] %v839_v59  ;;  %1046 = vst [vmem:[#allocation2 + $0x98] sm:$0x1] %v1045_v34  ;;  %v530_v33 = vsel %vm465_vm2, %v433_v21, %v498_v38  ;;  %v1699_v60 = vsel %vm8735_vm1, %v1694_v61, %v9319_v11  ;;  %v6632_v28 = vrot.slane %v1245_v4, 11  ;;  %v6844_v12 = vrot.slane %v4055_v54, 9  ;;  %7821 = vmatprep.subr.bf16.mxu0 %v8279_v47 }
  0xda   : > { %v7091_v52 = vpack.c.bf16 %v530_v33, %v530_v33  ;;  %v6665_v46 = vcombine.low %v1699_v60, %v1709_v39  ;;  %v1214_v32 = vsel %vm8607_vm11, %v6614_v0, %v1213_v55  ;;  %v1720_v29 = vshll.u32 %v1402_v17, 16  ;;  %v9378_v48 = vld [vmem:[%s8535_s29 + $0x68] sm:$0xff]   ;;  %v1051_v4 = vld [vmem:[#allocation2 + $0xa4] sm:$0x1] }
  0xdb   : > { %v1724_v13 = vshrl.u32 %v1402_v17, 16  ;;  %1215 = vst [vmem:[#allocation2 + $0x84] sm:$0x1] %v1214_v32  ;;  %v1359_v11 = vsel %vm8638_vm14, %v6632_v28, %v1358_v22  ;;  %v531_v53 = vsel %vm466_vm3, %v434_v63, %v499_v1  ;;  %v4151_v9 = vrot.slane %v8362_v15, 5  ;;  %v4056_v17 = vld [vmem:[#allocation2 + $0x54] sm:$0xe] }
  0xdc   : > { %v842_v62 = vshrl.u32 %v7091_v52, 16  ;;  %v845_v31 = vshll.u32 %v7091_v52, 16  ;;  %7557 = vmatprep.mubr.bf16.mxu1 %v6665_v46  ;;  %1360 = vst [vmem:[#allocation2 + $0x8c] sm:$0x1] %v1359_v11  ;;  %v9383_v19 = vrot.slane %v1720_v29, 5  ;;  %v7092_v40 = vpack.c.bf16 %v531_v53, %v531_v53  ;;  %7822 = vmatpush3.bf16.msra.mxu0 %v8279_v47 }
  0xdd   : > { %v1726_v16 = vrot.slane %v1724_v13, 4  ;;  %v4154_v27 = vrot.slane %v9073_v45, 5  ;;  %v7185_v3 = vunpack.c.l.bf16 %v9378_v48  ;;  %v7186_v56 = vunpack.c.h.bf16 %v9378_v48  ;;  %7823 = vmatprep.subr.bf16.mxu0 %v8283_v8 }
  0xde   : > { %v844_v58 = vrot.slane %v842_v62, 7  ;;  %v850_v21 = vshrl.u32 %v7092_v40, 16  ;;  %v853_v51 = vshll.u32 %v7092_v40, 16  ;;  %v4152_v14 = vsel %vm9034_vm0, %v6844_v12, %v4151_v9 }
  0xdf   : > { %v1727_v50 = vor.u32 %v1726_v16, %v9383_v19  ;;  %v1102_v10 = vld [vmem:[#allocation2 + $0x90] sm:$0x2]  ;;  %v1216_v7 = vld [vmem:[#allocation2 + $0x90] sm:$0x1]  ;;  %v396_v63 = vsub.f32 %v7185_v3, %v9346_v37  ;;  %v4153_v24 = vrot.slane %v4151_v9, 4  ;;  %v397_v16 = vsub.f32 %v7186_v56, %v9346_v37 }
  0xe0   : > { %v6615_v43 = vrot.slane %v1102_v10, 9  ;;  %v1246_v45 = vld [vmem:[#allocation2 + $0x94] sm:$0x8]  ;;  %v1361_v44 = vld [vmem:[#allocation2 + $0x98] sm:$0x1]  ;;  %v847_v47 = vor.u32 %v845_v31, %v844_v58  ;;  %v848_v35 = vrot.slane %v844_v58, 4  ;;  %7824 = vmatpush3.bf16.msra.mxu0 %v8283_v8 }
  0xe1   : > { %v9395_v38 = vrot.slane %v1727_v50, 4  ;;  %v6633_v54 = vrot.slane %v1246_v45, 11  ;;  %v9397_v61 = vld [vmem:[#allocation2 + $0x94] sm:$0xf]  ;;  %v852_v39 = vrot.slane %v850_v21, 7  ;;  %7857 = vmatprep.subr.bf16.mxu0 %v8288_v6  ;;  %v4155_v28 = vsel %vm9034_vm0, %v4153_v24, %v4154_v27 }
  0xe2   : > { %v1217_v55 = vsel %vm8607_vm11, %v6615_v43, %v1216_v7  ;;  %v1744_v59 = vshll.u32 %v9397_v61, 16  ;;  %v1748_v34 = vshrl.u32 %v9397_v61, 16  ;;  %v1048_v0 = vsel %vm8594_vm8, %v847_v47, %v1047_v20  ;;  %v9405_v22 = vld [vmem:[#allocation2 + $0x84] sm:$0xf]  ;;  %v9424_v58 = vld [vmem:[%s8535_s29 + $0x70] sm:$0xff]  }
  0xe3   : > { %1218 = vst [vmem:[#allocation2 + $0x90] sm:$0x1] %v1217_v55  ;;  %v1362_v1 = vsel %vm8638_vm14, %v6633_v54, %v1361_v44  ;;  %v855_v33 = vor.u32 %v853_v51, %v852_v39  ;;  %v857_v60 = vrot.slane %v852_v39, 4  ;;  %1049 = vst [vmem:[#allocation2 + $0x9c] sm:$0xf] %v1048_v0  ;;  %v1711_v12 = vshrl.u32 %v9405_v22, 16 }
  0xe4   : > { %v1438_v52 = vld [vmem:[#allocation2 + $0x8c] sm:$0x1]  ;;  %v1714_v8 = vshll.u32 %v9405_v22, 16  ;;  %1363 = vst [vmem:[#allocation2 + $0x98] sm:$0x1] %v1362_v1  ;;  %v9413_v46 = vrot.slane %v1744_v59, 5  ;;  %v6876_v11 = vcombine.low %v4152_v14, %v4155_v28  ;;  %v435_v20 = vmul.f32 %v9302_v25, %v396_v63 }
  0xe5   : > { %v1750_v32 = vrot.slane %v1748_v34, 4  ;;  %v1730_v29 = vshll.u32 %v1438_v52, 16  ;;  %v856_v13 = vsel %vm8582_vm7, %v848_v35, %v855_v33  ;;  %v1052_v48 = vsel %vm8607_vm11, %v857_v60, %v1051_v4 }
  0xe6   : > { %v1713_v53 = vrot.slane %v1711_v12, 4  ;;  %v1716_v62 = vrot.slane %v1714_v8, 5  ;;  %1050 = vst [vmem:[#allocation2 + $0xa0] sm:$0xf] %v856_v13  ;;  %1053 = vst [vmem:[#allocation2 + $0xa4] sm:$0x1] %v1052_v48  ;;  %7786 = vmatmul.mubr.bf16.gmra.mrb[8].mxu0 %v6876_v11  ;;  %v436_v6 = vmul.f32 %v9302_v25, %v397_v16  ;;  %v500_v56 = vmul.f32 %v8565_v26, %v435_v20 }
  0xe7   : > { %v1751_v31 = vor.u32 %v1750_v32, %v9413_v46  ;;  %v1732_v40 = vrot.slane %v1730_v29, 5  ;;  %v6845_v15 = vrot.slane %v4056_v17, 9  ;;  %v4158_v9 = vrot.slane %v9120_v18, 5 }
  0xe8   : > { %v1717_v27 = vor.u32 %v1716_v62, %v1713_v53  ;;  %v4161_v50 = vrot.slane %v9166_v36, 5  ;;  %vm467_vm4 = vcmp.gt.f32.partialorder %v435_v20, 0.0  ;;  %vm468_vm5 = vcmp.gt.f32.partialorder %v436_v6, 0.0  ;;  %v1054_v62 = vld [vmem:[#allocation2 + $0xa8] sm:$0xf] }
  0xe9   : > { %v1752_v3 = vrot.slane %v1751_v31, 4  ;;  %v1733_v10 = vsel %vm8735_vm1, %v9395_v38, %v1732_v40  ;;  %v9434_v7 = vsel %vm9034_vm0, %v6845_v15, %v4158_v9  ;;  %v501_v14 = vmul.f32 %v8565_v26, %v436_v6 }
  0xea   : > { %v1718_v18 = vrot.slane %v1717_v27, 4  ;;  %v9436_v21 = vld [vmem:[#allocation2 + $0x90] sm:$0xf]  ;;  %v1103_v51 = vld [vmem:[#allocation2 + $0x9c] sm:$0x2]  ;;  %v7189_v43 = vunpack.c.l.bf16 %v9424_v58  ;;  %v532_v63 = vsel %vm467_vm4, %v435_v20, %v500_v56 }
  0xeb   : > { %v1439_v45 = vld [vmem:[#allocation2 + $0x98] sm:$0x1]  ;;  %v1735_v44 = vshrl.u32 %v9436_v21, 16  ;;  %v1738_v47 = vshll.u32 %v9436_v21, 16  ;;  %v6616_v35 = vrot.slane %v1103_v51, 9  ;;  %v533_v24 = vsel %vm468_vm5, %v436_v6, %v501_v14 }
  0xec   : > { %v1723_v38 = vsel %vm8735_vm1, %v1718_v18, %v9383_v19  ;;  %v1754_v54 = vshll.u32 %v1439_v45, 16  ;;  %v1219_v39 = vld [vmem:[#allocation2 + $0x9c] sm:$0x1]  ;;  %v7093_v55 = vpack.c.bf16 %v532_v63, %v532_v63  ;;  %v7094_v52 = vpack.c.bf16 %v533_v24, %v533_v24  ;;  %v1058_v18 = vld [vmem:[#allocation2 + $0xb0] sm:$0x1] }
  0xed   : > { %v6666_v59 = vcombine.low %v1723_v38, %v1733_v10  ;;  %v1737_v34 = vrot.slane %v1735_v44, 4  ;;  %v1740_v0 = vrot.slane %v1738_v47, 5  ;;  %v1220_v4 = vsel %vm8607_vm11, %v6616_v35, %v1219_v39  ;;  %v1247_v1 = vld [vmem:[#allocation2 + $0xa0] sm:$0x8]  ;;  %v1364_v33 = vld [vmem:[#allocation2 + $0xa4] sm:$0x1] }
  0xee   : > { %v1756_v60 = vrot.slane %v1754_v54, 5  ;;  %1221 = vst [vmem:[#allocation2 + $0x9c] sm:$0x1] %v1220_v4  ;;  %v6634_v28 = vrot.slane %v1247_v1, 11  ;;  %v9447_v17 = vld [vmem:[#allocation2 + $0xa0] sm:$0xf]  ;;  %v7190_v51 = vunpack.c.h.bf16 %v9424_v58  ;;  %v398_v14 = vsub.f32 %v7189_v43, %v9346_v37 }
  0xef   : > { %v859_v12 = vshrl.u32 %v7093_v55, 16  ;;  %7558 = vmatmul.mubr.bf16.gmra.mrb[20].mxu1 %v6666_v59  ;;  %v1741_v19 = vor.u32 %v1740_v0, %v1737_v34  ;;  %v1768_v8 = vshll.u32 %v9447_v17, 16  ;;  %v1772_v32 = vshrl.u32 %v9447_v17, 16  ;;  %v4057_v63 = vld [vmem:[#allocation2 + $0x60] sm:$0xe] }
  0xf0   : > { %v862_v29 = vshll.u32 %v7093_v55, 16  ;;  %v1757_v13 = vsel %vm8735_vm1, %v1752_v3, %v1756_v60  ;;  %v1365_v48 = vsel %vm8638_vm14, %v6634_v28, %v1364_v33  ;;  %v867_v53 = vshrl.u32 %v7094_v52, 16 }
  0xf1   : > { %v861_v11 = vrot.slane %v859_v12, 7  ;;  %v1742_v31 = vrot.slane %v1741_v19, 4  ;;  %1366 = vst [vmem:[#allocation2 + $0xa4] sm:$0x1] %v1365_v48  ;;  %v9455_v16 = vrot.slane %v1768_v8, 5  ;;  %v1774_v40 = vrot.slane %v1772_v32, 4 }
  0xf2   : > { %v870_v20 = vshll.u32 %v7094_v52, 16  ;;  %v869_v6 = vrot.slane %v867_v53, 7  ;;  %v4160_v10 = vrot.slane %v4158_v9, 4  ;;  %v399_v58 = vsub.f32 %v7190_v51, %v9346_v37 }
  0xf3   : > { %v864_v15 = vor.u32 %v862_v29, %v861_v11  ;;  %v865_v27 = vrot.slane %v861_v11, 4  ;;  %v1747_v3 = vsel %vm8735_vm1, %v1742_v31, %v9413_v46  ;;  %v1775_v56 = vor.u32 %v1774_v40, %v9455_v16 }
  0xf4   : > { %v6667_v45 = vcombine.low %v1747_v3, %v1757_v13  ;;  %v872_v44 = vor.u32 %v870_v20, %v869_v6  ;;  %v874_v47 = vrot.slane %v869_v6, 4  ;;  %v4162_v46 = vsel %vm9034_vm0, %v4160_v10, %v4161_v50  ;;  %v4058_v6 = vld [vmem:[#allocation2 + $0x6c] sm:$0xe] }
  0xf5   : > { %v1055_v35 = vsel %vm8594_vm8, %v864_v15, %v1054_v62  ;;  %v9465_v38 = vld [vmem:[#allocation2 + $0x9c] sm:$0xf]  ;;  %v1776_v9 = vrot.slane %v1775_v56, 4  ;;  %v437_v43 = vmul.f32 %v9302_v25, %v398_v14  ;;  %v6877_v36 = vcombine.low %v9434_v7, %v4162_v46 }
  0xf6   : > { %1056 = vst [vmem:[#allocation2 + $0xa8] sm:$0xf] %v1055_v35  ;;  %7561 = vmatprep.mubr.bf16.mxu1 %v6667_v45  ;;  %v1759_v54 = vshrl.u32 %v9465_v38, 16  ;;  %v1762_v39 = vshll.u32 %v9465_v38, 16  ;;  %v873_v24 = vsel %vm8582_vm7, %v865_v27, %v872_v44  ;;  %v1059_v55 = vsel %vm8607_vm11, %v874_v47, %v1058_v18  ;;  %v3321_v27 = vld [vmem:[#allocation2 + $0x70] sm:$0xf] }
  0xf7   : > { %1057 = vst [vmem:[#allocation2 + $0xac] sm:$0xf] %v873_v24  ;;  %1060 = vst [vmem:[#allocation2 + $0xb0] sm:$0x1] %v1059_v55  ;;  %v438_v50 = vmul.f32 %v9302_v25, %v399_v58  ;;  %vm469_vm6 = vcmp.gt.f32.partialorder %v437_v43, 0.0  ;;  %v502_v59 = vmul.f32 %v8565_v26, %v437_v43  ;;  %v6846_v1 = vrot.slane %v4057_v63, 9  ;;  %7789 = vmatprep.mubr.bf16.mxu0 %v6877_v36 }
  0xf8   : > { %v1440_v34 = vld [vmem:[#allocation2 + $0xa4] sm:$0x1]  ;;  %v1761_v0 = vrot.slane %v1759_v54, 4  ;;  %v1764_v4 = vrot.slane %v1762_v39, 5  ;;  %v4165_v33 = vrot.slane %v9180_v5, 5  ;;  %v4168_v13 = vrot.slane %v9212_v23, 5 }
  0xf9   : > { %v1778_v60 = vshll.u32 %v1440_v34, 16  ;;  %vm470_vm9 = vcmp.gt.f32.partialorder %v438_v50, 0.0  ;;  %v503_v28 = vmul.f32 %v8565_v26, %v438_v50  ;;  %v534_v52 = vsel %vm469_vm6, %v437_v43, %v502_v59  ;;  %v1061_v43 = vld [vmem:[#allocation2 + $0xb4] sm:$0xf]  ;;  %v1065_v59 = vld [vmem:[#allocation2 + $0xbc] sm:$0x1] }
  0xfa   : > { %v1765_v12 = vor.u32 %v1764_v4, %v1761_v0  ;;  %v7095_v19 = vpack.c.bf16 %v534_v52, %v534_v52  ;;  %v4167_v7 = vrot.slane %v4165_v33, 4  ;;  %v4166_v29 = vsel %vm9034_vm0, %v6846_v1, %v4165_v33  ;;  %v4059_v52 = vld [vmem:[#allocation2 + $0x78] sm:$0xe] }
  0xfb   : > { %v1780_v8 = vrot.slane %v1778_v60, 5  ;;  %v535_v32 = vsel %vm470_vm9, %v438_v50, %v503_v28  ;;  %v6847_v54 = vrot.slane %v4058_v6, 9  ;;  %v4172_v39 = vrot.slane %v3321_v27, 5  ;;  %v9515_v28 = vld [vmem:[#allocation2 + $0x7c] sm:$0xf] }
  0xfc   : > { %v1766_v48 = vrot.slane %v1765_v12, 4  ;;  %v7096_v5 = vpack.c.bf16 %v535_v32, %v535_v32  ;;  %v876_v62 = vshrl.u32 %v7095_v19, 16  ;;  %v879_v20 = vshll.u32 %v7095_v19, 16  ;;  %v3330_v6 = vld [vmem:[#allocation2 + $0x94] sm:$0xf] }
  0xfd   : > { %v1104_v11 = vld [vmem:[#allocation2 + $0xa8] sm:$0x2]  ;;  %v1222_v53 = vld [vmem:[#allocation2 + $0xa8] sm:$0x1]  ;;  %v1781_v31 = vsel %vm8735_vm1, %v1776_v9, %v1780_v8  ;;  %v4169_v15 = vsel %vm9034_vm0, %v4167_v7, %v4168_v13  ;;  %v4173_v34 = vsel %vm9034_vm0, %v6847_v54, %v4172_v39  ;;  %v4174_v0 = vrot.slane %v4172_v39, 4 }
  0xfe   : > { %v6617_v40 = vrot.slane %v1104_v11, 9  ;;  %v1771_v10 = vsel %vm8735_vm1, %v1766_v48, %v9455_v16  ;;  %v1248_v23 = vld [vmem:[#allocation2 + $0xac] sm:$0x8]  ;;  %v1367_v3 = vld [vmem:[#allocation2 + $0xb0] sm:$0x1]  ;;  %v6878_v18 = vcombine.low %v4166_v29, %v4169_v15  ;;  %v878_v35 = vrot.slane %v876_v62, 7 }
  0xff   : > { %v9494_v56 = vld [vmem:[#allocation2 + $0xac] sm:$0xf]  ;;  %v6668_v51 = vcombine.low %v1771_v10, %v1781_v31  ;;  %v6635_v45 = vrot.slane %v1248_v23, 11  ;;  %v884_v63 = vshrl.u32 %v7096_v5, 16  ;;  %v887_v9 = vshll.u32 %v7096_v5, 16 }
 0x100   : > { %v1223_v14 = vsel %vm8607_vm11, %v6617_v40, %v1222_v53  ;;  %v1792_v44 = vshll.u32 %v9494_v56, 16  ;;  %v1796_v47 = vshrl.u32 %v9494_v56, 16  ;;  %7790 = vmatmul.mubr.bf16.gmra.mrb[12].mxu0 %v6878_v18  ;;  %v3322_v16 = vld [vmem:[#allocation2 + $0x74] sm:$0x1]  ;;  %v9504_v55 = vor.u32 %v879_v20, %v878_v35  ;;  %v9520_v7 = vld [vmem:[#allocation2 + $0x80] sm:$0x1] }
 0x101   : > { %1224 = vst [vmem:[#allocation2 + $0xa8] sm:$0x1] %v1223_v14  ;;  %7562 = vmatmul.mubr.bf16.gmra.mrb[24].mxu1 %v6668_v51  ;;  %v1368_v46 = vsel %vm8638_vm14, %v6635_v45, %v1367_v3  ;;  %v882_v36 = vrot.slane %v878_v35, 4  ;;  %v9506_v50 = vrot.slane %v884_v63, 7  ;;  %v4175_v4 = vrot.slane %v3322_v16, 5 }
 0x102   : > { %v9502_v58 = vrot.slane %v1792_v44, 5  ;;  %1369 = vst [vmem:[#allocation2 + $0xb0] sm:$0x1] %v1368_v46  ;;  %v1798_v24 = vrot.slane %v1796_v47, 4  ;;  %v1062_v60 = vsel %vm8594_vm8, %v9504_v55, %v1061_v43  ;;  %v4060_v8 = vld [vmem:[#allocation2 + $0x84] sm:$0xe] }
 0x103   : > { %v889_v1 = vor.u32 %v887_v9, %v9506_v50  ;;  %v891_v33 = vrot.slane %v9506_v50, 4  ;;  %1063 = vst [vmem:[#allocation2 + $0xb4] sm:$0xf] %v1062_v60  ;;  %v4176_v19 = vsel %vm9034_vm0, %v4174_v0, %v4175_v4  ;;  %v3327_v48 = vld [vmem:[#allocation2 + $0x88] sm:$0xf]  ;;  %v6848_v53 = vrot.slane %v4059_v52, 9 }
 0x104   : > { %v1799_v12 = vor.u32 %v1798_v24, %v9502_v58  ;;  %v6879_v13 = vcombine.low %v4173_v34, %v4176_v19  ;;  %v4179_v5 = vrot.slane %v9515_v28, 5  ;;  %v3328_v62 = vld [vmem:[#allocation2 + $0x8c] sm:$0x1]  ;;  %v4061_v31 = vld [vmem:[#allocation2 + $0x90] sm:$0xe]  ;;  %v4182_v15 = vrot.slane %v9520_v7, 5 }
 0x105   : > { %v890_v32 = vsel %vm8582_vm7, %v882_v36, %v889_v1  ;;  %v1066_v29 = vsel %vm8607_vm11, %v891_v33, %v1065_v59  ;;  %v6849_v27 = vrot.slane %v4060_v8, 9  ;;  %v4186_v51 = vrot.slane %v3327_v48, 5  ;;  %v3331_v35 = vld [vmem:[#allocation2 + $0x98] sm:$0x1]  ;;  %v4062_v46 = vld [vmem:[#allocation2 + $0x9c] sm:$0xe] }
 0x106   : > { %1064 = vst [vmem:[#allocation2 + $0xb8] sm:$0xf] %v890_v32  ;;  %1067 = vst [vmem:[#allocation2 + $0xbc] sm:$0x1] %v1066_v29  ;;  %7793 = vmatprep.mubr.bf16.mxu0 %v6879_v13  ;;  %v1800_v23 = vrot.slane %v1799_v12, 4  ;;  %v4180_v3 = vsel %vm9034_vm0, %v6848_v53, %v4179_v5  ;;  %v4181_v18 = vrot.slane %v4179_v5, 4 }
 0x107   : > { %1086 = vst [vmem:[#allocation2 + $0xd0] sm:$0xf] %v890_v32  ;;  %v4189_v47 = vrot.slane %v3328_v62, 5  ;;  %v4187_v9 = vsel %vm9034_vm0, %v6849_v27, %v4186_v51  ;;  %v4188_v16 = vrot.slane %v4186_v51, 4  ;;  %v6850_v59 = vrot.slane %v4061_v31, 9 }
 0x108   : > { %v9528_v11 = vld [vmem:[#allocation2 + $0xa8] sm:$0xf]  ;;  %v4183_v63 = vsel %vm9034_vm0, %v4181_v18, %v4182_v15  ;;  %v3333_v34 = vld [vmem:[#allocation2 + $0xa0] sm:$0xf]  ;;  %v4193_v1 = vrot.slane %v3330_v6, 5  ;;  %v4196_v60 = vrot.slane %v3331_v35, 5 }
 0x109   : > { %v1783_v40 = vshrl.u32 %v9528_v11, 16  ;;  %v1786_v20 = vshll.u32 %v9528_v11, 16  ;;  %v1441_v10 = vld [vmem:[#allocation2 + $0xb0] sm:$0x1]  ;;  %v6880_v36 = vcombine.low %v4180_v3, %v4183_v63  ;;  %v4190_v4 = vsel %vm9034_vm0, %v4188_v16, %v4189_v47  ;;  %v3334_v52 = vld [vmem:[#allocation2 + $0xa4] sm:$0x1] }
 0x10a   : > { %v1802_v44 = vshll.u32 %v1441_v10, 16  ;;  %v1105_v39 = vld [vmem:[#allocation2 + $0xb4] sm:$0x2]  ;;  %v1225_v24 = vld [vmem:[#allocation2 + $0xb4] sm:$0x1]  ;;  %v6881_v29 = vcombine.low %v4187_v9, %v4190_v4  ;;  %v4194_v62 = vsel %vm9034_vm0, %v6850_v59, %v4193_v1  ;;  %v4195_v31 = vrot.slane %v4193_v1, 4 }
 0x10b   : > { %v1785_v14 = vrot.slane %v1783_v40, 4  ;;  %v1788_v45 = vrot.slane %v1786_v20, 5  ;;  %v6618_v0 = vrot.slane %v1105_v39, 9  ;;  %7794 = vmatmul.mubr.bf16.gmra.mrb[16].mxu0 %v6880_v36  ;;  %v4063_v13 = vld [vmem:[#allocation2 + $0xa8] sm:$0xe]  ;;  %v6851_v10 = vrot.slane %v4062_v46, 9 }
 0x10c   : > { %v1804_v54 = vrot.slane %v1802_v44, 5  ;;  %v3336_v40 = vld [vmem:[#allocation2 + $0xac] sm:$0xf]  ;;  %v3337_v20 = vld [vmem:[#allocation2 + $0xb0] sm:$0x1]  ;;  %7797 = vmatprep.mubr.bf16.mxu0 %v6881_v29  ;;  %v4197_v18 = vsel %vm9034_vm0, %v4195_v31, %v4196_v60  ;;  %v4200_v51 = vrot.slane %v3333_v34, 5 }
 0x10d   : > { %v1789_v43 = vor.u32 %v1788_v45, %v1785_v14  ;;  %v1249_v8 = vld [vmem:[#allocation2 + $0xb8] sm:$0x8]  ;;  %v1370_v32 = vld [vmem:[#allocation2 + $0xbc] sm:$0x1]  ;;  %v1226_v48 = vsel %vm8607_vm11, %v6618_v0, %v1225_v24  ;;  %v4064_v14 = vld [vmem:[#allocation2 + $0xb4] sm:$0xe]  ;;  %v6882_v44 = vcombine.low %v4194_v62, %v4197_v18 }
 0x10e   : > { %v1805_v19 = vsel %vm8735_vm1, %v1800_v23, %v1804_v54  ;;  %v6636_v53 = vrot.slane %v1249_v8, 11  ;;  %v9546_v5 = vld [vmem:[#allocation2 + $0xb8] sm:$0xf]  ;;  %1227 = vst [vmem:[#allocation2 + $0xb4] sm:$0x1] %v1226_v48  ;;  %v4203_v47 = vrot.slane %v3334_v52, 5  ;;  %v4201_v63 = vsel %vm9034_vm0, %v6851_v10, %v4200_v51 }
 0x10f   : > { %v1790_v12 = vrot.slane %v1789_v43, 4  ;;  %v1816_v27 = vshll.u32 %v9546_v5, 16  ;;  %v1820_v6 = vshrl.u32 %v9546_v5, 16  ;;  %v3339_v35 = vld [vmem:[#allocation2 + $0xb8] sm:$0xf]  ;;  %v4202_v9 = vrot.slane %v4200_v51, 4 }
 0x110   : > { %v1371_v3 = vsel %vm8638_vm14, %v6636_v53, %v1370_v32  ;;  %v6852_v16 = vrot.slane %v4063_v13, 9  ;;  %v4207_v43 = vrot.slane %v3336_v40, 5  ;;  %v4210_v54 = vrot.slane %v3337_v20, 5  ;;  %v7289_v39 = vld [vmem:[%s8535_s29 + $0x78] sm:$0xff]   ;;  %s293_s29 = scalar_lea.vmem %s10698_s6, %s10807_s27 }
 0x111   : > { %v1795_v15 = vsel %vm8735_vm1, %v1790_v12, %v9502_v58  ;;  %1372 = vst [vmem:[#allocation2 + $0xbc] sm:$0x1] %v1371_v3  ;;  %v1818_v45 = vrot.slane %v1816_v27, 5  ;;  %v1822_v58 = vrot.slane %v1820_v6, 4  ;;  %v4204_v24 = vsel %vm9034_vm0, %v4202_v9, %v4203_v47  ;;  %v8364_v9 = vld [vmem:[#allocation2] sm:$0xf] }
 0x112   : > { %v6669_v23 = vcombine.low %v1795_v15, %v1805_v19  ;;  %v6853_v36 = vrot.slane %v4064_v14, 9  ;;  %v4214_v59 = vrot.slane %v3339_v35, 5  ;;  %v6883_v34 = vcombine.low %v4201_v63, %v4204_v24  ;;  %v9586_v63 = vld [vmem:[#allocation2 + $0x4] sm:$0xf] }
 0x113   : > { %v1823_v46 = vor.u32 %v1822_v58, %v1818_v45  ;;  %7798 = vmatmul.mubr.bf16.gmra.mrb[20].mxu0 %v6882_v44  ;;  %v4208_v0 = vsel %vm9034_vm0, %v6852_v16, %v4207_v43  ;;  %v4209_v4 = vrot.slane %v4207_v43, 4  ;;  %v7193_v52 = vunpack.c.l.bf16 %v7289_v39 }
 0x114   : > { %7565 = vmatprep.mubr.bf16.mxu1 %v6669_v23  ;;  %v7194_v12 = vunpack.c.h.bf16 %v7289_v39  ;;  %7801 = vmatprep.mubr.bf16.mxu0 %v6883_v34  ;;  %v4216_v29 = vrot.slane %v4214_v59, 4  ;;  %v4215_v62 = vsel %vm9034_vm0, %v6853_v36, %v4214_v59  ;;  %v6679_v16 = vcombine.low %v8364_v9, %v9586_v63 }
 0x115   : > { %v9566_v1 = vld [vmem:[#allocation2 + $0xb4] sm:$0xf]  ;;  %v1824_v60 = vrot.slane %v1823_v46, 4  ;;  %v4211_v32 = vsel %vm9034_vm0, %v4209_v4, %v4210_v54  ;;  %v400_v31 = vsub.f32 %v7193_v52, %v9346_v37  ;;  %v1072_v52 = vld [vmem:[#allocation2 + $0xc8] sm:$0x1] }
 0x116   : > { %v1807_v19 = vshrl.u32 %v9566_v1, 16  ;;  %v1810_v8 = vshll.u32 %v9566_v1, 16  ;;  %v6884_v48 = vcombine.low %v4208_v0, %v4211_v32  ;;  %v401_v40 = vsub.f32 %v7194_v12, %v9346_v37  ;;  %v1068_v0 = vld [vmem:[#allocation2 + $0xc0] sm:$0xf]  ;;  %v9589_v12 = vld [vmem:[#allocation2 + $0x10] sm:$0xf] }
 0x117   : > { %v439_v10 = vmul.f32 %v9302_v25, %v400_v31  ;;  %v8274_v31 = vld [vmem:[%s10696_s4 + $0x88] sm:$0xff]   ;;  %v2485_v57 = vrot.slane %v9589_v12, 5 }
 0x118   : > { %v1442_v13 = vld [vmem:[#allocation2 + $0xbc] sm:$0x1]  ;;  %v1809_v20 = vrot.slane %v1807_v19, 4  ;;  %v1812_v15 = vrot.slane %v1810_v8, 5  ;;  %v440_v23 = vmul.f32 %v9302_v25, %v401_v40  ;;  %v8366_v19 = vld [vmem:[#allocation2 + $0xc] sm:$0xf] }
 0x119   : > { %v3340_v53 = vld [vmem:[#allocation2 + $0xbc] sm:$0x1]  ;;  %v1826_v27 = vshll.u32 %v1442_v13, 16  ;;  %vm471_vm10 = vcmp.gt.f32.partialorder %v439_v10, 0.0  ;;  %v504_v58 = vmul.f32 %v8565_v26, %v439_v10  ;;  %v6680_v8 = vcombine.low %v8366_v19, %v9589_v12  ;;  %v9663_v12 = vld [vmem:[#allocation2 + $0x64] sm:$0xf] }
 0x11a   : > { %v4217_v6 = vrot.slane %v3340_v53, 5  ;;  %v1813_v3 = vor.u32 %v1812_v15, %v1809_v20  ;;  %vm472_vm12 = vcmp.gt.f32.partialorder %v440_v23, 0.0  ;;  %v505_v47 = vmul.f32 %v8565_v26, %v440_v23  ;;  %v9592_v13 = vld [vmem:[#allocation2 + $0x1c] sm:$0xf]  ;;  %v8369_v15 = vld [vmem:[%s10696_s4 + $0x80] sm:$0xff]  }
 0x11b   : > { %v1828_v18 = vrot.slane %v1826_v27, 5  ;;  %7802 = vmatmul.mubr.bf16.gmra.mrb[24].mxu0 %v6884_v48  ;;  %v536_v35 = vsel %vm471_vm10, %v439_v10, %v504_v58  ;;  %v8368_v48 = vld [vmem:[#allocation2 + $0x18] sm:$0xf]  ;;  %v8278_v27 = vld [vmem:[%s10696_s4 + $0x90] sm:$0xff]   ;;  %v9610_v10 = vld [vmem:[#allocation2 + $0x28] sm:$0xf] }
 0x11c   : > { %v4218_v51 = vsel %vm9034_vm0, %v4216_v29, %v4217_v6  ;;  %v1814_v44 = vrot.slane %v1813_v3, 4  ;;  %v537_v46 = vsel %vm472_vm12, %v440_v23, %v505_v47  ;;  %v7097_v43 = vpack.c.bf16 %v536_v35, %v536_v35  ;;  %v1087_v6 = vld [vmem:[#allocation2 + $0xd4] sm:$0x1]  ;;  %v8371_v23 = vld [vmem:[#allocation2 + $0x24] sm:$0xf]  ;;  %v8282_v58 = vld [vmem:[%s10696_s4 + $0x98] sm:$0xff]  }
 0x11d   : > { %v6885_v14 = vcombine.low %v4215_v62, %v4218_v51  ;;  %v1829_v37 = vsel %vm8735_vm1, %v1824_v60, %v1828_v18  ;;  %v7098_v39 = vpack.c.bf16 %v537_v46, %v537_v46  ;;  %v6681_v53 = vcombine.low %v8368_v48, %v9592_v13  ;;  %v9613_v18 = vld [vmem:[#allocation2 + $0x34] sm:$0xf]  ;;  %v8373_v51 = vld [vmem:[#allocation2 + $0x30] sm:$0xf] }
 0x11e   : > { %v1819_v25 = vsel %vm8735_vm1, %v1814_v44, %v1818_v45  ;;  %v893_v24 = vshrl.u32 %v7097_v43, 16  ;;  %v896_v36 = vshll.u32 %v7097_v43, 16  ;;  %v6682_v3 = vcombine.low %v8371_v23, %v9610_v10 }
 0x11f   : > { %7805 = vmatprep.mubr.bf16.mxu0 %v6885_v14  ;;  %v6670_v54 = vcombine.low %v1819_v25, %v1829_v37  ;;  %v901_v59 = vshrl.u32 %v7098_v39, 16  ;;  %v904_v34 = vshll.u32 %v7098_v39, 16  ;;  %v6683_v14 = vcombine.low %v8373_v51, %v9613_v18  ;;  %v8375_v39 = vld [vmem:[#allocation2 + $0x3c] sm:$0xf]  ;;  %v9658_v51 = vld [vmem:[#allocation2 + $0x58] sm:$0xf] }
 0x120   : > { %v895_v26 = vrot.slane %v893_v24, 7  ;;  %v1084_v37 = vsel %vm8594_vm8, %v9504_v55, %v1083_v42  ;;  %v1088_v47 = vsel %vm8607_vm11, %v891_v33, %v1087_v6  ;;  %v8286_v33 = vld [vmem:[%s10696_s4 + $0xa0] sm:$0xff]   ;;  %v3570_v19 = vshll.u32 %v9515_v28, 16  ;;  %v2427_v42 = vld [vmem:[#allocation2 + $0x18] sm:$0xe] }
 0x121   : > { %7566 = vmatmul.mubr.bf16.gmra.mrb[28].mxu1 %v6670_v54  ;;  %v903_v4 = vrot.slane %v901_v59, 7  ;;  %1085 = vst [vmem:[#allocation2 + $0xcc] sm:$0xf] %v1084_v37  ;;  %1089 = vst [vmem:[#allocation2 + $0xd4] sm:$0x1] %v1088_v47  ;;  %v2492_v6 = vrot.slane %v9592_v13, 5 }
 0x122   : > { %7585 = vmatprep.mubr.bf16.mxu1 %v6679_v16  ;;  %v898_v60 = vor.u32 %v896_v36, %v895_v26  ;;  %v899_v45 = vrot.slane %v895_v26, 4  ;;  %v9633_v54 = vld [vmem:[#allocation2 + $0x40] sm:$0xf]  ;;  %v9636_v59 = vld [vmem:[#allocation2 + $0x4c] sm:$0xf]  ;;  %v9654_v23 = vrot.slane %v3570_v19, 5 }
 0x123   : > { %v906_v32 = vor.u32 %v904_v34, %v903_v4  ;;  %v908_v29 = vrot.slane %v903_v4, 4  ;;  %v6684_v24 = vcombine.low %v8375_v39, %v9633_v54  ;;  %v8377_v34 = vld [vmem:[#allocation2 + $0x48] sm:$0xf]  ;;  %v8382_v47 = vld [vmem:[#allocation2 + $0x60] sm:$0xf] }
 0x124   : > { %v1069_v62 = vsel %vm8594_vm8, %v898_v60, %v1068_v0  ;;  %v6685_v26 = vcombine.low %v8377_v34, %v9636_v59  ;;  %10737 = vst [vmem:[#allocation4_spill] sm:$0xff] %v9654_v23  ;;  %v9672_v34 = vld [vmem:[#allocation2 + $0x70] sm:$0xf]  ;;  %v10743_v23 = vcombine.low %v9566_v1, %v9546_v5  ;;  %v9897_v1 = vld [vmem:[%s10696_s4 + $0x200] sm:$0xff]  }
 0x125   : > { %v907_v40 = vsel %vm8582_vm7, %v899_v45, %v906_v32  ;;  %1070 = vst [vmem:[#allocation2 + $0xc0] sm:$0xf] %v1069_v62  ;;  %v1073_v20 = vsel %vm8607_vm11, %v908_v29, %v1072_v52  ;;  %v8292_v45 = vld [vmem:[%s10696_s4 + $0xa8] sm:$0xff]  }
 0x126   : > { %1071 = vst [vmem:[#allocation2 + $0xc4] sm:$0xf] %v907_v40  ;;  %1074 = vst [vmem:[#allocation2 + $0xc8] sm:$0x1] %v1073_v20  ;;  %v8298_v40 = vld [vmem:[%s10696_s4 + $0xb0] sm:$0xff]  }
 0x127   : > { %v2426_v20 = vld [vmem:[#allocation2 + $0xc] sm:$0xe] }
 0x128   : > { %v1107_v0 = vld [vmem:[#allocation2 + $0xcc] sm:$0x2]  ;;  %v1231_v4 = vld [vmem:[#allocation2 + $0xcc] sm:$0x1] }
 0x129   : > { %7586 = vmatmul.mubr.bf16.vlgmr.msra.gmra.mrb[0].mxu1 %v6680_v8  ;;  %v6620_v52 = vrot.slane %v1107_v0, 9  ;;  %v3574_v8 = vshrl.u32 %v9515_v28, 16  ;;  %v2478_v28 = vrot.slane %v9586_v63, 5 }
 0x12a   : > { %7618 = vmatpush3.bf16.msra.mxu1 %v8369_v15  ;;  %7589 = vmatprep.mubr.bf16.mxu1 %v6681_v53  ;;  %v2425_v53 = vld [vmem:[#allocation2] sm:$0xe]  ;;  %v8378_v15 = vld [vmem:[#allocation2 + $0x8] sm:$0x1] }
 0x12b   : > { %7619 = vmatprep.subr.bf16.mxu1 %v8274_v31  ;;  %v1232_v29 = vsel %vm8607_vm11, %v6620_v52, %v1231_v4  ;;  %v6703_v13 = vrot.slane %v2425_v53, 9  ;;  %v2428_v4 = vld [vmem:[#allocation2 + $0x24] sm:$0xe] }
 0x12c   : > { %v1106_v44 = vld [vmem:[#allocation2 + $0xc0] sm:$0x2]  ;;  %v1228_v9 = vld [vmem:[#allocation2 + $0xc0] sm:$0x1]  ;;  %1233 = vst [vmem:[#allocation2 + $0xcc] sm:$0x1] %v1232_v29 }
 0x12d   : > { %v1250_v35 = vld [vmem:[#allocation2 + $0xc4] sm:$0x8]  ;;  %v1373_v25 = vld [vmem:[#allocation2 + $0xc8] sm:$0x1]  ;;  %v6619_v46 = vrot.slane %v1106_v44, 9  ;;  %v8287_v44 = vld [vmem:[#allocation2 + $0x18] sm:$0xff]  }
 0x12e   : > { %7620 = vmatpush3.bf16.msra.mxu1 %v8274_v31  ;;  %v6637_v16 = vrot.slane %v1250_v35, 11  ;;  %v3342_v55 = vld [vmem:[#allocation2 + $0xc4] sm:$0xf]  ;;  %v4065_v43 = vld [vmem:[#allocation2 + $0xc0] sm:$0xe]  ;;  %v6687_v35 = vcombine.low %v8382_v47, %v9663_v12 }
 0x12f   : > { %7621 = vmatprep.subr.bf16.mxu1 %v8278_v27  ;;  %v1229_v50 = vsel %vm8607_vm11, %v6619_v46, %v1228_v9  ;;  %v4221_v36 = vrot.slane %v3342_v55, 5  ;;  %v6854_v60 = vrot.slane %v4065_v43, 9  ;;  %v8383_v9 = vld [vmem:[#allocation2 + $0x14] sm:$0x1]  ;;  %v8304_v46 = vld [vmem:[%s10696_s4 + $0xb8] sm:$0xff]   ;;  %v2487_v55 = vrot.slane %v2485_v57, 4 }
 0x130   : > { %v1374_v49 = vsel %vm8638_vm14, %v6637_v16, %v1373_v25  ;;  %1230 = vst [vmem:[#allocation2 + $0xc0] sm:$0x1] %v1229_v50  ;;  %v6704_v25 = vrot.slane %v2426_v20, 9  ;;  %v2488_v16 = vrot.slane %v8383_v9, 5  ;;  %v6705_v50 = vrot.slane %v2427_v42, 9  ;;  %v9693_v29 = vld [vmem:[%s10696_s4 + $0xc0] sm:$0xff]  }
 0x131   : > { %7590 = vmatmul.mubr.bf16.gmra.mrb[4].mxu1 %v6682_v3  ;;  %1375 = vst [vmem:[#allocation2 + $0xc8] sm:$0x1] %v1374_v49  ;;  %v4223_v32 = vrot.slane %v4221_v36, 4  ;;  %v4222_v62 = vsel %vm9034_vm0, %v6854_v60, %v4221_v36  ;;  %v9656_v3 = vrot.slane %v3574_v8, 4  ;;  %v2480_v49 = vrot.slane %v2478_v28, 4  ;;  %v8294_v9 = vld [vmem:[%s10696_s4 + $0x1c8] sm:$0xff]  }
 0x132   : > { %7593 = vmatprep.mubr.bf16.mxu1 %v6683_v14  ;;  %7622 = vmatpush3.bf16.msra.mxu1 %v8278_v27  ;;  %v2481_v27 = vrot.slane %v8378_v15, 5  ;;  %v8380_v14 = vld [vmem:[#allocation2 + $0x54] sm:$0xf]  ;;  %v8384_v43 = vld [vmem:[#allocation2 + $0x20] sm:$0x1]  ;;  %v9684_v19 = vsel %vm9034_vm0, %v6704_v25, %v2485_v57  ;;  %v9701_v53 = vsel %vm9034_vm0, %v6705_v50, %v2492_v6 }
 0x133   : > { %7623 = vmatprep.subr.bf16.mxu1 %v8282_v58  ;;  %10738 = vst [vmem:[#allocation5_spill] sm:$0xff] %v9656_v3  ;;  %v2495_v39 = vrot.slane %v8384_v43, 5  ;;  %v9675_v60 = vld [vmem:[#allocation2 + $0x7c] sm:$0xf]  ;;  %v2429_v8 = vld [vmem:[#allocation2 + $0x30] sm:$0xe] }
 0x134   : > { %v8389_v57 = vld [vmem:[#allocation2 + $0x2c] sm:$0x1]  ;;  %v4935_v25 = vld [vmem:[#allocation2 + $0x18] sm:$0xf]  ;;  %v4939_v47 = vld [vmem:[#allocation2 + $0x28] sm:$0xf] }
 0x135   : > { %v2502_v15 = vrot.slane %v8389_v57, 5 }
 0x136   : > { %7624 = vmatpush3.bf16.msra.mxu1 %v8282_v58  ;;  %v6686_v58 = vcombine.low %v8380_v14, %v9658_v51  ;;  %v6707_v14 = vrot.slane %v2429_v8, 9 }
 0x137   : > { %7625 = vmatprep.subr.bf16.mxu1 %v8286_v33 }
 0x138   : > { %v3343_v48 = vld [vmem:[#allocation2 + $0xc8] sm:$0x1] }
 0x139   : > { %7594 = vmatmul.mubr.bf16.gmra.mrb[8].mxu1 %v6684_v24  ;;  %v4224_v31 = vrot.slane %v3343_v48, 5  ;;  %v2499_v24 = vrot.slane %v9610_v10, 5  ;;  %v9680_v10 = vsel %vm9034_vm0, %v6703_v13, %v2478_v28  ;;  %v9697_v48 = vsel %vm9034_vm0, %v2487_v55, %v2488_v16  ;;  %v2431_v13 = vld [vmem:[#allocation2 + $0x48] sm:$0xe]  ;;  %v8391_v55 = vld [vmem:[#allocation2 + $0x38] sm:$0x1] }
 0x13a   : > { %7597 = vmatprep.mubr.bf16.mxu1 %v6685_v26  ;;  %7626 = vmatpush3.bf16.msra.mxu1 %v8286_v33  ;;  %v2494_v33 = vrot.slane %v2492_v6, 4  ;;  %v8386_v26 = vld [vmem:[#allocation2 + $0x6c] sm:$0xf]  ;;  %v6706_v28 = vrot.slane %v2428_v4, 9  ;;  %v2509_v50 = vrot.slane %v8391_v55, 5 }
 0x13b   : > { %7627 = vmatprep.subr.bf16.mxu1 %v8292_v45  ;;  %v4225_v63 = vsel %vm9034_vm0, %v4223_v32, %v4224_v31  ;;  %v6688_v0 = vcombine.low %v8386_v26, %v9672_v34  ;;  %v9688_v32 = vsel %vm9034_vm0, %v2480_v49, %v2481_v27  ;;  %v8290_v31 = vld [vmem:[#allocation2 + $0x24] sm:$0xff]   ;;  %v2501_v20 = vrot.slane %v2499_v24, 4  ;;  %v2433_v49 = vld [vmem:[#allocation2 + $0x60] sm:$0xe] }
 0x13c   : > { %v6886_v37 = vcombine.low %v4222_v62, %v4225_v63  ;;  %v2506_v62 = vrot.slane %v9613_v18, 5  ;;  %v9708_v27 = vld [vmem:[#allocation2 + $0x88] sm:$0xf]  ;;  %v8293_v63 = vld [vmem:[#allocation2 + $0x30] sm:$0xff]   ;;  %v2520_v26 = vrot.slane %v9636_v59, 5 }
 0x13d   : > { %v6690_v42 = vcombine.low %v9405_v22, %v9708_v27  ;;  %v9737_v43 = vsel %vm9034_vm0, %v2501_v20, %v2502_v15  ;;  %v4938_v4 = vld [vmem:[#allocation2 + $0x24] sm:$0xf]  ;;  %v8300_v59 = vld [vmem:[%s10696_s4 + $0x1d0] sm:$0xff]   ;;  %v8299_v55 = vld [vmem:[#allocation2 + $0x48] sm:$0xff]  }
 0x13e   : > { %7628 = vmatpush3.bf16.msra.mxu1 %v8292_v45  ;;  %7806 = vmatmul.mubr.bf16.gmra.mrb[28].mxu0 %v6886_v37  ;;  %v8388_v45 = vld [vmem:[#allocation2 + $0x78] sm:$0xf]  ;;  %v9745_v8 = vsel %vm9034_vm0, %v6707_v14, %v2506_v62  ;;  %v2432_v14 = vld [vmem:[#allocation2 + $0x54] sm:$0xe]  ;;  %v8311_v22 = vld [vmem:[%s10696_s4 + $0x1e0] sm:$0xff]  }
 0x13f   : > { %7629 = vmatprep.subr.bf16.mxu1 %v8298_v40  ;;  %7825 = vmatprep.mubr.bf16.mxu0 %v8287_v44  ;;  %v6689_v52 = vcombine.low %v8388_v45, %v9675_v60  ;;  %v8392_v45 = vld [vmem:[%s10696_s4 + $0x1c0] sm:$0xff]  }
 0x141   : > { %7598 = vmatmul.mubr.bf16.gmra.mrb[12].mxu1 %v6686_v58  ;;  %v2430_v58 = vld [vmem:[#allocation2 + $0x3c] sm:$0xe] }
 0x142   : > { %7601 = vmatprep.mubr.bf16.mxu1 %v6687_v35  ;;  %7630 = vmatpush3.bf16.msra.mxu1 %v8298_v40  ;;  %v9706_v40 = vsel %vm9034_vm0, %v2494_v33, %v2495_v39  ;;  %v2513_v35 = vrot.slane %v9633_v54, 5  ;;  %v4936_v33 = vld [vmem:[#allocation2 + $0x1c] sm:$0xf]  ;;  %v9733_v54 = vsel %vm9034_vm0, %v6706_v28, %v2499_v24  ;;  %v6708_v39 = vrot.slane %v2430_v58, 9 }
 0x143   : > { %7631 = vmatprep.subr.bf16.mxu1 %v8304_v46  ;;  %v6709_v24 = vrot.slane %v2431_v13, 9  ;;  %v4987_v28 = vshll.u32 %v4935_v25, 16  ;;  %v4993_v15 = vshll.u32 %v4936_v33, 16  ;;  %v4997_v58 = vshrl.u32 %v4936_v33, 16  ;;  %v8296_v13 = vld [vmem:[#allocation2 + $0x3c] sm:$0xff]  }
 0x144   : > { %v2515_v20 = vrot.slane %v2513_v35, 4  ;;  %v2527_v33 = vrot.slane %v9658_v51, 5 }
 0x145   : > { %v4989_v16 = vrot.slane %v4987_v28, 5 }
 0x146   : > { %7632 = vmatpush3.bf16.msra.mxu1 %v8304_v46  ;;  %v2508_v46 = vrot.slane %v2506_v62, 4  ;;  %7826 = vmatmul.mubr.bf16.vlgmr.msra.gmra.mrb[0].mxu0 %v8290_v31  ;;  %v4984_v31 = vshrl.u32 %v4935_v25, 16  ;;  %v9758_v25 = vsel %vm9034_vm0, %v6708_v39, %v2513_v35  ;;  %v8306_v35 = vld [vmem:[%s10696_s4 + $0x1d8] sm:$0xff]   ;;  %v4937_v39 = vld [vmem:[#allocation2 + $0x20] sm:$0x1]  ;;  %v2529_v6 = vrot.slane %v2527_v33, 4 }
 0x147   : > { %7665 = vmatprep.subr.bf16.mxu1 %v9693_v29  ;;  %7858 = vmatpush3.bf16.msra.mxu0 %v8392_v45  ;;  %v2522_v45 = vrot.slane %v2520_v26, 4 }
 0x148   : > { %7829 = vmatprep.mubr.bf16.mxu0 %v8293_v63  ;;  %7859 = vmatprep.subr.bf16.mxu0 %v8294_v9  ;;  %v9754_v62 = vsel %vm9034_vm0, %v2508_v46, %v2509_v50  ;;  %v5011_v63 = vshll.u32 %v4938_v4, 16  ;;  %v9763_v46 = vsel %vm9034_vm0, %v6709_v24, %v2520_v26  ;;  %v2534_v50 = vrot.slane %v9663_v12, 5  ;;  %v8395_v24 = vld [vmem:[#allocation2 + $0x5c] sm:$0x1]  ;;  %v2434_v12 = vld [vmem:[#allocation2 + $0x6c] sm:$0xe] }
 0x149   : > { %7602 = vmatmul.mubr.bf16.gmra.mrb[16].mxu1 %v6688_v0  ;;  %v8393_v0 = vld [vmem:[#allocation2 + $0x44] sm:$0x1]  ;;  %v4999_v26 = vrot.slane %v4997_v58, 4  ;;  %v2530_v37 = vrot.slane %v8395_v24, 5 }
 0x14a   : > { %7605 = vmatprep.mubr.bf16.mxu1 %v6689_v52  ;;  %v2516_v57 = vrot.slane %v8393_v0, 5  ;;  %v5008_v52 = vshrl.u32 %v4938_v4, 16  ;;  %v8394_v0 = vld [vmem:[#allocation2 + $0x50] sm:$0x1]  ;;  %v4986_v4 = vrot.slane %v4984_v31, 4  ;;  %v2541_v31 = vrot.slane %v9672_v34, 5 }
 0x14b   : > { %v2523_v36 = vrot.slane %v8394_v0, 5  ;;  %7860 = vmatpush3.bf16.msra.mxu0 %v8294_v9  ;;  %v6710_v9 = vrot.slane %v2432_v14, 9  ;;  %v9773_v0 = vrot.slane %v4993_v15, 5  ;;  %v5013_v44 = vrot.slane %v5011_v63, 5  ;;  %v8396_v14 = vld [vmem:[#allocation2 + $0x68] sm:$0x1] }
 0x14c   : > { %7861 = vmatprep.subr.bf16.mxu0 %v8300_v59  ;;  %v9771_v51 = vsel %vm9034_vm0, %v2515_v20, %v2516_v57  ;;  %v5010_v28 = vrot.slane %v5008_v52, 4  ;;  %v5017_v20 = vshll.u32 %v4939_v47, 16  ;;  %v5021_v57 = vshrl.u32 %v4939_v47, 16 }
 0x14d   : > { %v9778_v18 = vsel %vm9034_vm0, %v2522_v45, %v2523_v36  ;;  %v6711_v15 = vrot.slane %v2433_v49, 9  ;;  %v2536_v58 = vrot.slane %v2534_v50, 4  ;;  %v2537_v24 = vrot.slane %v8396_v14, 5  ;;  %v8397_v49 = vld [vmem:[#allocation2 + $0x74] sm:$0x1]  ;;  %v8305_v14 = vld [vmem:[#allocation2 + $0x60] sm:$0xff]  }
 0x14e   : > { %7830 = vmatmul.mubr.bf16.gmra.mrb[4].mxu0 %v8296_v13  ;;  %v4990_v34 = vor.u32 %v4989_v16, %v4986_v4  ;;  %v10739_v52 = vcombine.low %v9436_v21, %v9397_v61  ;;  %v5000_v47 = vor.u32 %v4999_v26, %v9773_v0  ;;  %v5003_v63 = vshll.u32 %v4937_v39, 16  ;;  %v4940_v21 = vld [vmem:[#allocation2 + $0x2c] sm:$0x1]  ;;  %v2436_v45 = vld [vmem:[#allocation2 + $0x84] sm:$0xe] }
 0x14f   : > { %7833 = vmatprep.mubr.bf16.mxu0 %v8299_v55  ;;  %7862 = vmatpush3.bf16.msra.mxu0 %v8300_v59  ;;  %v6712_v13 = vrot.slane %v2434_v12, 9  ;;  %v2543_v16 = vrot.slane %v2541_v31, 4  ;;  %v2544_v61 = vrot.slane %v8397_v49, 5  ;;  %v5014_v59 = vor.u32 %v5013_v44, %v5010_v28  ;;  %v8302_v55 = vld [vmem:[#allocation2 + $0x54] sm:$0xff]  }
 0x150   : > { %7863 = vmatprep.subr.bf16.mxu0 %v8306_v35  ;;  %v9798_v4 = vsel %vm9034_vm0, %v6710_v9, %v2527_v33  ;;  %v9800_v39 = vrot.slane %v5017_v20, 5  ;;  %v5023_v26 = vrot.slane %v5021_v57, 4  ;;  %v2435_v12 = vld [vmem:[#allocation2 + $0x78] sm:$0xe]  ;;  %v9808_v44 = vsel %vm9034_vm0, %v6711_v15, %v2534_v50  ;;  %v4941_v33 = vld [vmem:[#allocation2 + $0x30] sm:$0xf] }
 0x151   : > { %7606 = vmatmul.mubr.bf16.gmra.mrb[20].mxu1 %v6690_v42  ;;  %v9812_v28 = vsel %vm9034_vm0, %v2536_v58, %v2537_v24  ;;  %v9814_v49 = vrot.slane %v4990_v34, 4  ;;  %v4942_v9 = vld [vmem:[#allocation2 + $0x34] sm:$0xf]  ;;  %v9816_v20 = vrot.slane %v5000_v47, 4  ;;  %v9818_v57 = vrot.slane %v5003_v63, 5  ;;  %v8315_v50 = vld [vmem:[%s10696_s4 + $0x1e8] sm:$0xff]  }
 0x152   : > { %7609 = vmatprep.mubr.bf16.mxu1 %v10739_v52  ;;  %v9804_v52 = vsel %vm9034_vm0, %v2529_v6, %v2530_v37  ;;  %v9822_v6 = vsel %vm9034_vm0, %v6712_v13, %v2541_v31  ;;  %v5027_v37 = vshll.u32 %v4940_v21, 16  ;;  %v9829_v15 = vsel %vm9034_vm0, %v2543_v16, %v2544_v61  ;;  %v8319_v16 = vld [vmem:[%s10696_s4 + $0x1f0] sm:$0xff]   ;;  %v8310_v61 = vld [vmem:[#allocation2 + $0x78] sm:$0xff]  }
 0x153   : > { %7864 = vmatpush3.bf16.msra.mxu0 %v8306_v35  ;;  %10740 = vst [vmem:[#allocation6_spill] sm:$0xff] %v9829_v15  ;;  %v9831_v58 = vrot.slane %v5014_v59, 4  ;;  %v6713_v35 = vrot.slane %v2435_v12, 9  ;;  %v2548_v24 = vrot.slane %v9675_v60, 5  ;;  %v5024_v34 = vor.u32 %v5023_v26, %v9800_v39  ;;  %v9869_v60 = vld [vmem:[#allocation2 + $0x4c] sm:$0xf] }
 0x154   : > { %7865 = vmatprep.subr.bf16.mxu0 %v8311_v22  ;;  %v5032_v31 = vshrl.u32 %v4941_v33, 16  ;;  %v5035_v47 = vshll.u32 %v4941_v33, 16  ;;  %v5041_v63 = vshll.u32 %v4942_v9, 16  ;;  %v10741_v21 = vcombine.low %v9465_v38, %v9447_v17  ;;  %v8308_v38 = vld [vmem:[#allocation2 + $0x6c] sm:$0xff]   ;;  %v4944_v33 = vld [vmem:[#allocation2 + $0x3c] sm:$0xf] }
 0x155   : > { %v4996_v59 = vsel %vm8735_vm1, %v9814_v49, %v9773_v0  ;;  %v10742_v17 = vcombine.low %v9528_v11, %v9494_v56  ;;  %v5029_v12 = vrot.slane %v5027_v37, 5  ;;  %v5020_v56 = vsel %vm8735_vm1, %v9831_v58, %v9800_v39 }
 0x156   : > { %7834 = vmatmul.mubr.bf16.gmra.mrb[8].mxu0 %v8302_v55  ;;  %v5006_v55 = vsel %vm8735_vm1, %v9816_v20, %v9818_v57  ;;  %v9865_v11 = vsel %vm9034_vm0, %v6713_v35, %v2548_v24  ;;  %v2550_v0 = vrot.slane %v2548_v24, 4  ;;  %v4943_v20 = vld [vmem:[#allocation2 + $0x38] sm:$0x1]  ;;  %v4947_v57 = vld [vmem:[#allocation2 + $0x48] sm:$0xf]  ;;  %v5025_v37 = vrot.slane %v5024_v34, 4 }
 0x157   : > { %7837 = vmatprep.mubr.bf16.mxu0 %v8305_v14  ;;  %7866 = vmatpush3.bf16.msra.mxu0 %v8311_v22  ;;  %v5045_v14 = vshrl.u32 %v4942_v9, 16  ;;  %v8398_v22 = vld [vmem:[#allocation2 + $0x80] sm:$0x1]  ;;  %v5034_v9 = vrot.slane %v5032_v31, 4  ;;  %v9867_v26 = vrot.slane %v5041_v63, 5  ;;  %v5056_v42 = vshrl.u32 %v4944_v33, 16 }
 0x158   : > { %7867 = vmatprep.subr.bf16.mxu0 %v8315_v50  ;;  %v2551_v49 = vrot.slane %v8398_v22, 5  ;;  %v5059_v36 = vshll.u32 %v4944_v33, 16  ;;  %v2555_v24 = vrot.slane %v9708_v27, 5  ;;  %v5080_v13 = vshrl.u32 %v4947_v57, 16  ;;  %v8323_v34 = vld [vmem:[%s10696_s4 + $0x1f8] sm:$0xff]  }
 0x159   : > { %7610 = vmatmul.mubr.bf16.gmra.mrb[24].mxu1 %v10741_v21  ;;  %v4945_v21 = vld [vmem:[#allocation2 + $0x40] sm:$0xf]  ;;  %v5047_v35 = vrot.slane %v5045_v14, 4  ;;  %v5083_v22 = vshll.u32 %v4947_v57, 16  ;;  %v5089_v63 = vshll.u32 %v9869_v60, 16  ;;  %v5093_v33 = vshrl.u32 %v9869_v60, 16 }
 0x15a   : > { %7613 = vmatprep.mubr.bf16.mxu1 %v10742_v17  ;;  %v5037_v17 = vrot.slane %v5035_v47, 5  ;;  %v5065_v39 = vshll.u32 %v4945_v21, 16  ;;  %v5069_v58 = vshrl.u32 %v4945_v21, 16  ;;  %v9877_v31 = vsel %vm9034_vm0, %v2550_v0, %v2551_v49  ;;  %v8399_v21 = vld [vmem:[#allocation2 + $0x8c] sm:$0x1] }
 0x15b   : > { %7868 = vmatpush3.bf16.msra.mxu0 %v8315_v50  ;;  %v5051_v47 = vshll.u32 %v4943_v20, 16  ;;  %v5030_v27 = vsel %vm8735_vm1, %v5025_v37, %v5029_v12  ;;  %v6714_v14 = vrot.slane %v2436_v45, 9  ;;  %v2558_v57 = vrot.slane %v8399_v21, 5  ;;  %v4946_v0 = vld [vmem:[#allocation2 + $0x44] sm:$0x1] }
 0x15c   : > { %7869 = vmatprep.subr.bf16.mxu0 %v8319_v16  ;;  %v5038_v50 = vor.u32 %v5037_v17, %v5034_v9  ;;  %v5058_v49 = vrot.slane %v5056_v42, 4  ;;  %v5061_v20 = vrot.slane %v5059_v36, 5  ;;  %v9886_v3 = vrot.slane %v5065_v39, 5  ;;  %v9901_v36 = vld [vmem:[#allocation2 + $0x50] sm:$0x1]  ;;  %v8312_v42 = vld [vmem:[#allocation2 + $0x84] sm:$0xff]  }
 0x15d   : > { %v5071_v15 = vrot.slane %v5069_v58, 4  ;;  %v5048_v45 = vor.u32 %v5047_v35, %v9867_v26  ;;  %v2557_v12 = vrot.slane %v2555_v24, 4  ;;  %v5082_v37 = vrot.slane %v5080_v13, 4  ;;  %10745 = vst [vmem:[#allocation7_spill] sm:$0xff] %v9901_v36  ;;  %v8314_v17 = vld [vmem:[#allocation2 + $0x90] sm:$0xff]  }
 0x15e   : > { %7838 = vmatmul.mubr.bf16.gmra.mrb[12].mxu0 %v8308_v38  ;;  %v10744_v38 = vcombine.low %v9680_v10, %v9688_v32  ;;  %v5085_v9 = vrot.slane %v5083_v22, 5  ;;  %v9892_v5 = vcombine.low %v4996_v59, %v5006_v55  ;;  %v9903_v10 = vrot.slane %v5089_v63, 5  ;;  %v4950_v55 = vld [vmem:[#allocation2 + $0x54] sm:$0xf]  ;;  %v2437_v22 = vld [vmem:[#allocation2 + $0x90] sm:$0xe] }
 0x15f   : > { %7841 = vmatprep.mubr.bf16.mxu0 %v8310_v61  ;;  %7870 = vmatpush3.bf16.msra.mxu0 %v8319_v16  ;;  %v5095_v32 = vrot.slane %v5093_v33, 4  ;;  %v9905_v16 = vcombine.low %v5020_v56, %v5030_v27  ;;  %v9907_v13 = vrot.slane %v5038_v50, 4  ;;  %v9909_v61 = vrot.slane %v5051_v47, 5  ;;  %v8400_v63 = vld [vmem:[#allocation2 + $0x94] sm:$0xf] }
 0x160   : > { %7871 = vmatprep.subr.bf16.mxu0 %v8323_v34  ;;  %v5075_v59 = vshll.u32 %v4946_v0, 16  ;;  %v9913_v39 = vsel %vm9034_vm0, %v6714_v14, %v2555_v24  ;;  %v5062_v58 = vor.u32 %v5061_v20, %v5058_v49  ;;  %v5072_v35 = vor.u32 %v5071_v15, %v9886_v3  ;;  %v9916_v21 = vld [vmem:[#allocation2 + $0x58] sm:$0xf]  ;;  %v8401_v50 = vld [vmem:[#allocation2 + $0xa0] sm:$0xf]  ;;  %v8313_v24 = vld [vmem:[%s10696_s4 + $0xc8] sm:$0xff]  }
 0x161   : > { %7614 = vmatmul.mubr.bf16.gmra.mrb[28].mxu1 %v10743_v23  ;;  %v2562_v33 = vrot.slane %v8400_v63, 5  ;;  %10746 = vst [vmem:[#allocation8_spill] sm:$0xff] %v9916_v21  ;;  %v9918_v56 = vrot.slane %v5048_v45, 4  ;;  %v9922_v47 = vsel %vm9034_vm0, %v2557_v12, %v2558_v57  ;;  %v5086_v27 = vor.u32 %v5085_v9, %v5082_v37 }
 0x162   : > { %7633 = vmatprep.mubr.bf16.mxu1 %v10744_v38  ;;  %10747 = vst [vmem:[#allocation9_spill] sm:$0xff] %v9922_v47  ;;  %v2569_v0 = vrot.slane %v8401_v50, 5  ;;  %v5096_v15 = vor.u32 %v5095_v32, %v9903_v10  ;;  %v5099_v14 = vshll.u32 %v9901_v36, 16  ;;  %v5104_v49 = vshrl.u32 %v4950_v55, 16  ;;  %v8402_v50 = vld [vmem:[#allocation2 + $0x98] sm:$0x1] }
 0x163   : > { %7872 = vmatpush3.bf16.msra.mxu0 %v8323_v34  ;;  %v2438_v34 = vld [vmem:[#allocation2 + $0x9c] sm:$0xe]  ;;  %v5107_v20 = vshll.u32 %v4950_v55, 16  ;;  %v5077_v38 = vrot.slane %v5075_v59, 5  ;;  %v6715_v57 = vrot.slane %v2437_v22, 9  ;;  %v5113_v45 = vshll.u32 %v9916_v21, 16 }
 0x164   : > { %7905 = vmatprep.subr.bf16.mxu0 %v9897_v1  ;;  %v5117_v12 = vshrl.u32 %v9916_v21, 16  ;;  %v10748_v37 = vcombine.low %v9684_v19, %v9697_v48  ;;  %v5063_v9 = vrot.slane %v5062_v58, 4  ;;  %v5073_v63 = vrot.slane %v5072_v35, 4  ;;  %v8403_v21 = vld [vmem:[#allocation2 + $0xa4] sm:$0x1]  ;;  %v8317_v19 = vld [vmem:[%s10696_s4 + $0xd0] sm:$0xff]  }
 0x165   : > { %v2564_v32 = vrot.slane %v2562_v33, 4  ;;  %v2565_v23 = vrot.slane %v8402_v50, 5  ;;  %v5087_v59 = vrot.slane %v5086_v27, 4  ;;  %v6716_v55 = vrot.slane %v2438_v34, 9 }
 0x166   : > { %7842 = vmatmul.mubr.bf16.gmra.mrb[16].mxu0 %v8312_v42  ;;  %v10749_v42 = vcombine.low %v9701_v53, %v9706_v40  ;;  %v2571_v22 = vrot.slane %v2569_v0, 4  ;;  %v2572_v36 = vrot.slane %v8403_v21, 5  ;;  %v5097_v48 = vrot.slane %v5096_v15, 4  ;;  %v9950_v40 = vld [vmem:[#allocation2 + $0x5c] sm:$0x1]  ;;  %v8318_v15 = vld [vmem:[#allocation2 + $0xa8] sm:$0xff]  }
 0x167   : > { %7845 = vmatprep.mubr.bf16.mxu0 %v8314_v17  ;;  %v5101_v17 = vrot.slane %v5099_v14, 5  ;;  %v5106_v58 = vrot.slane %v5104_v49, 4  ;;  %v5109_v35 = vrot.slane %v5107_v20, 5  ;;  %v5054_v53 = vsel %vm8735_vm1, %v9918_v56, %v9909_v61  ;;  %v4953_v61 = vld [vmem:[#allocation2 + $0x60] sm:$0xf]  ;;  %v8321_v56 = vld [vmem:[%s10696_s4 + $0xd8] sm:$0xff]  }
 0x168   : > { %v9952_v21 = vrot.slane %v5113_v45, 5  ;;  %v5119_v27 = vrot.slane %v5117_v12, 4  ;;  %v5068_v34 = vsel %vm8735_vm1, %v5063_v9, %v9886_v3  ;;  %v5078_v49 = vsel %vm8735_vm1, %v5073_v63, %v5077_v38  ;;  %v2439_v38 = vld [vmem:[#allocation2 + $0xa8] sm:$0xe]  ;;  %v8404_v45 = vld [vmem:[#allocation2 + $0xac] sm:$0xf] }
 0x169   : > { %7634 = vmatmul.mubr.bf16.vlgmr.msra.gmra.mrb[0].mxu1 %v10748_v37  ;;  %v8316_v37 = vld [vmem:[#allocation2 + $0x9c] sm:$0xff]   ;;  %v5092_v3 = vsel %vm8735_vm1, %v5087_v59, %v9903_v10  ;;  %v5110_v20 = vor.u32 %v5109_v35, %v5106_v58  ;;  %v2576_v12 = vrot.slane %v8404_v45, 5  ;;  %v9986_v9 = vld [vmem:[#allocation2 + $0x64] sm:$0xf]  ;;  %v5128_v63 = vshrl.u32 %v4953_v61, 16 }
 0x16a   : > { %7666 = vmatpush3.bf16.msra.mxu1 %v9693_v29  ;;  %7637 = vmatprep.mubr.bf16.mxu1 %v10749_v42  ;;  %v5044_v29 = vsel %vm8735_vm1, %v9907_v13, %v9867_v26  ;;  %v9961_v26 = vsel %vm9034_vm0, %v6715_v57, %v2562_v33  ;;  %v9965_v13 = vsel %vm9034_vm0, %v2564_v32, %v2565_v23  ;;  %v5123_v57 = vshll.u32 %v9950_v40, 16  ;;  %v8325_v59 = vld [vmem:[%s10696_s4 + $0xe0] sm:$0xff]  }
 0x16b   : > { %7667 = vmatprep.subr.bf16.mxu1 %v8313_v24  ;;  %10750 = vst [vmem:[#allocation10_spill] sm:$0xff] %v9961_v26  ;;  %10751 = vst [vmem:[#allocation11_spill] sm:$0xff] %v9965_v13  ;;  %v9977_v33 = vsel %vm9034_vm0, %v6716_v55, %v2569_v0  ;;  %v9981_v23 = vsel %vm9034_vm0, %v2571_v22, %v2572_v36  ;;  %v9988_v10 = vcombine.low %v5044_v29, %v5054_v53  ;;  %v10016_v53 = vld [vmem:[#allocation2 + $0x70] sm:$0xf]  ;;  %v8322_v45 = vld [vmem:[#allocation2 + $0xc0] sm:$0xff]  }
 0x16c   : > { %10752 = vst [vmem:[#allocation12_spill] sm:$0xff] %v9977_v33  ;;  %10753 = vst [vmem:[#allocation13_spill] sm:$0xff] %v9981_v23  ;;  %v5120_v0 = vor.u32 %v5119_v27, %v9952_v21  ;;  %v5131_v36 = vshll.u32 %v4953_v61, 16  ;;  %v10754_v32 = vshll.u32 %v9520_v7, 16  ;;  %v10756_v42 = vcombine.low %v9733_v54, %v9737_v43  ;;  %v10007_v7 = vld [vmem:[#allocation2 + $0x68] sm:$0x1] }
 0x16d   : > { %v10001_v55 = vcombine.low %v5068_v34, %v5078_v49  ;;  %10757 = vst [vmem:[#allocation15_spill] sm:$0xff] %v10007_v7  ;;  %v10758_v54 = vcombine.low %v9745_v8, %v9754_v62  ;;  %v8320_v43 = vld [vmem:[#allocation2 + $0xb4] sm:$0xff]   ;;  %v6717_v35 = vrot.slane %v2439_v38, 9  ;;  %v5141_v29 = vshrl.u32 %v9986_v9, 16  ;;  %10760 = vst [vmem:[#allocation17_spill] sm:$0xff] %v10016_v53 }
 0x16e   : > { %7668 = vmatpush3.bf16.msra.mxu1 %v8313_v24  ;;  %v5102_v24 = vsel %vm8735_vm1, %v5097_v48, %v5101_v17  ;;  %7846 = vmatmul.mubr.bf16.gmra.mrb[20].mxu0 %v8316_v37  ;;  %v9993_v50 = vrot.slane %v10754_v32, 5  ;;  %v4956_v17 = vld [vmem:[#allocation2 + $0x6c] sm:$0xf]  ;;  %v5137_v37 = vshll.u32 %v9986_v9, 16  ;;  %v10018_v27 = vrot.slane %v5110_v20, 4 }
 0x16f   : > { %7669 = vmatprep.subr.bf16.mxu1 %v8317_v19  ;;  %7849 = vmatprep.mubr.bf16.mxu0 %v8318_v15  ;;  %v10012_v58 = vcombine.low %v5092_v3, %v5102_v24  ;;  %v10020_v15 = vrot.slane %v5123_v57, 5  ;;  %v2578_v34 = vrot.slane %v2576_v12, 4  ;;  %v8405_v61 = vld [vmem:[#allocation2 + $0xb0] sm:$0x1]  ;;  %v4959_v62 = vld [vmem:[#allocation2 + $0x78] sm:$0xf] }
 0x170   : > { %10755 = vst [vmem:[#allocation14_spill] sm:$0xff] %v9993_v50  ;;  %v2579_v8 = vrot.slane %v8405_v61, 5  ;;  %v5130_v49 = vrot.slane %v5128_v63, 4  ;;  %v5133_v3 = vrot.slane %v5131_v36, 5  ;;  %v5147_v24 = vshll.u32 %v10007_v7, 16  ;;  %v8327_v63 = vld [vmem:[%s10696_s4 + $0xe8] sm:$0xff]  }
 0x171   : > { %7638 = vmatmul.mubr.bf16.gmra.mrb[4].mxu1 %v10756_v42  ;;  %10759 = vst [vmem:[#allocation16_spill] sm:$0xff] %v10012_v58  ;;  %v10025_v38 = vld [vmem:[#allocation2 + $0x7c] sm:$0xf]  ;;  %v5152_v32 = vshrl.u32 %v4956_v17, 16  ;;  %v5155_v42 = vshll.u32 %v4956_v17, 16  ;;  %v5161_v20 = vshll.u32 %v10016_v53, 16  ;;  %v10040_v17 = vsel %vm9034_vm0, %v6717_v35, %v2576_v12 }
 0x172   : > { %7641 = vmatprep.mubr.bf16.mxu1 %v10758_v54  ;;  %7670 = vmatpush3.bf16.msra.mxu1 %v8317_v19  ;;  %v10022_v19 = vrot.slane %v5120_v0, 4  ;;  %10761 = vst [vmem:[#allocation18_spill] sm:$0xff] %v10025_v38  ;;  %v5165_v57 = vshrl.u32 %v10016_v53, 16  ;;  %v10029_v54 = vrot.slane %v5137_v37, 5  ;;  %v5143_v61 = vrot.slane %v5141_v29, 4 }
 0x173   : > { %7671 = vmatprep.subr.bf16.mxu1 %v8321_v56  ;;  %v5176_v48 = vshrl.u32 %v4959_v62, 16  ;;  %v5179_v0 = vshll.u32 %v4959_v62, 16  ;;  %v5185_v37 = vshll.u32 %v10025_v38, 16  ;;  %v5189_v29 = vshrl.u32 %v10025_v38, 16  ;;  %v10056_v12 = vld [vmem:[#allocation2 + $0x74] sm:$0x1] }
 0x174   : > { %v10052_v22 = vsel %vm9034_vm0, %v2578_v34, %v2579_v8  ;;  %v5134_v14 = vor.u32 %v5133_v3, %v5130_v49  ;;  %v10054_v36 = vrot.slane %v5147_v24, 5  ;;  %10762 = vst [vmem:[#allocation19_spill] sm:$0xff] %v10056_v12  ;;  %v4962_v35 = vld [vmem:[#allocation2 + $0x84] sm:$0xf]  ;;  %v10763_v50 = vcombine.low %v9758_v25, %v9771_v51  ;;  %v10063_v38 = vld [vmem:[#allocation2 + $0x88] sm:$0xf] }
 0x175   : > { %v5157_v23 = vrot.slane %v5155_v42, 5  ;;  %v10061_v33 = vrot.slane %v5161_v20, 5  ;;  %v5167_v62 = vrot.slane %v5165_v57, 4  ;;  %10764 = vst [vmem:[#allocation20_spill] sm:$0xff] %v10063_v38  ;;  %v10765_v34 = vcombine.low %v9763_v46, %v9778_v18  ;;  %v8329_v8 = vld [vmem:[%s10696_s4 + $0xf0] sm:$0xff]  }
 0x176   : > { %7672 = vmatpush3.bf16.msra.mxu1 %v8321_v56  ;;  %v10042_v56 = vld [vmem:[#allocation2 + $0xb4] sm:$0xe]  ;;  %7850 = vmatmul.mubr.bf16.gmra.mrb[24].mxu0 %v8320_v43  ;;  %v5154_v43 = vrot.slane %v5152_v32, 4  ;;  %v5144_v25 = vor.u32 %v5143_v61, %v10029_v54  ;;  %v8406_v51 = vld [vmem:[#allocation2 + $0xb8] sm:$0xf]  ;;  %v5178_v3 = vrot.slane %v5176_v48, 4 }
 0x177   : > { %7673 = vmatprep.subr.bf16.mxu1 %v8325_v59  ;;  %7853 = vmatprep.mubr.bf16.mxu0 %v8322_v45  ;;  %v10072_v49 = vld [vmem:[#allocation2 + $0x80] sm:$0x1]  ;;  %v5181_v24 = vrot.slane %v5179_v0, 5  ;;  %v10074_v45 = vrot.slane %v5185_v37, 5  ;;  %v5191_v32 = vrot.slane %v5189_v29, 4  ;;  %v5200_v42 = vshrl.u32 %v4962_v35, 16 }
 0x178   : > { %10766 = vst [vmem:[#allocation21_spill] sm:$0xff] %v10072_v49  ;;  %v5203_v18 = vshll.u32 %v4962_v35, 16  ;;  %v1251_v46 = vld [vmem:[#allocation2 + $0xd0] sm:$0x8]  ;;  %v10076_v20 = vrot.slane %v5134_v14, 4  ;;  %v6718_v57 = vrot.slane %v10042_v56, 9  ;;  %v5158_v48 = vor.u32 %v5157_v23, %v5154_v43 }
 0x179   : > { %7642 = vmatmul.mubr.bf16.gmra.mrb[8].mxu1 %v10763_v50  ;;  %v2583_v50 = vrot.slane %v8406_v51, 5  ;;  %v5209_v61 = vshll.u32 %v10063_v38, 16  ;;  %v8407_v51 = vld [vmem:[#allocation2 + $0xbc] sm:$0x1]  ;;  %v5168_v0 = vor.u32 %v5167_v62, %v10061_v33  ;;  %v5171_v37 = vshll.u32 %v10056_v12, 16 }
 0x17a   : > { %7645 = vmatprep.mubr.bf16.mxu1 %v10765_v34  ;;  %7674 = vmatpush3.bf16.msra.mxu1 %v8325_v59  ;;  %v8324_v59 = vld [vmem:[#allocation2 + $0xcc] sm:$0xff]   ;;  %v5213_v34 = vshrl.u32 %v10063_v38, 16  ;;  %v2586_v13 = vrot.slane %v8407_v51, 5  ;;  %v10085_v26 = vrot.slane %v5144_v25, 4  ;;  %v5182_v53 = vor.u32 %v5181_v24, %v5178_v3  ;;  %v1376_v7 = vld [vmem:[#allocation2 + $0xd4] sm:$0x1] }
 0x17b   : > { %7675 = vmatprep.subr.bf16.mxu1 %v8327_v63  ;;  %v10083_v29 = vld [vmem:[#allocation2 + $0x8c] sm:$0x1]  ;;  %v4965_v35 = vld [vmem:[#allocation2 + $0x90] sm:$0xf]  ;;  %v2585_v14 = vrot.slane %v2583_v50, 4  ;;  %v5195_v56 = vshll.u32 %v10072_v49, 16  ;;  %v5192_v62 = vor.u32 %v5191_v32, %v10074_v45  ;;  %v10767_v49 = vcombine.low %v9798_v4, %v9804_v52 }
 0x17c   : > { %v8331_v23 = vld [vmem:[%s10696_s4 + $0xf8] sm:$0xff]   ;;  %v5202_v43 = vrot.slane %v5200_v42, 4  ;;  %v5205_v51 = vrot.slane %v5203_v18, 5  ;;  %v10092_v38 = vld [vmem:[#allocation2 + $0x94] sm:$0xf]  ;;  %v6638_v12 = vrot.slane %v1251_v46, 11  ;;  %v10768_v18 = vcombine.low %v9808_v44, %v9812_v28 }
 0x17d   : > { %v5215_v25 = vrot.slane %v5213_v34, 4  ;;  %v5224_v3 = vshrl.u32 %v4965_v35, 16  ;;  %v5227_v24 = vshll.u32 %v4965_v35, 16  ;;  %v5159_v58 = vrot.slane %v5158_v48, 4  ;;  %v10132_v34 = vld [vmem:[#allocation2 + $0xa0] sm:$0xf] }
 0x17e   : > { %7676 = vmatpush3.bf16.msra.mxu1 %v8327_v63  ;;  %7854 = vmatmul.mubr.bf16.gmra.mrb[28].mxu0 %v8324_v59  ;;  %v10094_v63 = vrot.slane %v5209_v61, 5  ;;  %v5169_v47 = vrot.slane %v5168_v0, 4  ;;  %v5173_v32 = vrot.slane %v5171_v37, 5  ;;  %v1377_v42 = vsel %vm8638_vm14, %v6638_v12, %v1376_v7 }
 0x17f   : > { %7677 = vmatprep.subr.bf16.mxu1 %v8329_v8  ;;  %7873 = vmatprep.mubr.bf16.mxu0 %v9892_v5  ;;  %v5183_v46 = vrot.slane %v5182_v53, 4  ;;  %v5219_v59 = vshll.u32 %v10083_v29, 16  ;;  %v5233_v61 = vshll.u32 %v10092_v38, 16  ;;  %v5237_v4 = vshrl.u32 %v10092_v38, 16  ;;  %1378 = vst [vmem:[#allocation2 + $0xd4] sm:$0x1] %v1377_v42 }
 0x180   : > { %v10110_v52 = vsel %vm9034_vm0, %v6718_v57, %v2583_v50  ;;  %v5193_v41 = vrot.slane %v5192_v62, 4  ;;  %v5197_v5 = vrot.slane %v5195_v56, 5  ;;  %v5206_v7 = vor.u32 %v5205_v51, %v5202_v43  ;;  %v10117_v53 = vld [vmem:[#allocation2 + $0x98] sm:$0x1]  ;;  %v10769_v62 = vld [vmem:[#allocation6_spill] sm:$0xff] }
 0x181   : > { %7646 = vmatmul.mubr.bf16.gmra.mrb[12].mxu1 %v10767_v49  ;;  %v5140_v44 = vsel %vm8735_vm1, %v10076_v20, %v10029_v54  ;;  %v5216_v28 = vor.u32 %v5215_v25, %v10094_v63  ;;  %v5226_v12 = vrot.slane %v5224_v3, 4  ;;  %v4968_v49 = vld [vmem:[#allocation2 + $0x9c] sm:$0xf]  ;;  %v5150_v50 = vsel %vm8735_vm1, %v10085_v26, %v10054_v36  ;;  %v8328_v36 = vld [vmem:[%s10696_s4 + $0x208] sm:$0xff]  }
 0x182   : > { %7649 = vmatprep.mubr.bf16.mxu1 %v10768_v18  ;;  %7678 = vmatpush3.bf16.msra.mxu1 %v8329_v8  ;;  %v5229_v8 = vrot.slane %v5227_v24, 5  ;;  %v10125_v57 = vsel %vm9034_vm0, %v2585_v14, %v2586_v13  ;;  %v5164_v54 = vsel %vm8735_vm1, %v5159_v58, %v10061_v33  ;;  %v5174_v20 = vsel %vm8735_vm1, %v5169_v47, %v5173_v32  ;;  %v10147_v47 = vld [vmem:[%s10696_s4 + $0x100] sm:$0xff]   ;;  %v10774_v32 = vld [vmem:[#allocation4_spill] sm:$0xff] }
 0x183   : > { %7679 = vmatprep.subr.bf16.mxu1 %v8331_v23  ;;  %v5188_v48 = vsel %vm8735_vm1, %v5183_v46, %v10074_v45  ;;  %v10137_v0 = vrot.slane %v5219_v59, 5  ;;  %v10139_v26 = vrot.slane %v5233_v61, 5  ;;  %v5239_v13 = vrot.slane %v5237_v4, 4  ;;  %v10773_v24 = vld [vmem:[#allocation5_spill] sm:$0xff]  ;;  %v5693_v61 = vld [vmem:[#allocation2 + $0x48] sm:$0xe] }
 0x184   : > { %v5198_v33 = vsel %vm8735_vm1, %v5193_v41, %v5197_v5  ;;  %v10152_v58 = vrot.slane %v5206_v7, 4  ;;  %v5243_v45 = vshll.u32 %v10117_v53, 16  ;;  %v5248_v37 = vshrl.u32 %v4968_v49, 16  ;;  %v10197_v59 = vld [vmem:[#allocation2 + $0xa4] sm:$0x1] }
 0x185   : > { %v10156_v35 = vrot.slane %v5216_v28, 4  ;;  %v5230_v14 = vor.u32 %v5229_v8, %v5226_v12  ;;  %v5251_v56 = vshll.u32 %v4968_v49, 16  ;;  %v10770_v43 = vcombine.low %v9822_v6, %v10769_v62  ;;  %v4971_v41 = vld [vmem:[#allocation2 + $0xa8] sm:$0xf]  ;;  %v5694_v5 = vld [vmem:[#allocation2 + $0x54] sm:$0xe] }
 0x186   : > { %7680 = vmatpush3.bf16.msra.mxu1 %v8331_v23  ;;  %7874 = vmatmul.mubr.bf16.vlgmr.msra.gmra.mrb[0].mxu0 %v9905_v16  ;;  %v5257_v23 = vshll.u32 %v10132_v34, 16  ;;  %v10771_v51 = vsel %vm8735_vm1, %v10022_v19, %v10020_v15  ;;  %v10772_v16 = vsel %vm8735_vm1, %v10018_v27, %v9952_v21  ;;  %v6749_v3 = vcombine.low %v10040_v17, %v10052_v22  ;;  %v8330_v21 = vld [vmem:[%s10696_s4 + $0x210] sm:$0xff]   ;;  %v10219_v8 = vld [vmem:[#allocation2 + $0xac] sm:$0xf] }
 0x187   : > { %7953 = vmatprep.subr.bf16.mxu1 %v10147_v47  ;;  %7906 = vmatpush3.bf16.msra.mxu0 %v9897_v1  ;;  %v10173_v25 = vcombine.low %v10772_v16, %v10771_v51  ;;  %v5261_v1 = vshrl.u32 %v10132_v34, 16  ;;  %v10775_v42 = vor.u32 %v10773_v24, %v10774_v32  ;;  %v10776_v15 = vcombine.low %v9865_v11, %v9877_v31  ;;  %v10778_v51 = vld [vmem:[#allocation8_spill] sm:$0xff] }
 0x188   : > { %7877 = vmatprep.mubr.bf16.mxu0 %v9988_v10  ;;  %v10192_v27 = vcombine.low %v5140_v44, %v5150_v50  ;;  %v10194_v19 = vcombine.low %v5164_v54, %v5174_v20  ;;  %v5240_v46 = vor.u32 %v5239_v13, %v10139_v26  ;;  %7907 = vmatprep.subr.bf16.mxu0 %v8328_v36  ;;  %v10205_v31 = vrot.slane %v5243_v45, 5  ;;  %v10777_v20 = vld [vmem:[#allocation7_spill] sm:$0xff]  ;;  %v5695_v13 = vld [vmem:[#allocation2 + $0x60] sm:$0xe]  ;;  %v10791_v11 = vld [vmem:[#allocation12_spill] sm:$0xff] }
 0x189   : > { %7650 = vmatmul.mubr.bf16.gmra.mrb[16].mxu1 %v10770_v43  ;;  %v10183_v18 = vrot.slane %v10775_v42, 4  ;;  %v10199_v4 = vcombine.low %v5188_v48, %v5198_v33  ;;  %v10207_v10 = vrot.slane %v5248_v37, 4  ;;  %v10213_v44 = vrot.slane %v5230_v14, 4 }
 0x18a   : > { %7653 = vmatprep.mubr.bf16.mxu1 %v10776_v15  ;;  %v10215_v28 = vrot.slane %v5251_v56, 5  ;;  %v10217_v12 = vrot.slane %v5257_v23, 5  ;;  %v10221_v49 = vrot.slane %v5261_v1, 4  ;;  %v6979_v50 = vrot.slane %v5693_v61, 9  ;;  %v5696_v56 = vld [vmem:[#allocation2 + $0x6c] sm:$0xe] }
 0x18b   : > { %7908 = vmatpush3.bf16.msra.mxu0 %v8328_v36  ;;  %v5783_v54 = vrot.slane %v9869_v60, 5  ;;  %v5786_v48 = vrot.slane %v10777_v20, 5  ;;  %v10225_v33 = vrot.slane %v5240_v46, 4  ;;  %v5267_v45 = vshll.u32 %v10197_v59, 16  ;;  %v8332_v36 = vld [vmem:[%s10696_s4 + $0x218] sm:$0xff]   ;;  %v10779_v15 = vld [vmem:[#allocation9_spill] sm:$0xff] }
 0x18c   : > { %7909 = vmatprep.subr.bf16.mxu0 %v8330_v21  ;;  %v5272_v37 = vshrl.u32 %v4971_v41, 16  ;;  %v6980_v14 = vrot.slane %v5694_v5, 9  ;;  %v5275_v23 = vshll.u32 %v4971_v41, 16  ;;  %v5281_v62 = vshll.u32 %v10219_v8, 16  ;;  %v10781_v61 = vld [vmem:[#allocation16_spill] sm:$0xff]  ;;  %v10782_v5 = vld [vmem:[#allocation15_spill] sm:$0xff] }
 0x18d   : > { %v10234_v60 = vsel %vm9034_vm0, %v6979_v50, %v5783_v54  ;;  %v5785_v43 = vrot.slane %v5783_v54, 4  ;;  %v5790_v16 = vrot.slane %v10778_v51, 5  ;;  %v5793_v1 = vrot.slane %v9950_v40, 5  ;;  %v10783_v54 = vld [vmem:[#allocation17_spill] sm:$0xff]  ;;  %v10784_v51 = vld [vmem:[#allocation10_spill] sm:$0xff]  ;;  %v10785_v40 = vld [vmem:[#allocation11_spill] sm:$0xff] }
 0x18e   : > { %7878 = vmatmul.mubr.bf16.gmra.mrb[4].mxu0 %v10001_v55  ;;  %v6981_v24 = vrot.slane %v5695_v13, 9  ;;  %v5797_v42 = vrot.slane %v9986_v9, 5  ;;  %v10780_v46 = vcombine.low %v9913_v39, %v10779_v15  ;;  %v5800_v50 = vrot.slane %v10782_v5, 5 }
 0x18f   : > { %7881 = vmatprep.mubr.bf16.mxu0 %v10781_v61  ;;  %v10246_v41 = vsel %vm9034_vm0, %v5785_v43, %v5786_v48  ;;  %v6982_v55 = vrot.slane %v5696_v56, 9  ;;  %v5804_v20 = vrot.slane %v10783_v54, 5  ;;  %v10786_v13 = vcombine.low %v10784_v51, %v10785_v40  ;;  %7910 = vmatpush3.bf16.msra.mxu0 %v8330_v21  ;;  %v8334_v56 = vld [vmem:[%s10696_s4 + $0x220] sm:$0xff]   ;;  %v10787_v61 = vld [vmem:[#allocation19_spill] sm:$0xff]  ;;  %v5697_v54 = vld [vmem:[#allocation2 + $0x78] sm:$0xe] }
 0x190   : > { %v10257_v9 = vsel %vm9034_vm0, %v6980_v14, %v5790_v16  ;;  %v5792_v15 = vrot.slane %v5790_v16, 4  ;;  %v10261_v48 = vsel %vm9034_vm0, %v6981_v24, %v5797_v42  ;;  %7911 = vmatprep.subr.bf16.mxu0 %v8332_v36  ;;  %v5799_v43 = vrot.slane %v5797_v42, 4  ;;  %v10294_v40 = vld [vmem:[#allocation2 + $0xb0] sm:$0x1]  ;;  %v5698_v14 = vld [vmem:[#allocation2 + $0x84] sm:$0xe] }
 0x191   : > { %7654 = vmatmul.mubr.bf16.gmra.mrb[20].mxu1 %v10780_v46  ;;  %v10268_v21 = vsel %vm9034_vm0, %v6982_v55, %v5804_v20  ;;  %v5806_v46 = vrot.slane %v5804_v20, 4  ;;  %v5807_v5 = vrot.slane %v10787_v61, 5  ;;  %v5254_v16 = vor.u32 %v10215_v28, %v10207_v10  ;;  %v3323_v28 = vld [vmem:[#allocation2 + $0x78] sm:$0xf] }
 0x192   : > { %7657 = vmatprep.mubr.bf16.mxu1 %v10786_v13  ;;  %v5285_v24 = vshrl.u32 %v10219_v8, 16  ;;  %v10280_v42 = vsel %vm9034_vm0, %v5792_v15, %v5793_v1  ;;  %v5264_v55 = vor.u32 %v10221_v49, %v10217_v12  ;;  %v10288_v51 = vsel %vm9034_vm0, %v5799_v43, %v5800_v50  ;;  %v4974_v15 = vld [vmem:[#allocation2 + $0xb4] sm:$0xf]  ;;  %v10790_v49 = vld [vmem:[#allocation21_spill] sm:$0xff] }
 0x193   : > { %v10292_v10 = vsel %vm9034_vm0, %v5806_v46, %v5807_v5  ;;  %7912 = vmatpush3.bf16.msra.mxu0 %v8332_v36  ;;  %v5274_v1 = vrot.slane %v5272_v37, 4  ;;  %v5277_v13 = vrot.slane %v5275_v23, 5  ;;  %v8337_v36 = vld [vmem:[%s10696_s4 + $0x228] sm:$0xff]   ;;  %v10307_v43 = vrot.slane %v5267_v45, 5  ;;  %v10792_v50 = vld [vmem:[#allocation13_spill] sm:$0xff] }
 0x194   : > { %10788 = vst [vmem:[#allocation6_spill] sm:$0xff] %v10292_v10  ;;  %7913 = vmatprep.subr.bf16.mxu0 %v8334_v56  ;;  %v10309_v37 = vrot.slane %v5281_v62, 5  ;;  %v6983_v23 = vrot.slane %v5697_v54, 9  ;;  %v5287_v46 = vrot.slane %v5285_v24, 4  ;;  %v10789_v5 = vld [vmem:[#allocation18_spill] sm:$0xff]  ;;  %v5814_v20 = vrot.slane %v10790_v49, 5 }
 0x195   : > { %v5811_v61 = vrot.slane %v10789_v5, 5  ;;  %v3561_v39 = vshrl.u32 %v3323_v28, 16  ;;  %v10793_v7 = vcombine.low %v10791_v11, %v10792_v50  ;;  %v5291_v45 = vshll.u32 %v10294_v40, 16  ;;  %v10319_v62 = vld [vmem:[#allocation2 + $0xb8] sm:$0xf] }
 0x196   : > { %7882 = vmatmul.mubr.bf16.gmra.mrb[8].mxu0 %v10173_v25  ;;  %v5296_v54 = vshrl.u32 %v4974_v15, 16  ;;  %v3564_v6 = vshll.u32 %v3323_v28, 16  ;;  %v10794_v25 = vld [vmem:[#allocation14_spill] sm:$0xff]  ;;  %v5278_v11 = vor.u32 %v5277_v13, %v5274_v1  ;;  %v8340_v28 = vld [vmem:[%s10696_s4 + $0x230] sm:$0xff]   ;;  %v5299_v50 = vshll.u32 %v4974_v15, 16 }
 0x197   : > { %7885 = vmatprep.mubr.bf16.mxu0 %v10192_v27  ;;  %v3583_v24 = vsel %vm8735_vm1, %v10183_v18, %v10794_v25  ;;  %7914 = vmatpush3.bf16.msra.mxu0 %v8334_v56  ;;  %v10330_v27 = vsel %vm9034_vm0, %v6983_v23, %v5811_v61  ;;  %v3563_v49 = vrot.slane %v3561_v39, 4  ;;  %v6984_v18 = vrot.slane %v5698_v14, 9  ;;  %v10795_v25 = vld [vmem:[#allocation20_spill] sm:$0xff]  ;;  %v10347_v13 = vld [vmem:[#allocation2 + $0xc4] sm:$0xf]  ;;  %v8333_v15 = vld [vmem:[#allocation2 + $0xc] sm:$0xff]  }
 0x198   : > { %7915 = vmatprep.subr.bf16.mxu0 %v8337_v36  ;;  %v3566_v5 = vrot.slane %v3564_v6, 5  ;;  %v5818_v10 = vrot.slane %v10795_v25, 5  ;;  %v10336_v22 = vrot.slane %v5254_v16, 4  ;;  %v5305_v17 = vshll.u32 %v10319_v62, 16  ;;  %v5699_v16 = vld [vmem:[#allocation2 + $0x90] sm:$0xe] }
 0x199   : > { %7658 = vmatmul.mubr.bf16.gmra.mrb[24].mxu1 %v10793_v7  ;;  %v5813_v7 = vrot.slane %v5811_v61, 4  ;;  %v5821_v39 = vrot.slane %v10083_v29, 5  ;;  %v10344_v56 = vrot.slane %v5264_v55, 4  ;;  %v5288_v1 = vor.u32 %v5287_v46, %v10309_v37 }
 0x19a   : > { %7661 = vmatprep.mubr.bf16.mxu1 %v6749_v3  ;;  %v3567_v14 = vor.u32 %v3566_v5, %v3563_v49  ;;  %v10351_v61 = vrot.slane %v5291_v45, 5  ;;  %v10353_v23 = vrot.slane %v5296_v54, 4  ;;  %v10357_v29 = vsel %vm9034_vm0, %v6984_v18, %v5818_v10 }
 0x19b   : > { %v10341_v3 = vsel %vm9034_vm0, %v5813_v7, %v5814_v20  ;;  %7916 = vmatpush3.bf16.msra.mxu0 %v8337_v36  ;;  %v4977_v20 = vld [vmem:[#allocation2 + $0xc0] sm:$0xf]  ;;  %v5820_v55 = vrot.slane %v5818_v10, 4  ;;  %v10359_v46 = vrot.slane %v5278_v11, 4  ;;  %v10361_v7 = vrot.slane %v5299_v50, 5  ;;  %v8343_v36 = vld [vmem:[%s10696_s4 + $0x238] sm:$0xff]  }
 0x19c   : > { %v7015_v6 = vcombine.low %v10330_v27, %v10341_v3  ;;  %7917 = vmatprep.subr.bf16.mxu0 %v8340_v28  ;;  %v5309_v49 = vshrl.u32 %v10319_v62, 16  ;;  %v3568_v45 = vrot.slane %v3567_v14, 4  ;;  %v10368_v54 = vrot.slane %v5305_v17, 5  ;;  %v10384_v14 = vld [vmem:[#allocation2 + $0xbc] sm:$0x1] }
 0x19d   : > { %v10372_v5 = vsel %vm9034_vm0, %v5820_v55, %v5821_v39  ;;  %v6985_v10 = vrot.slane %v5699_v16, 9  ;;  %v5825_v11 = vrot.slane %v10092_v38, 5  ;;  %v10796_v50 = vcombine.low %v10110_v52, %v10125_v57 }
 0x19e   : > { %7886 = vmatmul.mubr.bf16.gmra.mrb[12].mxu0 %v10194_v19  ;;  %v5320_v18 = vshrl.u32 %v4977_v20, 16  ;;  %v5323_v25 = vshll.u32 %v4977_v20, 16  ;;  %v3573_v19 = vsel %vm8735_vm1, %v3568_v45, %v10774_v32  ;;  %v7016_v17 = vcombine.low %v10357_v29, %v10372_v5  ;;  %v4980_v45 = vld [vmem:[#allocation2 + $0xcc] sm:$0xf] }
 0x19f   : > { %7889 = vmatprep.mubr.bf16.mxu0 %v10199_v4  ;;  %v5289_v39 = vrot.slane %v5288_v1, 4  ;;  %7918 = vmatpush3.bf16.msra.mxu0 %v8340_v28  ;;  %v5329_v38 = vshll.u32 %v10347_v13, 16  ;;  %v5333_v52 = vshrl.u32 %v10347_v13, 16  ;;  %v10388_v57 = vcombine.low %v3573_v19, %v3583_v24 }
 0x1a0   : > { %v5311_v4 = vrot.slane %v5309_v49, 4  ;;  %7919 = vmatprep.subr.bf16.mxu0 %v8343_v36  ;;  %v10392_v16 = vsel %vm9034_vm0, %v6985_v10, %v5825_v11  ;;  %v5827_v32 = vrot.slane %v5825_v11, 4  ;;  %v5828_v20 = vrot.slane %v10117_v53, 5 }
 0x1a1   : > { %7662 = vmatmul.mubr.bf16.gmra.mrb[28].mxu1 %v10796_v50  ;;  %v10797_v28 = vsel %vm8735_vm1, %v10156_v35, %v10137_v0  ;;  %v10798_v24 = vsel %vm8735_vm1, %v10152_v58, %v10094_v63  ;;  %v10800_v53 = vsel %vm8735_vm1, %v10213_v44, %v10139_v26  ;;  %v5260_v0 = vsel %vm8735_vm1, %v10336_v22, %v10217_v12  ;;  %v5700_v58 = vld [vmem:[#allocation2 + $0x9c] sm:$0xe]  ;;  %v8336_v44 = vld [vmem:[#allocation2 + $0x24] sm:$0xff]  }
 0x1a2   : > { %7681 = vmatprep.mubr.bf16.mxu1 %v8333_v15  ;;  %v6960_v1 = vcombine.low %v10798_v24, %v10797_v28  ;;  %v10799_v15 = vsel %vm8735_vm1, %v10225_v33, %v10205_v31  ;;  %v5270_v63 = vsel %vm8735_vm1, %v10344_v56, %v10307_v43  ;;  %v8335_v35 = vld [vmem:[#allocation2 + $0x18] sm:$0xff]   ;;  %v5315_v31 = vshll.u32 %v10384_v14, 16  ;;  %v10434_v56 = vld [vmem:[#allocation2 + $0xd0] sm:$0xf] }
 0x1a3   : > { %v6961_v55 = vcombine.low %v10800_v53, %v10799_v15  ;;  %v5322_v33 = vrot.slane %v5320_v18, 4  ;;  %v5325_v49 = vrot.slane %v5323_v25, 5  ;;  %v10426_v26 = vsel %vm9034_vm0, %v5827_v32, %v5828_v20  ;;  %7920 = vmatpush3.bf16.msra.mxu0 %v8343_v36  ;;  %v10444_v25 = vld [vmem:[#allocation2 + $0xc8] sm:$0x1] }
 0x1a4   : > { %v5284_v12 = vsel %vm8735_vm1, %v10359_v46, %v10309_v37  ;;  %v10432_v22 = vrot.slane %v5329_v38, 5  ;;  %v5335_v43 = vrot.slane %v5333_v52, 4  ;;  %v7017_v10 = vcombine.low %v10392_v16, %v10426_v26  ;;  %v8409_v32 = vld [vmem:[%s10696_s4 + $0x108] sm:$0xff]  }
 0x1a5   : > { %v5294_v11 = vsel %vm8735_vm1, %v5289_v39, %v10351_v61  ;;  %v5302_v50 = vor.u32 %v10361_v7, %v10353_v23  ;;  %v5312_v18 = vor.u32 %v5311_v4, %v10368_v54  ;;  %v6986_v37 = vrot.slane %v5700_v58, 9  ;;  %v8338_v58 = vld [vmem:[#allocation2 + $0x30] sm:$0xff]  }
 0x1a6   : > { %7890 = vmatmul.mubr.bf16.gmra.mrb[16].mxu0 %v6960_v1  ;;  %v5344_v46 = vshrl.u32 %v4980_v45, 16  ;;  %v5347_v19 = vshll.u32 %v4980_v45, 16  ;;  %v5832_v36 = vrot.slane %v10132_v34, 5  ;;  %v5835_v38 = vrot.slane %v10197_v59, 5  ;;  %v5701_v59 = vld [vmem:[#allocation2 + $0xa8] sm:$0xe] }
 0x1a7   : > { %7893 = vmatprep.mubr.bf16.mxu0 %v6961_v55  ;;  %v5326_v52 = vor.u32 %v5325_v49, %v5322_v33  ;;  %v5353_v61 = vshll.u32 %v10434_v56, 16  ;;  %v5357_v39 = vshrl.u32 %v10434_v56, 16  ;;  %v5336_v23 = vor.u32 %v5335_v43, %v10432_v22 }
 0x1a8   : > { %v5339_v7 = vshll.u32 %v10444_v25, 16  ;;  %v10455_v4 = vsel %vm9034_vm0, %v6986_v37, %v5832_v36  ;;  %v5834_v34 = vrot.slane %v5832_v36, 4  ;;  %v6962_v20 = vcombine.low %v5260_v0, %v5270_v63 }
 0x1a9   : > { %7682 = vmatmul.mubr.bf16.vlgmr.msra.gmra.mrb[0].mxu1 %v8335_v35  ;;  %v6963_v28 = vcombine.low %v5284_v12, %v5294_v11  ;;  %v5303_v24 = vrot.slane %v5302_v50, 4  ;;  %v5313_v1 = vrot.slane %v5312_v18, 4  ;;  %v5346_v15 = vrot.slane %v5344_v46, 4  ;;  %v8339_v35 = vld [vmem:[#allocation2 + $0x3c] sm:$0xff]   ;;  %v10468_v12 = vld [vmem:[#allocation2 + $0xd4] sm:$0x1] }
 0x1aa   : > { %7961 = vmatpush3.bf16.msra.mxu1 %v10147_v47  ;;  %7685 = vmatprep.mubr.bf16.mxu1 %v8336_v44  ;;  %v5317_v47 = vrot.slane %v5315_v31, 5  ;;  %v5349_v53 = vrot.slane %v5347_v19, 5  ;;  %v10462_v55 = vsel %vm9034_vm0, %v5834_v34, %v5835_v38  ;;  %v10464_v33 = vrot.slane %v5353_v61, 5  ;;  %v8410_v11 = vld [vmem:[%s10696_s4 + $0x110] sm:$0xff]   ;;  %v5689_v38 = vld [vmem:[#allocation2 + $0x18] sm:$0xe] }
 0x1ab   : > { %7954 = vmatprep.subr.bf16.mxu1 %v8409_v32  ;;  %v5359_v49 = vrot.slane %v5357_v39, 4  ;;  %v7018_v45 = vcombine.low %v10455_v4, %v10462_v55  ;;  %v6987_v44 = vrot.slane %v5701_v59, 9  ;;  %v5327_v0 = vrot.slane %v5326_v52, 4  ;;  %v5702_v52 = vld [vmem:[#allocation2 + $0xb4] sm:$0xe]  ;;  %v8412_v59 = vld [vmem:[%s10696_s4 + $0x118] sm:$0xff]  }
 0x1ac   : > { %v5337_v63 = vrot.slane %v5336_v23, 4  ;;  %v5341_v31 = vrot.slane %v5339_v7, 5  ;;  %v5839_v43 = vrot.slane %v10219_v8, 5  ;;  %v5842_v50 = vrot.slane %v10294_v40, 5  ;;  %v8411_v39 = vld [vmem:[#allocation2 + $0x1c] sm:$0xf] }
 0x1ad   : > { %v5308_v18 = vsel %vm8735_vm1, %v5303_v24, %v10368_v54  ;;  %v5318_v37 = vsel %vm8735_vm1, %v5313_v1, %v5317_v47  ;;  %v5350_v19 = vor.u32 %v5349_v53, %v5346_v15  ;;  %v5360_v36 = vor.u32 %v5359_v49, %v10464_v33  ;;  %v8341_v47 = vld [vmem:[#allocation2 + $0x48] sm:$0xff]  }
 0x1ae   : > { %7962 = vmatpush3.bf16.msra.mxu1 %v8409_v32  ;;  %7894 = vmatmul.mubr.bf16.gmra.mrb[20].mxu0 %v6962_v20  ;;  %v10482_v46 = vsel %vm9034_vm0, %v6987_v44, %v5839_v43  ;;  %v5841_v8 = vrot.slane %v5839_v43, 4  ;;  %v5363_v40 = vshll.u32 %v10468_v12, 16  ;;  %v5332_v54 = vsel %vm8735_vm1, %v5327_v0, %v10432_v22  ;;  %v8413_v44 = vld [vmem:[#allocation2 + $0x20] sm:$0x1]  ;;  %v5703_v43 = vld [vmem:[#allocation2 + $0xc0] sm:$0xe] }
 0x1af   : > { %7955 = vmatprep.subr.bf16.mxu1 %v8410_v11  ;;  %7897 = vmatprep.mubr.bf16.mxu0 %v6963_v28  ;;  %v5342_v61 = vsel %vm8735_vm1, %v5337_v63, %v5341_v31  ;;  %v5755_v23 = vrot.slane %v8411_v39, 5  ;;  %v6964_v34 = vcombine.low %v5308_v18, %v5318_v37  ;;  %v6975_v20 = vrot.slane %v5689_v38, 9  ;;  %v5690_v38 = vld [vmem:[#allocation2 + $0x24] sm:$0xe]  ;;  %v5691_v39 = vld [vmem:[#allocation2 + $0x30] sm:$0xe] }
 0x1b0   : > { %v10493_v7 = vsel %vm9034_vm0, %v5841_v8, %v5842_v50  ;;  %v6988_v22 = vrot.slane %v5702_v52, 9  ;;  %v5846_v28 = vrot.slane %v10319_v62, 5  ;;  %v5849_v24 = vrot.slane %v10384_v14, 5  ;;  %v8414_v62 = vld [vmem:[%s10696_s4 + $0x120] sm:$0xff]   ;;  %v8415_v14 = vld [vmem:[#allocation2 + $0x28] sm:$0xf] }
 0x1b1   : > { %7686 = vmatmul.mubr.bf16.gmra.mrb[4].mxu1 %v8338_v58  ;;  %v7019_v32 = vcombine.low %v10482_v46, %v10493_v7  ;;  %v6965_v1 = vcombine.low %v5332_v54, %v5342_v61  ;;  %v5351_v15 = vrot.slane %v5350_v19, 4  ;;  %v5361_v53 = vrot.slane %v5360_v36, 4  ;;  %v8416_v52 = vld [vmem:[#allocation2 + $0x34] sm:$0xf]  ;;  %v8417_v61 = vld [vmem:[%s10696_s4 + $0x128] sm:$0xff]  }
 0x1b2   : > { %7689 = vmatprep.mubr.bf16.mxu1 %v8339_v35  ;;  %7963 = vmatpush3.bf16.msra.mxu1 %v8410_v11  ;;  %v5365_v58 = vrot.slane %v5363_v40, 5  ;;  %v8342_v35 = vld [vmem:[#allocation2 + $0x54] sm:$0xff]   ;;  %v5757_v49 = vrot.slane %v5755_v23, 4  ;;  %v5758_v0 = vrot.slane %v8413_v44, 5  ;;  %v10504_v63 = vsel %vm9034_vm0, %v6988_v22, %v5846_v28  ;;  %v8344_v22 = vld [vmem:[#allocation2 + $0x60] sm:$0xff]  }
 0x1b3   : > { %7956 = vmatprep.subr.bf16.mxu1 %v8412_v59  ;;  %v5848_v31 = vrot.slane %v5846_v28, 4  ;;  %v5762_v11 = vrot.slane %v8415_v14, 5  ;;  %v5356_v18 = vsel %vm8735_vm1, %v5351_v15, %v10464_v33  ;;  %v6989_v19 = vrot.slane %v5703_v43, 9  ;;  %v5704_v15 = vld [vmem:[#allocation2 + $0xcc] sm:$0xe] }
 0x1b4   : > { %v5366_v37 = vsel %vm8735_vm1, %v5361_v53, %v5365_v58  ;;  %v5756_v36 = vsel %vm9034_vm0, %v6975_v20, %v5755_v23  ;;  %v5759_v40 = vsel %vm9034_vm0, %v5757_v49, %v5758_v0  ;;  %v5769_v54 = vrot.slane %v8416_v52, 5  ;;  %v8345_v53 = vld [vmem:[#allocation2 + $0x6c] sm:$0xff]   ;;  %v8419_v49 = vld [vmem:[#allocation2 + $0x38] sm:$0x1]  ;;  %v5692_v43 = vld [vmem:[#allocation2 + $0x3c] sm:$0xe] }
 0x1b5   : > { %v10511_v50 = vsel %vm9034_vm0, %v5848_v31, %v5849_v24  ;;  %v5853_v33 = vrot.slane %v10347_v13, 5  ;;  %v7007_v28 = vcombine.low %v5756_v36, %v5759_v40  ;;  %v6976_v24 = vrot.slane %v5690_v38, 9  ;;  %v8420_v0 = vld [vmem:[%s10696_s4 + $0x130] sm:$0xff]  }
 0x1b6   : > { %7964 = vmatpush3.bf16.msra.mxu1 %v8412_v59  ;;  %7898 = vmatmul.mubr.bf16.gmra.mrb[24].mxu0 %v6964_v34  ;;  %v7020_v8 = vcombine.low %v10504_v63, %v10511_v50  ;;  %v5856_v34 = vrot.slane %v10444_v25, 5  ;;  %v6966_v59 = vcombine.low %v5356_v18, %v5366_v37  ;;  %v6977_v58 = vrot.slane %v5691_v39, 9 }
 0x1b7   : > { %7957 = vmatprep.subr.bf16.mxu1 %v8414_v62  ;;  %7901 = vmatprep.mubr.bf16.mxu0 %v6965_v1  ;;  %v10531_v23 = vsel %vm9034_vm0, %v6989_v19, %v5853_v33  ;;  %v5855_v20 = vrot.slane %v5853_v33, 4  ;;  %v8418_v1 = vld [vmem:[#allocation2 + $0x2c] sm:$0x1]  ;;  %v5772_v44 = vrot.slane %v8419_v49, 5  ;;  %v6990_v18 = vrot.slane %v5704_v15, 9 }
 0x1b8   : > { %v5765_v13 = vrot.slane %v8418_v1, 5  ;;  %v5860_v37 = vrot.slane %v10434_v56, 5  ;;  %v5863_v19 = vrot.slane %v10468_v12, 5  ;;  %v5763_v36 = vsel %vm9034_vm0, %v6976_v24, %v5762_v11  ;;  %v8347_v24 = vld [vmem:[#allocation2 + $0x84] sm:$0xff]  }
 0x1b9   : > { %7690 = vmatmul.mubr.bf16.gmra.mrb[8].mxu1 %v8341_v47  ;;  %v5764_v47 = vrot.slane %v5762_v11, 4  ;;  %v10535_v25 = vsel %vm9034_vm0, %v5855_v20, %v5856_v34  ;;  %v5770_v38 = vsel %vm9034_vm0, %v6977_v58, %v5769_v54  ;;  %v6978_v33 = vrot.slane %v5692_v43, 9  ;;  %v8422_v11 = vld [vmem:[%s10696_s4 + $0x138] sm:$0xff]   ;;  %v8423_v34 = vld [vmem:[#allocation2 + $0x44] sm:$0x1] }
 0x1ba   : > { %7693 = vmatprep.mubr.bf16.mxu1 %v8342_v35  ;;  %7965 = vmatpush3.bf16.msra.mxu1 %v8414_v62  ;;  %v5771_v35 = vrot.slane %v5769_v54, 4  ;;  %v7021_v31 = vcombine.low %v10531_v23, %v10535_v25  ;;  %v8421_v62 = vld [vmem:[#allocation2 + $0x40] sm:$0xf]  ;;  %v10554_v56 = vsel %vm9034_vm0, %v6990_v18, %v5860_v37  ;;  %v5862_v12 = vrot.slane %v5860_v37, 4  ;;  %v8346_v20 = vld [vmem:[#allocation2 + $0x78] sm:$0xff]  }
 0x1bb   : > { %7958 = vmatprep.subr.bf16.mxu1 %v8417_v61  ;;  %v5776_v14 = vrot.slane %v8421_v62, 5  ;;  %v5766_v40 = vsel %vm9034_vm0, %v5764_v47, %v5765_v13  ;;  %v3320_v47 = vld [vmem:[#allocation2 + $0x6c] sm:$0xf]  ;;  %v8424_v58 = vld [vmem:[#allocation2 + $0x70] sm:$0xf] }
 0x1bc   : > { %v5773_v52 = vsel %vm9034_vm0, %v5771_v35, %v5772_v44  ;;  %v10561_v54 = vsel %vm9034_vm0, %v5862_v12, %v5863_v19  ;;  %v3537_v15 = vshrl.u32 %v3320_v47, 16  ;;  %v3546_v35 = vshll.u32 %v8424_v58, 16  ;;  %v8349_v19 = vld [vmem:[#allocation2 + $0x9c] sm:$0xff]  }
 0x1bd   : > { %v5778_v39 = vrot.slane %v5776_v14, 4  ;;  %v5777_v1 = vsel %vm9034_vm0, %v6978_v33, %v5776_v14  ;;  %v3550_v49 = vshrl.u32 %v8424_v58, 16  ;;  %v8425_v14 = vld [vmem:[#allocation2 + $0x74] sm:$0x1] }
 0x1be   : > { %7966 = vmatpush3.bf16.msra.mxu1 %v8417_v61  ;;  %7902 = vmatmul.mubr.bf16.gmra.mrb[28].mxu0 %v6966_v59  ;;  %v7008_v61 = vcombine.low %v5763_v36, %v5766_v40  ;;  %v5779_v59 = vrot.slane %v8423_v34, 5  ;;  %v3539_v43 = vrot.slane %v3537_v15, 4  ;;  %v3548_v18 = vrot.slane %v3546_v35, 5  ;;  %v3326_v36 = vld [vmem:[#allocation2 + $0x84] sm:$0xf]  ;;  %v8351_v15 = vld [vmem:[#allocation2 + $0xb4] sm:$0xff]  }
 0x1bf   : > { %7959 = vmatprep.subr.bf16.mxu1 %v8420_v0  ;;  %7921 = vmatprep.mubr.bf16.mxu0 %v7007_v28  ;;  %v7022_v28 = vcombine.low %v10554_v56, %v10561_v54  ;;  %v3552_v37 = vrot.slane %v3550_v49, 4  ;;  %v3556_v2 = vshll.u32 %v8425_v14, 16  ;;  %v10801_v40 = vcombine.low %v10234_v60, %v10246_v41  ;;  %v3329_v34 = vld [vmem:[#allocation2 + $0x90] sm:$0xf]  ;;  %v8427_v35 = vld [vmem:[#allocation2 + $0x94] sm:$0xf] }
 0x1c0   : > { %v5780_v13 = vsel %vm9034_vm0, %v5778_v39, %v5779_v59  ;;  %v3585_v12 = vshrl.u32 %v3326_v36, 16  ;;  %v3588_v33 = vshll.u32 %v3326_v36, 16  ;;  %v8350_v59 = vld [vmem:[#allocation2 + $0xa8] sm:$0xff]   ;;  %v3609_v41 = vshrl.u32 %v3329_v34, 16 }
 0x1c1   : > { %7694 = vmatmul.mubr.bf16.gmra.mrb[12].mxu1 %v8344_v22  ;;  %v7009_v22 = vcombine.low %v5770_v38, %v5773_v52  ;;  %v7010_v44 = vcombine.low %v5777_v1, %v5780_v13  ;;  %v3553_v52 = vor.u32 %v3552_v37, %v3548_v18  ;;  %v3332_v13 = vld [vmem:[#allocation2 + $0x9c] sm:$0xf]  ;;  %v3612_v58 = vshll.u32 %v3329_v34, 16  ;;  %v8428_v37 = vld [vmem:[#allocation2 + $0xa0] sm:$0xf] }
 0x1c2   : > { %7697 = vmatprep.mubr.bf16.mxu1 %v8345_v53  ;;  %7967 = vmatpush3.bf16.msra.mxu1 %v8420_v0  ;;  %v3540_v53 = vshll.u32 %v3320_v47, 16  ;;  %v8348_v0 = vld [vmem:[#allocation2 + $0x90] sm:$0xff]   ;;  %v3587_v47 = vrot.slane %v3585_v12, 4  ;;  %v3590_v1 = vrot.slane %v3588_v33, 5  ;;  %v3618_v49 = vshll.u32 %v8427_v35, 16 }
 0x1c3   : > { %7960 = vmatprep.subr.bf16.mxu1 %v8422_v11  ;;  %v3646_v36 = vshrl.u32 %v8428_v37, 16  ;;  %v10803_v14 = vcombine.low %v10261_v48, %v10288_v51  ;;  %v3611_v12 = vrot.slane %v3609_v41, 4  ;;  %v3614_v33 = vrot.slane %v3612_v58, 5 }
 0x1c4   : > { %v3542_v62 = vrot.slane %v3540_v53, 5 }
 0x1c5   : > { %v3648_v34 = vrot.slane %v3646_v36, 4 }
 0x1c6   : > { %7968 = vmatpush3.bf16.msra.mxu1 %v8422_v11  ;;  %7922 = vmatmul.mubr.bf16.vlgmr.msra.gmra.mrb[0].mxu0 %v7008_v61  ;;  %v3543_v38 = vor.u32 %v3542_v62, %v3539_v43  ;;  %v8426_v11 = vld [vmem:[#allocation2 + $0x88] sm:$0xf]  ;;  %v3633_v43 = vshrl.u32 %v3332_v13, 16  ;;  %v3636_v62 = vshll.u32 %v3332_v13, 16  ;;  %v3615_v13 = vor.u32 %v3614_v33, %v3611_v12 }
 0x1c7   : > { %7925 = vmatprep.mubr.bf16.mxu0 %v7009_v22  ;;  %v3594_v61 = vshll.u32 %v8426_v11, 16  ;;  %v3598_v39 = vshrl.u32 %v8426_v11, 16  ;;  %v10585_v11 = vrot.slane %v3618_v49, 5 }
 0x1c8   : > { %v3544_v22 = vrot.slane %v3543_v38, 4  ;;  %v8429_v38 = vld [vmem:[#allocation2 + $0x8c] sm:$0x1]  ;;  %v3638_v48 = vrot.slane %v3636_v62, 5 }
 0x1c9   : > { %7698 = vmatmul.mubr.bf16.gmra.mrb[16].mxu1 %v8346_v20  ;;  %v3558_v20 = vrot.slane %v3556_v2, 5  ;;  %v10572_v53 = vrot.slane %v3594_v61, 5  ;;  %v3600_v60 = vrot.slane %v3598_v39, 4  ;;  %v3635_v39 = vrot.slane %v3633_v43, 4  ;;  %v3338_v43 = vld [vmem:[#allocation2 + $0xb4] sm:$0xf] }
 0x1ca   : > { %7701 = vmatprep.mubr.bf16.mxu1 %v8347_v24  ;;  %v3554_v24 = vrot.slane %v3553_v52, 4  ;;  %v3549_v2 = vsel %vm8735_vm1, %v3544_v22, %v3548_v18  ;;  %v3604_v52 = vshll.u32 %v8429_v38, 16  ;;  %v8352_v18 = vld [vmem:[#allocation2 + $0xc0] sm:$0xff]  }
 0x1cc   : > { %v3606_v22 = vrot.slane %v3604_v52, 5  ;;  %v3681_v52 = vshrl.u32 %v3338_v43, 16 }
 0x1ce   : > { %7926 = vmatmul.mubr.bf16.gmra.mrb[4].mxu0 %v7010_v44  ;;  %v3622_v44 = vshrl.u32 %v8427_v35, 16  ;;  %v3639_v35 = vor.u32 %v3638_v48, %v3635_v39 }
 0x1cf   : > { %7929 = vmatprep.mubr.bf16.mxu0 %v10801_v40  ;;  %v3559_v40 = vsel %vm8735_vm1, %v3554_v24, %v3558_v20 }
 0x1d0   : > { %v3624_v61 = vrot.slane %v3622_v44, 4  ;;  %v8431_v44 = vld [vmem:[#allocation2 + $0xa4] sm:$0x1]  ;;  %v3640_v12 = vrot.slane %v3639_v35, 4 }
 0x1d1   : > { %7702 = vmatmul.mubr.bf16.gmra.mrb[20].mxu1 %v8348_v0  ;;  %v10802_v0 = vcombine.low %v10257_v9, %v10280_v42  ;;  %v3591_v9 = vor.u32 %v3590_v1, %v3587_v47  ;;  %v3601_v42 = vor.u32 %v3600_v60, %v10572_v53  ;;  %v3335_v1 = vld [vmem:[#allocation2 + $0xa8] sm:$0xf]  ;;  %v8435_v35 = vld [vmem:[#allocation2 + $0xc4] sm:$0xf] }
 0x1d2   : > { %7705 = vmatprep.mubr.bf16.mxu1 %v8349_v19  ;;  %v3642_v19 = vshll.u32 %v8428_v37, 16  ;;  %v10804_v60 = vld [vmem:[#allocation6_spill] sm:$0xff]  ;;  %v3625_v58 = vor.u32 %v3624_v61, %v10585_v11  ;;  %v3657_v62 = vshrl.u32 %v3335_v1, 16  ;;  %v3660_v37 = vshll.u32 %v3335_v1, 16 }
 0x1d3   : > { %v3592_v20 = vrot.slane %v3591_v9, 4  ;;  %v3602_v24 = vrot.slane %v3601_v42, 4  ;;  %v10805_v41 = vcombine.low %v10268_v21, %v10804_v60  ;;  %v3684_v9 = vshll.u32 %v3338_v43, 16  ;;  %v8433_v42 = vld [vmem:[#allocation2 + $0xb8] sm:$0xf] }
 0x1d4   : > { %v10587_v51 = vrot.slane %v3642_v19, 5  ;;  %v8432_v19 = vld [vmem:[#allocation2 + $0xac] sm:$0xf]  ;;  %v3690_v27 = vshll.u32 %v8433_v42, 16  ;;  %v3694_v3 = vshrl.u32 %v8433_v42, 16  ;;  %v3659_v39 = vrot.slane %v3657_v62, 4 }
 0x1d5   : > { %v3666_v36 = vshll.u32 %v8432_v19, 16  ;;  %v3597_v21 = vsel %vm8735_vm1, %v3592_v20, %v10572_v53  ;;  %v3662_v48 = vrot.slane %v3660_v37, 5  ;;  %v3683_v53 = vrot.slane %v3681_v52, 4  ;;  %v8434_v60 = vld [vmem:[#allocation2 + $0xb0] sm:$0x1] }
 0x1d6   : > { %7930 = vmatmul.mubr.bf16.gmra.mrb[8].mxu0 %v10802_v0  ;;  %v3649_v49 = vor.u32 %v3648_v34, %v10587_v51  ;;  %v3652_v0 = vshll.u32 %v8431_v44, 16  ;;  %v3686_v20 = vrot.slane %v3684_v9, 5  ;;  %v3645_v1 = vsel %vm8735_vm1, %v3640_v12, %v10587_v51 }
 0x1d7   : > { %7933 = vmatprep.mubr.bf16.mxu0 %v10803_v14  ;;  %v3670_v14 = vshrl.u32 %v8432_v19, 16  ;;  %v3668_v34 = vrot.slane %v3666_v36, 5  ;;  %v3663_v5 = vor.u32 %v3662_v48, %v3659_v39  ;;  %v3718_v44 = vshrl.u32 %v8435_v35, 16 }
 0x1d8   : > { %v3650_v33 = vrot.slane %v3649_v49, 4  ;;  %v3654_v61 = vrot.slane %v3652_v0, 5  ;;  %v3714_v49 = vshll.u32 %v8435_v35, 16  ;;  %v3687_v51 = vor.u32 %v3686_v20, %v3683_v53 }
 0x1d9   : > { %7706 = vmatmul.mubr.bf16.gmra.mrb[24].mxu1 %v8350_v59  ;;  %v6823_v59 = vcombine.low %v3549_v2, %v3559_v40  ;;  %v3607_v2 = vsel %vm8735_vm1, %v3602_v24, %v3606_v22  ;;  %v3616_v40 = vrot.slane %v3615_v13, 4  ;;  %v3696_v22 = vrot.slane %v3694_v3, 4  ;;  %v3341_v24 = vld [vmem:[#allocation2 + $0xc0] sm:$0xf]  ;;  %v8437_v3 = vld [vmem:[#allocation2 + $0xc8] sm:$0x1] }
 0x1da   : > { %7709 = vmatprep.mubr.bf16.mxu1 %v8351_v15  ;;  %v8430_v15 = vld [vmem:[#allocation2 + $0x98] sm:$0x1]  ;;  %v3655_v29 = vsel %vm8735_vm1, %v3650_v33, %v3654_v61  ;;  %v3664_v26 = vrot.slane %v3663_v5, 4 }
 0x1db   : > { %v3628_v47 = vshll.u32 %v8430_v15, 16  ;;  %v3692_v15 = vrot.slane %v3690_v27, 5  ;;  %v3621_v13 = vsel %vm8735_vm1, %v3616_v40, %v10585_v11  ;;  %v3676_v11 = vshll.u32 %v8434_v60, 16 }
 0x1dc   : > { %v6827_v16 = vcombine.low %v3645_v1, %v3655_v29  ;;  %v3669_v52 = vsel %vm8735_vm1, %v3664_v26, %v3668_v34 }
 0x1dd   : > { %v3630_v38 = vrot.slane %v3628_v47, 5  ;;  %v3697_v0 = vor.u32 %v3696_v22, %v3692_v15  ;;  %v3678_v37 = vrot.slane %v3676_v11, 5 }
 0x1de   : > { %7934 = vmatmul.mubr.bf16.gmra.mrb[12].mxu0 %v10805_v41  ;;  %v3705_v41 = vshrl.u32 %v3341_v24, 16 }
 0x1df   : > { %7937 = vmatprep.mubr.bf16.mxu0 %v7015_v6  ;;  %v3626_v6 = vrot.slane %v3625_v58, 4  ;;  %v3708_v58 = vshll.u32 %v3341_v24, 16  ;;  %v3698_v40 = vrot.slane %v3697_v0, 4 }
 0x1e0   : > { %v3707_v19 = vrot.slane %v3705_v41, 4 }
 0x1e1   : > { %7710 = vmatmul.mubr.bf16.gmra.mrb[28].mxu1 %v8352_v18  ;;  %v3672_v18 = vrot.slane %v3670_v14, 4  ;;  %v3631_v47 = vsel %vm8735_vm1, %v3626_v6, %v3630_v38  ;;  %v3710_v36 = vrot.slane %v3708_v58, 5  ;;  %v3716_v14 = vrot.slane %v3714_v49, 5 }
 0x1e2   : > { %7745 = vmatprep.mubr.bf16.mxu1 %v6823_v59  ;;  %v6825_v59 = vcombine.low %v3597_v21, %v3607_v2  ;;  %v6826_v62 = vcombine.low %v3621_v13, %v3631_v47  ;;  %v3720_v21 = vrot.slane %v3718_v44, 4  ;;  %v3688_v2 = vrot.slane %v3687_v51, 4 }
 0x1e3   : > { %v3711_v42 = vor.u32 %v3710_v36, %v3707_v19  ;;  %v3724_v6 = vshll.u32 %v8437_v3, 16 }
 0x1e4   : > { %v3721_v27 = vor.u32 %v3720_v21, %v3716_v14  ;;  %v3693_v4 = vsel %vm8735_vm1, %v3688_v2, %v3692_v15 }
 0x1e5   : > { %v3712_v7 = vrot.slane %v3711_v42, 4  ;;  %v3726_v12 = vrot.slane %v3724_v6, 5 }
 0x1e6   : > { %7938 = vmatmul.mubr.bf16.gmra.mrb[16].mxu0 %v7016_v17  ;;  %v3673_v17 = vor.u32 %v3672_v18, %v3668_v34 }
 0x1e7   : > { %7941 = vmatprep.mubr.bf16.mxu0 %v7017_v10  ;;  %v3717_v33 = vsel %vm8735_vm1, %v3712_v7, %v3716_v14 }
 0x1e8   : > { %v3674_v10 = vrot.slane %v3673_v17, 4 }
 0x1e9   : > { %7746 = vmatmul.mubr.bf16.vlgmr.msra.gmra.mrb[16].mxu1 %v10388_v57  ;;  %v8436_v57 = vld [vmem:[#allocation2 + $0xbc] sm:$0x1] }
 0x1ea   : > { %7749 = vmatprep.mubr.bf16.mxu1 %v6825_v59  ;;  %v3700_v43 = vshll.u32 %v8436_v57, 16  ;;  %v3679_v9 = vsel %vm8735_vm1, %v3674_v10, %v3678_v37 }
 0x1ec   : > { %v3702_v38 = vrot.slane %v3700_v43, 5 }
 0x1ee   : > { %7942 = vmatmul.mubr.bf16.gmra.mrb[20].mxu0 %v7018_v45  ;;  %v3703_v55 = vsel %vm8735_vm1, %v3698_v40, %v3702_v38  ;;  %v6828_v45 = vcombine.low %v3669_v52, %v3679_v9 }
 0x1ef   : > { %7945 = vmatprep.mubr.bf16.mxu0 %v7019_v32  ;;  %v6829_v46 = vcombine.low %v3693_v4, %v3703_v55  ;;  %v3722_v32 = vrot.slane %v3721_v27, 4 }
 0x1f1   : > { %7750 = vmatmul.mubr.bf16.gmra.mrb[20].mxu1 %v6826_v62  ;;  %v3727_v61 = vsel %vm8735_vm1, %v3722_v32, %v3726_v12 }
 0x1f2   : > { %7753 = vmatprep.mubr.bf16.mxu1 %v6827_v16  ;;  %v6830_v39 = vcombine.low %v3717_v33, %v3727_v61 }
 0x1f6   : > { %7946 = vmatmul.mubr.bf16.gmra.mrb[24].mxu0 %v7020_v8 }
 0x1f7   : > { %7949 = vmatprep.mubr.bf16.mxu0 %v7021_v31 }
 0x1f9   : > { %7754 = vmatmul.mubr.bf16.gmra.mrb[24].mxu1 %v6828_v45 }
 0x1fa   : > { %7757 = vmatprep.mubr.bf16.mxu1 %v6829_v46 }
 0x1fe   : > { %7950 = vmatmul.mubr.bf16.gmra.mrb[28].mxu0 %v7022_v28 }
 0x201   : > { %7758 = vmatmul.mubr.bf16.gmra.mrb[28].mxu1 %v6830_v39 }
 0x27c   : > { %v7683_v63 = vpop.f32.mrb[0].mxu1 }
 0x27d   : > { %v3137_v50 = vpop.f32.mrb[1].mxu1 }
 0x27e   : > { %v7684_v8 = vpop.f32.mrb[2].mxu1 }
 0x27f   : > { %v3140_v48 = vpop.f32.mrb[3].mxu1 }
 0x284   : > { %v7687_v34 = vpop.f32.mrb[4].mxu1 }
 0x285   : > { %v3153_v23 = vpop.f32.mrb[5].mxu1 }
 0x286   : > { %v7688_v25 = vpop.f32.mrb[6].mxu1 }
 0x287   : > { %v3156_v31 = vpop.f32.mrb[7].mxu1 }
 0x28c   : > { %v7691_v18 = vpop.f32.mrb[8].mxu1 }
 0x28d   : > { %v3169_v59 = vpop.f32.mrb[9].mxu1 }
 0x28e   : > { %v7692_v53 = vpop.f32.mrb[10].mxu1 }
 0x28f   : > { %v3172_v30 = vpop.f32.mrb[11].mxu1 }
 0x294   : > { %v10646_v20 = vpop.f32.mrb[12].mxu1 }
 0x295   : > { %v10648_v15 = vpop.f32.mrb[13].mxu1 }
 0x296   : > { %v10650_v56 = vpop.f32.mrb[14].mxu1 }
 0x297   : > { %v10652_v54 = vpop.f32.mrb[15].mxu1 }
 0x299   : > { %v7923_v28 = vpop.f32.mrb[0].mxu0 }
 0x29a   : > { %v7969_v22 = vadd.f32 %v7923_v28, %v7683_v63  ;;  %v6028_v24 = vpop.f32.mrb[1].mxu0 }
 0x29b   : > { %v7970_v13 = vadd.f32 %v6028_v24, %v3137_v50  ;;  %v7924_v47 = vpop.f32.mrb[2].mxu0 }
 0x29c   : > { %v7971_v1 = vadd.f32 %v7924_v47, %v7684_v8  ;;  %v6031_v29 = vpop.f32.mrb[3].mxu0  ;;  %v6227_v35 = vmul.f32 %v7969_v22, %v7969_v22 }
 0x29d   : > { %v7972_v5 = vadd.f32 %v6031_v29, %v3140_v48  ;;  %v6225_v60 = vmul.f32 %v7970_v13, %v7970_v13 }
 0x29e   : > { %v7203_v17 = vpack.c.bf16 %v7971_v1, %v7969_v22  ;;  %v6228_v43 = vmul.f32 %v7971_v1, %v7971_v1 }
 0x29f   : > { %v6187_v11 = vadd.f32 %v7972_v5, %v7970_v13  ;;  %v6226_v41 = vmul.f32 %v7972_v5, %v7972_v5  ;;  %v7198_v58 = vpack.c.bf16 %v7972_v5, %v7970_v13 }
 0x2a0   : > { %7290 = vst [vmem:[%s10659_s24 + $0x8] sm:$0xff] %v7203_v17  }
 0x2a1   : > { %v6188_v49 = vadd.f32 %v7969_v22, %v6187_v11  ;;  %v6257_v44 = vadd.f32 %v6226_v41, %v6225_v60  ;;  %7199 = vst [vmem:[%s10659_s24] sm:$0xff] %v7198_v58   ;;  %v7927_v51 = vpop.f32.mrb[4].mxu0 }
 0x2a2   : > { %v7973_v0 = vadd.f32 %v7927_v51, %v7687_v34  ;;  %v6044_v57 = vpop.f32.mrb[5].mxu0 }
 0x2a3   : > { %v6258_v62 = vadd.f32 %v6257_v44, %v6227_v35  ;;  %v7974_v16 = vadd.f32 %v6044_v57, %v3153_v23  ;;  %v6189_v26 = vadd.f32 %v7971_v1, %v6188_v49  ;;  %v7928_v10 = vpop.f32.mrb[6].mxu0 }
 0x2a4   : > { %v7975_v37 = vadd.f32 %v7928_v10, %v7688_v25  ;;  %v6047_v19 = vpop.f32.mrb[7].mxu0  ;;  %v6231_v27 = vmul.f32 %v7973_v0, %v7973_v0 }
 0x2a5   : > { %v6190_v36 = vadd.f32 %v7974_v16, %v6189_v26  ;;  %v6229_v14 = vmul.f32 %v7974_v16, %v7974_v16  ;;  %v6259_v21 = vadd.f32 %v6258_v62, %v6228_v43  ;;  %v7976_v2 = vadd.f32 %v6047_v19, %v3156_v31 }
 0x2a6   : > { %v7213_v40 = vpack.c.bf16 %v7975_v37, %v7973_v0  ;;  %v6232_v46 = vmul.f32 %v7975_v37, %v7975_v37 }
 0x2a7   : > { %v6260_v38 = vadd.f32 %v6259_v21, %v6229_v14  ;;  %v6191_v52 = vadd.f32 %v7976_v2, %v6190_v36  ;;  %v6230_v9 = vmul.f32 %v7976_v2, %v7976_v2  ;;  %v7208_v42 = vpack.c.bf16 %v7976_v2, %v7974_v16 }
 0x2a8   : > { %7292 = vst [vmem:[%s10659_s24 + $0x18] sm:$0xff] %v7213_v40  }
 0x2a9   : > { %v6192_v3 = vadd.f32 %v7973_v0, %v6191_v52  ;;  %v6261_v6 = vadd.f32 %v6260_v38, %v6230_v9  ;;  %7291 = vst [vmem:[%s10659_s24 + $0x10] sm:$0xff] %v7208_v42   ;;  %v7931_v4 = vpop.f32.mrb[8].mxu0 }
 0x2aa   : > { %v7977_v55 = vadd.f32 %v7931_v4, %v7691_v18  ;;  %v6060_v45 = vpop.f32.mrb[9].mxu0 }
 0x2ab   : > { %v6262_v7 = vadd.f32 %v6261_v6, %v6231_v27  ;;  %v7978_v32 = vadd.f32 %v6060_v45, %v3169_v59  ;;  %v6193_v12 = vadd.f32 %v7975_v37, %v6192_v3  ;;  %v7932_v33 = vpop.f32.mrb[10].mxu0 }
 0x2ac   : > { %v7979_v61 = vadd.f32 %v7932_v33, %v7692_v53  ;;  %v6063_v39 = vpop.f32.mrb[11].mxu0  ;;  %v6235_v18 = vmul.f32 %v7977_v55, %v7977_v55 }
 0x2ad   : > { %v6194_v63 = vadd.f32 %v7978_v32, %v6193_v12  ;;  %v6233_v50 = vmul.f32 %v7978_v32, %v7978_v32  ;;  %v6263_v8 = vadd.f32 %v6262_v7, %v6232_v46  ;;  %v7980_v48 = vadd.f32 %v6063_v39, %v3172_v30 }
 0x2ae   : > { %v7223_v34 = vpack.c.bf16 %v7979_v61, %v7977_v55  ;;  %v6236_v53 = vmul.f32 %v7979_v61, %v7979_v61 }
 0x2af   : > { %v6264_v23 = vadd.f32 %v6263_v8, %v6233_v50  ;;  %v6195_v25 = vadd.f32 %v7980_v48, %v6194_v63  ;;  %v6234_v31 = vmul.f32 %v7980_v48, %v7980_v48  ;;  %v7218_v28 = vpack.c.bf16 %v7980_v48, %v7978_v32 }
 0x2b0   : > { %7294 = vst [vmem:[%s10659_s24 + $0x28] sm:$0xff] %v7223_v34  }
 0x2b1   : > { %v6196_v22 = vadd.f32 %v7977_v55, %v6195_v25  ;;  %v6265_v24 = vadd.f32 %v6264_v23, %v6234_v31  ;;  %7293 = vst [vmem:[%s10659_s24 + $0x20] sm:$0xff] %v7218_v28   ;;  %v7935_v59 = vpop.f32.mrb[12].mxu0 }
 0x2b2   : > { %v7981_v13 = vadd.f32 %v7935_v59, %v10646_v20  ;;  %v6076_v47 = vpop.f32.mrb[13].mxu0 }
 0x2b3   : > { %v6266_v1 = vadd.f32 %v6265_v24, %v6235_v18  ;;  %v7982_v29 = vadd.f32 %v6076_v47, %v10648_v15  ;;  %v6197_v30 = vadd.f32 %v7979_v61, %v6196_v22  ;;  %v7936_v5 = vpop.f32.mrb[14].mxu0 }
 0x2b4   : > { %v7983_v17 = vadd.f32 %v7936_v5, %v10650_v56  ;;  %v6079_v60 = vpop.f32.mrb[15].mxu0  ;;  %v6239_v57 = vmul.f32 %v7981_v13, %v7981_v13 }
 0x2b5   : > { %v6198_v11 = vadd.f32 %v7982_v29, %v6197_v30  ;;  %v6237_v41 = vmul.f32 %v7982_v29, %v7982_v29  ;;  %v6267_v58 = vadd.f32 %v6266_v1, %v6236_v53  ;;  %v7984_v35 = vadd.f32 %v6079_v60, %v10652_v54 }
 0x2b6   : > { %v7233_v49 = vpack.c.bf16 %v7983_v17, %v7981_v13  ;;  %v6240_v56 = vmul.f32 %v7983_v17, %v7983_v17 }
 0x2b7   : > { %v6268_v44 = vadd.f32 %v6267_v58, %v6237_v41  ;;  %v6199_v20 = vadd.f32 %v7984_v35, %v6198_v11  ;;  %v6238_v51 = vmul.f32 %v7984_v35, %v7984_v35  ;;  %v7228_v0 = vpack.c.bf16 %v7984_v35, %v7982_v29 }
 0x2b8   : > { %7296 = vst [vmem:[%s10659_s24 + $0x38] sm:$0xff] %v7233_v49  }
 0x2b9   : > { %v6200_v43 = vadd.f32 %v7981_v13, %v6199_v20  ;;  %v6269_v15 = vadd.f32 %v6268_v44, %v6238_v51  ;;  %7295 = vst [vmem:[%s10659_s24 + $0x30] sm:$0xff] %v7228_v0   ;;  %v7939_v62 = vpop.f32.mrb[16].mxu0 }
 0x2ba   : > { %v6092_v26 = vpop.f32.mrb[17].mxu0 }
 0x2bb   : > { %v6270_v10 = vadd.f32 %v6269_v15, %v6239_v57  ;;  %v6201_v36 = vadd.f32 %v7983_v17, %v6200_v43  ;;  %v7940_v54 = vpop.f32.mrb[18].mxu0 }
 0x2bc   : > { %v7747_v16 = vpop.f32.mrb[16].mxu1  ;;  %v6095_v2 = vpop.f32.mrb[19].mxu0 }
 0x2bd   : > { %v7985_v37 = vadd.f32 %v7939_v62, %v7747_v16  ;;  %v3955_v19 = vpop.f32.mrb[17].mxu1  ;;  %v6271_v40 = vadd.f32 %v6270_v10, %v6240_v56 }
 0x2be   : > { %v7986_v14 = vadd.f32 %v6092_v26, %v3955_v19  ;;  %v7748_v21 = vpop.f32.mrb[18].mxu1 }
 0x2bf   : > { %v7987_v38 = vadd.f32 %v7940_v54, %v7748_v21  ;;  %v3958_v52 = vpop.f32.mrb[19].mxu1  ;;  %v6243_v7 = vmul.f32 %v7985_v37, %v7985_v37 }
 0x2c0   : > { %v6202_v9 = vadd.f32 %v7986_v14, %v6201_v36  ;;  %v6241_v42 = vmul.f32 %v7986_v14, %v7986_v14  ;;  %v7988_v27 = vadd.f32 %v6095_v2, %v3958_v52 }
 0x2c1   : > { %v7243_v3 = vpack.c.bf16 %v7987_v38, %v7985_v37  ;;  %v7943_v46 = vpop.f32.mrb[20].mxu0  ;;  %v6244_v8 = vmul.f32 %v7987_v38, %v7987_v38 }
 0x2c2   : > { %v6272_v6 = vadd.f32 %v6271_v40, %v6241_v42  ;;  %v6203_v4 = vadd.f32 %v7988_v27, %v6202_v9  ;;  %v6242_v55 = vmul.f32 %v7988_v27, %v7988_v27  ;;  %v7238_v45 = vpack.c.bf16 %v7988_v27, %v7986_v14  ;;  %v6108_v61 = vpop.f32.mrb[21].mxu0 }
 0x2c3   : > { %7298 = vst [vmem:[%s10659_s24 + $0x48] sm:$0xff] %v7243_v3   ;;  %v7944_v50 = vpop.f32.mrb[22].mxu0 }
 0x2c4   : > { %v6204_v32 = vadd.f32 %v7985_v37, %v6203_v4  ;;  %v6273_v12 = vadd.f32 %v6272_v6, %v6242_v55  ;;  %7297 = vst [vmem:[%s10659_s24 + $0x40] sm:$0xff] %v7238_v45   ;;  %v7751_v33 = vpop.f32.mrb[20].mxu1  ;;  %v6111_v31 = vpop.f32.mrb[23].mxu0 }
 0x2c5   : > { %v7989_v39 = vadd.f32 %v7943_v46, %v7751_v33  ;;  %v3971_v63 = vpop.f32.mrb[21].mxu1 }
 0x2c6   : > { %v6274_v48 = vadd.f32 %v6273_v12, %v6243_v7  ;;  %v7990_v34 = vadd.f32 %v6108_v61, %v3971_v63  ;;  %v6205_v23 = vadd.f32 %v7987_v38, %v6204_v32  ;;  %v7752_v25 = vpop.f32.mrb[22].mxu1 }
 0x2c7   : > { %v7991_v28 = vadd.f32 %v7944_v50, %v7752_v25  ;;  %v3974_v18 = vpop.f32.mrb[23].mxu1  ;;  %v6247_v17 = vmul.f32 %v7989_v39, %v7989_v39 }
 0x2c8   : > { %v6206_v22 = vadd.f32 %v7990_v34, %v6205_v23  ;;  %v6245_v24 = vmul.f32 %v7990_v34, %v7990_v34  ;;  %v6275_v59 = vadd.f32 %v6274_v48, %v6244_v8  ;;  %v7992_v13 = vadd.f32 %v6111_v31, %v3974_v18 }
 0x2c9   : > { %v7253_v47 = vpack.c.bf16 %v7991_v28, %v7989_v39  ;;  %v7947_v5 = vpop.f32.mrb[24].mxu0  ;;  %v6248_v20 = vmul.f32 %v7991_v28, %v7991_v28 }
 0x2ca   : > { %v6276_v53 = vadd.f32 %v6275_v59, %v6245_v24  ;;  %v6207_v1 = vadd.f32 %v7992_v13, %v6206_v22  ;;  %v6246_v29 = vmul.f32 %v7992_v13, %v7992_v13  ;;  %v7248_v30 = vpack.c.bf16 %v7992_v13, %v7990_v34  ;;  %v6124_v58 = vpop.f32.mrb[25].mxu0 }
 0x2cb   : > { %7300 = vst [vmem:[%s10659_s24 + $0x58] sm:$0xff] %v7253_v47   ;;  %v7948_v44 = vpop.f32.mrb[26].mxu0 }
 0x2cc   : > { %v6208_v60 = vadd.f32 %v7989_v39, %v6207_v1  ;;  %v6277_v11 = vadd.f32 %v6276_v53, %v6246_v29  ;;  %7299 = vst [vmem:[%s10659_s24 + $0x50] sm:$0xff] %v7248_v30   ;;  %v7755_v41 = vpop.f32.mrb[24].mxu1  ;;  %v6127_v15 = vpop.f32.mrb[27].mxu0 }
 0x2cd   : > { %v7993_v35 = vadd.f32 %v7947_v5, %v7755_v41  ;;  %v3987_v49 = vpop.f32.mrb[25].mxu1 }
 0x2ce   : > { %v6278_v51 = vadd.f32 %v6277_v11, %v6247_v17  ;;  %v7994_v0 = vadd.f32 %v6124_v58, %v3987_v49  ;;  %v6209_v57 = vadd.f32 %v7991_v28, %v6208_v60  ;;  %v7756_v43 = vpop.f32.mrb[26].mxu1 }
 0x2cf   : > { %v7995_v62 = vadd.f32 %v7948_v44, %v7756_v43  ;;  %v3990_v16 = vpop.f32.mrb[27].mxu1  ;;  %v6251_v40 = vmul.f32 %v7993_v35, %v7993_v35 }
 0x2d0   : > { %v6210_v26 = vadd.f32 %v7994_v0, %v6209_v57  ;;  %v6249_v56 = vmul.f32 %v7994_v0, %v7994_v0  ;;  %v6279_v10 = vadd.f32 %v6278_v51, %v6248_v20  ;;  %v7996_v37 = vadd.f32 %v6127_v15, %v3990_v16 }
 0x2d1   : > { %v7263_v19 = vpack.c.bf16 %v7995_v62, %v7993_v35  ;;  %v7951_v2 = vpop.f32.mrb[28].mxu0  ;;  %v6252_v4 = vmul.f32 %v7995_v62, %v7995_v62 }
 0x2d2   : > { %v6280_v36 = vadd.f32 %v6279_v10, %v6249_v56  ;;  %v6211_v54 = vadd.f32 %v7996_v37, %v6210_v26  ;;  %v6250_v14 = vmul.f32 %v7996_v37, %v7996_v37  ;;  %v7258_v21 = vpack.c.bf16 %v7996_v37, %v7994_v0  ;;  %v6140_v42 = vpop.f32.mrb[29].mxu0 }
 0x2d3   : > { %7302 = vst [vmem:[%s10659_s24 + $0x68] sm:$0xff] %v7263_v19   ;;  %v7952_v6 = vpop.f32.mrb[30].mxu0 }
 0x2d4   : > { %v6212_v38 = vadd.f32 %v7993_v35, %v6211_v54  ;;  %v6281_v52 = vadd.f32 %v6280_v36, %v6250_v14  ;;  %7301 = vst [vmem:[%s10659_s24 + $0x60] sm:$0xff] %v7258_v21   ;;  %v7759_v9 = vpop.f32.mrb[28].mxu1  ;;  %v6143_v32 = vpop.f32.mrb[31].mxu0 }
 0x2d5   : > { %v7997_v27 = vadd.f32 %v7951_v2, %v7759_v9  ;;  %v4003_v3 = vpop.f32.mrb[29].mxu1 }
 0x2d6   : > { %v6282_v55 = vadd.f32 %v6281_v52, %v6251_v40  ;;  %v7998_v45 = vadd.f32 %v6140_v42, %v4003_v3  ;;  %v6213_v46 = vadd.f32 %v7995_v62, %v6212_v38  ;;  %v7760_v7 = vpop.f32.mrb[30].mxu1 }
 0x2d7   : > { %v7999_v12 = vadd.f32 %v7952_v6, %v7760_v7  ;;  %v4006_v33 = vpop.f32.mrb[31].mxu1  ;;  %v6255_v31 = vmul.f32 %v7997_v27, %v7997_v27 }
 0x2d8   : > { %v6214_v61 = vadd.f32 %v7998_v45, %v6213_v46  ;;  %v6253_v39 = vmul.f32 %v7998_v45, %v7998_v45  ;;  %v6283_v63 = vadd.f32 %v6282_v55, %v6252_v4  ;;  %v8000_v50 = vadd.f32 %v6143_v32, %v4006_v33 }
 0x2d9   : > { %v7273_v8 = vpack.c.bf16 %v7999_v12, %v7997_v27  ;;  %v6256_v22 = vmul.f32 %v7999_v12, %v7999_v12 }
 0x2da   : > { %v6284_v48 = vadd.f32 %v6283_v63, %v6253_v39  ;;  %v6215_v34 = vadd.f32 %v8000_v50, %v6214_v61  ;;  %v6254_v23 = vmul.f32 %v8000_v50, %v8000_v50  ;;  %v7268_v25 = vpack.c.bf16 %v8000_v50, %v7998_v45 }
 0x2db   : > { %7304 = vst [vmem:[%s10659_s24 + $0x78] sm:$0xff] %v7273_v8  }
 0x2dc   : > { %v6216_v28 = vadd.f32 %v7997_v27, %v6215_v34  ;;  %v6285_v18 = vadd.f32 %v6284_v48, %v6254_v23  ;;  %7303 = vst [vmem:[%s10659_s24 + $0x70] sm:$0xff] %v7268_v25  }
 0x2de   : > { %v6217_v24 = vadd.f32 %v7999_v12, %v6216_v28  ;;  %v6286_v59 = vadd.f32 %v6285_v18, %v6255_v31 }
 0x2e0   : > { %v6218_v13 = vrot.slane %v6217_v24, 4  ;;  %v6287_v47 = vadd.f32 %v6286_v59, %v6256_v22 }
 0x2e2   : > { %v6219_v53 = vadd.f32 %v6218_v13, %v6217_v24  ;;  %v6288_v1 = vrot.slane %v6287_v47, 4 }
 0x2e4   : > { %v6220_v29 = vrot.slane %v6219_v53, 2  ;;  %v6289_v30 = vadd.f32 %v6288_v1, %v6287_v47 }
 0x2e6   : > { %v6221_v5 = vadd.f32 %v6220_v29, %v6219_v53  ;;  %v6290_v17 = vrot.slane %v6289_v30, 2 }
 0x2e8   : > { %v6222_v60 = vrot.slane %v6221_v5, 1  ;;  %v6291_v11 = vadd.f32 %v6290_v17, %v6289_v30 }
 0x2ea   : > { %v6223_v41 = vadd.f32 %v6222_v60, %v6221_v5  ;;  %v6292_v58 = vrot.slane %v6291_v11, 1 }
 0x2ec   : > { %6224 = vst [vmem:[%s293_s29] sm:$0x1] %v6223_v41  ;;  %v6293_v35 = vadd.f32 %v6292_v58, %v6291_v11 }
 0x2ee   : > { %6294 = vst [vmem:[%s296_s30] sm:$0x1] %v6293_v35 }
 0x2ef PF: > { %s19_s26 = sadd.s32 1, %s8444_s26  }
 0x2f0   : > { %p16_p4 = scmp.ge.s32.totalorder %s19_s26, 4  }
 0x2f2   :  { %18 = sbr.rel (!%p16_p4) target bundleno = 2 (0x2), region = 105 }

// kernel: convolution_forward.4
= control target key start
LH: loop header
LB: loop body
LE: loop exit
PB: predicated region body
PF: predicated region fallthrough
CT: control target
= control target key end

     0   :  { %s8489_s26 = smov 0   ;;  %s10692_s0 = inlined_call_operand.<no memory space> [shape: f32[1], index: 0, kind: input, shape index: {}]   ;;  %s10693_s1 = inlined_call_operand.vmem [shape: f32[1,128], index: 1, kind: input, shape index: {}]   ;;  %s10694_s2 = inlined_call_operand.vmem [shape: f32[1,128], index: 2, kind: input, shape index: {}]   ;;  %s10695_s3 = inlined_call_operand.vmem [shape: bf16[2,16,16,128], index: 3, kind: input, shape index: {}]   ;;  %s10696_s4 = inlined_call_operand.vmem [shape: bf16[9,128,128], index: 4, kind: input, shape index: {}]   ;;  %s10697_s5 = inlined_call_operand.vmem [shape: bf16[2,16,16,128], index: 5, kind: output, shape index: {0}]   ;;  %s10698_s6 = inlined_call_operand.vmem [shape: f32[2,1,128], index: 6, kind: output, shape index: {1}]   ;;  %s10699_s7 = inlined_call_operand.vmem [shape: f32[2,1,128], index: 7, kind: output, shape index: {2}]  }
   0x1   :  { %13 = sst [smem:[#allocation3]] %s10692_s0 }
   0x2 LB: > { %s6560_s27 = sadd.s32 4294967295, %s8444_s26   ;;  %p6564_p0 = scmp.ge.s32.totalorder %s8444_s26, 1  ;;  %s8444_s26 = sphi %s8489_s26, %s19_s26  }
   0x3   : > { %p243_p1 = scmp.lt.s32.totalorder %s8444_s26, 3 }
   0x5   : > { %p244_p2 = pnand %p6564_p0, %p243_p1 }
   0x7   : > { %247 = sbr.rel (%p244_p2) target bundleno = 751 (0x2ef), region = 40 }
   0xe   : > { %v8233_v0 = vld [vmem:[%s10696_s4 + $0x40] sm:$0xff]   ;;  %v8235_v2 = vld [vmem:[%s10696_s4 + $0x48] sm:$0xff]   ;;  %p281_p3 = scmp.lt.s32.totalorder %s6560_s27, 1  ;;  %v8237_v4 = vld [vmem:[%s10696_s4 + $0x50] sm:$0xff]   ;;  %s298_s8 = sld [smem:[#allocation3]]  ;;  %vm958_vm0 = vcmask 1043456  }
   0xf   : > { %v8234_v1 = vld [vmem:[%s10696_s4 + $0x100] sm:$0xff]   ;;  %7521 = vmatprep.subr.bf16.mxu1 %v8233_v0  ;;  %v8236_v3 = vld [vmem:[%s10696_s4 + $0x108] sm:$0xff]   ;;  %v8238_v5 = vld [vmem:[%s10696_s4 + $0x110] sm:$0xff]   ;;  %vm634_vm1 = vsmask.f32 256  ;;  %vm965_vm6 = vcmask 1040384  }
  0x10   : > { %7713 = vmatprep.subr.bf16.mxu0 %v8234_v1  ;;  %7522 = vmatpush3.bf16.msra.mxu1 %v8233_v0  ;;  %s10807_s27 = smov (!%p281_p3, %s6560_s27), 1  ;;  %v8239_v6 = vld [vmem:[%s10696_s4 + $0x58] sm:$0xff]   ;;  %v8241_v8 = vld [vmem:[%s10696_s4 + $0x60] sm:$0xff]   ;;  %v8243_v10 = vld [vmem:[%s10696_s4 + $0x68] sm:$0xff]   ;;  %vm635_vm4 = vsmask.f32 4368 }
  0x11   : > { %7714 = vmatpush3.bf16.msra.mxu0 %v8234_v1  ;;  %7523 = vmatprep.subr.bf16.mxu1 %v8235_v2  ;;  %v8240_v7 = vld [vmem:[%s10696_s4 + $0x118] sm:$0xff]   ;;  %s7065_s20 = sshll.u32 %s10807_s27, 7  ;;  %v8242_v9 = vld [vmem:[%s10696_s4 + $0x120] sm:$0xff]   ;;  %v8244_v13 = vld [vmem:[%s10696_s4 + $0x128] sm:$0xff]   ;;  %vm959_vm5 = vsmask.f32 7938  ;;  %s296_s30 = scalar_lea.vmem %s10699_s7, %s10807_s27 }
  0x12   : > { %7715 = vmatprep.subr.bf16.mxu0 %v8236_v3  ;;  %s8535_s29 = scalar_lea.vmem %s10695_s3, %s7065_s20  ;;  %v8544_v12 = vld [vmem:[%s10693_s1] ss:$0 sm:$0xff]  ;;  %v8245_v19 = vld [vmem:[%s10696_s4 + $0x70] sm:$0xff]   ;;  %v8247_v27 = vld [vmem:[%s10696_s4 + $0x78] sm:$0xff]   ;;  %vm1443_vm15 = vsmask.f32 3328  ;;  %s10659_s24 = scalar_lea.vmem %s10697_s5, %s7065_s20 }
  0x13   : > { %v7275_v11 = vld [vmem:[%s8535_s29 + $0x8] sm:$0xff]   ;;  %v8552_v16 = vld [vmem:[%s10694_s2] ss:$0 sm:$0xff]  ;;  %v8246_v21 = vld [vmem:[%s10696_s4 + $0x130] sm:$0xff]  }
  0x14   : > { %7524 = vmatpush3.bf16.msra.mxu1 %v8235_v2  ;;  %v7137_v14 = vunpack.c.l.bf16 %v7275_v11  ;;  %v7138_v15 = vunpack.c.h.bf16 %v7275_v11  ;;  %v7132_v20 = vld [vmem:[%s8535_s29] sm:$0xff]   ;;  %v8565_v26 = vstv %s298_s8  ;;  %v8248_v28 = vld [vmem:[%s10696_s4 + $0x138] sm:$0xff]   ;;  %v7276_v39 = vld [vmem:[%s8535_s29 + $0x10] sm:$0xff]  }
  0x15   : > { %7716 = vmatpush3.bf16.msra.mxu0 %v8236_v3  ;;  %7525 = vmatprep.subr.bf16.mxu1 %v8237_v4  ;;  %v7133_v24 = vunpack.c.l.bf16 %v7132_v20  ;;  %v7134_v25 = vunpack.c.h.bf16 %v7132_v20  ;;  %v7141_v40 = vunpack.c.l.bf16 %v7276_v39  ;;  %v7142_v41 = vunpack.c.h.bf16 %v7276_v39  ;;  %vm8582_vm7 = vmor %vm634_vm1, %vm635_vm4  ;;  %v8589_v47 = vld [vmem:[%s10696_s4] sm:$0xff]   ;;  %v7277_v48 = vld [vmem:[%s8535_s29 + $0x18] sm:$0xff]  }
  0x16   : > { %7717 = vmatprep.subr.bf16.mxu0 %v8238_v5  ;;  %v372_v17 = vsub.f32 %v7137_v14, %v8544_v12  ;;  %v373_v18 = vsub.f32 %v7138_v15, %v8544_v12  ;;  %vm8594_vm8 = vmand %vm958_vm0, %vm959_vm5  ;;  %v1075_v50 = vld [vmem:[#allocation2] sm:$0xf]  ;;  %v1079_v51 = vld [vmem:[#allocation2 + $0x8] sm:$0x1]  ;;  %v7145_v63 = vunpack.c.l.bf16 %v7277_v48  ;;  %v7146_v0 = vunpack.c.h.bf16 %v7277_v48 }
  0x17   : > { %v370_v31 = vsub.f32 %v7133_v24, %v8544_v12  ;;  %v371_v32 = vsub.f32 %v7134_v25, %v8544_v12  ;;  %v8603_v54 = vld [vmem:[%s10696_s4 + $0x140] sm:$0xff]   ;;  %vm8607_vm11 = vmand %vm965_vm6, %vm634_vm1  ;;  %v374_v58 = vsub.f32 %v7141_v40, %v8544_v12  ;;  %v375_v59 = vsub.f32 %v7142_v41, %v8544_v12  ;;  %v970_v62 = vld [vmem:[#allocation2 + $0x18] sm:$0xf] }
  0x18   : > { %7526 = vmatpush3.bf16.msra.mxu1 %v8237_v4  ;;  %v411_v22 = vmul.f32 %v8552_v16, %v372_v17  ;;  %v412_v23 = vmul.f32 %v8552_v16, %v373_v18  ;;  %v7278_v15 = vld [vmem:[%s8535_s29 + $0x20] sm:$0xff]   ;;  %v7279_v40 = vld [vmem:[%s8535_s29 + $0x28] sm:$0xff]   ;;  %vm8638_vm14 = vmand %vm965_vm6, %vm959_vm5  ;;  %vm1444_vm0 = vsmask.f32 7440 }
  0x19   : > { %7718 = vmatpush3.bf16.msra.mxu0 %v8238_v5  ;;  %7527 = vmatprep.subr.bf16.mxu1 %v8239_v6  ;;  %v409_v37 = vmul.f32 %v8552_v16, %v370_v31  ;;  %v410_v38 = vmul.f32 %v8552_v16, %v371_v32  ;;  %v377_v31 = vsub.f32 %v7146_v0, %v8544_v12  ;;  %v7149_v32 = vunpack.c.l.bf16 %v7278_v15  ;;  %vm8735_vm1 = vmor %vm1443_vm15, %vm1444_vm0  ;;  %v1083_v42 = vld [vmem:[#allocation2 + $0xcc] sm:$0xf] }
  0x1a   : > { %7719 = vmatprep.subr.bf16.mxu0 %v8240_v7  ;;  %vm443_vm2 = vcmp.gt.f32.partialorder %v411_v22, 0.0  ;;  %vm444_vm3 = vcmp.gt.f32.partialorder %v412_v23, 0.0  ;;  %v476_v29 = vmul.f32 %v8565_v26, %v411_v22  ;;  %v477_v30 = vmul.f32 %v8565_v26, %v412_v23 }
  0x1b   : > { %vm441_vm9 = vcmp.gt.f32.partialorder %v409_v37, 0.0  ;;  %vm442_vm10 = vcmp.gt.f32.partialorder %v410_v38, 0.0  ;;  %v474_v52 = vmul.f32 %v8565_v26, %v409_v37  ;;  %v475_v53 = vmul.f32 %v8565_v26, %v410_v38 }
  0x1c   : > { %7528 = vmatpush3.bf16.msra.mxu1 %v8239_v6  ;;  %v508_v33 = vsel %vm443_vm2, %v411_v22, %v476_v29  ;;  %v509_v34 = vsel %vm444_vm3, %v412_v23, %v477_v30  ;;  %v967_v29 = vld [vmem:[#allocation2 + $0x14] sm:$0x1]  ;;  %vm2474_vm15 = vcmask 1046532  }
  0x1d   : > { %7720 = vmatpush3.bf16.msra.mxu0 %v8240_v7  ;;  %7529 = vmatprep.subr.bf16.mxu1 %v8241_v8  ;;  %v7069_v35 = vpack.c.bf16 %v508_v33, %v508_v33  ;;  %v7070_v36 = vpack.c.bf16 %v509_v34, %v509_v34  ;;  %v506_v60 = vsel %vm441_vm9, %v409_v37, %v474_v52  ;;  %v974_v7 = vld [vmem:[#allocation2 + $0x20] sm:$0x1]  ;;  %v7150_v33 = vunpack.c.h.bf16 %v7278_v15 }
  0x1e   : > { %7721 = vmatprep.subr.bf16.mxu0 %v8242_v9  ;;  %v507_v61 = vsel %vm442_vm10, %v410_v38, %v475_v53  ;;  %v7067_v5 = vpack.c.bf16 %v506_v60, %v506_v60  ;;  %v8654_v53 = vmul.f32 %v8552_v16, %v377_v31 }
  0x1f   : > { %v655_v43 = vshrl.u32 %v7069_v35, 16  ;;  %v658_v44 = vshll.u32 %v7069_v35, 16  ;;  %v663_v45 = vshrl.u32 %v7070_v36, 16  ;;  %v666_v46 = vshll.u32 %v7070_v36, 16 }
  0x20   : > { %7530 = vmatpush3.bf16.msra.mxu1 %v8241_v8  ;;  %v7068_v6 = vpack.c.bf16 %v507_v61, %v507_v61  ;;  %v413_v8 = vmul.f32 %v8552_v16, %v374_v58  ;;  %v638_v17 = vshrl.u32 %v7067_v5, 16  ;;  %v641_v18 = vshll.u32 %v7067_v5, 16 }
  0x21   : > { %7722 = vmatpush3.bf16.msra.mxu0 %v8242_v9  ;;  %7531 = vmatprep.subr.bf16.mxu1 %v8243_v10  ;;  %v657_v55 = vrot.slane %v655_v43, 7  ;;  %v665_v56 = vrot.slane %v663_v45, 7  ;;  %v414_v9 = vmul.f32 %v8552_v16, %v375_v59  ;;  %vm448_vm3 = vcmp.gt.f32.partialorder %v8654_v53, 0.0 }
  0x22   : > { %7723 = vmatprep.subr.bf16.mxu0 %v8244_v13  ;;  %v649_v20 = vshll.u32 %v7068_v6, 16  ;;  %vm445_vm12 = vcmp.gt.f32.partialorder %v413_v8, 0.0  ;;  %v478_v22 = vmul.f32 %v8565_v26, %v413_v8  ;;  %v640_v23 = vrot.slane %v638_v17, 7 }
  0x23   : > { %v660_v1 = vor.u32 %v658_v44, %v657_v55  ;;  %v661_v2 = vrot.slane %v657_v55, 4  ;;  %v668_v3 = vor.u32 %v666_v46, %v665_v56  ;;  %v670_v4 = vrot.slane %v665_v56, 4 }
  0x24   : > { %7532 = vmatpush3.bf16.msra.mxu1 %v8243_v10  ;;  %vm446_vm13 = vcmp.gt.f32.partialorder %v414_v9, 0.0  ;;  %v479_v25 = vmul.f32 %v8565_v26, %v414_v9  ;;  %v510_v30 = vsel %vm445_vm12, %v413_v8, %v478_v22  ;;  %v643_v34 = vor.u32 %v641_v18, %v640_v23 }
  0x25   : > { %7724 = vmatpush3.bf16.msra.mxu0 %v8244_v13  ;;  %7533 = vmatprep.subr.bf16.mxu1 %v8245_v19  ;;  %v669_v10 = vsel %vm8582_vm7, %v661_v2, %v668_v3  ;;  %v1076_v11 = vsel %vm8594_vm8, %v660_v1, %v1075_v50  ;;  %v1080_v13 = vsel %vm8607_vm11, %v670_v4, %v1079_v51  ;;  %v644_v35 = vrot.slane %v640_v23, 4 }
  0x26   : > { %7725 = vmatprep.subr.bf16.mxu0 %v8246_v21  ;;  %v971_v14 = vsel %vm8594_vm8, %v660_v1, %v970_v62  ;;  %973 = vst [vmem:[#allocation2 + $0x1c] sm:$0xf] %v669_v10  ;;  %1077 = vst [vmem:[#allocation2] sm:$0xf] %v1076_v11  ;;  %v511_v38 = vsel %vm446_vm13, %v414_v9, %v479_v25  ;;  %v8633_v39 = vpack.c.bf16 %v510_v30, %v510_v30  ;;  %vm2473_vm13 = vcmask 1042432  }
  0x27   : > { %1078 = vst [vmem:[#allocation2 + $0x4] sm:$0xf] %v669_v10  ;;  %1081 = vst [vmem:[#allocation2 + $0x8] sm:$0x1] %v1080_v13  ;;  %v8651_v52 = vpack.c.bf16 %v511_v38, %v511_v38  ;;  %v378_v55 = vsub.f32 %v7149_v32, %v8544_v12  ;;  %v379_v56 = vsub.f32 %v7150_v33, %v8544_v12  ;;  %v7153_v62 = vunpack.c.l.bf16 %v7279_v40 }
  0x28   : > { %7534 = vmatpush3.bf16.msra.mxu1 %v8245_v19  ;;  %v646_v19 = vshrl.u32 %v7068_v6, 16  ;;  %972 = vst [vmem:[#allocation2 + $0x18] sm:$0xf] %v971_v14  ;;  %v8692_v33 = vmul.f32 %v8565_v26, %v8654_v53  ;;  %vm9034_vm0 = vmor %vm2473_vm13, %vm2474_vm15 }
  0x29   : > { %7726 = vmatpush3.bf16.msra.mxu0 %v8246_v21  ;;  %7535 = vmatprep.subr.bf16.mxu1 %v8247_v27  ;;  %v975_v21 = vsel %vm8607_vm11, %v670_v4, %v974_v7  ;;  %v8659_v4 = vmul.f32 %v8552_v16, %v378_v55  ;;  %v8662_v5 = vmul.f32 %v8552_v16, %v379_v56 }
  0x2a   : > { %7727 = vmatprep.subr.bf16.mxu0 %v8248_v28  ;;  %v648_v24 = vrot.slane %v646_v19, 7  ;;  %976 = vst [vmem:[#allocation2 + $0x20] sm:$0x1] %v975_v21 }
  0x2b   : > { %v8712_v55 = vmul.f32 %v8565_v26, %v8662_v5  ;;  %vm449_vm4 = vcmp.gt.f32.partialorder %v8659_v4, 0.0  ;;  %vm450_vm5 = vcmp.gt.f32.partialorder %v8662_v5, 0.0 }
  0x2c   : > { %7536 = vmatpush3.bf16.msra.mxu1 %v8247_v27  ;;  %v376_v27 = vsub.f32 %v7145_v63, %v8544_v12  ;;  %v651_v36 = vor.u32 %v649_v20, %v648_v24  ;;  %v653_v37 = vrot.slane %v648_v24, 4  ;;  %v7154_v63 = vunpack.c.h.bf16 %v7279_v40 }
  0x2d   : > { %7728 = vmatpush3.bf16.msra.mxu0 %v8248_v28  ;;  %7569 = vmatprep.subr.bf16.mxu1 %v8589_v47  ;;  %v961_v28 = vld [vmem:[#allocation2 + $0xc] sm:$0xf]  ;;  %v1090_v48 = vld [vmem:[#allocation2] sm:$0x2]  ;;  %v1180_v50 = vld [vmem:[#allocation2] sm:$0x1] }
  0x2e   : > { %7761 = vmatprep.subr.bf16.mxu0 %v8603_v54  ;;  %v652_v43 = vsel %vm8582_vm7, %v644_v35, %v651_v36  ;;  %v962_v44 = vsel %vm8594_vm8, %v643_v34, %v961_v28  ;;  %v968_v45 = vsel %vm8607_vm11, %v653_v37, %v967_v29  ;;  %v8649_v46 = vmul.f32 %v8552_v16, %v376_v27  ;;  %v1234_v51 = vld [vmem:[#allocation2 + $0x4] sm:$0x8]  ;;  %v1325_v60 = vld [vmem:[#allocation2 + $0x8] sm:$0x1]  ;;  %v1236_v9 = vld [vmem:[#allocation2 + $0x1c] sm:$0x8] }
  0x2f   : > { %963 = vst [vmem:[#allocation2 + $0xc] sm:$0xf] %v962_v44  ;;  %964 = vst [vmem:[#allocation2 + $0x10] sm:$0xf] %v652_v43  ;;  %v6603_v58 = vrot.slane %v1090_v48, 9  ;;  %v6621_v59 = vrot.slane %v1234_v51, 11  ;;  %v380_v34 = vsub.f32 %v7153_v62, %v8544_v12  ;;  %v381_v35 = vsub.f32 %v7154_v63, %v8544_v12 }
  0x30   : > { %969 = vst [vmem:[#allocation2 + $0x14] sm:$0x1] %v968_v45  ;;  %v1380_v61 = vld [vmem:[#allocation2 + $0x4] sm:$0xf]  ;;  %v1092_v2 = vld [vmem:[#allocation2 + $0x18] sm:$0x2]  ;;  %v8688_v32 = vmul.f32 %v8565_v26, %v8649_v46  ;;  %v8708_v51 = vmul.f32 %v8565_v26, %v8659_v4 }
  0x31   : > { %v1456_v0 = vshll.u32 %v1380_v61, 16  ;;  %v1460_v1 = vshrl.u32 %v1380_v61, 16  ;;  %v1186_v3 = vld [vmem:[#allocation2 + $0x18] sm:$0x1]  ;;  %v1181_v6 = vsel %vm8607_vm11, %v6603_v58, %v1180_v50  ;;  %v1326_v7 = vsel %vm8638_vm14, %v6621_v59, %v1325_v60  ;;  %v1331_v10 = vld [vmem:[#allocation2 + $0x20] sm:$0x1] }
  0x32   : > { %v6605_v8 = vrot.slane %v1092_v2, 9  ;;  %1182 = vst [vmem:[#allocation2] sm:$0x1] %v1181_v6  ;;  %1327 = vst [vmem:[#allocation2 + $0x8] sm:$0x1] %v1326_v7  ;;  %v6623_v15 = vrot.slane %v1236_v9, 11  ;;  %v8724_v2 = vmul.f32 %v8552_v16, %v381_v35 }
  0x33   : > { %v8669_v13 = vrot.slane %v1456_v0, 5  ;;  %v1462_v14 = vrot.slane %v1460_v1, 4  ;;  %v8671_v17 = vld [vmem:[#allocation2 + $0x1c] sm:$0xf]  ;;  %v8721_v1 = vmul.f32 %v8552_v16, %v380_v34  ;;  %vm447_vm2 = vcmp.gt.f32.partialorder %v8649_v46, 0.0 }
  0x34   : > { %v1187_v19 = vsel %vm8607_vm11, %v6605_v8, %v1186_v3  ;;  %v3378_v20 = vshll.u32 %v8671_v17, 16  ;;  %v3382_v21 = vshrl.u32 %v8671_v17, 16  ;;  %v10700_v22 = vrot.slane %v8671_v17, 5  ;;  %v8679_v23 = vld [vmem:[#allocation2 + $0x1c] sm:$0xf] }
  0x35   : > { %v1463_v24 = vor.u32 %v1462_v14, %v8669_v13  ;;  %1188 = vst [vmem:[#allocation2 + $0x18] sm:$0x1] %v1187_v19  ;;  %v1332_v25 = vsel %vm8638_vm14, %v6623_v15, %v1331_v10  ;;  %v1504_v27 = vshll.u32 %v8679_v23, 16  ;;  %vm451_vm6 = vcmp.gt.f32.partialorder %v8721_v1, 0.0 }
  0x36   : > { %v1091_v29 = vld [vmem:[#allocation2 + $0xc] sm:$0x2]  ;;  %v1183_v30 = vld [vmem:[#allocation2 + $0xc] sm:$0x1]  ;;  %v1235_v31 = vld [vmem:[#allocation2 + $0x10] sm:$0x8] }
  0x37   : > { %1333 = vst [vmem:[#allocation2 + $0x20] sm:$0x1] %v1332_v25  ;;  %v8696_v36 = vrot.slane %v1463_v24, 4  ;;  %v6604_v37 = vrot.slane %v1091_v29, 9  ;;  %v6622_v38 = vrot.slane %v1235_v31, 11  ;;  %v8698_v43 = vrot.slane %v3378_v20, 5 }
  0x38   : > { %v1328_v40 = vld [vmem:[#allocation2 + $0x14] sm:$0x1]  ;;  %v8700_v44 = vld [vmem:[#allocation2 + $0x10] sm:$0xf]  ;;  %v3384_v48 = vrot.slane %v3382_v21, 4  ;;  %v8704_v50 = vrot.slane %v10700_v22, 4 }
  0x39   : > { %v1382_v45 = vld [vmem:[#allocation2 + $0x10] sm:$0xf]  ;;  %v1184_v56 = vsel %vm8607_vm11, %v6604_v37, %v1183_v30  ;;  %v1329_v58 = vsel %vm8638_vm14, %v6622_v38, %v1328_v40  ;;  %v3354_v59 = vshll.u32 %v8700_v44, 16  ;;  %v3358_v60 = vshrl.u32 %v8700_v44, 16  ;;  %v1379_v61 = vld [vmem:[#allocation2] sm:$0xf] }
  0x3a   : > { %v1427_v62 = vld [vmem:[#allocation2 + $0x8] sm:$0x1]  ;;  %1185 = vst [vmem:[#allocation2 + $0xc] sm:$0x1] %v1184_v56  ;;  %1330 = vst [vmem:[#allocation2 + $0x14] sm:$0x1] %v1329_v58  ;;  %v3385_v8 = vor.u32 %v3384_v48, %v8698_v43  ;;  %v8743_v37 = vmul.f32 %v8565_v26, %v8721_v1 }
  0x3b   : > { %v1480_v63 = vshll.u32 %v1382_v45, 16  ;;  %v1484_v0 = vshrl.u32 %v1382_v45, 16  ;;  %v1447_v3 = vshrl.u32 %v1379_v61, 16  ;;  %v1450_v6 = vshll.u32 %v1379_v61, 16  ;;  %v8747_v56 = vld [vmem:[%s8535_s29 + $0x30] sm:$0xff]  }
  0x3c   : > { %v1466_v7 = vshll.u32 %v1427_v62, 16  ;;  %v8727_v9 = vrot.slane %v3354_v59, 5  ;;  %v3360_v10 = vrot.slane %v3358_v60, 4  ;;  %v3299_v19 = vld [vmem:[#allocation2 + $0x18] sm:$0xf]  ;;  %v3386_v45 = vrot.slane %v3385_v8, 4 }
  0x3d   : > { %v8729_v14 = vrot.slane %v1480_v63, 5  ;;  %v1486_v15 = vrot.slane %v1484_v0, 4  ;;  %v1449_v20 = vrot.slane %v1447_v3, 4  ;;  %v1452_v21 = vrot.slane %v1450_v6, 5  ;;  %v1383_v22 = vld [vmem:[#allocation2 + $0x18] sm:$0xf] }
  0x3e   : > { %v1468_v24 = vrot.slane %v1466_v7, 5  ;;  %v8731_v25 = vld [vmem:[#allocation2 + $0x20] sm:$0x1]  ;;  %v3369_v29 = vshrl.u32 %v3299_v19, 16  ;;  %v3361_v31 = vor.u32 %v3360_v10, %v8727_v9  ;;  %v3372_v35 = vshll.u32 %v3299_v19, 16 }
  0x3f   : > { %v1487_v34 = vor.u32 %v1486_v15, %v8729_v14  ;;  %v1453_v38 = vor.u32 %v1452_v21, %v1449_v20  ;;  %v3388_v48 = vshll.u32 %v8731_v25, 16  ;;  %v8757_v7 = vmul.f32 %v8565_v26, %v8724_v2 }
  0x40   : > { %v3371_v40 = vrot.slane %v3369_v29, 4  ;;  %v3362_v58 = vrot.slane %v3361_v31, 4  ;;  %v3374_v60 = vrot.slane %v3372_v35, 5  ;;  %v1469_v63 = vsel %vm8735_vm1, %v8696_v36, %v1468_v24 }
  0x41   : > { %v1488_v59 = vrot.slane %v1487_v34, 4  ;;  %v1454_v62 = vrot.slane %v1453_v38, 4  ;;  %v3296_v0 = vld [vmem:[#allocation2 + $0xc] sm:$0xf]  ;;  %v8753_v3 = vld [vmem:[#allocation2 + $0x14] sm:$0x1] }
  0x42   : > { %v3390_v6 = vrot.slane %v3388_v48, 5  ;;  %v3345_v8 = vshrl.u32 %v3296_v0, 16  ;;  %v3348_v10 = vshll.u32 %v3296_v0, 16  ;;  %v3364_v15 = vshll.u32 %v8753_v3, 16  ;;  %v1381_v19 = vld [vmem:[#allocation2 + $0xc] sm:$0xf] }
  0x43   : > { %v1459_v21 = vsel %vm8735_vm1, %v1454_v62, %v8669_v13  ;;  %v1428_v36 = vld [vmem:[#allocation2 + $0x14] sm:$0x1]  ;;  %v1471_v24 = vshrl.u32 %v1381_v19, 16  ;;  %v1474_v29 = vshll.u32 %v1381_v19, 16  ;;  %v3375_v31 = vor.u32 %v3374_v60, %v3371_v40  ;;  %v1429_v40 = vld [vmem:[#allocation2 + $0x20] sm:$0x1] }
  0x44   : > { %v6655_v34 = vcombine.low %v1459_v21, %v1469_v63  ;;  %v3347_v35 = vrot.slane %v3345_v8, 4  ;;  %v3350_v38 = vrot.slane %v3348_v10, 5  ;;  %v3366_v48 = vrot.slane %v3364_v15, 5 }
  0x45   : > { %v4119_v0 = vrot.slane %v8753_v3, 5  ;;  %v1473_v61 = vrot.slane %v1471_v24, 4  ;;  %v1476_v18 = vrot.slane %v1474_v29, 5  ;;  %v1490_v11 = vshll.u32 %v1428_v36, 16 }
  0x46   : > { %7537 = vmatprep.mubr.bf16.mxu1 %v6655_v34  ;;  %v3351_v20 = vor.u32 %v3350_v38, %v3347_v35  ;;  %v3367_v28 = vsel %vm8735_vm1, %v3362_v58, %v3366_v48  ;;  %v3376_v13 = vrot.slane %v3375_v31, 4  ;;  %v3391_v62 = vsel %vm8735_vm1, %v3386_v45, %v3390_v6 }
  0x47   : > { %v1477_v60 = vor.u32 %v1476_v18, %v1473_v61  ;;  %v1492_v63 = vrot.slane %v1490_v11, 5  ;;  %v1495_v8 = vshrl.u32 %v1383_v22, 16  ;;  %v1498_v10 = vshll.u32 %v1383_v22, 16  ;;  %v8251_v22 = vld [vmem:[%s10696_s4 + $0x148] sm:$0xff]  }
  0x48   : > { %v3352_v15 = vrot.slane %v3351_v20, 4  ;;  %v3381_v19 = vsel %vm8735_vm1, %v3376_v13, %v8698_v43  ;;  %v1506_v21 = vrot.slane %v1504_v27, 5  ;;  %v10729_v36 = vshrl.u32 %v8679_v23, 16  ;;  %v8252_v23 = vld [vmem:[%s10696_s4 + $0x8] sm:$0xff]   ;;  %v977_v20 = vld [vmem:[#allocation2 + $0x24] sm:$0xf] }
  0x49   : > { %v1478_v24 = vrot.slane %v1477_v60, 4  ;;  %v1493_v45 = vsel %vm8735_vm1, %v1488_v59, %v1492_v63  ;;  %v6816_v6 = vcombine.low %v3381_v19, %v3391_v62  ;;  %v1497_v18 = vrot.slane %v1495_v8, 4  ;;  %v981_v62 = vld [vmem:[#allocation2 + $0x2c] sm:$0x1] }
  0x4a   : > { %v1510_v58 = vrot.slane %v10729_v36, 4  ;;  %v3357_v11 = vsel %vm8735_vm1, %v3352_v15, %v8727_v9  ;;  %v1500_v43 = vrot.slane %v1498_v10, 5  ;;  %v1514_v27 = vshll.u32 %v1429_v40, 16 }
  0x4b   : > { %v6815_v29 = vcombine.low %v3357_v11, %v3367_v28  ;;  %v1483_v59 = vsel %vm8735_vm1, %v1478_v24, %v8729_v14  ;;  %v10730_v31 = vshrl.u32 %v8633_v39, 16  ;;  %v680_v34 = vshrl.u32 %v8651_v52, 16 }
  0x4c   : > { %v1511_v61 = vor.u32 %v1510_v58, %v1506_v21  ;;  %v6656_v35 = vcombine.low %v1483_v59, %v1493_v45  ;;  %v1501_v38 = vor.u32 %v1500_v43, %v1497_v18  ;;  %v1516_v13 = vrot.slane %v1514_v27, 5  ;;  %v8255_v45 = vld [vmem:[%s10696_s4 + $0x10] sm:$0xff]   ;;  %v8254_v59 = vld [vmem:[%s10696_s4 + $0x158] sm:$0xff]  }
  0x4d   : > { %v674_v9 = vrot.slane %v10730_v31, 7  ;;  %7729 = vmatprep.mubr.bf16.mxu0 %v6815_v29  ;;  %v10731_v40 = vshll.u32 %v8633_v39, 16  ;;  %v682_v28 = vrot.slane %v680_v34, 7  ;;  %v683_v8 = vshll.u32 %v8651_v52, 16  ;;  %v984_v43 = vld [vmem:[#allocation2 + $0x30] sm:$0xf] }
  0x4e   : > { %v1512_v48 = vrot.slane %v1511_v61, 4  ;;  %7538 = vmatmul.mubr.bf16.vlgmr.msra.gmra.mrb[0].mxu1 %v6656_v35  ;;  %7730 = vmatmul.mubr.bf16.vlgmr.msra.gmra.mrb[0].mxu0 %v6816_v6  ;;  %v1502_v14 = vrot.slane %v1501_v38, 4  ;;  %v512_v52 = vsel %vm447_vm2, %v8649_v46, %v8688_v32  ;;  %v515_v61 = vsel %vm450_vm5, %v8662_v5, %v8712_v55  ;;  %v988_v29 = vld [vmem:[#allocation2 + $0x38] sm:$0x1] }
  0x4f   : > { %v677_v60 = vor.u32 %v10731_v40, %v674_v9  ;;  %v678_v63 = vrot.slane %v674_v9, 4  ;;  %7570 = vmatpush3.bf16.msra.mxu1 %v8589_v47  ;;  %7762 = vmatpush3.bf16.msra.mxu0 %v8603_v54  ;;  %v685_v39 = vor.u32 %v683_v8, %v682_v28  ;;  %v687_v15 = vrot.slane %v682_v28, 4  ;;  %v8253_v47 = vld [vmem:[%s10696_s4 + $0x150] sm:$0xff]   ;;  %v8258_v55 = vld [vmem:[%s10696_s4 + $0x18] sm:$0xff]   ;;  %v8256_v8 = vld [vmem:[%s10696_s4 + $0x160] sm:$0xff]  }
  0x50   : > { %v1517_v10 = vsel %vm8735_vm1, %v1512_v48, %v1516_v13  ;;  %7763 = vmatprep.subr.bf16.mxu0 %v8251_v22  ;;  %v1507_v36 = vsel %vm8735_vm1, %v1502_v14, %v1506_v21  ;;  %7571 = vmatprep.subr.bf16.mxu1 %v8252_v23  ;;  %v513_v54 = vsel %vm448_vm3, %v8654_v53, %v8692_v33  ;;  %vm452_vm9 = vcmp.gt.f32.partialorder %v8724_v2, 0.0  ;;  %v991_v28 = vld [vmem:[#allocation2 + $0x3c] sm:$0xf] }
  0x51   : > { %v978_v19 = vsel %vm8594_vm8, %v677_v60, %v977_v20  ;;  %v7073_v58 = vpack.c.bf16 %v512_v52, %v512_v52  ;;  %v6657_v24 = vcombine.low %v1507_v36, %v1517_v10  ;;  %v686_v46 = vsel %vm8582_vm7, %v678_v63, %v685_v39  ;;  %v8261_v10 = vld [vmem:[%s10696_s4 + $0x20] sm:$0xff]  }
  0x52   : > { %979 = vst [vmem:[#allocation2 + $0x24] sm:$0xf] %v978_v19  ;;  %v982_v32 = vsel %vm8607_vm11, %v687_v15, %v981_v62  ;;  %v7074_v21 = vpack.c.bf16 %v513_v54, %v513_v54  ;;  %980 = vst [vmem:[#allocation2 + $0x28] sm:$0xf] %v686_v46  ;;  %v514_v53 = vsel %vm449_vm4, %v8659_v4, %v8708_v51 }
  0x53   : > { %983 = vst [vmem:[#allocation2 + $0x2c] sm:$0x1] %v982_v32  ;;  %v689_v6 = vshrl.u32 %v7073_v58, 16  ;;  %v692_v18 = vshll.u32 %v7073_v58, 16  ;;  %7764 = vmatpush3.bf16.msra.mxu0 %v8251_v22  ;;  %7541 = vmatprep.mubr.bf16.mxu1 %v6657_v24  ;;  %v7075_v27 = vpack.c.bf16 %v514_v53, %v514_v53  ;;  %v7076_v31 = vpack.c.bf16 %v515_v61, %v515_v61  ;;  %v8257_v61 = vld [vmem:[%s10696_s4 + $0x168] sm:$0xff]  }
  0x54   : > { %v697_v33 = vshrl.u32 %v7074_v21, 16  ;;  %v700_v11 = vshll.u32 %v7074_v21, 16  ;;  %7765 = vmatprep.subr.bf16.mxu0 %v8253_v47  ;;  %7572 = vmatpush3.bf16.msra.mxu1 %v8252_v23  ;;  %v516_v5 = vsel %vm451_vm6, %v8721_v1, %v8743_v37  ;;  %v517_v60 = vsel %vm452_vm9, %v8724_v2, %v8757_v7 }
  0x55   : > { %v691_v20 = vrot.slane %v689_v6, 7  ;;  %7573 = vmatprep.subr.bf16.mxu1 %v8255_v45  ;;  %v706_v51 = vshrl.u32 %v7075_v27, 16  ;;  %v709_v22 = vshll.u32 %v7075_v27, 16  ;;  %v714_v34 = vshrl.u32 %v7076_v31, 16  ;;  %v8870_v27 = vld [vmem:[%s8535_s29 + $0x38] sm:$0xff]  }
  0x56   : > { %v699_v4 = vrot.slane %v697_v33, 7  ;;  %v717_v35 = vshll.u32 %v7076_v31, 16  ;;  %v8845_v14 = vpack.c.bf16 %v516_v5, %v516_v5  ;;  %v8856_v36 = vpack.c.bf16 %v517_v60, %v517_v60 }
  0x57   : > { %v694_v23 = vor.u32 %v692_v18, %v691_v20  ;;  %v695_v9 = vrot.slane %v691_v20, 4  ;;  %7766 = vmatpush3.bf16.msra.mxu0 %v8253_v47  ;;  %v708_v40 = vrot.slane %v706_v51, 7  ;;  %v716_v63 = vrot.slane %v714_v34, 7  ;;  %v995_v18 = vld [vmem:[#allocation2 + $0x44] sm:$0x1]  ;;  %v8263_v20 = vld [vmem:[%s10696_s4 + $0x28] sm:$0xff]  }
  0x58   : > { %v702_v13 = vor.u32 %v700_v11, %v699_v4  ;;  %v704_v62 = vrot.slane %v699_v4, 4  ;;  %7767 = vmatprep.subr.bf16.mxu0 %v8254_v59  ;;  %7574 = vmatpush3.bf16.msra.mxu1 %v8255_v45  ;;  %v723_v5 = vshrl.u32 %v8845_v14, 16  ;;  %v731_v34 = vshrl.u32 %v8856_v36, 16 }
  0x59   : > { %v1093_v38 = vld [vmem:[#allocation2 + $0x24] sm:$0x2]  ;;  %v1189_v48 = vld [vmem:[#allocation2 + $0x24] sm:$0x1]  ;;  %v985_v37 = vsel %vm8594_vm8, %v694_v23, %v984_v43  ;;  %v1237_v39 = vld [vmem:[#allocation2 + $0x28] sm:$0x8]  ;;  %v711_v52 = vor.u32 %v709_v22, %v708_v40  ;;  %7575 = vmatprep.subr.bf16.mxu1 %v8258_v55  ;;  %v719_v6 = vor.u32 %v717_v35, %v716_v63  ;;  %v10732_v60 = vunpack.c.l.bf16 %v8747_v56 }
  0x5a   : > { %v6606_v1 = vrot.slane %v1093_v38, 9  ;;  %v1334_v2 = vld [vmem:[#allocation2 + $0x2c] sm:$0x1]  ;;  %v8850_v7 = vld [vmem:[#allocation2 + $0x28] sm:$0xf]  ;;  %v703_v15 = vsel %vm8582_vm7, %v695_v9, %v702_v13  ;;  %v989_v19 = vsel %vm8607_vm11, %v704_v62, %v988_v29  ;;  %v6624_v54 = vrot.slane %v1237_v39, 11 }
  0x5b   : > { %986 = vst [vmem:[#allocation2 + $0x30] sm:$0xf] %v985_v37  ;;  %v3402_v58 = vshll.u32 %v8850_v7, 16  ;;  %v3406_v24 = vshrl.u32 %v8850_v7, 16  ;;  %v1386_v46 = vld [vmem:[#allocation2 + $0x28] sm:$0xf]  ;;  %7768 = vmatpush3.bf16.msra.mxu0 %v8254_v59  ;;  %v992_v4 = vsel %vm8594_vm8, %v711_v52, %v991_v28  ;;  %v7158_v38 = vunpack.c.h.bf16 %v8747_v56 }
  0x5c   : > { %v1190_v47 = vsel %vm8607_vm11, %v6606_v1, %v1189_v48  ;;  %987 = vst [vmem:[#allocation2 + $0x34] sm:$0xf] %v703_v15  ;;  %990 = vst [vmem:[#allocation2 + $0x38] sm:$0x1] %v989_v19  ;;  %v1528_v32 = vshll.u32 %v1386_v46, 16  ;;  %v1532_v21 = vshrl.u32 %v1386_v46, 16  ;;  %v1335_v53 = vsel %vm8638_vm14, %v6624_v54, %v1334_v2  ;;  %7769 = vmatprep.subr.bf16.mxu0 %v8256_v8 }
  0x5d   : > { %1191 = vst [vmem:[#allocation2 + $0x24] sm:$0x1] %v1190_v47  ;;  %v712_v45 = vrot.slane %v708_v40, 4  ;;  %v8864_v33 = vrot.slane %v3402_v58, 5  ;;  %v3408_v11 = vrot.slane %v3406_v24, 4  ;;  %v721_v43 = vrot.slane %v716_v63, 4  ;;  %7576 = vmatpush3.bf16.msra.mxu1 %v8258_v55 }
  0x5e   : > { %1336 = vst [vmem:[#allocation2 + $0x2c] sm:$0x1] %v1335_v53  ;;  %v8875_v29 = vrot.slane %v1528_v32, 5  ;;  %v1534_v59 = vrot.slane %v1532_v21, 4  ;;  %7577 = vmatprep.subr.bf16.mxu1 %v8261_v10  ;;  %993 = vst [vmem:[#allocation2 + $0x3c] sm:$0xf] %v992_v4  ;;  %v382_v1 = vsub.f32 %v10732_v60, %v8544_v12  ;;  %v7161_v37 = vunpack.c.l.bf16 %v8870_v27 }
  0x5f   : > { %v720_v31 = vsel %vm8582_vm7, %v712_v45, %v719_v6  ;;  %v3409_v51 = vor.u32 %v3408_v11, %v8864_v33  ;;  %v996_v22 = vsel %vm8607_vm11, %v721_v43, %v995_v18  ;;  %v726_v55 = vshll.u32 %v8845_v14, 16  ;;  %v8259_v23 = vld [vmem:[%s10696_s4 + $0x170] sm:$0xff]   ;;  %7770 = vmatpush3.bf16.msra.mxu0 %v8256_v8  ;;  %v8260_v54 = vld [vmem:[%s10696_s4 + $0x178] sm:$0xff]  }
  0x60   : > { %994 = vst [vmem:[#allocation2 + $0x40] sm:$0xf] %v720_v31  ;;  %v1535_v9 = vor.u32 %v1534_v59, %v8875_v29  ;;  %997 = vst [vmem:[#allocation2 + $0x44] sm:$0x1] %v996_v22  ;;  %v734_v35 = vshll.u32 %v8856_v36, 16  ;;  %v8895_v40 = vrot.slane %v723_v5, 7  ;;  %7771 = vmatprep.subr.bf16.mxu0 %v8257_v61  ;;  %v8904_v39 = vsub.f32 %v7158_v38, %v8544_v12 }
  0x61   : > { %v8893_v48 = vrot.slane %v3409_v51, 4  ;;  %7578 = vmatpush3.bf16.msra.mxu1 %v8261_v10  ;;  %v7162_v2 = vunpack.c.h.bf16 %v8870_v27  ;;  %v8912_v10 = vmul.f32 %v8552_v16, %v382_v1  ;;  %v998_v1 = vld [vmem:[#allocation2 + $0x48] sm:$0xf] }
  0x62   : > { %v1094_v13 = vld [vmem:[#allocation2 + $0x30] sm:$0x2]  ;;  %v1192_v62 = vld [vmem:[#allocation2 + $0x30] sm:$0x1]  ;;  %v8901_v63 = vrot.slane %v1535_v9, 4  ;;  %7579 = vmatprep.subr.bf16.mxu1 %v8263_v20  ;;  %v8908_v56 = vor.u32 %v726_v55, %v8895_v40  ;;  %v729_v47 = vrot.slane %v8895_v40, 4 }
  0x63   : > { %v6607_v28 = vrot.slane %v1094_v13, 9  ;;  %v1238_v8 = vld [vmem:[#allocation2 + $0x34] sm:$0x8]  ;;  %v1337_v14 = vld [vmem:[#allocation2 + $0x38] sm:$0x1]  ;;  %7772 = vmatpush3.bf16.msra.mxu0 %v8257_v61  ;;  %vm453_vm10 = vcmp.gt.f32.partialorder %v8912_v10, 0.0 }
  0x64   : > { %v3302_v15 = vld [vmem:[#allocation2 + $0x24] sm:$0xf]  ;;  %v6625_v52 = vrot.slane %v1238_v8, 11  ;;  %v3306_v32 = vld [vmem:[#allocation2 + $0x34] sm:$0xf]  ;;  %7773 = vmatprep.subr.bf16.mxu0 %v8259_v23 }
  0x65   : > { %v1385_v19 = vld [vmem:[#allocation2 + $0x24] sm:$0xf]  ;;  %v3393_v12 = vshrl.u32 %v3302_v15, 16  ;;  %v3396_v58 = vshll.u32 %v3302_v15, 16  ;;  %v3304_v21 = vld [vmem:[#allocation2 + $0x2c] sm:$0x1]  ;;  %v1193_v6 = vsel %vm8607_vm11, %v6607_v28, %v1192_v62  ;;  %7580 = vmatpush3.bf16.msra.mxu1 %v8263_v20 }
  0x66   : > { %v1519_v24 = vshrl.u32 %v1385_v19, 16  ;;  %v1522_v46 = vshll.u32 %v1385_v19, 16  ;;  %v1430_v45 = vld [vmem:[#allocation2 + $0x2c] sm:$0x1]  ;;  %v1338_v18 = vsel %vm8638_vm14, %v6625_v52, %v1337_v14  ;;  %v3426_v16 = vshll.u32 %v3306_v32, 16  ;;  %v8262_v19 = vld [vmem:[%s10696_s4 + $0x180] sm:$0xff]  }
  0x67   : > { %v3430_v53 = vshrl.u32 %v3306_v32, 16  ;;  %v3395_v11 = vrot.slane %v3393_v12, 4  ;;  %v3398_v43 = vrot.slane %v3396_v58, 5  ;;  %v3412_v59 = vshll.u32 %v3304_v21, 16  ;;  %1194 = vst [vmem:[#allocation2 + $0x30] sm:$0x1] %v1193_v6  ;;  %7774 = vmatpush3.bf16.msra.mxu0 %v8259_v23 }
  0x68   : > { %v1521_v31 = vrot.slane %v1519_v24, 4  ;;  %1339 = vst [vmem:[#allocation2 + $0x38] sm:$0x1] %v1338_v18  ;;  %v1388_v4 = vld [vmem:[#allocation2 + $0x34] sm:$0xf]  ;;  %v1524_v61 = vrot.slane %v1522_v46, 5  ;;  %7775 = vmatprep.subr.bf16.mxu0 %v8260_v54 }
  0x69   : > { %v1538_v51 = vshll.u32 %v1430_v45, 16  ;;  %v8921_v22 = vrot.slane %v3426_v16, 5  ;;  %v3432_v5 = vrot.slane %v3430_v53, 4  ;;  %v1095_v55 = vld [vmem:[#allocation2 + $0x3c] sm:$0x2]  ;;  %v3399_v9 = vor.u32 %v3398_v43, %v3395_v11 }
  0x6a   : > { %v3414_v38 = vrot.slane %v3412_v59, 5  ;;  %v1552_v13 = vshll.u32 %v1388_v4, 16  ;;  %v1556_v62 = vshrl.u32 %v1388_v4, 16  ;;  %v1195_v60 = vld [vmem:[#allocation2 + $0x3c] sm:$0x1]  ;;  %v1525_v20 = vor.u32 %v1524_v61, %v1521_v31 }
  0x6b   : > { %v1540_v28 = vrot.slane %v1538_v51, 5  ;;  %v3433_v8 = vor.u32 %v3432_v5, %v8921_v22  ;;  %v6608_v14 = vrot.slane %v1095_v55, 9  ;;  %v1239_v15 = vld [vmem:[#allocation2 + $0x40] sm:$0x8]  ;;  %v3400_v52 = vrot.slane %v3399_v9, 4  ;;  %7776 = vmatpush3.bf16.msra.mxu0 %v8260_v54 }
  0x6c   : > { %v3415_v12 = vsel %vm8735_vm1, %v8893_v48, %v3414_v38  ;;  %v8930_v58 = vrot.slane %v1552_v13, 5  ;;  %v1558_v24 = vrot.slane %v1556_v62, 4  ;;  %v3309_v23 = vld [vmem:[#allocation2 + $0x40] sm:$0xf]  ;;  %v1526_v46 = vrot.slane %v1525_v20, 4  ;;  %7809 = vmatprep.subr.bf16.mxu0 %v8262_v19 }
  0x6d   : > { %v1541_v32 = vsel %vm8735_vm1, %v8901_v63, %v1540_v28  ;;  %v8935_v21 = vrot.slane %v3433_v8, 4  ;;  %v1196_v45 = vsel %vm8607_vm11, %v6608_v14, %v1195_v60  ;;  %v3405_v6 = vsel %vm8735_vm1, %v3400_v52, %v8864_v33  ;;  %v1340_v16 = vld [vmem:[#allocation2 + $0x44] sm:$0x1]  ;;  %v8954_v4 = vld [vmem:[%s10694_s2] ss:$0 sm:$0xff] }
  0x6e   : > { %v1559_v48 = vor.u32 %v1558_v24, %v8930_v58  ;;  %1197 = vst [vmem:[#allocation2 + $0x3c] sm:$0x1] %v1196_v45  ;;  %v6626_v18 = vrot.slane %v1239_v15, 11  ;;  %v3450_v53 = vshll.u32 %v3309_v23, 16  ;;  %v6817_v11 = vcombine.low %v3405_v6, %v3415_v12  ;;  %v3305_v43 = vld [vmem:[#allocation2 + $0x30] sm:$0xf] }
  0x6f   : > { %v1531_v63 = vsel %vm8735_vm1, %v1526_v46, %v8875_v29  ;;  %v8946_v59 = vld [vmem:[#allocation2 + $0x38] sm:$0x1]  ;;  %v1387_v31 = vld [vmem:[#allocation2 + $0x30] sm:$0xf]  ;;  %v999_v33 = vsel %vm8594_vm8, %v8908_v56, %v998_v1  ;;  %v8958_v54 = vmul.f32 %v8954_v4, %v8904_v39  ;;  %v3417_v29 = vshrl.u32 %v3305_v43, 16 }
  0x70   : > { %v6658_v61 = vcombine.low %v1531_v63, %v1541_v32  ;;  %v3420_v51 = vshll.u32 %v3305_v43, 16  ;;  %v3436_v5 = vshll.u32 %v8946_v59, 16  ;;  %v1431_v55 = vld [vmem:[#allocation2 + $0x38] sm:$0x1]  ;;  %1000 = vst [vmem:[#allocation2 + $0x48] sm:$0xf] %v999_v33  ;;  %7733 = vmatprep.mubr.bf16.mxu0 %v6817_v11  ;;  %v1341_v39 = vsel %vm8638_vm14, %v6626_v18, %v1340_v16 }
  0x71   : > { %v1543_v9 = vshrl.u32 %v1387_v31, 16  ;;  %v1546_v56 = vshll.u32 %v1387_v31, 16  ;;  %v1560_v38 = vrot.slane %v1559_v48, 4  ;;  %v1562_v13 = vshll.u32 %v1431_v55, 16  ;;  %v1390_v62 = vld [vmem:[#allocation2 + $0x40] sm:$0xf] }
  0x72   : > { %7542 = vmatmul.mubr.bf16.gmra.mrb[4].mxu1 %v6658_v61  ;;  %v3419_v60 = vrot.slane %v3417_v29, 4  ;;  %v3422_v1 = vrot.slane %v3420_v51, 5  ;;  %v3438_v20 = vrot.slane %v3436_v5, 5  ;;  %1342 = vst [vmem:[#allocation2 + $0x44] sm:$0x1] %v1341_v39  ;;  %v8963_v15 = vrot.slane %v3450_v53, 5 }
  0x73   : > { %v1545_v28 = vrot.slane %v1543_v9, 4  ;;  %v1548_v8 = vrot.slane %v1546_v56, 5  ;;  %v1564_v14 = vrot.slane %v1562_v13, 5  ;;  %v3454_v12 = vshrl.u32 %v3309_v23, 16  ;;  %v8265_v46 = vld [vmem:[%s10696_s4 + $0x30] sm:$0xff]  }
  0x74   : > { %v3423_v19 = vor.u32 %v3422_v1, %v3419_v60  ;;  %v3439_v52 = vsel %vm8735_vm1, %v8935_v21, %v3438_v20  ;;  %v1576_v24 = vshll.u32 %v1390_v62, 16  ;;  %v1580_v18 = vshrl.u32 %v1390_v62, 16  ;;  %7581 = vmatprep.subr.bf16.mxu1 %v8265_v46  ;;  %v1002_v13 = vld [vmem:[#allocation2 + $0x50] sm:$0x1] }
  0x75   : > { %v1549_v32 = vor.u32 %v1548_v8, %v1545_v28  ;;  %v1565_v45 = vsel %vm8735_vm1, %v1560_v38, %v1564_v14  ;;  %v3308_v6 = vld [vmem:[#allocation2 + $0x3c] sm:$0xf]  ;;  %v733_v16 = vrot.slane %v731_v34, 7  ;;  %v3456_v21 = vrot.slane %v3454_v12, 4  ;;  %7582 = vmatpush3.bf16.msra.mxu1 %v8265_v46 }
  0x76   : > { %v1389_v48 = vld [vmem:[#allocation2 + $0x3c] sm:$0xf]  ;;  %v3424_v53 = vrot.slane %v3423_v19, 4  ;;  %v3441_v11 = vshrl.u32 %v3308_v6, 16  ;;  %v3444_v63 = vshll.u32 %v3308_v6, 16  ;;  %v1578_v33 = vrot.slane %v1576_v24, 5 }
  0x77   : > { %v1550_v23 = vrot.slane %v1549_v32, 4  ;;  %v1567_v43 = vshrl.u32 %v1389_v48, 16  ;;  %v1570_v31 = vshll.u32 %v1389_v48, 16  ;;  %v3457_v5 = vor.u32 %v3456_v21, %v8963_v15  ;;  %v1096_v55 = vld [vmem:[#allocation2 + $0x48] sm:$0x2] }
  0x78   : > { %v3429_v61 = vsel %vm8735_vm1, %v3424_v53, %v8921_v22  ;;  %v3443_v29 = vrot.slane %v3441_v11, 4  ;;  %v3446_v51 = vrot.slane %v3444_v63, 5  ;;  %v1198_v62 = vld [vmem:[#allocation2 + $0x48] sm:$0x1]  ;;  %v1582_v22 = vrot.slane %v1580_v18, 4 }
  0x79   : > { %v6818_v34 = vcombine.low %v3429_v61, %v3439_v52  ;;  %v1555_v9 = vsel %vm8735_vm1, %v1550_v23, %v8930_v58  ;;  %v1569_v56 = vrot.slane %v1567_v43, 4  ;;  %v1572_v38 = vrot.slane %v1570_v31, 5  ;;  %v3310_v1 = vld [vmem:[#allocation2 + $0x44] sm:$0x1]  ;;  %v4050_v18 = vld [vmem:[#allocation2 + $0xc] sm:$0xe] }
  0x7a   : > { %v6659_v60 = vcombine.low %v1555_v9, %v1565_v45  ;;  %v3447_v20 = vor.u32 %v3446_v51, %v3443_v29  ;;  %v3458_v39 = vrot.slane %v3457_v5, 4  ;;  %v1432_v28 = vld [vmem:[#allocation2 + $0x44] sm:$0x1]  ;;  %v3460_v8 = vshll.u32 %v3310_v1, 16  ;;  %v9013_v31 = vld [vmem:[%s10693_s1] ss:$0 sm:$0xff] }
  0x7b   : > { %7734 = vmatmul.mubr.bf16.gmra.mrb[4].mxu0 %v6818_v34  ;;  %v1573_v14 = vor.u32 %v1572_v38, %v1569_v56  ;;  %v1586_v19 = vshll.u32 %v1432_v28, 16  ;;  %v736_v52 = vor.u32 %v734_v35, %v733_v16  ;;  %v1583_v58 = vor.u32 %v1582_v22, %v1578_v33  ;;  %v9021_v29 = vld [vmem:[#allocation2 + $0x18] sm:$0xe]  ;;  %v9024_v51 = vld [vmem:[%s8535_s29 + $0x48] sm:$0xff]  }
  0x7c   : > { %7545 = vmatprep.mubr.bf16.mxu1 %v6659_v60  ;;  %v3448_v12 = vrot.slane %v3447_v20, 4  ;;  %v738_v24 = vrot.slane %v733_v16, 4  ;;  %v6609_v46 = vrot.slane %v1096_v55, 9  ;;  %v3462_v32 = vrot.slane %v3460_v8, 5 }
  0x7d   : > { %v1574_v45 = vrot.slane %v1573_v14, 4  ;;  %v1588_v6 = vrot.slane %v1586_v19, 5  ;;  %v737_v48 = vsel %vm8582_vm7, %v729_v47, %v736_v52  ;;  %v1584_v35 = vrot.slane %v1583_v58, 4  ;;  %v9002_v47 = vld [vmem:[%s8535_s29 + $0x40] sm:$0xff]  }
  0x7e   : > { %v3453_v36 = vsel %vm8735_vm1, %v3448_v12, %v8963_v15  ;;  %1001 = vst [vmem:[#allocation2 + $0x4c] sm:$0xf] %v737_v48  ;;  %v1003_v16 = vsel %vm8607_vm11, %v738_v24, %v1002_v13  ;;  %v1199_v53 = vsel %vm8607_vm11, %v6609_v46, %v1198_v62  ;;  %v3463_v11 = vsel %vm8735_vm1, %v3458_v39, %v3462_v32 }
  0x7f   : > { %v1579_v40 = vsel %vm8735_vm1, %v1574_v45, %v1578_v33  ;;  %1004 = vst [vmem:[#allocation2 + $0x50] sm:$0x1] %v1003_v16  ;;  %1200 = vst [vmem:[#allocation2 + $0x48] sm:$0x1] %v1199_v53  ;;  %vm454_vm12 = vcmp.gt.f32.partialorder %v8958_v54, 0.0  ;;  %v6819_v15 = vcombine.low %v3453_v36, %v3463_v11  ;;  %v1589_v63 = vsel %vm8735_vm1, %v1584_v35, %v1588_v6 }
  0x80   : > { %v486_v21 = vmul.f32 %v8565_v26, %v8912_v10  ;;  %v487_v23 = vmul.f32 %v8565_v26, %v8958_v54  ;;  %v6660_v43 = vcombine.low %v1579_v40, %v1589_v63  ;;  %v384_v33 = vsub.f32 %v7161_v37, %v9013_v31 }
  0x81   : > { %v385_v61 = vsub.f32 %v7162_v2, %v9013_v31  ;;  %7737 = vmatprep.mubr.bf16.mxu0 %v6819_v15  ;;  %v6839_v34 = vrot.slane %v4050_v18, 9  ;;  %v4116_v38 = vrot.slane %v8700_v44, 5  ;;  %v6840_v13 = vrot.slane %v9021_v29, 9 }
  0x82   : > { %v518_v5 = vsel %vm453_vm10, %v8912_v10, %v486_v21  ;;  %v519_v55 = vsel %vm454_vm12, %v8958_v54, %v487_v23  ;;  %7546 = vmatmul.mubr.bf16.gmra.mrb[8].mxu1 %v6660_v43  ;;  %v9029_v37 = vmul.f32 %v8954_v4, %v384_v33  ;;  %v7165_v10 = vunpack.c.l.bf16 %v9002_v47 }
  0x83   : > { %v7079_v9 = vpack.c.bf16 %v518_v5, %v518_v5  ;;  %v7080_v56 = vpack.c.bf16 %v519_v55, %v519_v55  ;;  %v9032_v27 = vmul.f32 %v8954_v4, %v385_v61  ;;  %v7166_v54 = vunpack.c.h.bf16 %v9002_v47  ;;  %v1005_v5 = vld [vmem:[#allocation2 + $0x54] sm:$0xf] }
  0x84   : > { %v488_v20 = vmul.f32 %v8565_v26, %v9029_v37  ;;  %v10735_v28 = vrot.slane %v8731_v25, 5  ;;  %v7169_v8 = vunpack.c.l.bf16 %v9024_v51  ;;  %v9060_v58 = vsel %vm9034_vm0, %v6839_v34, %v4116_v38 }
  0x85   : > { %v1240_v62 = vld [vmem:[#allocation2 + $0x4c] sm:$0x8]  ;;  %v9046_v39 = vmul.f32 %v8565_v26, %v9032_v27  ;;  %v386_v24 = vsub.f32 %v7165_v10, %v9013_v31  ;;  %v740_v21 = vshrl.u32 %v7079_v9, 16  ;;  %v743_v33 = vshll.u32 %v7079_v9, 16 }
  0x86   : > { %v3312_v60 = vld [vmem:[#allocation2 + $0x4c] sm:$0xf]  ;;  %v9053_v22 = vsel %vm9034_vm0, %v8704_v50, %v10735_v28  ;;  %v6627_v14 = vrot.slane %v1240_v62, 11  ;;  %v1343_v19 = vld [vmem:[#allocation2 + $0x50] sm:$0x1]  ;;  %v748_v61 = vshrl.u32 %v7080_v56, 16 }
  0x87   : > { %v1392_v1 = vld [vmem:[#allocation2 + $0x4c] sm:$0xf]  ;;  %v3311_v52 = vld [vmem:[#allocation2 + $0x48] sm:$0xf]  ;;  %v3474_v12 = vshll.u32 %v3312_v60, 16  ;;  %v3478_v32 = vshrl.u32 %v3312_v60, 16 }
  0x88   : > { %v3465_v25 = vshrl.u32 %v3311_v52, 16  ;;  %v3468_v46 = vshll.u32 %v3311_v52, 16  ;;  %v1391_v45 = vld [vmem:[#allocation2 + $0x48] sm:$0xf]  ;;  %v1600_v50 = vshll.u32 %v1392_v1, 16  ;;  %v1344_v6 = vsel %vm8638_vm14, %v6627_v14, %v1343_v19 }
  0x89   : > { %v9065_v48 = vrot.slane %v3474_v12, 5  ;;  %v1591_v18 = vshrl.u32 %v1391_v45, 16  ;;  %v1594_v36 = vshll.u32 %v1391_v45, 16  ;;  %1345 = vst [vmem:[#allocation2 + $0x50] sm:$0x1] %v1344_v6  ;;  %v3480_v53 = vrot.slane %v3478_v32, 4 }
  0x8a   : > { %v3467_v35 = vrot.slane %v3465_v25, 4  ;;  %v3470_v16 = vrot.slane %v3468_v46, 5  ;;  %v1602_v11 = vrot.slane %v1600_v50, 5  ;;  %v1604_v63 = vshrl.u32 %v1392_v1, 16  ;;  %v1009_v60 = vld [vmem:[#allocation2 + $0x5c] sm:$0x1] }
  0x8b   : > { %v1593_v40 = vrot.slane %v1591_v18, 4  ;;  %v1596_v15 = vrot.slane %v1594_v36, 5  ;;  %v3481_v43 = vor.u32 %v3480_v53, %v9065_v48  ;;  %v742_v10 = vrot.slane %v740_v21, 7 }
  0x8c   : > { %v3471_v23 = vor.u32 %v3470_v16, %v3467_v35  ;;  %v1606_v34 = vrot.slane %v1604_v63, 4  ;;  %v751_v62 = vshll.u32 %v7080_v56, 16  ;;  %v750_v19 = vrot.slane %v748_v61, 7 }
  0x8d   : > { %v1597_v55 = vor.u32 %v1596_v15, %v1593_v40  ;;  %v3482_v14 = vrot.slane %v3481_v43, 4  ;;  %vm455_vm2 = vcmp.gt.f32.partialorder %v9029_v37, 0.0  ;;  %v745_v1 = vor.u32 %v743_v33, %v742_v10 }
  0x8e   : > { %v3472_v28 = vrot.slane %v3471_v23, 4  ;;  %v1607_v12 = vor.u32 %v1606_v34, %v1602_v11  ;;  %v746_v25 = vrot.slane %v742_v10, 4  ;;  %v753_v46 = vor.u32 %v751_v62, %v750_v19  ;;  %v1016_v10 = vld [vmem:[#allocation2 + $0x68] sm:$0x1] }
  0x8f   : > { %v1598_v52 = vrot.slane %v1597_v55, 4  ;;  %v755_v32 = vrot.slane %v750_v19, 4  ;;  %vm456_vm3 = vcmp.gt.f32.partialorder %v9032_v27, 0.0  ;;  %v1006_v18 = vsel %vm8594_vm8, %v745_v1, %v1005_v5 }
  0x90   : > { %v3477_v9 = vsel %vm8735_vm1, %v3472_v28, %v9065_v48  ;;  %v9073_v45 = vld [vmem:[#allocation2 + $0x50] sm:$0x1]  ;;  %v1608_v6 = vrot.slane %v1607_v12, 4  ;;  %v520_v36 = vsel %vm455_vm2, %v9029_v37, %v488_v20  ;;  %v754_v48 = vsel %vm8582_vm7, %v746_v25, %v753_v46  ;;  %1007 = vst [vmem:[#allocation2 + $0x54] sm:$0xf] %v1006_v18 }
  0x91   : > { %v1433_v56 = vld [vmem:[#allocation2 + $0x50] sm:$0x1]  ;;  %v1603_v50 = vsel %vm8735_vm1, %v1598_v52, %v1602_v11  ;;  %v3484_v35 = vshll.u32 %v9073_v45, 16  ;;  %v1010_v53 = vsel %vm8607_vm11, %v755_v32, %v1009_v60  ;;  %v8267_v11 = vld [vmem:[%s10696_s4 + $0x38] sm:$0xff]   ;;  %1008 = vst [vmem:[#allocation2 + $0x58] sm:$0xf] %v754_v48  ;;  %v521_v40 = vsel %vm456_vm3, %v9032_v27, %v9046_v39 }
  0x92   : > { %v1610_v16 = vshll.u32 %v1433_v56, 16  ;;  %1011 = vst [vmem:[#allocation2 + $0x5c] sm:$0x1] %v1010_v53  ;;  %v7081_v37 = vpack.c.bf16 %v520_v36, %v520_v36  ;;  %v4118_v20 = vrot.slane %v4116_v38, 4  ;;  %v387_v15 = vsub.f32 %v7166_v54, %v9013_v31  ;;  %7583 = vmatprep.subr.bf16.mxu1 %v8267_v11 }
  0x93   : > { %v3486_v63 = vrot.slane %v3484_v35, 5  ;;  %v7082_v23 = vpack.c.bf16 %v521_v40, %v521_v40  ;;  %v425_v43 = vmul.f32 %v8954_v4, %v386_v24  ;;  %7584 = vmatpush3.bf16.msra.mxu1 %v8267_v11  ;;  %v1012_v24 = vld [vmem:[#allocation2 + $0x60] sm:$0xf]  ;;  %v10736_v12 = vrot.slane %v8671_v17, 5  ;;  %v9129_v11 = vld [vmem:[#allocation2 + $0x24] sm:$0xe] }
  0x94   : > { %v1612_v21 = vrot.slane %v1610_v16, 5  ;;  %v757_v33 = vshrl.u32 %v7081_v37, 16  ;;  %v760_v61 = vshll.u32 %v7081_v37, 16  ;;  %v9100_v27 = vsel %vm9034_vm0, %v4118_v20, %v4119_v0 }
  0x95   : > { %v426_v44 = vmul.f32 %v8954_v4, %v387_v15  ;;  %v3487_v47 = vsel %vm8735_vm1, %v3482_v14, %v3486_v63  ;;  %v765_v54 = vshrl.u32 %v7082_v23, 16  ;;  %v768_v39 = vshll.u32 %v7082_v23, 16 }
  0x96   : > { %v1613_v38 = vsel %vm8735_vm1, %v1608_v6, %v1612_v21  ;;  %v6820_v5 = vcombine.low %v3477_v9, %v3487_v47  ;;  %v759_v34 = vrot.slane %v757_v33, 7  ;;  %v6871_v3 = vcombine.low %v9060_v58, %v9100_v27 }
  0x97   : > { %v6661_v55 = vcombine.low %v1603_v50, %v1613_v38  ;;  %v767_v0 = vrot.slane %v765_v54, 7  ;;  %vm457_vm4 = vcmp.gt.f32.partialorder %v425_v43, 0.0  ;;  %vm458_vm5 = vcmp.gt.f32.partialorder %v426_v44, 0.0  ;;  %v1097_v60 = vld [vmem:[#allocation2 + $0x54] sm:$0x2] }
  0x98   : > { %v490_v62 = vmul.f32 %v8565_v26, %v425_v43  ;;  %7738 = vmatmul.mubr.bf16.gmra.mrb[8].mxu0 %v6820_v5  ;;  %v1201_v28 = vld [vmem:[#allocation2 + $0x54] sm:$0x1]  ;;  %v762_v14 = vor.u32 %v760_v61, %v759_v34  ;;  %v763_v19 = vrot.slane %v759_v34, 4  ;;  %v491_v52 = vmul.f32 %v8565_v26, %v426_v44  ;;  %v1241_v9 = vld [vmem:[#allocation2 + $0x58] sm:$0x8] }
  0x99   : > { %7549 = vmatprep.mubr.bf16.mxu1 %v6661_v55  ;;  %v9117_v1 = vsel %vm9034_vm0, %v6840_v13, %v10736_v12  ;;  %v6610_v25 = vrot.slane %v1097_v60, 9  ;;  %v1346_v46 = vld [vmem:[#allocation2 + $0x5c] sm:$0x1]  ;;  %v770_v32 = vor.u32 %v768_v39, %v767_v0  ;;  %v772_v56 = vrot.slane %v767_v0, 4  ;;  %v9120_v18 = vld [vmem:[#allocation2 + $0x58] sm:$0xf] }
  0x9a   : > { %v522_v50 = vsel %vm457_vm4, %v425_v43, %v490_v62  ;;  %v6628_v6 = vrot.slane %v1241_v9, 11  ;;  %v1394_v36 = vld [vmem:[#allocation2 + $0x58] sm:$0xf]  ;;  %v1013_v17 = vsel %vm8594_vm8, %v762_v14, %v1012_v24  ;;  %v523_v29 = vsel %vm458_vm5, %v426_v44, %v491_v52  ;;  %v1019_v24 = vld [vmem:[#allocation2 + $0x6c] sm:$0xf] }
  0x9b   : > { %v7083_v35 = vpack.c.bf16 %v522_v50, %v522_v50  ;;  %v1202_v13 = vsel %vm8607_vm11, %v6610_v25, %v1201_v28  ;;  %v3498_v16 = vshll.u32 %v9120_v18, 16  ;;  %v3502_v48 = vshrl.u32 %v9120_v18, 16  ;;  %1014 = vst [vmem:[#allocation2 + $0x60] sm:$0xf] %v1013_v17 }
  0x9c   : > { %v1624_v53 = vshll.u32 %v1394_v36, 16  ;;  %1203 = vst [vmem:[#allocation2 + $0x54] sm:$0x1] %v1202_v13  ;;  %v1347_v40 = vsel %vm8638_vm14, %v6628_v6, %v1346_v46  ;;  %v1628_v37 = vshrl.u32 %v1394_v36, 16  ;;  %v771_v20 = vsel %vm8582_vm7, %v763_v19, %v770_v32 }
  0x9d   : > { %v1017_v15 = vsel %vm8607_vm11, %v772_v56, %v1016_v10  ;;  %1348 = vst [vmem:[#allocation2 + $0x5c] sm:$0x1] %v1347_v40  ;;  %v9137_v63 = vrot.slane %v3498_v16, 5  ;;  %v3504_v21 = vrot.slane %v3502_v48, 4  ;;  %1015 = vst [vmem:[#allocation2 + $0x64] sm:$0xf] %v771_v20  ;;  %v7084_v43 = vpack.c.bf16 %v523_v29, %v523_v29 }
  0x9e   : > { %v9139_v23 = vrot.slane %v1624_v53, 5  ;;  %1018 = vst [vmem:[#allocation2 + $0x68] sm:$0x1] %v1017_v15  ;;  %v1630_v33 = vrot.slane %v1628_v37, 4  ;;  %v774_v61 = vshrl.u32 %v7083_v35, 16  ;;  %v777_v44 = vshll.u32 %v7083_v35, 16 }
  0x9f   : > { %v6872_v47 = vcombine.low %v9117_v1, %v9053_v22  ;;  %v3505_v38 = vor.u32 %v3504_v21, %v9137_v63  ;;  %v782_v54 = vshrl.u32 %v7084_v43, 16  ;;  %v785_v39 = vshll.u32 %v7084_v43, 16 }
  0xa0   : > { %v7170_v5 = vunpack.c.h.bf16 %v9024_v51  ;;  %v1631_v55 = vor.u32 %v1630_v33, %v9139_v23  ;;  %v9146_v34 = vrot.slane %v774_v61, 7  ;;  %v388_v0 = vsub.f32 %v7169_v8, %v9013_v31 }
  0xa1   : > { %v6841_v10 = vrot.slane %v9129_v11, 9  ;;  %v9152_v62 = vrot.slane %v3505_v38, 4  ;;  %v784_v60 = vrot.slane %v782_v54, 7  ;;  %v4130_v14 = vrot.slane %v8850_v7, 5 }
  0xa2   : > { %v389_v28 = vsub.f32 %v7170_v5, %v9013_v31  ;;  %v9156_v19 = vrot.slane %v1631_v55, 4  ;;  %v1098_v52 = vld [vmem:[#allocation2 + $0x60] sm:$0x2]  ;;  %v1204_v12 = vld [vmem:[#allocation2 + $0x60] sm:$0x1]  ;;  %v779_v25 = vor.u32 %v777_v44, %v9146_v34  ;;  %v780_v9 = vrot.slane %v9146_v34, 4 }
  0xa3   : > { %v9161_v51 = vmul.f32 %v8954_v4, %v388_v0  ;;  %v3314_v8 = vld [vmem:[#allocation2 + $0x54] sm:$0xf]  ;;  %v6611_v32 = vrot.slane %v1098_v52, 9  ;;  %v787_v56 = vor.u32 %v785_v39, %v784_v60  ;;  %v789_v50 = vrot.slane %v784_v60, 4  ;;  %v8270_v44 = vld [vmem:[%s10696_s4 + $0x80] sm:$0xff]  }
  0xa4   : > { %v1393_v46 = vld [vmem:[#allocation2 + $0x54] sm:$0xf]  ;;  %v9164_v6 = vmul.f32 %v8954_v4, %v389_v28  ;;  %v9166_v36 = vld [vmem:[#allocation2 + $0x5c] sm:$0x1]  ;;  %v3489_v17 = vshrl.u32 %v3314_v8, 16  ;;  %v3492_v29 = vshll.u32 %v3314_v8, 16  ;;  %v1020_v13 = vsel %vm8594_vm8, %v779_v25, %v1019_v24  ;;  %7617 = vmatprep.subr.bf16.mxu1 %v8270_v44 }
  0xa5   : > { %v1434_v35 = vld [vmem:[#allocation2 + $0x5c] sm:$0x1]  ;;  %v9172_v16 = vmul.f32 %v8565_v26, %v9161_v51  ;;  %v3508_v48 = vshll.u32 %v9166_v36, 16  ;;  %v1615_v53 = vshrl.u32 %v1393_v46, 16  ;;  %v1618_v40 = vshll.u32 %v1393_v46, 16 }
  0xa6   : > { %v1634_v37 = vshll.u32 %v1434_v35, 16  ;;  %v1242_v20 = vld [vmem:[#allocation2 + $0x64] sm:$0x8]  ;;  %1021 = vst [vmem:[#allocation2 + $0x6c] sm:$0xf] %v1020_v13  ;;  %v3491_v15 = vrot.slane %v3489_v17, 4  ;;  %v1205_v43 = vsel %vm8607_vm11, %v6611_v32, %v1204_v12  ;;  %v493_v44 = vmul.f32 %v8565_v26, %v9164_v6 }
  0xa7   : > { %v3494_v21 = vrot.slane %v3492_v29, 5  ;;  %v6629_v33 = vrot.slane %v1242_v20, 11  ;;  %v1349_v61 = vld [vmem:[#allocation2 + $0x68] sm:$0x1]  ;;  %v3510_v38 = vrot.slane %v3508_v48, 5  ;;  %v1617_v54 = vrot.slane %v1615_v53, 4 }
  0xa8   : > { %v1620_v39 = vrot.slane %v1618_v40, 5  ;;  %v1636_v24 = vrot.slane %v1634_v37, 5  ;;  %1206 = vst [vmem:[#allocation2 + $0x60] sm:$0x1] %v1205_v43  ;;  %v9180_v5 = vld [vmem:[#allocation2 + $0x64] sm:$0xf]  ;;  %v788_v53 = vsel %vm8582_vm7, %v780_v9, %v787_v56 }
  0xa9   : > { %v3495_v55 = vor.u32 %v3494_v21, %v3491_v15  ;;  %v1350_v34 = vsel %vm8638_vm14, %v6629_v33, %v1349_v61  ;;  %v3522_v0 = vshll.u32 %v9180_v5, 16  ;;  %v3526_v60 = vshrl.u32 %v9180_v5, 16  ;;  %v1396_v28 = vld [vmem:[#allocation2 + $0x64] sm:$0xf]  ;;  %v1023_v52 = vld [vmem:[#allocation2 + $0x74] sm:$0x1] }
  0xaa   : > { %v3511_v12 = vsel %vm8735_vm1, %v9152_v62, %v3510_v38  ;;  %v1621_v25 = vor.u32 %v1620_v39, %v1617_v54  ;;  %v1637_v8 = vsel %vm8735_vm1, %v9156_v19, %v1636_v24  ;;  %1351 = vst [vmem:[#allocation2 + $0x68] sm:$0x1] %v1350_v34  ;;  %v1648_v46 = vshll.u32 %v1396_v28, 16  ;;  %1022 = vst [vmem:[#allocation2 + $0x70] sm:$0xf] %v788_v53 }
  0xab   : > { %v3496_v32 = vrot.slane %v3495_v55, 4  ;;  %v9192_v17 = vrot.slane %v3522_v0, 5  ;;  %v3528_v29 = vrot.slane %v3526_v60, 4  ;;  %v1652_v35 = vshrl.u32 %v1396_v28, 16 }
  0xac   : > { %v1622_v13 = vrot.slane %v1621_v25, 4  ;;  %v9194_v48 = vrot.slane %v1648_v46, 5  ;;  %v1024_v62 = vsel %vm8607_vm11, %v789_v50, %v1023_v52  ;;  %vm459_vm6 = vcmp.gt.f32.partialorder %v9161_v51, 0.0 }
  0xad   : > { %v3501_v19 = vsel %vm8735_vm1, %v3496_v32, %v9137_v63  ;;  %v3529_v40 = vor.u32 %v3528_v29, %v9192_v17  ;;  %v1654_v37 = vrot.slane %v1652_v35, 4  ;;  %1025 = vst [vmem:[#allocation2 + $0x74] sm:$0x1] %v1024_v62  ;;  %v1099_v20 = vld [vmem:[#allocation2 + $0x6c] sm:$0x2]  ;;  %vm460_vm9 = vcmp.gt.f32.partialorder %v9164_v6, 0.0 }
  0xae   : > { %v6821_v15 = vcombine.low %v3501_v19, %v3511_v12  ;;  %v1627_v9 = vsel %vm8735_vm1, %v1622_v13, %v9139_v23  ;;  %v6612_v56 = vrot.slane %v1099_v20, 9  ;;  %v1207_v21 = vld [vmem:[#allocation2 + $0x6c] sm:$0x1]  ;;  %v524_v60 = vsel %vm459_vm6, %v9161_v51, %v9172_v16 }
  0xaf   : > { %v6662_v50 = vcombine.low %v1627_v9, %v1637_v8  ;;  %v3317_v43 = vld [vmem:[#allocation2 + $0x60] sm:$0xf]  ;;  %v3530_v63 = vrot.slane %v3529_v40, 4  ;;  %v1655_v61 = vor.u32 %v1654_v37, %v9194_v48  ;;  %v525_v28 = vsel %vm460_vm9, %v9164_v6, %v493_v44 }
  0xb0   : > { %v1395_v33 = vld [vmem:[#allocation2 + $0x60] sm:$0xf]  ;;  %7741 = vmatprep.mubr.bf16.mxu0 %v6821_v15  ;;  %v3513_v38 = vshrl.u32 %v3317_v43, 16  ;;  %v3516_v54 = vshll.u32 %v3317_v43, 16  ;;  %v1208_v0 = vsel %vm8607_vm11, %v6612_v56, %v1207_v21  ;;  %v7085_v29 = vpack.c.bf16 %v524_v60, %v524_v60 }
  0xb1   : > { %v1639_v39 = vshrl.u32 %v1395_v33, 16  ;;  %v1642_v24 = vshll.u32 %v1395_v33, 16  ;;  %7550 = vmatmul.mubr.bf16.gmra.mrb[12].mxu1 %v6662_v50  ;;  %v9212_v23 = vld [vmem:[#allocation2 + $0x68] sm:$0x1]  ;;  %v1656_v34 = vrot.slane %v1655_v61, 4  ;;  %v7086_v35 = vpack.c.bf16 %v525_v28, %v525_v28 }
  0xb2   : > { %v1435_v55 = vld [vmem:[#allocation2 + $0x68] sm:$0x1]  ;;  %v3515_v52 = vrot.slane %v3513_v38, 4  ;;  %v3518_v12 = vrot.slane %v3516_v54, 5  ;;  %v3532_v25 = vshll.u32 %v9212_v23, 16  ;;  %v9230_v51 = vsel %vm9034_vm0, %v6841_v10, %v4130_v14  ;;  %v7284_v38 = vld [vmem:[%s8535_s29 + $0x50] sm:$0xff]  }
  0xb3   : > { %v1641_v8 = vrot.slane %v1639_v39, 4  ;;  %1209 = vst [vmem:[#allocation2 + $0x6c] sm:$0x1] %v1208_v0  ;;  %v1644_v46 = vrot.slane %v1642_v24, 5  ;;  %v1658_v32 = vshll.u32 %v1435_v55, 16  ;;  %v4132_v6 = vrot.slane %v4130_v14, 4 }
  0xb4   : > { %v3519_v13 = vor.u32 %v3518_v12, %v3515_v52  ;;  %v3534_v53 = vrot.slane %v3532_v25, 5  ;;  %v1243_v62 = vld [vmem:[#allocation2 + $0x70] sm:$0x8]  ;;  %v1352_v19 = vld [vmem:[#allocation2 + $0x74] sm:$0x1]  ;;  %v791_v15 = vshrl.u32 %v7085_v29, 16 }
  0xb5   : > { %v1645_v16 = vor.u32 %v1644_v46, %v1641_v8  ;;  %v1660_v40 = vrot.slane %v1658_v32, 5  ;;  %v6630_v37 = vrot.slane %v1243_v62, 11  ;;  %v1398_v20 = vld [vmem:[#allocation2 + $0x70] sm:$0xf]  ;;  %v794_v44 = vshll.u32 %v7085_v29, 16 }
  0xb6   : > { %v3520_v9 = vrot.slane %v3519_v13, 4  ;;  %v3535_v56 = vsel %vm8735_vm1, %v3530_v63, %v3534_v53  ;;  %v1672_v21 = vshll.u32 %v1398_v20, 16  ;;  %v1676_v50 = vshrl.u32 %v1398_v20, 16  ;;  %v1026_v63 = vld [vmem:[#allocation2 + $0x78] sm:$0xf] }
  0xb7   : > { %v1646_v11 = vrot.slane %v1645_v16, 4  ;;  %v1661_v10 = vsel %vm8735_vm1, %v1656_v34, %v1660_v40  ;;  %v1353_v7 = vsel %vm8638_vm14, %v6630_v37, %v1352_v19  ;;  %v793_v14 = vrot.slane %v791_v15, 7  ;;  %v1030_v52 = vld [vmem:[#allocation2 + $0x80] sm:$0x1]  ;;  %v8355_v46 = vld [vmem:[#allocation2 + $0x2c] sm:$0x1] }
  0xb8   : > { %v3525_v43 = vsel %vm8735_vm1, %v3520_v9, %v9192_v17  ;;  %1354 = vst [vmem:[#allocation2 + $0x74] sm:$0x1] %v1353_v7  ;;  %v9243_v33 = vrot.slane %v1672_v21, 5  ;;  %v1678_v61 = vrot.slane %v1676_v50, 4  ;;  %v799_v34 = vshrl.u32 %v7086_v35, 16  ;;  %v7285_v37 = vld [vmem:[%s8535_s29 + $0x58] sm:$0xff]  }
  0xb9   : > { %v6822_v54 = vcombine.low %v3525_v43, %v3535_v56  ;;  %v1651_v39 = vsel %vm8735_vm1, %v1646_v11, %v9194_v48  ;;  %v797_v55 = vrot.slane %v793_v14, 4  ;;  %v796_v12 = vor.u32 %v794_v44, %v793_v14  ;;  %v4053_v29 = vld [vmem:[#allocation2 + $0x30] sm:$0xe]  ;;  %v8264_v21 = vld [vmem:[%s10696_s4 + $0x188] sm:$0xff]   ;;  %v8356_v50 = vld [vmem:[#allocation2 + $0x34] sm:$0xf] }
  0xba   : > { %v1397_v24 = vld [vmem:[#allocation2 + $0x6c] sm:$0xf]  ;;  %v6663_v0 = vcombine.low %v1651_v39, %v1661_v10  ;;  %v1679_v17 = vor.u32 %v1678_v61, %v9243_v33  ;;  %v801_v25 = vrot.slane %v799_v34, 7  ;;  %v802_v8 = vshll.u32 %v7086_v35, 16 }
  0xbb   : > { %v1663_v60 = vshrl.u32 %v1397_v24, 16  ;;  %v1666_v28 = vshll.u32 %v1397_v24, 16  ;;  %7742 = vmatmul.mubr.bf16.gmra.mrb[12].mxu0 %v6822_v54  ;;  %v4133_v32 = vrot.slane %v8355_v46, 5  ;;  %v7173_v62 = vunpack.c.l.bf16 %v7284_v38  ;;  %v8266_v46 = vld [vmem:[%s10696_s4 + $0x190] sm:$0xff]  }
  0xbc   : > { %7553 = vmatprep.mubr.bf16.mxu1 %v6663_v0  ;;  %7777 = vmatprep.mubr.bf16.mxu0 %v6871_v3  ;;  %v1680_v53 = vrot.slane %v1679_v17, 4  ;;  %v804_v19 = vor.u32 %v802_v8, %v801_v25  ;;  %v806_v16 = vrot.slane %v801_v25, 4  ;;  %v1027_v40 = vsel %vm8594_vm8, %v796_v12, %v1026_v63  ;;  %v9285_v0 = vld [vmem:[#allocation2 + $0x3c] sm:$0xe]  ;;  %v9302_v25 = vld [vmem:[%s10694_s2] ss:$0 sm:$0xff] }
  0xbd   : > { %v1665_v48 = vrot.slane %v1663_v60, 4  ;;  %v1668_v13 = vrot.slane %v1666_v28, 5  ;;  %v4134_v35 = vsel %vm9034_vm0, %v4132_v6, %v4133_v32  ;;  %1028 = vst [vmem:[#allocation2 + $0x78] sm:$0xf] %v1027_v40  ;;  %v7174_v9 = vunpack.c.h.bf16 %v7284_v38 }
  0xbe   : > { %v6873_v15 = vcombine.low %v9230_v51, %v4134_v35  ;;  %v390_v58 = vsub.f32 %v7173_v62, %v9013_v31  ;;  %v805_v3 = vsel %vm8582_vm7, %v797_v55, %v804_v19  ;;  %v1031_v56 = vsel %vm8607_vm11, %v806_v16, %v1030_v52 }
  0xbf   : > { %v1669_v20 = vor.u32 %v1668_v13, %v1665_v48  ;;  %v1436_v27 = vld [vmem:[#allocation2 + $0x74] sm:$0x1]  ;;  %v6842_v6 = vrot.slane %v4053_v29, 9  ;;  %v4137_v11 = vrot.slane %v8356_v50, 5  ;;  %1029 = vst [vmem:[#allocation2 + $0x7c] sm:$0xf] %v805_v3  ;;  %v391_v51 = vsub.f32 %v7174_v9, %v9013_v31 }
  0xc0   : > { %v1682_v7 = vshll.u32 %v1436_v27, 16  ;;  %1032 = vst [vmem:[#allocation2 + $0x80] sm:$0x1] %v1031_v56  ;;  %v429_v14 = vmul.f32 %v8954_v4, %v390_v58  ;;  %v4140_v44 = vrot.slane %v8946_v59, 5  ;;  %v7177_v63 = vunpack.c.l.bf16 %v7285_v37  ;;  %v8268_v58 = vld [vmem:[%s10696_s4 + $0x198] sm:$0xff]  }
  0xc1   : > { %v1670_v10 = vrot.slane %v1669_v20, 4  ;;  %v9271_v43 = vsel %vm9034_vm0, %v6842_v6, %v4137_v11  ;;  %v4139_v61 = vrot.slane %v4137_v11, 4  ;;  %v430_v39 = vmul.f32 %v8954_v4, %v391_v51  ;;  %v8357_v4 = vld [vmem:[%s10696_s4 + $0x180] sm:$0xff]  }
  0xc2   : > { %v1684_v54 = vrot.slane %v1682_v7, 5  ;;  %vm461_vm10 = vcmp.gt.f32.partialorder %v429_v14, 0.0  ;;  %v494_v24 = vmul.f32 %v8565_v26, %v429_v14  ;;  %v7178_v59 = vunpack.c.h.bf16 %v7285_v37  ;;  %v1033_v7 = vld [vmem:[#allocation2 + $0x84] sm:$0xf] }
  0xc3   : > { %v1675_v38 = vsel %vm8735_vm1, %v1670_v10, %v9243_v33  ;;  %7778 = vmatmul.mubr.bf16.vlgmr.msra.gmra.mrb[0].mxu0 %v6872_v47  ;;  %v4141_v55 = vsel %vm9034_vm0, %v4139_v61, %v4140_v44  ;;  %v392_v34 = vsub.f32 %v7177_v63, %v9013_v31  ;;  %vm462_vm12 = vcmp.gt.f32.partialorder %v430_v39, 0.0  ;;  %v9295_v47 = vld [vmem:[%s8535_s29 + $0x60] sm:$0xff]  }
  0xc4   : > { %v1685_v33 = vsel %vm8735_vm1, %v1680_v53, %v1684_v54  ;;  %7810 = vmatpush3.bf16.msra.mxu0 %v8357_v4  ;;  %7781 = vmatprep.mubr.bf16.mxu0 %v6873_v15  ;;  %v495_v22 = vmul.f32 %v8565_v26, %v430_v39  ;;  %v6874_v1 = vcombine.low %v9271_v43, %v4141_v55  ;;  %v1100_v28 = vld [vmem:[#allocation2 + $0x78] sm:$0x2]  ;;  %v1210_v17 = vld [vmem:[#allocation2 + $0x78] sm:$0x1]  ;;  %v6843_v13 = vrot.slane %v9285_v0, 9  ;;  %v8271_v61 = vld [vmem:[%s10696_s4 + $0x1a0] sm:$0xff]  }
  0xc5   : > { %v6664_v60 = vcombine.low %v1675_v38, %v1685_v33  ;;  %7811 = vmatprep.subr.bf16.mxu0 %v8264_v21  ;;  %v526_v52 = vsel %vm461_vm10, %v429_v14, %v494_v24  ;;  %v393_v12 = vsub.f32 %v7178_v59, %v9013_v31  ;;  %v431_v8 = vmul.f32 %v9302_v25, %v392_v34  ;;  %v1037_v14 = vld [vmem:[#allocation2 + $0x8c] sm:$0x1]  ;;  %v8359_v38 = vld [vmem:[#allocation2 + $0x40] sm:$0xf] }
  0xc6   : > { %v6613_v32 = vrot.slane %v1100_v28, 9  ;;  %v527_v29 = vsel %vm462_vm12, %v430_v39, %v495_v22  ;;  %v7087_v48 = vpack.c.bf16 %v526_v52, %v526_v52  ;;  %v1244_v53 = vld [vmem:[#allocation2 + $0x7c] sm:$0x8]  ;;  %v7181_v35 = vunpack.c.l.bf16 %v9295_v47  ;;  %v8360_v39 = vld [vmem:[#allocation2 + $0x44] sm:$0x1] }
  0xc7   : > { %7554 = vmatmul.mubr.bf16.gmra.mrb[16].mxu1 %v6664_v60  ;;  %v1355_v62 = vld [vmem:[#allocation2 + $0x80] sm:$0x1]  ;;  %v1400_v31 = vld [vmem:[#allocation2 + $0x7c] sm:$0xf]  ;;  %v7088_v19 = vpack.c.bf16 %v527_v29, %v527_v29  ;;  %v432_v16 = vmul.f32 %v9302_v25, %v393_v12  ;;  %v496_v40 = vmul.f32 %v8565_v26, %v431_v8  ;;  %v6631_v20 = vrot.slane %v1244_v53, 11 }
  0xc8   : > { %v1211_v37 = vsel %vm8607_vm11, %v6613_v32, %v1210_v17  ;;  %v1696_v15 = vshll.u32 %v1400_v31, 16  ;;  %v1700_v9 = vshrl.u32 %v1400_v31, 16  ;;  %7812 = vmatpush3.bf16.msra.mxu0 %v8264_v21  ;;  %v808_v27 = vshrl.u32 %v7087_v48, 16 }
  0xc9   : > { %1212 = vst [vmem:[#allocation2 + $0x78] sm:$0x1] %v1211_v37  ;;  %v811_v3 = vshll.u32 %v7087_v48, 16  ;;  %v816_v56 = vshrl.u32 %v7088_v19, 16  ;;  %v819_v6 = vshll.u32 %v7088_v19, 16  ;;  %7813 = vmatprep.subr.bf16.mxu0 %v8266_v46  ;;  %v1356_v50 = vsel %vm8638_vm14, %v6631_v20, %v1355_v62  ;;  %v8275_v48 = vld [vmem:[%s10696_s4 + $0x1a8] sm:$0xff]  }
  0xca   : > { %v9319_v11 = vrot.slane %v1696_v15, 5  ;;  %v1702_v10 = vrot.slane %v1700_v9, 4  ;;  %vm463_vm13 = vcmp.gt.f32.partialorder %v431_v8, 0.0  ;;  %1357 = vst [vmem:[#allocation2 + $0x80] sm:$0x1] %v1356_v50  ;;  %v810_v21 = vrot.slane %v808_v27, 7 }
  0xcb   : > { %v818_v51 = vrot.slane %v816_v56, 7  ;;  %7782 = vmatmul.mubr.bf16.gmra.mrb[4].mxu0 %v6874_v1  ;;  %vm464_vm15 = vcmp.gt.f32.partialorder %v432_v16, 0.0  ;;  %v497_v43 = vmul.f32 %v8565_v26, %v432_v16  ;;  %v528_v63 = vsel %vm463_vm13, %v431_v8, %v496_v40  ;;  %v9346_v37 = vld [vmem:[%s10693_s1] ss:$0 sm:$0xff]  ;;  %v1040_v56 = vld [vmem:[#allocation2 + $0x90] sm:$0xf] }
  0xcc   : > { %v1703_v44 = vor.u32 %v1702_v10, %v9319_v11  ;;  %v4144_v54 = vrot.slane %v8359_v38, 5  ;;  %v4147_v24 = vrot.slane %v8360_v39, 5  ;;  %7814 = vmatpush3.bf16.msra.mxu0 %v8266_v46  ;;  %v813_v55 = vor.u32 %v811_v3, %v810_v21  ;;  %v1044_v10 = vld [vmem:[#allocation2 + $0x98] sm:$0x1] }
  0xcd   : > { %v814_v59 = vrot.slane %v810_v21, 4  ;;  %v821_v34 = vor.u32 %v819_v6, %v818_v51  ;;  %v823_v0 = vrot.slane %v818_v51, 4  ;;  %7815 = vmatprep.subr.bf16.mxu0 %v8268_v58  ;;  %v529_v4 = vsel %vm464_vm15, %v432_v16, %v497_v43 }
  0xce   : > { %v9326_v33 = vrot.slane %v1703_v44, 4  ;;  %v7089_v22 = vpack.c.bf16 %v528_v63, %v528_v63  ;;  %v4145_v1 = vsel %vm9034_vm0, %v6843_v13, %v4144_v54  ;;  %v1034_v28 = vsel %vm8594_vm8, %v813_v55, %v1033_v7 }
  0xcf   : > { %v822_v60 = vsel %vm8582_vm7, %v814_v59, %v821_v34  ;;  %v1038_v17 = vsel %vm8607_vm11, %v823_v0, %v1037_v14  ;;  %v7090_v52 = vpack.c.bf16 %v529_v4, %v529_v4  ;;  %1035 = vst [vmem:[#allocation2 + $0x84] sm:$0xf] %v1034_v28  ;;  %v4146_v32 = vrot.slane %v4144_v54, 4  ;;  %v4055_v54 = vld [vmem:[#allocation2 + $0x48] sm:$0xe] }
  0xd0   : > { %v1399_v12 = vld [vmem:[#allocation2 + $0x78] sm:$0xf]  ;;  %1036 = vst [vmem:[#allocation2 + $0x88] sm:$0xf] %v822_v60  ;;  %1039 = vst [vmem:[#allocation2 + $0x8c] sm:$0x1] %v1038_v17  ;;  %v7182_v29 = vunpack.c.h.bf16 %v9295_v47  ;;  %7816 = vmatpush3.bf16.msra.mxu0 %v8268_v58  ;;  %v394_v20 = vsub.f32 %v7181_v35, %v9346_v37 }
  0xd1   : > { %v825_v8 = vshrl.u32 %v7089_v22, 16  ;;  %v828_v46 = vshll.u32 %v7089_v22, 16  ;;  %v1687_v13 = vshrl.u32 %v1399_v12, 16  ;;  %v1690_v53 = vshll.u32 %v1399_v12, 16  ;;  %7817 = vmatprep.subr.bf16.mxu0 %v8271_v61  ;;  %v1437_v19 = vld [vmem:[#allocation2 + $0x80] sm:$0x1] }
  0xd2   : > { %v833_v62 = vshrl.u32 %v7090_v52, 16  ;;  %v836_v31 = vshll.u32 %v7090_v52, 16  ;;  %v4148_v40 = vsel %vm9034_vm0, %v4146_v32, %v4147_v24  ;;  %v395_v15 = vsub.f32 %v7182_v29, %v9346_v37  ;;  %v8279_v47 = vld [vmem:[%s10696_s4 + $0x1b0] sm:$0xff]  }
  0xd3   : > { %v827_v16 = vrot.slane %v825_v8, 7  ;;  %v1689_v9 = vrot.slane %v1687_v13, 4  ;;  %v1692_v58 = vrot.slane %v1690_v53, 5  ;;  %v1706_v27 = vshll.u32 %v1437_v19, 16  ;;  %v8283_v8 = vld [vmem:[%s10696_s4 + $0x1b8] sm:$0xff]  }
  0xd4   : > { %v835_v3 = vrot.slane %v833_v62, 7  ;;  %v6875_v7 = vcombine.low %v4145_v1, %v4148_v40  ;;  %v433_v21 = vmul.f32 %v9302_v25, %v394_v20  ;;  %7818 = vmatpush3.bf16.msra.mxu0 %v8271_v61  ;;  %v434_v63 = vmul.f32 %v9302_v25, %v395_v15  ;;  %v1047_v20 = vld [vmem:[#allocation2 + $0x9c] sm:$0xf]  ;;  %v8362_v15 = vld [vmem:[#allocation2 + $0x4c] sm:$0xf] }
  0xd5   : > { %v830_v6 = vor.u32 %v828_v46, %v827_v16  ;;  %v831_v50 = vrot.slane %v827_v16, 4  ;;  %v1693_v51 = vor.u32 %v1692_v58, %v1689_v9  ;;  %v1708_v14 = vrot.slane %v1706_v27, 5  ;;  %7819 = vmatprep.subr.bf16.mxu0 %v8275_v48 }
  0xd6   : > { %v838_v43 = vor.u32 %v836_v31, %v835_v3  ;;  %v840_v44 = vrot.slane %v835_v3, 4  ;;  %7785 = vmatprep.mubr.bf16.mxu0 %v6875_v7  ;;  %vm465_vm2 = vcmp.gt.f32.partialorder %v433_v21, 0.0  ;;  %v498_v38 = vmul.f32 %v8565_v26, %v433_v21  ;;  %v1101_v24 = vld [vmem:[#allocation2 + $0x84] sm:$0x2]  ;;  %v1213_v55 = vld [vmem:[#allocation2 + $0x84] sm:$0x1] }
  0xd7   : > { %v1041_v35 = vsel %vm8594_vm8, %v830_v6, %v1040_v56  ;;  %v1694_v61 = vrot.slane %v1693_v51, 4  ;;  %v1709_v39 = vsel %vm8735_vm1, %v9326_v33, %v1708_v14  ;;  %v6614_v0 = vrot.slane %v1101_v24, 9  ;;  %v1245_v4 = vld [vmem:[#allocation2 + $0x88] sm:$0x8]  ;;  %v1358_v22 = vld [vmem:[#allocation2 + $0x8c] sm:$0x1] }
  0xd8   : > { %v839_v59 = vsel %vm8582_vm7, %v831_v50, %v838_v43  ;;  %1042 = vst [vmem:[#allocation2 + $0x90] sm:$0xf] %v1041_v35  ;;  %v1045_v34 = vsel %vm8607_vm11, %v840_v44, %v1044_v10  ;;  %vm466_vm3 = vcmp.gt.f32.partialorder %v434_v63, 0.0  ;;  %v499_v1 = vmul.f32 %v8565_v26, %v434_v63  ;;  %7820 = vmatpush3.bf16.msra.mxu0 %v8275_v48  ;;  %v1402_v17 = vld [vmem:[#allocation2 + $0x88] sm:$0xf]  ;;  %v8288_v6 = vld [vmem:[%s10696_s4 + $0x1c0] sm:$0xff]  }
  0xd9   : > { %1043 = vst [vmem:[#allocation2 + $0x94] sm:$0xf] %v839_v59  ;;  %1046 = vst [vmem:[#allocation2 + $0x98] sm:$0x1] %v1045_v34  ;;  %v530_v33 = vsel %vm465_vm2, %v433_v21, %v498_v38  ;;  %v1699_v60 = vsel %vm8735_vm1, %v1694_v61, %v9319_v11  ;;  %v6632_v28 = vrot.slane %v1245_v4, 11  ;;  %v6844_v12 = vrot.slane %v4055_v54, 9  ;;  %7821 = vmatprep.subr.bf16.mxu0 %v8279_v47 }
  0xda   : > { %v7091_v52 = vpack.c.bf16 %v530_v33, %v530_v33  ;;  %v6665_v46 = vcombine.low %v1699_v60, %v1709_v39  ;;  %v1214_v32 = vsel %vm8607_vm11, %v6614_v0, %v1213_v55  ;;  %v1720_v29 = vshll.u32 %v1402_v17, 16  ;;  %v9378_v48 = vld [vmem:[%s8535_s29 + $0x68] sm:$0xff]   ;;  %v1051_v4 = vld [vmem:[#allocation2 + $0xa4] sm:$0x1] }
  0xdb   : > { %v1724_v13 = vshrl.u32 %v1402_v17, 16  ;;  %1215 = vst [vmem:[#allocation2 + $0x84] sm:$0x1] %v1214_v32  ;;  %v1359_v11 = vsel %vm8638_vm14, %v6632_v28, %v1358_v22  ;;  %v531_v53 = vsel %vm466_vm3, %v434_v63, %v499_v1  ;;  %v4151_v9 = vrot.slane %v8362_v15, 5  ;;  %v4056_v17 = vld [vmem:[#allocation2 + $0x54] sm:$0xe] }
  0xdc   : > { %v842_v62 = vshrl.u32 %v7091_v52, 16  ;;  %v845_v31 = vshll.u32 %v7091_v52, 16  ;;  %7557 = vmatprep.mubr.bf16.mxu1 %v6665_v46  ;;  %1360 = vst [vmem:[#allocation2 + $0x8c] sm:$0x1] %v1359_v11  ;;  %v9383_v19 = vrot.slane %v1720_v29, 5  ;;  %v7092_v40 = vpack.c.bf16 %v531_v53, %v531_v53  ;;  %7822 = vmatpush3.bf16.msra.mxu0 %v8279_v47 }
  0xdd   : > { %v1726_v16 = vrot.slane %v1724_v13, 4  ;;  %v4154_v27 = vrot.slane %v9073_v45, 5  ;;  %v7185_v3 = vunpack.c.l.bf16 %v9378_v48  ;;  %v7186_v56 = vunpack.c.h.bf16 %v9378_v48  ;;  %7823 = vmatprep.subr.bf16.mxu0 %v8283_v8 }
  0xde   : > { %v844_v58 = vrot.slane %v842_v62, 7  ;;  %v850_v21 = vshrl.u32 %v7092_v40, 16  ;;  %v853_v51 = vshll.u32 %v7092_v40, 16  ;;  %v4152_v14 = vsel %vm9034_vm0, %v6844_v12, %v4151_v9 }
  0xdf   : > { %v1727_v50 = vor.u32 %v1726_v16, %v9383_v19  ;;  %v1102_v10 = vld [vmem:[#allocation2 + $0x90] sm:$0x2]  ;;  %v1216_v7 = vld [vmem:[#allocation2 + $0x90] sm:$0x1]  ;;  %v396_v63 = vsub.f32 %v7185_v3, %v9346_v37  ;;  %v4153_v24 = vrot.slane %v4151_v9, 4  ;;  %v397_v16 = vsub.f32 %v7186_v56, %v9346_v37 }
  0xe0   : > { %v6615_v43 = vrot.slane %v1102_v10, 9  ;;  %v1246_v45 = vld [vmem:[#allocation2 + $0x94] sm:$0x8]  ;;  %v1361_v44 = vld [vmem:[#allocation2 + $0x98] sm:$0x1]  ;;  %v847_v47 = vor.u32 %v845_v31, %v844_v58  ;;  %v848_v35 = vrot.slane %v844_v58, 4  ;;  %7824 = vmatpush3.bf16.msra.mxu0 %v8283_v8 }
  0xe1   : > { %v9395_v38 = vrot.slane %v1727_v50, 4  ;;  %v6633_v54 = vrot.slane %v1246_v45, 11  ;;  %v9397_v61 = vld [vmem:[#allocation2 + $0x94] sm:$0xf]  ;;  %v852_v39 = vrot.slane %v850_v21, 7  ;;  %7857 = vmatprep.subr.bf16.mxu0 %v8288_v6  ;;  %v4155_v28 = vsel %vm9034_vm0, %v4153_v24, %v4154_v27 }
  0xe2   : > { %v1217_v55 = vsel %vm8607_vm11, %v6615_v43, %v1216_v7  ;;  %v1744_v59 = vshll.u32 %v9397_v61, 16  ;;  %v1748_v34 = vshrl.u32 %v9397_v61, 16  ;;  %v1048_v0 = vsel %vm8594_vm8, %v847_v47, %v1047_v20  ;;  %v9405_v22 = vld [vmem:[#allocation2 + $0x84] sm:$0xf]  ;;  %v9424_v58 = vld [vmem:[%s8535_s29 + $0x70] sm:$0xff]  }
  0xe3   : > { %1218 = vst [vmem:[#allocation2 + $0x90] sm:$0x1] %v1217_v55  ;;  %v1362_v1 = vsel %vm8638_vm14, %v6633_v54, %v1361_v44  ;;  %v855_v33 = vor.u32 %v853_v51, %v852_v39  ;;  %v857_v60 = vrot.slane %v852_v39, 4  ;;  %1049 = vst [vmem:[#allocation2 + $0x9c] sm:$0xf] %v1048_v0  ;;  %v1711_v12 = vshrl.u32 %v9405_v22, 16 }
  0xe4   : > { %v1438_v52 = vld [vmem:[#allocation2 + $0x8c] sm:$0x1]  ;;  %v1714_v8 = vshll.u32 %v9405_v22, 16  ;;  %1363 = vst [vmem:[#allocation2 + $0x98] sm:$0x1] %v1362_v1  ;;  %v9413_v46 = vrot.slane %v1744_v59, 5  ;;  %v6876_v11 = vcombine.low %v4152_v14, %v4155_v28  ;;  %v435_v20 = vmul.f32 %v9302_v25, %v396_v63 }
  0xe5   : > { %v1750_v32 = vrot.slane %v1748_v34, 4  ;;  %v1730_v29 = vshll.u32 %v1438_v52, 16  ;;  %v856_v13 = vsel %vm8582_vm7, %v848_v35, %v855_v33  ;;  %v1052_v48 = vsel %vm8607_vm11, %v857_v60, %v1051_v4 }
  0xe6   : > { %v1713_v53 = vrot.slane %v1711_v12, 4  ;;  %v1716_v62 = vrot.slane %v1714_v8, 5  ;;  %1050 = vst [vmem:[#allocation2 + $0xa0] sm:$0xf] %v856_v13  ;;  %1053 = vst [vmem:[#allocation2 + $0xa4] sm:$0x1] %v1052_v48  ;;  %7786 = vmatmul.mubr.bf16.gmra.mrb[8].mxu0 %v6876_v11  ;;  %v436_v6 = vmul.f32 %v9302_v25, %v397_v16  ;;  %v500_v56 = vmul.f32 %v8565_v26, %v435_v20 }
  0xe7   : > { %v1751_v31 = vor.u32 %v1750_v32, %v9413_v46  ;;  %v1732_v40 = vrot.slane %v1730_v29, 5  ;;  %v6845_v15 = vrot.slane %v4056_v17, 9  ;;  %v4158_v9 = vrot.slane %v9120_v18, 5 }
  0xe8   : > { %v1717_v27 = vor.u32 %v1716_v62, %v1713_v53  ;;  %v4161_v50 = vrot.slane %v9166_v36, 5  ;;  %vm467_vm4 = vcmp.gt.f32.partialorder %v435_v20, 0.0  ;;  %vm468_vm5 = vcmp.gt.f32.partialorder %v436_v6, 0.0  ;;  %v1054_v62 = vld [vmem:[#allocation2 + $0xa8] sm:$0xf] }
  0xe9   : > { %v1752_v3 = vrot.slane %v1751_v31, 4  ;;  %v1733_v10 = vsel %vm8735_vm1, %v9395_v38, %v1732_v40  ;;  %v9434_v7 = vsel %vm9034_vm0, %v6845_v15, %v4158_v9  ;;  %v501_v14 = vmul.f32 %v8565_v26, %v436_v6 }
  0xea   : > { %v1718_v18 = vrot.slane %v1717_v27, 4  ;;  %v9436_v21 = vld [vmem:[#allocation2 + $0x90] sm:$0xf]  ;;  %v1103_v51 = vld [vmem:[#allocation2 + $0x9c] sm:$0x2]  ;;  %v7189_v43 = vunpack.c.l.bf16 %v9424_v58  ;;  %v532_v63 = vsel %vm467_vm4, %v435_v20, %v500_v56 }
  0xeb   : > { %v1439_v45 = vld [vmem:[#allocation2 + $0x98] sm:$0x1]  ;;  %v1735_v44 = vshrl.u32 %v9436_v21, 16  ;;  %v1738_v47 = vshll.u32 %v9436_v21, 16  ;;  %v6616_v35 = vrot.slane %v1103_v51, 9  ;;  %v533_v24 = vsel %vm468_vm5, %v436_v6, %v501_v14 }
  0xec   : > { %v1723_v38 = vsel %vm8735_vm1, %v1718_v18, %v9383_v19  ;;  %v1754_v54 = vshll.u32 %v1439_v45, 16  ;;  %v1219_v39 = vld [vmem:[#allocation2 + $0x9c] sm:$0x1]  ;;  %v7093_v55 = vpack.c.bf16 %v532_v63, %v532_v63  ;;  %v7094_v52 = vpack.c.bf16 %v533_v24, %v533_v24  ;;  %v1058_v18 = vld [vmem:[#allocation2 + $0xb0] sm:$0x1] }
  0xed   : > { %v6666_v59 = vcombine.low %v1723_v38, %v1733_v10  ;;  %v1737_v34 = vrot.slane %v1735_v44, 4  ;;  %v1740_v0 = vrot.slane %v1738_v47, 5  ;;  %v1220_v4 = vsel %vm8607_vm11, %v6616_v35, %v1219_v39  ;;  %v1247_v1 = vld [vmem:[#allocation2 + $0xa0] sm:$0x8]  ;;  %v1364_v33 = vld [vmem:[#allocation2 + $0xa4] sm:$0x1] }
  0xee   : > { %v1756_v60 = vrot.slane %v1754_v54, 5  ;;  %1221 = vst [vmem:[#allocation2 + $0x9c] sm:$0x1] %v1220_v4  ;;  %v6634_v28 = vrot.slane %v1247_v1, 11  ;;  %v9447_v17 = vld [vmem:[#allocation2 + $0xa0] sm:$0xf]  ;;  %v7190_v51 = vunpack.c.h.bf16 %v9424_v58  ;;  %v398_v14 = vsub.f32 %v7189_v43, %v9346_v37 }
  0xef   : > { %v859_v12 = vshrl.u32 %v7093_v55, 16  ;;  %7558 = vmatmul.mubr.bf16.gmra.mrb[20].mxu1 %v6666_v59  ;;  %v1741_v19 = vor.u32 %v1740_v0, %v1737_v34  ;;  %v1768_v8 = vshll.u32 %v9447_v17, 16  ;;  %v1772_v32 = vshrl.u32 %v9447_v17, 16  ;;  %v4057_v63 = vld [vmem:[#allocation2 + $0x60] sm:$0xe] }
  0xf0   : > { %v862_v29 = vshll.u32 %v7093_v55, 16  ;;  %v1757_v13 = vsel %vm8735_vm1, %v1752_v3, %v1756_v60  ;;  %v1365_v48 = vsel %vm8638_vm14, %v6634_v28, %v1364_v33  ;;  %v867_v53 = vshrl.u32 %v7094_v52, 16 }
  0xf1   : > { %v861_v11 = vrot.slane %v859_v12, 7  ;;  %v1742_v31 = vrot.slane %v1741_v19, 4  ;;  %1366 = vst [vmem:[#allocation2 + $0xa4] sm:$0x1] %v1365_v48  ;;  %v9455_v16 = vrot.slane %v1768_v8, 5  ;;  %v1774_v40 = vrot.slane %v1772_v32, 4 }
  0xf2   : > { %v870_v20 = vshll.u32 %v7094_v52, 16  ;;  %v869_v6 = vrot.slane %v867_v53, 7  ;;  %v4160_v10 = vrot.slane %v4158_v9, 4  ;;  %v399_v58 = vsub.f32 %v7190_v51, %v9346_v37 }
  0xf3   : > { %v864_v15 = vor.u32 %v862_v29, %v861_v11  ;;  %v865_v27 = vrot.slane %v861_v11, 4  ;;  %v1747_v3 = vsel %vm8735_vm1, %v1742_v31, %v9413_v46  ;;  %v1775_v56 = vor.u32 %v1774_v40, %v9455_v16 }
  0xf4   : > { %v6667_v45 = vcombine.low %v1747_v3, %v1757_v13  ;;  %v872_v44 = vor.u32 %v870_v20, %v869_v6  ;;  %v874_v47 = vrot.slane %v869_v6, 4  ;;  %v4162_v46 = vsel %vm9034_vm0, %v4160_v10, %v4161_v50  ;;  %v4058_v6 = vld [vmem:[#allocation2 + $0x6c] sm:$0xe] }
  0xf5   : > { %v1055_v35 = vsel %vm8594_vm8, %v864_v15, %v1054_v62  ;;  %v9465_v38 = vld [vmem:[#allocation2 + $0x9c] sm:$0xf]  ;;  %v1776_v9 = vrot.slane %v1775_v56, 4  ;;  %v437_v43 = vmul.f32 %v9302_v25, %v398_v14  ;;  %v6877_v36 = vcombine.low %v9434_v7, %v4162_v46 }
  0xf6   : > { %1056 = vst [vmem:[#allocation2 + $0xa8] sm:$0xf] %v1055_v35  ;;  %7561 = vmatprep.mubr.bf16.mxu1 %v6667_v45  ;;  %v1759_v54 = vshrl.u32 %v9465_v38, 16  ;;  %v1762_v39 = vshll.u32 %v9465_v38, 16  ;;  %v873_v24 = vsel %vm8582_vm7, %v865_v27, %v872_v44  ;;  %v1059_v55 = vsel %vm8607_vm11, %v874_v47, %v1058_v18  ;;  %v3321_v27 = vld [vmem:[#allocation2 + $0x70] sm:$0xf] }
  0xf7   : > { %1057 = vst [vmem:[#allocation2 + $0xac] sm:$0xf] %v873_v24  ;;  %1060 = vst [vmem:[#allocation2 + $0xb0] sm:$0x1] %v1059_v55  ;;  %v438_v50 = vmul.f32 %v9302_v25, %v399_v58  ;;  %vm469_vm6 = vcmp.gt.f32.partialorder %v437_v43, 0.0  ;;  %v502_v59 = vmul.f32 %v8565_v26, %v437_v43  ;;  %v6846_v1 = vrot.slane %v4057_v63, 9  ;;  %7789 = vmatprep.mubr.bf16.mxu0 %v6877_v36 }
  0xf8   : > { %v1440_v34 = vld [vmem:[#allocation2 + $0xa4] sm:$0x1]  ;;  %v1761_v0 = vrot.slane %v1759_v54, 4  ;;  %v1764_v4 = vrot.slane %v1762_v39, 5  ;;  %v4165_v33 = vrot.slane %v9180_v5, 5  ;;  %v4168_v13 = vrot.slane %v9212_v23, 5 }
  0xf9   : > { %v1778_v60 = vshll.u32 %v1440_v34, 16  ;;  %vm470_vm9 = vcmp.gt.f32.partialorder %v438_v50, 0.0  ;;  %v503_v28 = vmul.f32 %v8565_v26, %v438_v50  ;;  %v534_v52 = vsel %vm469_vm6, %v437_v43, %v502_v59  ;;  %v1061_v43 = vld [vmem:[#allocation2 + $0xb4] sm:$0xf]  ;;  %v1065_v59 = vld [vmem:[#allocation2 + $0xbc] sm:$0x1] }
  0xfa   : > { %v1765_v12 = vor.u32 %v1764_v4, %v1761_v0  ;;  %v7095_v19 = vpack.c.bf16 %v534_v52, %v534_v52  ;;  %v4167_v7 = vrot.slane %v4165_v33, 4  ;;  %v4166_v29 = vsel %vm9034_vm0, %v6846_v1, %v4165_v33  ;;  %v4059_v52 = vld [vmem:[#allocation2 + $0x78] sm:$0xe] }
  0xfb   : > { %v1780_v8 = vrot.slane %v1778_v60, 5  ;;  %v535_v32 = vsel %vm470_vm9, %v438_v50, %v503_v28  ;;  %v6847_v54 = vrot.slane %v4058_v6, 9  ;;  %v4172_v39 = vrot.slane %v3321_v27, 5  ;;  %v9515_v28 = vld [vmem:[#allocation2 + $0x7c] sm:$0xf] }
  0xfc   : > { %v1766_v48 = vrot.slane %v1765_v12, 4  ;;  %v7096_v5 = vpack.c.bf16 %v535_v32, %v535_v32  ;;  %v876_v62 = vshrl.u32 %v7095_v19, 16  ;;  %v879_v20 = vshll.u32 %v7095_v19, 16  ;;  %v3330_v6 = vld [vmem:[#allocation2 + $0x94] sm:$0xf] }
  0xfd   : > { %v1104_v11 = vld [vmem:[#allocation2 + $0xa8] sm:$0x2]  ;;  %v1222_v53 = vld [vmem:[#allocation2 + $0xa8] sm:$0x1]  ;;  %v1781_v31 = vsel %vm8735_vm1, %v1776_v9, %v1780_v8  ;;  %v4169_v15 = vsel %vm9034_vm0, %v4167_v7, %v4168_v13  ;;  %v4173_v34 = vsel %vm9034_vm0, %v6847_v54, %v4172_v39  ;;  %v4174_v0 = vrot.slane %v4172_v39, 4 }
  0xfe   : > { %v6617_v40 = vrot.slane %v1104_v11, 9  ;;  %v1771_v10 = vsel %vm8735_vm1, %v1766_v48, %v9455_v16  ;;  %v1248_v23 = vld [vmem:[#allocation2 + $0xac] sm:$0x8]  ;;  %v1367_v3 = vld [vmem:[#allocation2 + $0xb0] sm:$0x1]  ;;  %v6878_v18 = vcombine.low %v4166_v29, %v4169_v15  ;;  %v878_v35 = vrot.slane %v876_v62, 7 }
  0xff   : > { %v9494_v56 = vld [vmem:[#allocation2 + $0xac] sm:$0xf]  ;;  %v6668_v51 = vcombine.low %v1771_v10, %v1781_v31  ;;  %v6635_v45 = vrot.slane %v1248_v23, 11  ;;  %v884_v63 = vshrl.u32 %v7096_v5, 16  ;;  %v887_v9 = vshll.u32 %v7096_v5, 16 }
 0x100   : > { %v1223_v14 = vsel %vm8607_vm11, %v6617_v40, %v1222_v53  ;;  %v1792_v44 = vshll.u32 %v9494_v56, 16  ;;  %v1796_v47 = vshrl.u32 %v9494_v56, 16  ;;  %7790 = vmatmul.mubr.bf16.gmra.mrb[12].mxu0 %v6878_v18  ;;  %v3322_v16 = vld [vmem:[#allocation2 + $0x74] sm:$0x1]  ;;  %v9504_v55 = vor.u32 %v879_v20, %v878_v35  ;;  %v9520_v7 = vld [vmem:[#allocation2 + $0x80] sm:$0x1] }
 0x101   : > { %1224 = vst [vmem:[#allocation2 + $0xa8] sm:$0x1] %v1223_v14  ;;  %7562 = vmatmul.mubr.bf16.gmra.mrb[24].mxu1 %v6668_v51  ;;  %v1368_v46 = vsel %vm8638_vm14, %v6635_v45, %v1367_v3  ;;  %v882_v36 = vrot.slane %v878_v35, 4  ;;  %v9506_v50 = vrot.slane %v884_v63, 7  ;;  %v4175_v4 = vrot.slane %v3322_v16, 5 }
 0x102   : > { %v9502_v58 = vrot.slane %v1792_v44, 5  ;;  %1369 = vst [vmem:[#allocation2 + $0xb0] sm:$0x1] %v1368_v46  ;;  %v1798_v24 = vrot.slane %v1796_v47, 4  ;;  %v1062_v60 = vsel %vm8594_vm8, %v9504_v55, %v1061_v43  ;;  %v4060_v8 = vld [vmem:[#allocation2 + $0x84] sm:$0xe] }
 0x103   : > { %v889_v1 = vor.u32 %v887_v9, %v9506_v50  ;;  %v891_v33 = vrot.slane %v9506_v50, 4  ;;  %1063 = vst [vmem:[#allocation2 + $0xb4] sm:$0xf] %v1062_v60  ;;  %v4176_v19 = vsel %vm9034_vm0, %v4174_v0, %v4175_v4  ;;  %v3327_v48 = vld [vmem:[#allocation2 + $0x88] sm:$0xf]  ;;  %v6848_v53 = vrot.slane %v4059_v52, 9 }
 0x104   : > { %v1799_v12 = vor.u32 %v1798_v24, %v9502_v58  ;;  %v6879_v13 = vcombine.low %v4173_v34, %v4176_v19  ;;  %v4179_v5 = vrot.slane %v9515_v28, 5  ;;  %v3328_v62 = vld [vmem:[#allocation2 + $0x8c] sm:$0x1]  ;;  %v4061_v31 = vld [vmem:[#allocation2 + $0x90] sm:$0xe]  ;;  %v4182_v15 = vrot.slane %v9520_v7, 5 }
 0x105   : > { %v890_v32 = vsel %vm8582_vm7, %v882_v36, %v889_v1  ;;  %v1066_v29 = vsel %vm8607_vm11, %v891_v33, %v1065_v59  ;;  %v6849_v27 = vrot.slane %v4060_v8, 9  ;;  %v4186_v51 = vrot.slane %v3327_v48, 5  ;;  %v3331_v35 = vld [vmem:[#allocation2 + $0x98] sm:$0x1]  ;;  %v4062_v46 = vld [vmem:[#allocation2 + $0x9c] sm:$0xe] }
 0x106   : > { %1064 = vst [vmem:[#allocation2 + $0xb8] sm:$0xf] %v890_v32  ;;  %1067 = vst [vmem:[#allocation2 + $0xbc] sm:$0x1] %v1066_v29  ;;  %7793 = vmatprep.mubr.bf16.mxu0 %v6879_v13  ;;  %v1800_v23 = vrot.slane %v1799_v12, 4  ;;  %v4180_v3 = vsel %vm9034_vm0, %v6848_v53, %v4179_v5  ;;  %v4181_v18 = vrot.slane %v4179_v5, 4 }
 0x107   : > { %1086 = vst [vmem:[#allocation2 + $0xd0] sm:$0xf] %v890_v32  ;;  %v4189_v47 = vrot.slane %v3328_v62, 5  ;;  %v4187_v9 = vsel %vm9034_vm0, %v6849_v27, %v4186_v51  ;;  %v4188_v16 = vrot.slane %v4186_v51, 4  ;;  %v6850_v59 = vrot.slane %v4061_v31, 9 }
 0x108   : > { %v9528_v11 = vld [vmem:[#allocation2 + $0xa8] sm:$0xf]  ;;  %v4183_v63 = vsel %vm9034_vm0, %v4181_v18, %v4182_v15  ;;  %v3333_v34 = vld [vmem:[#allocation2 + $0xa0] sm:$0xf]  ;;  %v4193_v1 = vrot.slane %v3330_v6, 5  ;;  %v4196_v60 = vrot.slane %v3331_v35, 5 }
 0x109   : > { %v1783_v40 = vshrl.u32 %v9528_v11, 16  ;;  %v1786_v20 = vshll.u32 %v9528_v11, 16  ;;  %v1441_v10 = vld [vmem:[#allocation2 + $0xb0] sm:$0x1]  ;;  %v6880_v36 = vcombine.low %v4180_v3, %v4183_v63  ;;  %v4190_v4 = vsel %vm9034_vm0, %v4188_v16, %v4189_v47  ;;  %v3334_v52 = vld [vmem:[#allocation2 + $0xa4] sm:$0x1] }
 0x10a   : > { %v1802_v44 = vshll.u32 %v1441_v10, 16  ;;  %v1105_v39 = vld [vmem:[#allocation2 + $0xb4] sm:$0x2]  ;;  %v1225_v24 = vld [vmem:[#allocation2 + $0xb4] sm:$0x1]  ;;  %v6881_v29 = vcombine.low %v4187_v9, %v4190_v4  ;;  %v4194_v62 = vsel %vm9034_vm0, %v6850_v59, %v4193_v1  ;;  %v4195_v31 = vrot.slane %v4193_v1, 4 }
 0x10b   : > { %v1785_v14 = vrot.slane %v1783_v40, 4  ;;  %v1788_v45 = vrot.slane %v1786_v20, 5  ;;  %v6618_v0 = vrot.slane %v1105_v39, 9  ;;  %7794 = vmatmul.mubr.bf16.gmra.mrb[16].mxu0 %v6880_v36  ;;  %v4063_v13 = vld [vmem:[#allocation2 + $0xa8] sm:$0xe]  ;;  %v6851_v10 = vrot.slane %v4062_v46, 9 }
 0x10c   : > { %v1804_v54 = vrot.slane %v1802_v44, 5  ;;  %v3336_v40 = vld [vmem:[#allocation2 + $0xac] sm:$0xf]  ;;  %v3337_v20 = vld [vmem:[#allocation2 + $0xb0] sm:$0x1]  ;;  %7797 = vmatprep.mubr.bf16.mxu0 %v6881_v29  ;;  %v4197_v18 = vsel %vm9034_vm0, %v4195_v31, %v4196_v60  ;;  %v4200_v51 = vrot.slane %v3333_v34, 5 }
 0x10d   : > { %v1789_v43 = vor.u32 %v1788_v45, %v1785_v14  ;;  %v1249_v8 = vld [vmem:[#allocation2 + $0xb8] sm:$0x8]  ;;  %v1370_v32 = vld [vmem:[#allocation2 + $0xbc] sm:$0x1]  ;;  %v1226_v48 = vsel %vm8607_vm11, %v6618_v0, %v1225_v24  ;;  %v4064_v14 = vld [vmem:[#allocation2 + $0xb4] sm:$0xe]  ;;  %v6882_v44 = vcombine.low %v4194_v62, %v4197_v18 }
 0x10e   : > { %v1805_v19 = vsel %vm8735_vm1, %v1800_v23, %v1804_v54  ;;  %v6636_v53 = vrot.slane %v1249_v8, 11  ;;  %v9546_v5 = vld [vmem:[#allocation2 + $0xb8] sm:$0xf]  ;;  %1227 = vst [vmem:[#allocation2 + $0xb4] sm:$0x1] %v1226_v48  ;;  %v4203_v47 = vrot.slane %v3334_v52, 5  ;;  %v4201_v63 = vsel %vm9034_vm0, %v6851_v10, %v4200_v51 }
 0x10f   : > { %v1790_v12 = vrot.slane %v1789_v43, 4  ;;  %v1816_v27 = vshll.u32 %v9546_v5, 16  ;;  %v1820_v6 = vshrl.u32 %v9546_v5, 16  ;;  %v3339_v35 = vld [vmem:[#allocation2 + $0xb8] sm:$0xf]  ;;  %v4202_v9 = vrot.slane %v4200_v51, 4 }
 0x110   : > { %v1371_v3 = vsel %vm8638_vm14, %v6636_v53, %v1370_v32  ;;  %v6852_v16 = vrot.slane %v4063_v13, 9  ;;  %v4207_v43 = vrot.slane %v3336_v40, 5  ;;  %v4210_v54 = vrot.slane %v3337_v20, 5  ;;  %v7289_v39 = vld [vmem:[%s8535_s29 + $0x78] sm:$0xff]   ;;  %s293_s29 = scalar_lea.vmem %s10698_s6, %s10807_s27 }
 0x111   : > { %v1795_v15 = vsel %vm8735_vm1, %v1790_v12, %v9502_v58  ;;  %1372 = vst [vmem:[#allocation2 + $0xbc] sm:$0x1] %v1371_v3  ;;  %v1818_v45 = vrot.slane %v1816_v27, 5  ;;  %v1822_v58 = vrot.slane %v1820_v6, 4  ;;  %v4204_v24 = vsel %vm9034_vm0, %v4202_v9, %v4203_v47  ;;  %v8364_v9 = vld [vmem:[#allocation2] sm:$0xf] }
 0x112   : > { %v6669_v23 = vcombine.low %v1795_v15, %v1805_v19  ;;  %v6853_v36 = vrot.slane %v4064_v14, 9  ;;  %v4214_v59 = vrot.slane %v3339_v35, 5  ;;  %v6883_v34 = vcombine.low %v4201_v63, %v4204_v24  ;;  %v9586_v63 = vld [vmem:[#allocation2 + $0x4] sm:$0xf] }
 0x113   : > { %v1823_v46 = vor.u32 %v1822_v58, %v1818_v45  ;;  %7798 = vmatmul.mubr.bf16.gmra.mrb[20].mxu0 %v6882_v44  ;;  %v4208_v0 = vsel %vm9034_vm0, %v6852_v16, %v4207_v43  ;;  %v4209_v4 = vrot.slane %v4207_v43, 4  ;;  %v7193_v52 = vunpack.c.l.bf16 %v7289_v39 }
 0x114   : > { %7565 = vmatprep.mubr.bf16.mxu1 %v6669_v23  ;;  %v7194_v12 = vunpack.c.h.bf16 %v7289_v39  ;;  %7801 = vmatprep.mubr.bf16.mxu0 %v6883_v34  ;;  %v4216_v29 = vrot.slane %v4214_v59, 4  ;;  %v4215_v62 = vsel %vm9034_vm0, %v6853_v36, %v4214_v59  ;;  %v6679_v16 = vcombine.low %v8364_v9, %v9586_v63 }
 0x115   : > { %v9566_v1 = vld [vmem:[#allocation2 + $0xb4] sm:$0xf]  ;;  %v1824_v60 = vrot.slane %v1823_v46, 4  ;;  %v4211_v32 = vsel %vm9034_vm0, %v4209_v4, %v4210_v54  ;;  %v400_v31 = vsub.f32 %v7193_v52, %v9346_v37  ;;  %v1072_v52 = vld [vmem:[#allocation2 + $0xc8] sm:$0x1] }
 0x116   : > { %v1807_v19 = vshrl.u32 %v9566_v1, 16  ;;  %v1810_v8 = vshll.u32 %v9566_v1, 16  ;;  %v6884_v48 = vcombine.low %v4208_v0, %v4211_v32  ;;  %v401_v40 = vsub.f32 %v7194_v12, %v9346_v37  ;;  %v1068_v0 = vld [vmem:[#allocation2 + $0xc0] sm:$0xf]  ;;  %v9589_v12 = vld [vmem:[#allocation2 + $0x10] sm:$0xf] }
 0x117   : > { %v439_v10 = vmul.f32 %v9302_v25, %v400_v31  ;;  %v8274_v31 = vld [vmem:[%s10696_s4 + $0x88] sm:$0xff]   ;;  %v2485_v57 = vrot.slane %v9589_v12, 5 }
 0x118   : > { %v1442_v13 = vld [vmem:[#allocation2 + $0xbc] sm:$0x1]  ;;  %v1809_v20 = vrot.slane %v1807_v19, 4  ;;  %v1812_v15 = vrot.slane %v1810_v8, 5  ;;  %v440_v23 = vmul.f32 %v9302_v25, %v401_v40  ;;  %v8366_v19 = vld [vmem:[#allocation2 + $0xc] sm:$0xf] }
 0x119   : > { %v3340_v53 = vld [vmem:[#allocation2 + $0xbc] sm:$0x1]  ;;  %v1826_v27 = vshll.u32 %v1442_v13, 16  ;;  %vm471_vm10 = vcmp.gt.f32.partialorder %v439_v10, 0.0  ;;  %v504_v58 = vmul.f32 %v8565_v26, %v439_v10  ;;  %v6680_v8 = vcombine.low %v8366_v19, %v9589_v12  ;;  %v9663_v12 = vld [vmem:[#allocation2 + $0x64] sm:$0xf] }
 0x11a   : > { %v4217_v6 = vrot.slane %v3340_v53, 5  ;;  %v1813_v3 = vor.u32 %v1812_v15, %v1809_v20  ;;  %vm472_vm12 = vcmp.gt.f32.partialorder %v440_v23, 0.0  ;;  %v505_v47 = vmul.f32 %v8565_v26, %v440_v23  ;;  %v9592_v13 = vld [vmem:[#allocation2 + $0x1c] sm:$0xf]  ;;  %v8369_v15 = vld [vmem:[%s10696_s4 + $0x80] sm:$0xff]  }
 0x11b   : > { %v1828_v18 = vrot.slane %v1826_v27, 5  ;;  %7802 = vmatmul.mubr.bf16.gmra.mrb[24].mxu0 %v6884_v48  ;;  %v536_v35 = vsel %vm471_vm10, %v439_v10, %v504_v58  ;;  %v8368_v48 = vld [vmem:[#allocation2 + $0x18] sm:$0xf]  ;;  %v8278_v27 = vld [vmem:[%s10696_s4 + $0x90] sm:$0xff]   ;;  %v9610_v10 = vld [vmem:[#allocation2 + $0x28] sm:$0xf] }
 0x11c   : > { %v4218_v51 = vsel %vm9034_vm0, %v4216_v29, %v4217_v6  ;;  %v1814_v44 = vrot.slane %v1813_v3, 4  ;;  %v537_v46 = vsel %vm472_vm12, %v440_v23, %v505_v47  ;;  %v7097_v43 = vpack.c.bf16 %v536_v35, %v536_v35  ;;  %v1087_v6 = vld [vmem:[#allocation2 + $0xd4] sm:$0x1]  ;;  %v8371_v23 = vld [vmem:[#allocation2 + $0x24] sm:$0xf]  ;;  %v8282_v58 = vld [vmem:[%s10696_s4 + $0x98] sm:$0xff]  }
 0x11d   : > { %v6885_v14 = vcombine.low %v4215_v62, %v4218_v51  ;;  %v1829_v37 = vsel %vm8735_vm1, %v1824_v60, %v1828_v18  ;;  %v7098_v39 = vpack.c.bf16 %v537_v46, %v537_v46  ;;  %v6681_v53 = vcombine.low %v8368_v48, %v9592_v13  ;;  %v9613_v18 = vld [vmem:[#allocation2 + $0x34] sm:$0xf]  ;;  %v8373_v51 = vld [vmem:[#allocation2 + $0x30] sm:$0xf] }
 0x11e   : > { %v1819_v25 = vsel %vm8735_vm1, %v1814_v44, %v1818_v45  ;;  %v893_v24 = vshrl.u32 %v7097_v43, 16  ;;  %v896_v36 = vshll.u32 %v7097_v43, 16  ;;  %v6682_v3 = vcombine.low %v8371_v23, %v9610_v10 }
 0x11f   : > { %7805 = vmatprep.mubr.bf16.mxu0 %v6885_v14  ;;  %v6670_v54 = vcombine.low %v1819_v25, %v1829_v37  ;;  %v901_v59 = vshrl.u32 %v7098_v39, 16  ;;  %v904_v34 = vshll.u32 %v7098_v39, 16  ;;  %v6683_v14 = vcombine.low %v8373_v51, %v9613_v18  ;;  %v8375_v39 = vld [vmem:[#allocation2 + $0x3c] sm:$0xf]  ;;  %v9658_v51 = vld [vmem:[#allocation2 + $0x58] sm:$0xf] }
 0x120   : > { %v895_v26 = vrot.slane %v893_v24, 7  ;;  %v1084_v37 = vsel %vm8594_vm8, %v9504_v55, %v1083_v42  ;;  %v1088_v47 = vsel %vm8607_vm11, %v891_v33, %v1087_v6  ;;  %v8286_v33 = vld [vmem:[%s10696_s4 + $0xa0] sm:$0xff]   ;;  %v3570_v19 = vshll.u32 %v9515_v28, 16  ;;  %v2427_v42 = vld [vmem:[#allocation2 + $0x18] sm:$0xe] }
 0x121   : > { %7566 = vmatmul.mubr.bf16.gmra.mrb[28].mxu1 %v6670_v54  ;;  %v903_v4 = vrot.slane %v901_v59, 7  ;;  %1085 = vst [vmem:[#allocation2 + $0xcc] sm:$0xf] %v1084_v37  ;;  %1089 = vst [vmem:[#allocation2 + $0xd4] sm:$0x1] %v1088_v47  ;;  %v2492_v6 = vrot.slane %v9592_v13, 5 }
 0x122   : > { %7585 = vmatprep.mubr.bf16.mxu1 %v6679_v16  ;;  %v898_v60 = vor.u32 %v896_v36, %v895_v26  ;;  %v899_v45 = vrot.slane %v895_v26, 4  ;;  %v9633_v54 = vld [vmem:[#allocation2 + $0x40] sm:$0xf]  ;;  %v9636_v59 = vld [vmem:[#allocation2 + $0x4c] sm:$0xf]  ;;  %v9654_v23 = vrot.slane %v3570_v19, 5 }
 0x123   : > { %v906_v32 = vor.u32 %v904_v34, %v903_v4  ;;  %v908_v29 = vrot.slane %v903_v4, 4  ;;  %v6684_v24 = vcombine.low %v8375_v39, %v9633_v54  ;;  %v8377_v34 = vld [vmem:[#allocation2 + $0x48] sm:$0xf]  ;;  %v8382_v47 = vld [vmem:[#allocation2 + $0x60] sm:$0xf] }
 0x124   : > { %v1069_v62 = vsel %vm8594_vm8, %v898_v60, %v1068_v0  ;;  %v6685_v26 = vcombine.low %v8377_v34, %v9636_v59  ;;  %10737 = vst [vmem:[#allocation4_spill] sm:$0xff] %v9654_v23  ;;  %v9672_v34 = vld [vmem:[#allocation2 + $0x70] sm:$0xf]  ;;  %v10743_v23 = vcombine.low %v9566_v1, %v9546_v5  ;;  %v9897_v1 = vld [vmem:[%s10696_s4 + $0x200] sm:$0xff]  }
 0x125   : > { %v907_v40 = vsel %vm8582_vm7, %v899_v45, %v906_v32  ;;  %1070 = vst [vmem:[#allocation2 + $0xc0] sm:$0xf] %v1069_v62  ;;  %v1073_v20 = vsel %vm8607_vm11, %v908_v29, %v1072_v52  ;;  %v8292_v45 = vld [vmem:[%s10696_s4 + $0xa8] sm:$0xff]  }
 0x126   : > { %1071 = vst [vmem:[#allocation2 + $0xc4] sm:$0xf] %v907_v40  ;;  %1074 = vst [vmem:[#allocation2 + $0xc8] sm:$0x1] %v1073_v20  ;;  %v8298_v40 = vld [vmem:[%s10696_s4 + $0xb0] sm:$0xff]  }
 0x127   : > { %v2426_v20 = vld [vmem:[#allocation2 + $0xc] sm:$0xe] }
 0x128   : > { %v1107_v0 = vld [vmem:[#allocation2 + $0xcc] sm:$0x2]  ;;  %v1231_v4 = vld [vmem:[#allocation2 + $0xcc] sm:$0x1] }
 0x129   : > { %7586 = vmatmul.mubr.bf16.vlgmr.msra.gmra.mrb[0].mxu1 %v6680_v8  ;;  %v6620_v52 = vrot.slane %v1107_v0, 9  ;;  %v3574_v8 = vshrl.u32 %v9515_v28, 16  ;;  %v2478_v28 = vrot.slane %v9586_v63, 5 }
 0x12a   : > { %7618 = vmatpush3.bf16.msra.mxu1 %v8369_v15  ;;  %7589 = vmatprep.mubr.bf16.mxu1 %v6681_v53  ;;  %v2425_v53 = vld [vmem:[#allocation2] sm:$0xe]  ;;  %v8378_v15 = vld [vmem:[#allocation2 + $0x8] sm:$0x1] }
 0x12b   : > { %7619 = vmatprep.subr.bf16.mxu1 %v8274_v31  ;;  %v1232_v29 = vsel %vm8607_vm11, %v6620_v52, %v1231_v4  ;;  %v6703_v13 = vrot.slane %v2425_v53, 9  ;;  %v2428_v4 = vld [vmem:[#allocation2 + $0x24] sm:$0xe] }
 0x12c   : > { %v1106_v44 = vld [vmem:[#allocation2 + $0xc0] sm:$0x2]  ;;  %v1228_v9 = vld [vmem:[#allocation2 + $0xc0] sm:$0x1]  ;;  %1233 = vst [vmem:[#allocation2 + $0xcc] sm:$0x1] %v1232_v29 }
 0x12d   : > { %v1250_v35 = vld [vmem:[#allocation2 + $0xc4] sm:$0x8]  ;;  %v1373_v25 = vld [vmem:[#allocation2 + $0xc8] sm:$0x1]  ;;  %v6619_v46 = vrot.slane %v1106_v44, 9  ;;  %v8287_v44 = vld [vmem:[#allocation2 + $0x18] sm:$0xff]  }
 0x12e   : > { %7620 = vmatpush3.bf16.msra.mxu1 %v8274_v31  ;;  %v6637_v16 = vrot.slane %v1250_v35, 11  ;;  %v3342_v55 = vld [vmem:[#allocation2 + $0xc4] sm:$0xf]  ;;  %v4065_v43 = vld [vmem:[#allocation2 + $0xc0] sm:$0xe]  ;;  %v6687_v35 = vcombine.low %v8382_v47, %v9663_v12 }
 0x12f   : > { %7621 = vmatprep.subr.bf16.mxu1 %v8278_v27  ;;  %v1229_v50 = vsel %vm8607_vm11, %v6619_v46, %v1228_v9  ;;  %v4221_v36 = vrot.slane %v3342_v55, 5  ;;  %v6854_v60 = vrot.slane %v4065_v43, 9  ;;  %v8383_v9 = vld [vmem:[#allocation2 + $0x14] sm:$0x1]  ;;  %v8304_v46 = vld [vmem:[%s10696_s4 + $0xb8] sm:$0xff]   ;;  %v2487_v55 = vrot.slane %v2485_v57, 4 }
 0x130   : > { %v1374_v49 = vsel %vm8638_vm14, %v6637_v16, %v1373_v25  ;;  %1230 = vst [vmem:[#allocation2 + $0xc0] sm:$0x1] %v1229_v50  ;;  %v6704_v25 = vrot.slane %v2426_v20, 9  ;;  %v2488_v16 = vrot.slane %v8383_v9, 5  ;;  %v6705_v50 = vrot.slane %v2427_v42, 9  ;;  %v9693_v29 = vld [vmem:[%s10696_s4 + $0xc0] sm:$0xff]  }
 0x131   : > { %7590 = vmatmul.mubr.bf16.gmra.mrb[4].mxu1 %v6682_v3  ;;  %1375 = vst [vmem:[#allocation2 + $0xc8] sm:$0x1] %v1374_v49  ;;  %v4223_v32 = vrot.slane %v4221_v36, 4  ;;  %v4222_v62 = vsel %vm9034_vm0, %v6854_v60, %v4221_v36  ;;  %v9656_v3 = vrot.slane %v3574_v8, 4  ;;  %v2480_v49 = vrot.slane %v2478_v28, 4  ;;  %v8294_v9 = vld [vmem:[%s10696_s4 + $0x1c8] sm:$0xff]  }
 0x132   : > { %7593 = vmatprep.mubr.bf16.mxu1 %v6683_v14  ;;  %7622 = vmatpush3.bf16.msra.mxu1 %v8278_v27  ;;  %v2481_v27 = vrot.slane %v8378_v15, 5  ;;  %v8380_v14 = vld [vmem:[#allocation2 + $0x54] sm:$0xf]  ;;  %v8384_v43 = vld [vmem:[#allocation2 + $0x20] sm:$0x1]  ;;  %v9684_v19 = vsel %vm9034_vm0, %v6704_v25, %v2485_v57  ;;  %v9701_v53 = vsel %vm9034_vm0, %v6705_v50, %v2492_v6 }
 0x133   : > { %7623 = vmatprep.subr.bf16.mxu1 %v8282_v58  ;;  %10738 = vst [vmem:[#allocation5_spill] sm:$0xff] %v9656_v3  ;;  %v2495_v39 = vrot.slane %v8384_v43, 5  ;;  %v9675_v60 = vld [vmem:[#allocation2 + $0x7c] sm:$0xf]  ;;  %v2429_v8 = vld [vmem:[#allocation2 + $0x30] sm:$0xe] }
 0x134   : > { %v8389_v57 = vld [vmem:[#allocation2 + $0x2c] sm:$0x1]  ;;  %v4935_v25 = vld [vmem:[#allocation2 + $0x18] sm:$0xf]  ;;  %v4939_v47 = vld [vmem:[#allocation2 + $0x28] sm:$0xf] }
 0x135   : > { %v2502_v15 = vrot.slane %v8389_v57, 5 }
 0x136   : > { %7624 = vmatpush3.bf16.msra.mxu1 %v8282_v58  ;;  %v6686_v58 = vcombine.low %v8380_v14, %v9658_v51  ;;  %v6707_v14 = vrot.slane %v2429_v8, 9 }
 0x137   : > { %7625 = vmatprep.subr.bf16.mxu1 %v8286_v33 }
 0x138   : > { %v3343_v48 = vld [vmem:[#allocation2 + $0xc8] sm:$0x1] }
 0x139   : > { %7594 = vmatmul.mubr.bf16.gmra.mrb[8].mxu1 %v6684_v24  ;;  %v4224_v31 = vrot.slane %v3343_v48, 5  ;;  %v2499_v24 = vrot.slane %v9610_v10, 5  ;;  %v9680_v10 = vsel %vm9034_vm0, %v6703_v13, %v2478_v28  ;;  %v9697_v48 = vsel %vm9034_vm0, %v2487_v55, %v2488_v16  ;;  %v2431_v13 = vld [vmem:[#allocation2 + $0x48] sm:$0xe]  ;;  %v8391_v55 = vld [vmem:[#allocation2 + $0x38] sm:$0x1] }
 0x13a   : > { %7597 = vmatprep.mubr.bf16.mxu1 %v6685_v26  ;;  %7626 = vmatpush3.bf16.msra.mxu1 %v8286_v33  ;;  %v2494_v33 = vrot.slane %v2492_v6, 4  ;;  %v8386_v26 = vld [vmem:[#allocation2 + $0x6c] sm:$0xf]  ;;  %v6706_v28 = vrot.slane %v2428_v4, 9  ;;  %v2509_v50 = vrot.slane %v8391_v55, 5 }
 0x13b   : > { %7627 = vmatprep.subr.bf16.mxu1 %v8292_v45  ;;  %v4225_v63 = vsel %vm9034_vm0, %v4223_v32, %v4224_v31  ;;  %v6688_v0 = vcombine.low %v8386_v26, %v9672_v34  ;;  %v9688_v32 = vsel %vm9034_vm0, %v2480_v49, %v2481_v27  ;;  %v8290_v31 = vld [vmem:[#allocation2 + $0x24] sm:$0xff]   ;;  %v2501_v20 = vrot.slane %v2499_v24, 4  ;;  %v2433_v49 = vld [vmem:[#allocation2 + $0x60] sm:$0xe] }
 0x13c   : > { %v6886_v37 = vcombine.low %v4222_v62, %v4225_v63  ;;  %v2506_v62 = vrot.slane %v9613_v18, 5  ;;  %v9708_v27 = vld [vmem:[#allocation2 + $0x88] sm:$0xf]  ;;  %v8293_v63 = vld [vmem:[#allocation2 + $0x30] sm:$0xff]   ;;  %v2520_v26 = vrot.slane %v9636_v59, 5 }
 0x13d   : > { %v6690_v42 = vcombine.low %v9405_v22, %v9708_v27  ;;  %v9737_v43 = vsel %vm9034_vm0, %v2501_v20, %v2502_v15  ;;  %v4938_v4 = vld [vmem:[#allocation2 + $0x24] sm:$0xf]  ;;  %v8300_v59 = vld [vmem:[%s10696_s4 + $0x1d0] sm:$0xff]   ;;  %v8299_v55 = vld [vmem:[#allocation2 + $0x48] sm:$0xff]  }
 0x13e   : > { %7628 = vmatpush3.bf16.msra.mxu1 %v8292_v45  ;;  %7806 = vmatmul.mubr.bf16.gmra.mrb[28].mxu0 %v6886_v37  ;;  %v8388_v45 = vld [vmem:[#allocation2 + $0x78] sm:$0xf]  ;;  %v9745_v8 = vsel %vm9034_vm0, %v6707_v14, %v2506_v62  ;;  %v2432_v14 = vld [vmem:[#allocation2 + $0x54] sm:$0xe]  ;;  %v8311_v22 = vld [vmem:[%s10696_s4 + $0x1e0] sm:$0xff]  }
 0x13f   : > { %7629 = vmatprep.subr.bf16.mxu1 %v8298_v40  ;;  %7825 = vmatprep.mubr.bf16.mxu0 %v8287_v44  ;;  %v6689_v52 = vcombine.low %v8388_v45, %v9675_v60  ;;  %v8392_v45 = vld [vmem:[%s10696_s4 + $0x1c0] sm:$0xff]  }
 0x141   : > { %7598 = vmatmul.mubr.bf16.gmra.mrb[12].mxu1 %v6686_v58  ;;  %v2430_v58 = vld [vmem:[#allocation2 + $0x3c] sm:$0xe] }
 0x142   : > { %7601 = vmatprep.mubr.bf16.mxu1 %v6687_v35  ;;  %7630 = vmatpush3.bf16.msra.mxu1 %v8298_v40  ;;  %v9706_v40 = vsel %vm9034_vm0, %v2494_v33, %v2495_v39  ;;  %v2513_v35 = vrot.slane %v9633_v54, 5  ;;  %v4936_v33 = vld [vmem:[#allocation2 + $0x1c] sm:$0xf]  ;;  %v9733_v54 = vsel %vm9034_vm0, %v6706_v28, %v2499_v24  ;;  %v6708_v39 = vrot.slane %v2430_v58, 9 }
 0x143   : > { %7631 = vmatprep.subr.bf16.mxu1 %v8304_v46  ;;  %v6709_v24 = vrot.slane %v2431_v13, 9  ;;  %v4987_v28 = vshll.u32 %v4935_v25, 16  ;;  %v4993_v15 = vshll.u32 %v4936_v33, 16  ;;  %v4997_v58 = vshrl.u32 %v4936_v33, 16  ;;  %v8296_v13 = vld [vmem:[#allocation2 + $0x3c] sm:$0xff]  }
 0x144   : > { %v2515_v20 = vrot.slane %v2513_v35, 4  ;;  %v2527_v33 = vrot.slane %v9658_v51, 5 }
 0x145   : > { %v4989_v16 = vrot.slane %v4987_v28, 5 }
 0x146   : > { %7632 = vmatpush3.bf16.msra.mxu1 %v8304_v46  ;;  %v2508_v46 = vrot.slane %v2506_v62, 4  ;;  %7826 = vmatmul.mubr.bf16.vlgmr.msra.gmra.mrb[0].mxu0 %v8290_v31  ;;  %v4984_v31 = vshrl.u32 %v4935_v25, 16  ;;  %v9758_v25 = vsel %vm9034_vm0, %v6708_v39, %v2513_v35  ;;  %v8306_v35 = vld [vmem:[%s10696_s4 + $0x1d8] sm:$0xff]   ;;  %v4937_v39 = vld [vmem:[#allocation2 + $0x20] sm:$0x1]  ;;  %v2529_v6 = vrot.slane %v2527_v33, 4 }
 0x147   : > { %7665 = vmatprep.subr.bf16.mxu1 %v9693_v29  ;;  %7858 = vmatpush3.bf16.msra.mxu0 %v8392_v45  ;;  %v2522_v45 = vrot.slane %v2520_v26, 4 }
 0x148   : > { %7829 = vmatprep.mubr.bf16.mxu0 %v8293_v63  ;;  %7859 = vmatprep.subr.bf16.mxu0 %v8294_v9  ;;  %v9754_v62 = vsel %vm9034_vm0, %v2508_v46, %v2509_v50  ;;  %v5011_v63 = vshll.u32 %v4938_v4, 16  ;;  %v9763_v46 = vsel %vm9034_vm0, %v6709_v24, %v2520_v26  ;;  %v2534_v50 = vrot.slane %v9663_v12, 5  ;;  %v8395_v24 = vld [vmem:[#allocation2 + $0x5c] sm:$0x1]  ;;  %v2434_v12 = vld [vmem:[#allocation2 + $0x6c] sm:$0xe] }
 0x149   : > { %7602 = vmatmul.mubr.bf16.gmra.mrb[16].mxu1 %v6688_v0  ;;  %v8393_v0 = vld [vmem:[#allocation2 + $0x44] sm:$0x1]  ;;  %v4999_v26 = vrot.slane %v4997_v58, 4  ;;  %v2530_v37 = vrot.slane %v8395_v24, 5 }
 0x14a   : > { %7605 = vmatprep.mubr.bf16.mxu1 %v6689_v52  ;;  %v2516_v57 = vrot.slane %v8393_v0, 5  ;;  %v5008_v52 = vshrl.u32 %v4938_v4, 16  ;;  %v8394_v0 = vld [vmem:[#allocation2 + $0x50] sm:$0x1]  ;;  %v4986_v4 = vrot.slane %v4984_v31, 4  ;;  %v2541_v31 = vrot.slane %v9672_v34, 5 }
 0x14b   : > { %v2523_v36 = vrot.slane %v8394_v0, 5  ;;  %7860 = vmatpush3.bf16.msra.mxu0 %v8294_v9  ;;  %v6710_v9 = vrot.slane %v2432_v14, 9  ;;  %v9773_v0 = vrot.slane %v4993_v15, 5  ;;  %v5013_v44 = vrot.slane %v5011_v63, 5  ;;  %v8396_v14 = vld [vmem:[#allocation2 + $0x68] sm:$0x1] }
 0x14c   : > { %7861 = vmatprep.subr.bf16.mxu0 %v8300_v59  ;;  %v9771_v51 = vsel %vm9034_vm0, %v2515_v20, %v2516_v57  ;;  %v5010_v28 = vrot.slane %v5008_v52, 4  ;;  %v5017_v20 = vshll.u32 %v4939_v47, 16  ;;  %v5021_v57 = vshrl.u32 %v4939_v47, 16 }
 0x14d   : > { %v9778_v18 = vsel %vm9034_vm0, %v2522_v45, %v2523_v36  ;;  %v6711_v15 = vrot.slane %v2433_v49, 9  ;;  %v2536_v58 = vrot.slane %v2534_v50, 4  ;;  %v2537_v24 = vrot.slane %v8396_v14, 5  ;;  %v8397_v49 = vld [vmem:[#allocation2 + $0x74] sm:$0x1]  ;;  %v8305_v14 = vld [vmem:[#allocation2 + $0x60] sm:$0xff]  }
 0x14e   : > { %7830 = vmatmul.mubr.bf16.gmra.mrb[4].mxu0 %v8296_v13  ;;  %v4990_v34 = vor.u32 %v4989_v16, %v4986_v4  ;;  %v10739_v52 = vcombine.low %v9436_v21, %v9397_v61  ;;  %v5000_v47 = vor.u32 %v4999_v26, %v9773_v0  ;;  %v5003_v63 = vshll.u32 %v4937_v39, 16  ;;  %v4940_v21 = vld [vmem:[#allocation2 + $0x2c] sm:$0x1]  ;;  %v2436_v45 = vld [vmem:[#allocation2 + $0x84] sm:$0xe] }
 0x14f   : > { %7833 = vmatprep.mubr.bf16.mxu0 %v8299_v55  ;;  %7862 = vmatpush3.bf16.msra.mxu0 %v8300_v59  ;;  %v6712_v13 = vrot.slane %v2434_v12, 9  ;;  %v2543_v16 = vrot.slane %v2541_v31, 4  ;;  %v2544_v61 = vrot.slane %v8397_v49, 5  ;;  %v5014_v59 = vor.u32 %v5013_v44, %v5010_v28  ;;  %v8302_v55 = vld [vmem:[#allocation2 + $0x54] sm:$0xff]  }
 0x150   : > { %7863 = vmatprep.subr.bf16.mxu0 %v8306_v35  ;;  %v9798_v4 = vsel %vm9034_vm0, %v6710_v9, %v2527_v33  ;;  %v9800_v39 = vrot.slane %v5017_v20, 5  ;;  %v5023_v26 = vrot.slane %v5021_v57, 4  ;;  %v2435_v12 = vld [vmem:[#allocation2 + $0x78] sm:$0xe]  ;;  %v9808_v44 = vsel %vm9034_vm0, %v6711_v15, %v2534_v50  ;;  %v4941_v33 = vld [vmem:[#allocation2 + $0x30] sm:$0xf] }
 0x151   : > { %7606 = vmatmul.mubr.bf16.gmra.mrb[20].mxu1 %v6690_v42  ;;  %v9812_v28 = vsel %vm9034_vm0, %v2536_v58, %v2537_v24  ;;  %v9814_v49 = vrot.slane %v4990_v34, 4  ;;  %v4942_v9 = vld [vmem:[#allocation2 + $0x34] sm:$0xf]  ;;  %v9816_v20 = vrot.slane %v5000_v47, 4  ;;  %v9818_v57 = vrot.slane %v5003_v63, 5  ;;  %v8315_v50 = vld [vmem:[%s10696_s4 + $0x1e8] sm:$0xff]  }
 0x152   : > { %7609 = vmatprep.mubr.bf16.mxu1 %v10739_v52  ;;  %v9804_v52 = vsel %vm9034_vm0, %v2529_v6, %v2530_v37  ;;  %v9822_v6 = vsel %vm9034_vm0, %v6712_v13, %v2541_v31  ;;  %v5027_v37 = vshll.u32 %v4940_v21, 16  ;;  %v9829_v15 = vsel %vm9034_vm0, %v2543_v16, %v2544_v61  ;;  %v8319_v16 = vld [vmem:[%s10696_s4 + $0x1f0] sm:$0xff]   ;;  %v8310_v61 = vld [vmem:[#allocation2 + $0x78] sm:$0xff]  }
 0x153   : > { %7864 = vmatpush3.bf16.msra.mxu0 %v8306_v35  ;;  %10740 = vst [vmem:[#allocation6_spill] sm:$0xff] %v9829_v15  ;;  %v9831_v58 = vrot.slane %v5014_v59, 4  ;;  %v6713_v35 = vrot.slane %v2435_v12, 9  ;;  %v2548_v24 = vrot.slane %v9675_v60, 5  ;;  %v5024_v34 = vor.u32 %v5023_v26, %v9800_v39  ;;  %v9869_v60 = vld [vmem:[#allocation2 + $0x4c] sm:$0xf] }
 0x154   : > { %7865 = vmatprep.subr.bf16.mxu0 %v8311_v22  ;;  %v5032_v31 = vshrl.u32 %v4941_v33, 16  ;;  %v5035_v47 = vshll.u32 %v4941_v33, 16  ;;  %v5041_v63 = vshll.u32 %v4942_v9, 16  ;;  %v10741_v21 = vcombine.low %v9465_v38, %v9447_v17  ;;  %v8308_v38 = vld [vmem:[#allocation2 + $0x6c] sm:$0xff]   ;;  %v4944_v33 = vld [vmem:[#allocation2 + $0x3c] sm:$0xf] }
 0x155   : > { %v4996_v59 = vsel %vm8735_vm1, %v9814_v49, %v9773_v0  ;;  %v10742_v17 = vcombine.low %v9528_v11, %v9494_v56  ;;  %v5029_v12 = vrot.slane %v5027_v37, 5  ;;  %v5020_v56 = vsel %vm8735_vm1, %v9831_v58, %v9800_v39 }
 0x156   : > { %7834 = vmatmul.mubr.bf16.gmra.mrb[8].mxu0 %v8302_v55  ;;  %v5006_v55 = vsel %vm8735_vm1, %v9816_v20, %v9818_v57  ;;  %v9865_v11 = vsel %vm9034_vm0, %v6713_v35, %v2548_v24  ;;  %v2550_v0 = vrot.slane %v2548_v24, 4  ;;  %v4943_v20 = vld [vmem:[#allocation2 + $0x38] sm:$0x1]  ;;  %v4947_v57 = vld [vmem:[#allocation2 + $0x48] sm:$0xf]  ;;  %v5025_v37 = vrot.slane %v5024_v34, 4 }
 0x157   : > { %7837 = vmatprep.mubr.bf16.mxu0 %v8305_v14  ;;  %7866 = vmatpush3.bf16.msra.mxu0 %v8311_v22  ;;  %v5045_v14 = vshrl.u32 %v4942_v9, 16  ;;  %v8398_v22 = vld [vmem:[#allocation2 + $0x80] sm:$0x1]  ;;  %v5034_v9 = vrot.slane %v5032_v31, 4  ;;  %v9867_v26 = vrot.slane %v5041_v63, 5  ;;  %v5056_v42 = vshrl.u32 %v4944_v33, 16 }
 0x158   : > { %7867 = vmatprep.subr.bf16.mxu0 %v8315_v50  ;;  %v2551_v49 = vrot.slane %v8398_v22, 5  ;;  %v5059_v36 = vshll.u32 %v4944_v33, 16  ;;  %v2555_v24 = vrot.slane %v9708_v27, 5  ;;  %v5080_v13 = vshrl.u32 %v4947_v57, 16  ;;  %v8323_v34 = vld [vmem:[%s10696_s4 + $0x1f8] sm:$0xff]  }
 0x159   : > { %7610 = vmatmul.mubr.bf16.gmra.mrb[24].mxu1 %v10741_v21  ;;  %v4945_v21 = vld [vmem:[#allocation2 + $0x40] sm:$0xf]  ;;  %v5047_v35 = vrot.slane %v5045_v14, 4  ;;  %v5083_v22 = vshll.u32 %v4947_v57, 16  ;;  %v5089_v63 = vshll.u32 %v9869_v60, 16  ;;  %v5093_v33 = vshrl.u32 %v9869_v60, 16 }
 0x15a   : > { %7613 = vmatprep.mubr.bf16.mxu1 %v10742_v17  ;;  %v5037_v17 = vrot.slane %v5035_v47, 5  ;;  %v5065_v39 = vshll.u32 %v4945_v21, 16  ;;  %v5069_v58 = vshrl.u32 %v4945_v21, 16  ;;  %v9877_v31 = vsel %vm9034_vm0, %v2550_v0, %v2551_v49  ;;  %v8399_v21 = vld [vmem:[#allocation2 + $0x8c] sm:$0x1] }
 0x15b   : > { %7868 = vmatpush3.bf16.msra.mxu0 %v8315_v50  ;;  %v5051_v47 = vshll.u32 %v4943_v20, 16  ;;  %v5030_v27 = vsel %vm8735_vm1, %v5025_v37, %v5029_v12  ;;  %v6714_v14 = vrot.slane %v2436_v45, 9  ;;  %v2558_v57 = vrot.slane %v8399_v21, 5  ;;  %v4946_v0 = vld [vmem:[#allocation2 + $0x44] sm:$0x1] }
 0x15c   : > { %7869 = vmatprep.subr.bf16.mxu0 %v8319_v16  ;;  %v5038_v50 = vor.u32 %v5037_v17, %v5034_v9  ;;  %v5058_v49 = vrot.slane %v5056_v42, 4  ;;  %v5061_v20 = vrot.slane %v5059_v36, 5  ;;  %v9886_v3 = vrot.slane %v5065_v39, 5  ;;  %v9901_v36 = vld [vmem:[#allocation2 + $0x50] sm:$0x1]  ;;  %v8312_v42 = vld [vmem:[#allocation2 + $0x84] sm:$0xff]  }
 0x15d   : > { %v5071_v15 = vrot.slane %v5069_v58, 4  ;;  %v5048_v45 = vor.u32 %v5047_v35, %v9867_v26  ;;  %v2557_v12 = vrot.slane %v2555_v24, 4  ;;  %v5082_v37 = vrot.slane %v5080_v13, 4  ;;  %10745 = vst [vmem:[#allocation7_spill] sm:$0xff] %v9901_v36  ;;  %v8314_v17 = vld [vmem:[#allocation2 + $0x90] sm:$0xff]  }
 0x15e   : > { %7838 = vmatmul.mubr.bf16.gmra.mrb[12].mxu0 %v8308_v38  ;;  %v10744_v38 = vcombine.low %v9680_v10, %v9688_v32  ;;  %v5085_v9 = vrot.slane %v5083_v22, 5  ;;  %v9892_v5 = vcombine.low %v4996_v59, %v5006_v55  ;;  %v9903_v10 = vrot.slane %v5089_v63, 5  ;;  %v4950_v55 = vld [vmem:[#allocation2 + $0x54] sm:$0xf]  ;;  %v2437_v22 = vld [vmem:[#allocation2 + $0x90] sm:$0xe] }
 0x15f   : > { %7841 = vmatprep.mubr.bf16.mxu0 %v8310_v61  ;;  %7870 = vmatpush3.bf16.msra.mxu0 %v8319_v16  ;;  %v5095_v32 = vrot.slane %v5093_v33, 4  ;;  %v9905_v16 = vcombine.low %v5020_v56, %v5030_v27  ;;  %v9907_v13 = vrot.slane %v5038_v50, 4  ;;  %v9909_v61 = vrot.slane %v5051_v47, 5  ;;  %v8400_v63 = vld [vmem:[#allocation2 + $0x94] sm:$0xf] }
 0x160   : > { %7871 = vmatprep.subr.bf16.mxu0 %v8323_v34  ;;  %v5075_v59 = vshll.u32 %v4946_v0, 16  ;;  %v9913_v39 = vsel %vm9034_vm0, %v6714_v14, %v2555_v24  ;;  %v5062_v58 = vor.u32 %v5061_v20, %v5058_v49  ;;  %v5072_v35 = vor.u32 %v5071_v15, %v9886_v3  ;;  %v9916_v21 = vld [vmem:[#allocation2 + $0x58] sm:$0xf]  ;;  %v8401_v50 = vld [vmem:[#allocation2 + $0xa0] sm:$0xf]  ;;  %v8313_v24 = vld [vmem:[%s10696_s4 + $0xc8] sm:$0xff]  }
 0x161   : > { %7614 = vmatmul.mubr.bf16.gmra.mrb[28].mxu1 %v10743_v23  ;;  %v2562_v33 = vrot.slane %v8400_v63, 5  ;;  %10746 = vst [vmem:[#allocation8_spill] sm:$0xff] %v9916_v21  ;;  %v9918_v56 = vrot.slane %v5048_v45, 4  ;;  %v9922_v47 = vsel %vm9034_vm0, %v2557_v12, %v2558_v57  ;;  %v5086_v27 = vor.u32 %v5085_v9, %v5082_v37 }
 0x162   : > { %7633 = vmatprep.mubr.bf16.mxu1 %v10744_v38  ;;  %10747 = vst [vmem:[#allocation9_spill] sm:$0xff] %v9922_v47  ;;  %v2569_v0 = vrot.slane %v8401_v50, 5  ;;  %v5096_v15 = vor.u32 %v5095_v32, %v9903_v10  ;;  %v5099_v14 = vshll.u32 %v9901_v36, 16  ;;  %v5104_v49 = vshrl.u32 %v4950_v55, 16  ;;  %v8402_v50 = vld [vmem:[#allocation2 + $0x98] sm:$0x1] }
 0x163   : > { %7872 = vmatpush3.bf16.msra.mxu0 %v8323_v34  ;;  %v2438_v34 = vld [vmem:[#allocation2 + $0x9c] sm:$0xe]  ;;  %v5107_v20 = vshll.u32 %v4950_v55, 16  ;;  %v5077_v38 = vrot.slane %v5075_v59, 5  ;;  %v6715_v57 = vrot.slane %v2437_v22, 9  ;;  %v5113_v45 = vshll.u32 %v9916_v21, 16 }
 0x164   : > { %7905 = vmatprep.subr.bf16.mxu0 %v9897_v1  ;;  %v5117_v12 = vshrl.u32 %v9916_v21, 16  ;;  %v10748_v37 = vcombine.low %v9684_v19, %v9697_v48  ;;  %v5063_v9 = vrot.slane %v5062_v58, 4  ;;  %v5073_v63 = vrot.slane %v5072_v35, 4  ;;  %v8403_v21 = vld [vmem:[#allocation2 + $0xa4] sm:$0x1]  ;;  %v8317_v19 = vld [vmem:[%s10696_s4 + $0xd0] sm:$0xff]  }
 0x165   : > { %v2564_v32 = vrot.slane %v2562_v33, 4  ;;  %v2565_v23 = vrot.slane %v8402_v50, 5  ;;  %v5087_v59 = vrot.slane %v5086_v27, 4  ;;  %v6716_v55 = vrot.slane %v2438_v34, 9 }
 0x166   : > { %7842 = vmatmul.mubr.bf16.gmra.mrb[16].mxu0 %v8312_v42  ;;  %v10749_v42 = vcombine.low %v9701_v53, %v9706_v40  ;;  %v2571_v22 = vrot.slane %v2569_v0, 4  ;;  %v2572_v36 = vrot.slane %v8403_v21, 5  ;;  %v5097_v48 = vrot.slane %v5096_v15, 4  ;;  %v9950_v40 = vld [vmem:[#allocation2 + $0x5c] sm:$0x1]  ;;  %v8318_v15 = vld [vmem:[#allocation2 + $0xa8] sm:$0xff]  }
 0x167   : > { %7845 = vmatprep.mubr.bf16.mxu0 %v8314_v17  ;;  %v5101_v17 = vrot.slane %v5099_v14, 5  ;;  %v5106_v58 = vrot.slane %v5104_v49, 4  ;;  %v5109_v35 = vrot.slane %v5107_v20, 5  ;;  %v5054_v53 = vsel %vm8735_vm1, %v9918_v56, %v9909_v61  ;;  %v4953_v61 = vld [vmem:[#allocation2 + $0x60] sm:$0xf]  ;;  %v8321_v56 = vld [vmem:[%s10696_s4 + $0xd8] sm:$0xff]  }
 0x168   : > { %v9952_v21 = vrot.slane %v5113_v45, 5  ;;  %v5119_v27 = vrot.slane %v5117_v12, 4  ;;  %v5068_v34 = vsel %vm8735_vm1, %v5063_v9, %v9886_v3  ;;  %v5078_v49 = vsel %vm8735_vm1, %v5073_v63, %v5077_v38  ;;  %v2439_v38 = vld [vmem:[#allocation2 + $0xa8] sm:$0xe]  ;;  %v8404_v45 = vld [vmem:[#allocation2 + $0xac] sm:$0xf] }
 0x169   : > { %7634 = vmatmul.mubr.bf16.vlgmr.msra.gmra.mrb[0].mxu1 %v10748_v37  ;;  %v8316_v37 = vld [vmem:[#allocation2 + $0x9c] sm:$0xff]   ;;  %v5092_v3 = vsel %vm8735_vm1, %v5087_v59, %v9903_v10  ;;  %v5110_v20 = vor.u32 %v5109_v35, %v5106_v58  ;;  %v2576_v12 = vrot.slane %v8404_v45, 5  ;;  %v9986_v9 = vld [vmem:[#allocation2 + $0x64] sm:$0xf]  ;;  %v5128_v63 = vshrl.u32 %v4953_v61, 16 }
 0x16a   : > { %7666 = vmatpush3.bf16.msra.mxu1 %v9693_v29  ;;  %7637 = vmatprep.mubr.bf16.mxu1 %v10749_v42  ;;  %v5044_v29 = vsel %vm8735_vm1, %v9907_v13, %v9867_v26  ;;  %v9961_v26 = vsel %vm9034_vm0, %v6715_v57, %v2562_v33  ;;  %v9965_v13 = vsel %vm9034_vm0, %v2564_v32, %v2565_v23  ;;  %v5123_v57 = vshll.u32 %v9950_v40, 16  ;;  %v8325_v59 = vld [vmem:[%s10696_s4 + $0xe0] sm:$0xff]  }
 0x16b   : > { %7667 = vmatprep.subr.bf16.mxu1 %v8313_v24  ;;  %10750 = vst [vmem:[#allocation10_spill] sm:$0xff] %v9961_v26  ;;  %10751 = vst [vmem:[#allocation11_spill] sm:$0xff] %v9965_v13  ;;  %v9977_v33 = vsel %vm9034_vm0, %v6716_v55, %v2569_v0  ;;  %v9981_v23 = vsel %vm9034_vm0, %v2571_v22, %v2572_v36  ;;  %v9988_v10 = vcombine.low %v5044_v29, %v5054_v53  ;;  %v10016_v53 = vld [vmem:[#allocation2 + $0x70] sm:$0xf]  ;;  %v8322_v45 = vld [vmem:[#allocation2 + $0xc0] sm:$0xff]  }
 0x16c   : > { %10752 = vst [vmem:[#allocation12_spill] sm:$0xff] %v9977_v33  ;;  %10753 = vst [vmem:[#allocation13_spill] sm:$0xff] %v9981_v23  ;;  %v5120_v0 = vor.u32 %v5119_v27, %v9952_v21  ;;  %v5131_v36 = vshll.u32 %v4953_v61, 16  ;;  %v10754_v32 = vshll.u32 %v9520_v7, 16  ;;  %v10756_v42 = vcombine.low %v9733_v54, %v9737_v43  ;;  %v10007_v7 = vld [vmem:[#allocation2 + $0x68] sm:$0x1] }
 0x16d   : > { %v10001_v55 = vcombine.low %v5068_v34, %v5078_v49  ;;  %10757 = vst [vmem:[#allocation15_spill] sm:$0xff] %v10007_v7  ;;  %v10758_v54 = vcombine.low %v9745_v8, %v9754_v62  ;;  %v8320_v43 = vld [vmem:[#allocation2 + $0xb4] sm:$0xff]   ;;  %v6717_v35 = vrot.slane %v2439_v38, 9  ;;  %v5141_v29 = vshrl.u32 %v9986_v9, 16  ;;  %10760 = vst [vmem:[#allocation17_spill] sm:$0xff] %v10016_v53 }
 0x16e   : > { %7668 = vmatpush3.bf16.msra.mxu1 %v8313_v24  ;;  %v5102_v24 = vsel %vm8735_vm1, %v5097_v48, %v5101_v17  ;;  %7846 = vmatmul.mubr.bf16.gmra.mrb[20].mxu0 %v8316_v37  ;;  %v9993_v50 = vrot.slane %v10754_v32, 5  ;;  %v4956_v17 = vld [vmem:[#allocation2 + $0x6c] sm:$0xf]  ;;  %v5137_v37 = vshll.u32 %v9986_v9, 16  ;;  %v10018_v27 = vrot.slane %v5110_v20, 4 }
 0x16f   : > { %7669 = vmatprep.subr.bf16.mxu1 %v8317_v19  ;;  %7849 = vmatprep.mubr.bf16.mxu0 %v8318_v15  ;;  %v10012_v58 = vcombine.low %v5092_v3, %v5102_v24  ;;  %v10020_v15 = vrot.slane %v5123_v57, 5  ;;  %v2578_v34 = vrot.slane %v2576_v12, 4  ;;  %v8405_v61 = vld [vmem:[#allocation2 + $0xb0] sm:$0x1]  ;;  %v4959_v62 = vld [vmem:[#allocation2 + $0x78] sm:$0xf] }
 0x170   : > { %10755 = vst [vmem:[#allocation14_spill] sm:$0xff] %v9993_v50  ;;  %v2579_v8 = vrot.slane %v8405_v61, 5  ;;  %v5130_v49 = vrot.slane %v5128_v63, 4  ;;  %v5133_v3 = vrot.slane %v5131_v36, 5  ;;  %v5147_v24 = vshll.u32 %v10007_v7, 16  ;;  %v8327_v63 = vld [vmem:[%s10696_s4 + $0xe8] sm:$0xff]  }
 0x171   : > { %7638 = vmatmul.mubr.bf16.gmra.mrb[4].mxu1 %v10756_v42  ;;  %10759 = vst [vmem:[#allocation16_spill] sm:$0xff] %v10012_v58  ;;  %v10025_v38 = vld [vmem:[#allocation2 + $0x7c] sm:$0xf]  ;;  %v5152_v32 = vshrl.u32 %v4956_v17, 16  ;;  %v5155_v42 = vshll.u32 %v4956_v17, 16  ;;  %v5161_v20 = vshll.u32 %v10016_v53, 16  ;;  %v10040_v17 = vsel %vm9034_vm0, %v6717_v35, %v2576_v12 }
 0x172   : > { %7641 = vmatprep.mubr.bf16.mxu1 %v10758_v54  ;;  %7670 = vmatpush3.bf16.msra.mxu1 %v8317_v19  ;;  %v10022_v19 = vrot.slane %v5120_v0, 4  ;;  %10761 = vst [vmem:[#allocation18_spill] sm:$0xff] %v10025_v38  ;;  %v5165_v57 = vshrl.u32 %v10016_v53, 16  ;;  %v10029_v54 = vrot.slane %v5137_v37, 5  ;;  %v5143_v61 = vrot.slane %v5141_v29, 4 }
 0x173   : > { %7671 = vmatprep.subr.bf16.mxu1 %v8321_v56  ;;  %v5176_v48 = vshrl.u32 %v4959_v62, 16  ;;  %v5179_v0 = vshll.u32 %v4959_v62, 16  ;;  %v5185_v37 = vshll.u32 %v10025_v38, 16  ;;  %v5189_v29 = vshrl.u32 %v10025_v38, 16  ;;  %v10056_v12 = vld [vmem:[#allocation2 + $0x74] sm:$0x1] }
 0x174   : > { %v10052_v22 = vsel %vm9034_vm0, %v2578_v34, %v2579_v8  ;;  %v5134_v14 = vor.u32 %v5133_v3, %v5130_v49  ;;  %v10054_v36 = vrot.slane %v5147_v24, 5  ;;  %10762 = vst [vmem:[#allocation19_spill] sm:$0xff] %v10056_v12  ;;  %v4962_v35 = vld [vmem:[#allocation2 + $0x84] sm:$0xf]  ;;  %v10763_v50 = vcombine.low %v9758_v25, %v9771_v51  ;;  %v10063_v38 = vld [vmem:[#allocation2 + $0x88] sm:$0xf] }
 0x175   : > { %v5157_v23 = vrot.slane %v5155_v42, 5  ;;  %v10061_v33 = vrot.slane %v5161_v20, 5  ;;  %v5167_v62 = vrot.slane %v5165_v57, 4  ;;  %10764 = vst [vmem:[#allocation20_spill] sm:$0xff] %v10063_v38  ;;  %v10765_v34 = vcombine.low %v9763_v46, %v9778_v18  ;;  %v8329_v8 = vld [vmem:[%s10696_s4 + $0xf0] sm:$0xff]  }
 0x176   : > { %7672 = vmatpush3.bf16.msra.mxu1 %v8321_v56  ;;  %v10042_v56 = vld [vmem:[#allocation2 + $0xb4] sm:$0xe]  ;;  %7850 = vmatmul.mubr.bf16.gmra.mrb[24].mxu0 %v8320_v43  ;;  %v5154_v43 = vrot.slane %v5152_v32, 4  ;;  %v5144_v25 = vor.u32 %v5143_v61, %v10029_v54  ;;  %v8406_v51 = vld [vmem:[#allocation2 + $0xb8] sm:$0xf]  ;;  %v5178_v3 = vrot.slane %v5176_v48, 4 }
 0x177   : > { %7673 = vmatprep.subr.bf16.mxu1 %v8325_v59  ;;  %7853 = vmatprep.mubr.bf16.mxu0 %v8322_v45  ;;  %v10072_v49 = vld [vmem:[#allocation2 + $0x80] sm:$0x1]  ;;  %v5181_v24 = vrot.slane %v5179_v0, 5  ;;  %v10074_v45 = vrot.slane %v5185_v37, 5  ;;  %v5191_v32 = vrot.slane %v5189_v29, 4  ;;  %v5200_v42 = vshrl.u32 %v4962_v35, 16 }
 0x178   : > { %10766 = vst [vmem:[#allocation21_spill] sm:$0xff] %v10072_v49  ;;  %v5203_v18 = vshll.u32 %v4962_v35, 16  ;;  %v1251_v46 = vld [vmem:[#allocation2 + $0xd0] sm:$0x8]  ;;  %v10076_v20 = vrot.slane %v5134_v14, 4  ;;  %v6718_v57 = vrot.slane %v10042_v56, 9  ;;  %v5158_v48 = vor.u32 %v5157_v23, %v5154_v43 }
 0x179   : > { %7642 = vmatmul.mubr.bf16.gmra.mrb[8].mxu1 %v10763_v50  ;;  %v2583_v50 = vrot.slane %v8406_v51, 5  ;;  %v5209_v61 = vshll.u32 %v10063_v38, 16  ;;  %v8407_v51 = vld [vmem:[#allocation2 + $0xbc] sm:$0x1]  ;;  %v5168_v0 = vor.u32 %v5167_v62, %v10061_v33  ;;  %v5171_v37 = vshll.u32 %v10056_v12, 16 }
 0x17a   : > { %7645 = vmatprep.mubr.bf16.mxu1 %v10765_v34  ;;  %7674 = vmatpush3.bf16.msra.mxu1 %v8325_v59  ;;  %v8324_v59 = vld [vmem:[#allocation2 + $0xcc] sm:$0xff]   ;;  %v5213_v34 = vshrl.u32 %v10063_v38, 16  ;;  %v2586_v13 = vrot.slane %v8407_v51, 5  ;;  %v10085_v26 = vrot.slane %v5144_v25, 4  ;;  %v5182_v53 = vor.u32 %v5181_v24, %v5178_v3  ;;  %v1376_v7 = vld [vmem:[#allocation2 + $0xd4] sm:$0x1] }
 0x17b   : > { %7675 = vmatprep.subr.bf16.mxu1 %v8327_v63  ;;  %v10083_v29 = vld [vmem:[#allocation2 + $0x8c] sm:$0x1]  ;;  %v4965_v35 = vld [vmem:[#allocation2 + $0x90] sm:$0xf]  ;;  %v2585_v14 = vrot.slane %v2583_v50, 4  ;;  %v5195_v56 = vshll.u32 %v10072_v49, 16  ;;  %v5192_v62 = vor.u32 %v5191_v32, %v10074_v45  ;;  %v10767_v49 = vcombine.low %v9798_v4, %v9804_v52 }
 0x17c   : > { %v8331_v23 = vld [vmem:[%s10696_s4 + $0xf8] sm:$0xff]   ;;  %v5202_v43 = vrot.slane %v5200_v42, 4  ;;  %v5205_v51 = vrot.slane %v5203_v18, 5  ;;  %v10092_v38 = vld [vmem:[#allocation2 + $0x94] sm:$0xf]  ;;  %v6638_v12 = vrot.slane %v1251_v46, 11  ;;  %v10768_v18 = vcombine.low %v9808_v44, %v9812_v28 }
 0x17d   : > { %v5215_v25 = vrot.slane %v5213_v34, 4  ;;  %v5224_v3 = vshrl.u32 %v4965_v35, 16  ;;  %v5227_v24 = vshll.u32 %v4965_v35, 16  ;;  %v5159_v58 = vrot.slane %v5158_v48, 4  ;;  %v10132_v34 = vld [vmem:[#allocation2 + $0xa0] sm:$0xf] }
 0x17e   : > { %7676 = vmatpush3.bf16.msra.mxu1 %v8327_v63  ;;  %7854 = vmatmul.mubr.bf16.gmra.mrb[28].mxu0 %v8324_v59  ;;  %v10094_v63 = vrot.slane %v5209_v61, 5  ;;  %v5169_v47 = vrot.slane %v5168_v0, 4  ;;  %v5173_v32 = vrot.slane %v5171_v37, 5  ;;  %v1377_v42 = vsel %vm8638_vm14, %v6638_v12, %v1376_v7 }
 0x17f   : > { %7677 = vmatprep.subr.bf16.mxu1 %v8329_v8  ;;  %7873 = vmatprep.mubr.bf16.mxu0 %v9892_v5  ;;  %v5183_v46 = vrot.slane %v5182_v53, 4  ;;  %v5219_v59 = vshll.u32 %v10083_v29, 16  ;;  %v5233_v61 = vshll.u32 %v10092_v38, 16  ;;  %v5237_v4 = vshrl.u32 %v10092_v38, 16  ;;  %1378 = vst [vmem:[#allocation2 + $0xd4] sm:$0x1] %v1377_v42 }
 0x180   : > { %v10110_v52 = vsel %vm9034_vm0, %v6718_v57, %v2583_v50  ;;  %v5193_v41 = vrot.slane %v5192_v62, 4  ;;  %v5197_v5 = vrot.slane %v5195_v56, 5  ;;  %v5206_v7 = vor.u32 %v5205_v51, %v5202_v43  ;;  %v10117_v53 = vld [vmem:[#allocation2 + $0x98] sm:$0x1]  ;;  %v10769_v62 = vld [vmem:[#allocation6_spill] sm:$0xff] }
 0x181   : > { %7646 = vmatmul.mubr.bf16.gmra.mrb[12].mxu1 %v10767_v49  ;;  %v5140_v44 = vsel %vm8735_vm1, %v10076_v20, %v10029_v54  ;;  %v5216_v28 = vor.u32 %v5215_v25, %v10094_v63  ;;  %v5226_v12 = vrot.slane %v5224_v3, 4  ;;  %v4968_v49 = vld [vmem:[#allocation2 + $0x9c] sm:$0xf]  ;;  %v5150_v50 = vsel %vm8735_vm1, %v10085_v26, %v10054_v36  ;;  %v8328_v36 = vld [vmem:[%s10696_s4 + $0x208] sm:$0xff]  }
 0x182   : > { %7649 = vmatprep.mubr.bf16.mxu1 %v10768_v18  ;;  %7678 = vmatpush3.bf16.msra.mxu1 %v8329_v8  ;;  %v5229_v8 = vrot.slane %v5227_v24, 5  ;;  %v10125_v57 = vsel %vm9034_vm0, %v2585_v14, %v2586_v13  ;;  %v5164_v54 = vsel %vm8735_vm1, %v5159_v58, %v10061_v33  ;;  %v5174_v20 = vsel %vm8735_vm1, %v5169_v47, %v5173_v32  ;;  %v10147_v47 = vld [vmem:[%s10696_s4 + $0x100] sm:$0xff]   ;;  %v10774_v32 = vld [vmem:[#allocation4_spill] sm:$0xff] }
 0x183   : > { %7679 = vmatprep.subr.bf16.mxu1 %v8331_v23  ;;  %v5188_v48 = vsel %vm8735_vm1, %v5183_v46, %v10074_v45  ;;  %v10137_v0 = vrot.slane %v5219_v59, 5  ;;  %v10139_v26 = vrot.slane %v5233_v61, 5  ;;  %v5239_v13 = vrot.slane %v5237_v4, 4  ;;  %v10773_v24 = vld [vmem:[#allocation5_spill] sm:$0xff]  ;;  %v5693_v61 = vld [vmem:[#allocation2 + $0x48] sm:$0xe] }
 0x184   : > { %v5198_v33 = vsel %vm8735_vm1, %v5193_v41, %v5197_v5  ;;  %v10152_v58 = vrot.slane %v5206_v7, 4  ;;  %v5243_v45 = vshll.u32 %v10117_v53, 16  ;;  %v5248_v37 = vshrl.u32 %v4968_v49, 16  ;;  %v10197_v59 = vld [vmem:[#allocation2 + $0xa4] sm:$0x1] }
 0x185   : > { %v10156_v35 = vrot.slane %v5216_v28, 4  ;;  %v5230_v14 = vor.u32 %v5229_v8, %v5226_v12  ;;  %v5251_v56 = vshll.u32 %v4968_v49, 16  ;;  %v10770_v43 = vcombine.low %v9822_v6, %v10769_v62  ;;  %v4971_v41 = vld [vmem:[#allocation2 + $0xa8] sm:$0xf]  ;;  %v5694_v5 = vld [vmem:[#allocation2 + $0x54] sm:$0xe] }
 0x186   : > { %7680 = vmatpush3.bf16.msra.mxu1 %v8331_v23  ;;  %7874 = vmatmul.mubr.bf16.vlgmr.msra.gmra.mrb[0].mxu0 %v9905_v16  ;;  %v5257_v23 = vshll.u32 %v10132_v34, 16  ;;  %v10771_v51 = vsel %vm8735_vm1, %v10022_v19, %v10020_v15  ;;  %v10772_v16 = vsel %vm8735_vm1, %v10018_v27, %v9952_v21  ;;  %v6749_v3 = vcombine.low %v10040_v17, %v10052_v22  ;;  %v8330_v21 = vld [vmem:[%s10696_s4 + $0x210] sm:$0xff]   ;;  %v10219_v8 = vld [vmem:[#allocation2 + $0xac] sm:$0xf] }
 0x187   : > { %7953 = vmatprep.subr.bf16.mxu1 %v10147_v47  ;;  %7906 = vmatpush3.bf16.msra.mxu0 %v9897_v1  ;;  %v10173_v25 = vcombine.low %v10772_v16, %v10771_v51  ;;  %v5261_v1 = vshrl.u32 %v10132_v34, 16  ;;  %v10775_v42 = vor.u32 %v10773_v24, %v10774_v32  ;;  %v10776_v15 = vcombine.low %v9865_v11, %v9877_v31  ;;  %v10778_v51 = vld [vmem:[#allocation8_spill] sm:$0xff] }
 0x188   : > { %7877 = vmatprep.mubr.bf16.mxu0 %v9988_v10  ;;  %v10192_v27 = vcombine.low %v5140_v44, %v5150_v50  ;;  %v10194_v19 = vcombine.low %v5164_v54, %v5174_v20  ;;  %v5240_v46 = vor.u32 %v5239_v13, %v10139_v26  ;;  %7907 = vmatprep.subr.bf16.mxu0 %v8328_v36  ;;  %v10205_v31 = vrot.slane %v5243_v45, 5  ;;  %v10777_v20 = vld [vmem:[#allocation7_spill] sm:$0xff]  ;;  %v5695_v13 = vld [vmem:[#allocation2 + $0x60] sm:$0xe]  ;;  %v10791_v11 = vld [vmem:[#allocation12_spill] sm:$0xff] }
 0x189   : > { %7650 = vmatmul.mubr.bf16.gmra.mrb[16].mxu1 %v10770_v43  ;;  %v10183_v18 = vrot.slane %v10775_v42, 4  ;;  %v10199_v4 = vcombine.low %v5188_v48, %v5198_v33  ;;  %v10207_v10 = vrot.slane %v5248_v37, 4  ;;  %v10213_v44 = vrot.slane %v5230_v14, 4 }
 0x18a   : > { %7653 = vmatprep.mubr.bf16.mxu1 %v10776_v15  ;;  %v10215_v28 = vrot.slane %v5251_v56, 5  ;;  %v10217_v12 = vrot.slane %v5257_v23, 5  ;;  %v10221_v49 = vrot.slane %v5261_v1, 4  ;;  %v6979_v50 = vrot.slane %v5693_v61, 9  ;;  %v5696_v56 = vld [vmem:[#allocation2 + $0x6c] sm:$0xe] }
 0x18b   : > { %7908 = vmatpush3.bf16.msra.mxu0 %v8328_v36  ;;  %v5783_v54 = vrot.slane %v9869_v60, 5  ;;  %v5786_v48 = vrot.slane %v10777_v20, 5  ;;  %v10225_v33 = vrot.slane %v5240_v46, 4  ;;  %v5267_v45 = vshll.u32 %v10197_v59, 16  ;;  %v8332_v36 = vld [vmem:[%s10696_s4 + $0x218] sm:$0xff]   ;;  %v10779_v15 = vld [vmem:[#allocation9_spill] sm:$0xff] }
 0x18c   : > { %7909 = vmatprep.subr.bf16.mxu0 %v8330_v21  ;;  %v5272_v37 = vshrl.u32 %v4971_v41, 16  ;;  %v6980_v14 = vrot.slane %v5694_v5, 9  ;;  %v5275_v23 = vshll.u32 %v4971_v41, 16  ;;  %v5281_v62 = vshll.u32 %v10219_v8, 16  ;;  %v10781_v61 = vld [vmem:[#allocation16_spill] sm:$0xff]  ;;  %v10782_v5 = vld [vmem:[#allocation15_spill] sm:$0xff] }
 0x18d   : > { %v10234_v60 = vsel %vm9034_vm0, %v6979_v50, %v5783_v54  ;;  %v5785_v43 = vrot.slane %v5783_v54, 4  ;;  %v5790_v16 = vrot.slane %v10778_v51, 5  ;;  %v5793_v1 = vrot.slane %v9950_v40, 5  ;;  %v10783_v54 = vld [vmem:[#allocation17_spill] sm:$0xff]  ;;  %v10784_v51 = vld [vmem:[#allocation10_spill] sm:$0xff]  ;;  %v10785_v40 = vld [vmem:[#allocation11_spill] sm:$0xff] }
 0x18e   : > { %7878 = vmatmul.mubr.bf16.gmra.mrb[4].mxu0 %v10001_v55  ;;  %v6981_v24 = vrot.slane %v5695_v13, 9  ;;  %v5797_v42 = vrot.slane %v9986_v9, 5  ;;  %v10780_v46 = vcombine.low %v9913_v39, %v10779_v15  ;;  %v5800_v50 = vrot.slane %v10782_v5, 5 }
 0x18f   : > { %7881 = vmatprep.mubr.bf16.mxu0 %v10781_v61  ;;  %v10246_v41 = vsel %vm9034_vm0, %v5785_v43, %v5786_v48  ;;  %v6982_v55 = vrot.slane %v5696_v56, 9  ;;  %v5804_v20 = vrot.slane %v10783_v54, 5  ;;  %v10786_v13 = vcombine.low %v10784_v51, %v10785_v40  ;;  %7910 = vmatpush3.bf16.msra.mxu0 %v8330_v21  ;;  %v8334_v56 = vld [vmem:[%s10696_s4 + $0x220] sm:$0xff]   ;;  %v10787_v61 = vld [vmem:[#allocation19_spill] sm:$0xff]  ;;  %v5697_v54 = vld [vmem:[#allocation2 + $0x78] sm:$0xe] }
 0x190   : > { %v10257_v9 = vsel %vm9034_vm0, %v6980_v14, %v5790_v16  ;;  %v5792_v15 = vrot.slane %v5790_v16, 4  ;;  %v10261_v48 = vsel %vm9034_vm0, %v6981_v24, %v5797_v42  ;;  %7911 = vmatprep.subr.bf16.mxu0 %v8332_v36  ;;  %v5799_v43 = vrot.slane %v5797_v42, 4  ;;  %v10294_v40 = vld [vmem:[#allocation2 + $0xb0] sm:$0x1]  ;;  %v5698_v14 = vld [vmem:[#allocation2 + $0x84] sm:$0xe] }
 0x191   : > { %7654 = vmatmul.mubr.bf16.gmra.mrb[20].mxu1 %v10780_v46  ;;  %v10268_v21 = vsel %vm9034_vm0, %v6982_v55, %v5804_v20  ;;  %v5806_v46 = vrot.slane %v5804_v20, 4  ;;  %v5807_v5 = vrot.slane %v10787_v61, 5  ;;  %v5254_v16 = vor.u32 %v10215_v28, %v10207_v10  ;;  %v3323_v28 = vld [vmem:[#allocation2 + $0x78] sm:$0xf] }
 0x192   : > { %7657 = vmatprep.mubr.bf16.mxu1 %v10786_v13  ;;  %v5285_v24 = vshrl.u32 %v10219_v8, 16  ;;  %v10280_v42 = vsel %vm9034_vm0, %v5792_v15, %v5793_v1  ;;  %v5264_v55 = vor.u32 %v10221_v49, %v10217_v12  ;;  %v10288_v51 = vsel %vm9034_vm0, %v5799_v43, %v5800_v50  ;;  %v4974_v15 = vld [vmem:[#allocation2 + $0xb4] sm:$0xf]  ;;  %v10790_v49 = vld [vmem:[#allocation21_spill] sm:$0xff] }
 0x193   : > { %v10292_v10 = vsel %vm9034_vm0, %v5806_v46, %v5807_v5  ;;  %7912 = vmatpush3.bf16.msra.mxu0 %v8332_v36  ;;  %v5274_v1 = vrot.slane %v5272_v37, 4  ;;  %v5277_v13 = vrot.slane %v5275_v23, 5  ;;  %v8337_v36 = vld [vmem:[%s10696_s4 + $0x228] sm:$0xff]   ;;  %v10307_v43 = vrot.slane %v5267_v45, 5  ;;  %v10792_v50 = vld [vmem:[#allocation13_spill] sm:$0xff] }
 0x194   : > { %10788 = vst [vmem:[#allocation6_spill] sm:$0xff] %v10292_v10  ;;  %7913 = vmatprep.subr.bf16.mxu0 %v8334_v56  ;;  %v10309_v37 = vrot.slane %v5281_v62, 5  ;;  %v6983_v23 = vrot.slane %v5697_v54, 9  ;;  %v5287_v46 = vrot.slane %v5285_v24, 4  ;;  %v10789_v5 = vld [vmem:[#allocation18_spill] sm:$0xff]  ;;  %v5814_v20 = vrot.slane %v10790_v49, 5 }
 0x195   : > { %v5811_v61 = vrot.slane %v10789_v5, 5  ;;  %v3561_v39 = vshrl.u32 %v3323_v28, 16  ;;  %v10793_v7 = vcombine.low %v10791_v11, %v10792_v50  ;;  %v5291_v45 = vshll.u32 %v10294_v40, 16  ;;  %v10319_v62 = vld [vmem:[#allocation2 + $0xb8] sm:$0xf] }
 0x196   : > { %7882 = vmatmul.mubr.bf16.gmra.mrb[8].mxu0 %v10173_v25  ;;  %v5296_v54 = vshrl.u32 %v4974_v15, 16  ;;  %v3564_v6 = vshll.u32 %v3323_v28, 16  ;;  %v10794_v25 = vld [vmem:[#allocation14_spill] sm:$0xff]  ;;  %v5278_v11 = vor.u32 %v5277_v13, %v5274_v1  ;;  %v8340_v28 = vld [vmem:[%s10696_s4 + $0x230] sm:$0xff]   ;;  %v5299_v50 = vshll.u32 %v4974_v15, 16 }
 0x197   : > { %7885 = vmatprep.mubr.bf16.mxu0 %v10192_v27  ;;  %v3583_v24 = vsel %vm8735_vm1, %v10183_v18, %v10794_v25  ;;  %7914 = vmatpush3.bf16.msra.mxu0 %v8334_v56  ;;  %v10330_v27 = vsel %vm9034_vm0, %v6983_v23, %v5811_v61  ;;  %v3563_v49 = vrot.slane %v3561_v39, 4  ;;  %v6984_v18 = vrot.slane %v5698_v14, 9  ;;  %v10795_v25 = vld [vmem:[#allocation20_spill] sm:$0xff]  ;;  %v10347_v13 = vld [vmem:[#allocation2 + $0xc4] sm:$0xf]  ;;  %v8333_v15 = vld [vmem:[#allocation2 + $0xc] sm:$0xff]  }
 0x198   : > { %7915 = vmatprep.subr.bf16.mxu0 %v8337_v36  ;;  %v3566_v5 = vrot.slane %v3564_v6, 5  ;;  %v5818_v10 = vrot.slane %v10795_v25, 5  ;;  %v10336_v22 = vrot.slane %v5254_v16, 4  ;;  %v5305_v17 = vshll.u32 %v10319_v62, 16  ;;  %v5699_v16 = vld [vmem:[#allocation2 + $0x90] sm:$0xe] }
 0x199   : > { %7658 = vmatmul.mubr.bf16.gmra.mrb[24].mxu1 %v10793_v7  ;;  %v5813_v7 = vrot.slane %v5811_v61, 4  ;;  %v5821_v39 = vrot.slane %v10083_v29, 5  ;;  %v10344_v56 = vrot.slane %v5264_v55, 4  ;;  %v5288_v1 = vor.u32 %v5287_v46, %v10309_v37 }
 0x19a   : > { %7661 = vmatprep.mubr.bf16.mxu1 %v6749_v3  ;;  %v3567_v14 = vor.u32 %v3566_v5, %v3563_v49  ;;  %v10351_v61 = vrot.slane %v5291_v45, 5  ;;  %v10353_v23 = vrot.slane %v5296_v54, 4  ;;  %v10357_v29 = vsel %vm9034_vm0, %v6984_v18, %v5818_v10 }
 0x19b   : > { %v10341_v3 = vsel %vm9034_vm0, %v5813_v7, %v5814_v20  ;;  %7916 = vmatpush3.bf16.msra.mxu0 %v8337_v36  ;;  %v4977_v20 = vld [vmem:[#allocation2 + $0xc0] sm:$0xf]  ;;  %v5820_v55 = vrot.slane %v5818_v10, 4  ;;  %v10359_v46 = vrot.slane %v5278_v11, 4  ;;  %v10361_v7 = vrot.slane %v5299_v50, 5  ;;  %v8343_v36 = vld [vmem:[%s10696_s4 + $0x238] sm:$0xff]  }
 0x19c   : > { %v7015_v6 = vcombine.low %v10330_v27, %v10341_v3  ;;  %7917 = vmatprep.subr.bf16.mxu0 %v8340_v28  ;;  %v5309_v49 = vshrl.u32 %v10319_v62, 16  ;;  %v3568_v45 = vrot.slane %v3567_v14, 4  ;;  %v10368_v54 = vrot.slane %v5305_v17, 5  ;;  %v10384_v14 = vld [vmem:[#allocation2 + $0xbc] sm:$0x1] }
 0x19d   : > { %v10372_v5 = vsel %vm9034_vm0, %v5820_v55, %v5821_v39  ;;  %v6985_v10 = vrot.slane %v5699_v16, 9  ;;  %v5825_v11 = vrot.slane %v10092_v38, 5  ;;  %v10796_v50 = vcombine.low %v10110_v52, %v10125_v57 }
 0x19e   : > { %7886 = vmatmul.mubr.bf16.gmra.mrb[12].mxu0 %v10194_v19  ;;  %v5320_v18 = vshrl.u32 %v4977_v20, 16  ;;  %v5323_v25 = vshll.u32 %v4977_v20, 16  ;;  %v3573_v19 = vsel %vm8735_vm1, %v3568_v45, %v10774_v32  ;;  %v7016_v17 = vcombine.low %v10357_v29, %v10372_v5  ;;  %v4980_v45 = vld [vmem:[#allocation2 + $0xcc] sm:$0xf] }
 0x19f   : > { %7889 = vmatprep.mubr.bf16.mxu0 %v10199_v4  ;;  %v5289_v39 = vrot.slane %v5288_v1, 4  ;;  %7918 = vmatpush3.bf16.msra.mxu0 %v8340_v28  ;;  %v5329_v38 = vshll.u32 %v10347_v13, 16  ;;  %v5333_v52 = vshrl.u32 %v10347_v13, 16  ;;  %v10388_v57 = vcombine.low %v3573_v19, %v3583_v24 }
 0x1a0   : > { %v5311_v4 = vrot.slane %v5309_v49, 4  ;;  %7919 = vmatprep.subr.bf16.mxu0 %v8343_v36  ;;  %v10392_v16 = vsel %vm9034_vm0, %v6985_v10, %v5825_v11  ;;  %v5827_v32 = vrot.slane %v5825_v11, 4  ;;  %v5828_v20 = vrot.slane %v10117_v53, 5 }
 0x1a1   : > { %7662 = vmatmul.mubr.bf16.gmra.mrb[28].mxu1 %v10796_v50  ;;  %v10797_v28 = vsel %vm8735_vm1, %v10156_v35, %v10137_v0  ;;  %v10798_v24 = vsel %vm8735_vm1, %v10152_v58, %v10094_v63  ;;  %v10800_v53 = vsel %vm8735_vm1, %v10213_v44, %v10139_v26  ;;  %v5260_v0 = vsel %vm8735_vm1, %v10336_v22, %v10217_v12  ;;  %v5700_v58 = vld [vmem:[#allocation2 + $0x9c] sm:$0xe]  ;;  %v8336_v44 = vld [vmem:[#allocation2 + $0x24] sm:$0xff]  }
 0x1a2   : > { %7681 = vmatprep.mubr.bf16.mxu1 %v8333_v15  ;;  %v6960_v1 = vcombine.low %v10798_v24, %v10797_v28  ;;  %v10799_v15 = vsel %vm8735_vm1, %v10225_v33, %v10205_v31  ;;  %v5270_v63 = vsel %vm8735_vm1, %v10344_v56, %v10307_v43  ;;  %v8335_v35 = vld [vmem:[#allocation2 + $0x18] sm:$0xff]   ;;  %v5315_v31 = vshll.u32 %v10384_v14, 16  ;;  %v10434_v56 = vld [vmem:[#allocation2 + $0xd0] sm:$0xf] }
 0x1a3   : > { %v6961_v55 = vcombine.low %v10800_v53, %v10799_v15  ;;  %v5322_v33 = vrot.slane %v5320_v18, 4  ;;  %v5325_v49 = vrot.slane %v5323_v25, 5  ;;  %v10426_v26 = vsel %vm9034_vm0, %v5827_v32, %v5828_v20  ;;  %7920 = vmatpush3.bf16.msra.mxu0 %v8343_v36  ;;  %v10444_v25 = vld [vmem:[#allocation2 + $0xc8] sm:$0x1] }
 0x1a4   : > { %v5284_v12 = vsel %vm8735_vm1, %v10359_v46, %v10309_v37  ;;  %v10432_v22 = vrot.slane %v5329_v38, 5  ;;  %v5335_v43 = vrot.slane %v5333_v52, 4  ;;  %v7017_v10 = vcombine.low %v10392_v16, %v10426_v26  ;;  %v8409_v32 = vld [vmem:[%s10696_s4 + $0x108] sm:$0xff]  }
 0x1a5   : > { %v5294_v11 = vsel %vm8735_vm1, %v5289_v39, %v10351_v61  ;;  %v5302_v50 = vor.u32 %v10361_v7, %v10353_v23  ;;  %v5312_v18 = vor.u32 %v5311_v4, %v10368_v54  ;;  %v6986_v37 = vrot.slane %v5700_v58, 9  ;;  %v8338_v58 = vld [vmem:[#allocation2 + $0x30] sm:$0xff]  }
 0x1a6   : > { %7890 = vmatmul.mubr.bf16.gmra.mrb[16].mxu0 %v6960_v1  ;;  %v5344_v46 = vshrl.u32 %v4980_v45, 16  ;;  %v5347_v19 = vshll.u32 %v4980_v45, 16  ;;  %v5832_v36 = vrot.slane %v10132_v34, 5  ;;  %v5835_v38 = vrot.slane %v10197_v59, 5  ;;  %v5701_v59 = vld [vmem:[#allocation2 + $0xa8] sm:$0xe] }
 0x1a7   : > { %7893 = vmatprep.mubr.bf16.mxu0 %v6961_v55  ;;  %v5326_v52 = vor.u32 %v5325_v49, %v5322_v33  ;;  %v5353_v61 = vshll.u32 %v10434_v56, 16  ;;  %v5357_v39 = vshrl.u32 %v10434_v56, 16  ;;  %v5336_v23 = vor.u32 %v5335_v43, %v10432_v22 }
 0x1a8   : > { %v5339_v7 = vshll.u32 %v10444_v25, 16  ;;  %v10455_v4 = vsel %vm9034_vm0, %v6986_v37, %v5832_v36  ;;  %v5834_v34 = vrot.slane %v5832_v36, 4  ;;  %v6962_v20 = vcombine.low %v5260_v0, %v5270_v63 }
 0x1a9   : > { %7682 = vmatmul.mubr.bf16.vlgmr.msra.gmra.mrb[0].mxu1 %v8335_v35  ;;  %v6963_v28 = vcombine.low %v5284_v12, %v5294_v11  ;;  %v5303_v24 = vrot.slane %v5302_v50, 4  ;;  %v5313_v1 = vrot.slane %v5312_v18, 4  ;;  %v5346_v15 = vrot.slane %v5344_v46, 4  ;;  %v8339_v35 = vld [vmem:[#allocation2 + $0x3c] sm:$0xff]   ;;  %v10468_v12 = vld [vmem:[#allocation2 + $0xd4] sm:$0x1] }
 0x1aa   : > { %7961 = vmatpush3.bf16.msra.mxu1 %v10147_v47  ;;  %7685 = vmatprep.mubr.bf16.mxu1 %v8336_v44  ;;  %v5317_v47 = vrot.slane %v5315_v31, 5  ;;  %v5349_v53 = vrot.slane %v5347_v19, 5  ;;  %v10462_v55 = vsel %vm9034_vm0, %v5834_v34, %v5835_v38  ;;  %v10464_v33 = vrot.slane %v5353_v61, 5  ;;  %v8410_v11 = vld [vmem:[%s10696_s4 + $0x110] sm:$0xff]   ;;  %v5689_v38 = vld [vmem:[#allocation2 + $0x18] sm:$0xe] }
 0x1ab   : > { %7954 = vmatprep.subr.bf16.mxu1 %v8409_v32  ;;  %v5359_v49 = vrot.slane %v5357_v39, 4  ;;  %v7018_v45 = vcombine.low %v10455_v4, %v10462_v55  ;;  %v6987_v44 = vrot.slane %v5701_v59, 9  ;;  %v5327_v0 = vrot.slane %v5326_v52, 4  ;;  %v5702_v52 = vld [vmem:[#allocation2 + $0xb4] sm:$0xe]  ;;  %v8412_v59 = vld [vmem:[%s10696_s4 + $0x118] sm:$0xff]  }
 0x1ac   : > { %v5337_v63 = vrot.slane %v5336_v23, 4  ;;  %v5341_v31 = vrot.slane %v5339_v7, 5  ;;  %v5839_v43 = vrot.slane %v10219_v8, 5  ;;  %v5842_v50 = vrot.slane %v10294_v40, 5  ;;  %v8411_v39 = vld [vmem:[#allocation2 + $0x1c] sm:$0xf] }
 0x1ad   : > { %v5308_v18 = vsel %vm8735_vm1, %v5303_v24, %v10368_v54  ;;  %v5318_v37 = vsel %vm8735_vm1, %v5313_v1, %v5317_v47  ;;  %v5350_v19 = vor.u32 %v5349_v53, %v5346_v15  ;;  %v5360_v36 = vor.u32 %v5359_v49, %v10464_v33  ;;  %v8341_v47 = vld [vmem:[#allocation2 + $0x48] sm:$0xff]  }
 0x1ae   : > { %7962 = vmatpush3.bf16.msra.mxu1 %v8409_v32  ;;  %7894 = vmatmul.mubr.bf16.gmra.mrb[20].mxu0 %v6962_v20  ;;  %v10482_v46 = vsel %vm9034_vm0, %v6987_v44, %v5839_v43  ;;  %v5841_v8 = vrot.slane %v5839_v43, 4  ;;  %v5363_v40 = vshll.u32 %v10468_v12, 16  ;;  %v5332_v54 = vsel %vm8735_vm1, %v5327_v0, %v10432_v22  ;;  %v8413_v44 = vld [vmem:[#allocation2 + $0x20] sm:$0x1]  ;;  %v5703_v43 = vld [vmem:[#allocation2 + $0xc0] sm:$0xe] }
 0x1af   : > { %7955 = vmatprep.subr.bf16.mxu1 %v8410_v11  ;;  %7897 = vmatprep.mubr.bf16.mxu0 %v6963_v28  ;;  %v5342_v61 = vsel %vm8735_vm1, %v5337_v63, %v5341_v31  ;;  %v5755_v23 = vrot.slane %v8411_v39, 5  ;;  %v6964_v34 = vcombine.low %v5308_v18, %v5318_v37  ;;  %v6975_v20 = vrot.slane %v5689_v38, 9  ;;  %v5690_v38 = vld [vmem:[#allocation2 + $0x24] sm:$0xe]  ;;  %v5691_v39 = vld [vmem:[#allocation2 + $0x30] sm:$0xe] }
 0x1b0   : > { %v10493_v7 = vsel %vm9034_vm0, %v5841_v8, %v5842_v50  ;;  %v6988_v22 = vrot.slane %v5702_v52, 9  ;;  %v5846_v28 = vrot.slane %v10319_v62, 5  ;;  %v5849_v24 = vrot.slane %v10384_v14, 5  ;;  %v8414_v62 = vld [vmem:[%s10696_s4 + $0x120] sm:$0xff]   ;;  %v8415_v14 = vld [vmem:[#allocation2 + $0x28] sm:$0xf] }
 0x1b1   : > { %7686 = vmatmul.mubr.bf16.gmra.mrb[4].mxu1 %v8338_v58  ;;  %v7019_v32 = vcombine.low %v10482_v46, %v10493_v7  ;;  %v6965_v1 = vcombine.low %v5332_v54, %v5342_v61  ;;  %v5351_v15 = vrot.slane %v5350_v19, 4  ;;  %v5361_v53 = vrot.slane %v5360_v36, 4  ;;  %v8416_v52 = vld [vmem:[#allocation2 + $0x34] sm:$0xf]  ;;  %v8417_v61 = vld [vmem:[%s10696_s4 + $0x128] sm:$0xff]  }
 0x1b2   : > { %7689 = vmatprep.mubr.bf16.mxu1 %v8339_v35  ;;  %7963 = vmatpush3.bf16.msra.mxu1 %v8410_v11  ;;  %v5365_v58 = vrot.slane %v5363_v40, 5  ;;  %v8342_v35 = vld [vmem:[#allocation2 + $0x54] sm:$0xff]   ;;  %v5757_v49 = vrot.slane %v5755_v23, 4  ;;  %v5758_v0 = vrot.slane %v8413_v44, 5  ;;  %v10504_v63 = vsel %vm9034_vm0, %v6988_v22, %v5846_v28  ;;  %v8344_v22 = vld [vmem:[#allocation2 + $0x60] sm:$0xff]  }
 0x1b3   : > { %7956 = vmatprep.subr.bf16.mxu1 %v8412_v59  ;;  %v5848_v31 = vrot.slane %v5846_v28, 4  ;;  %v5762_v11 = vrot.slane %v8415_v14, 5  ;;  %v5356_v18 = vsel %vm8735_vm1, %v5351_v15, %v10464_v33  ;;  %v6989_v19 = vrot.slane %v5703_v43, 9  ;;  %v5704_v15 = vld [vmem:[#allocation2 + $0xcc] sm:$0xe] }
 0x1b4   : > { %v5366_v37 = vsel %vm8735_vm1, %v5361_v53, %v5365_v58  ;;  %v5756_v36 = vsel %vm9034_vm0, %v6975_v20, %v5755_v23  ;;  %v5759_v40 = vsel %vm9034_vm0, %v5757_v49, %v5758_v0  ;;  %v5769_v54 = vrot.slane %v8416_v52, 5  ;;  %v8345_v53 = vld [vmem:[#allocation2 + $0x6c] sm:$0xff]   ;;  %v8419_v49 = vld [vmem:[#allocation2 + $0x38] sm:$0x1]  ;;  %v5692_v43 = vld [vmem:[#allocation2 + $0x3c] sm:$0xe] }
 0x1b5   : > { %v10511_v50 = vsel %vm9034_vm0, %v5848_v31, %v5849_v24  ;;  %v5853_v33 = vrot.slane %v10347_v13, 5  ;;  %v7007_v28 = vcombine.low %v5756_v36, %v5759_v40  ;;  %v6976_v24 = vrot.slane %v5690_v38, 9  ;;  %v8420_v0 = vld [vmem:[%s10696_s4 + $0x130] sm:$0xff]  }
 0x1b6   : > { %7964 = vmatpush3.bf16.msra.mxu1 %v8412_v59  ;;  %7898 = vmatmul.mubr.bf16.gmra.mrb[24].mxu0 %v6964_v34  ;;  %v7020_v8 = vcombine.low %v10504_v63, %v10511_v50  ;;  %v5856_v34 = vrot.slane %v10444_v25, 5  ;;  %v6966_v59 = vcombine.low %v5356_v18, %v5366_v37  ;;  %v6977_v58 = vrot.slane %v5691_v39, 9 }
 0x1b7   : > { %7957 = vmatprep.subr.bf16.mxu1 %v8414_v62  ;;  %7901 = vmatprep.mubr.bf16.mxu0 %v6965_v1  ;;  %v10531_v23 = vsel %vm9034_vm0, %v6989_v19, %v5853_v33  ;;  %v5855_v20 = vrot.slane %v5853_v33, 4  ;;  %v8418_v1 = vld [vmem:[#allocation2 + $0x2c] sm:$0x1]  ;;  %v5772_v44 = vrot.slane %v8419_v49, 5  ;;  %v6990_v18 = vrot.slane %v5704_v15, 9 }
 0x1b8   : > { %v5765_v13 = vrot.slane %v8418_v1, 5  ;;  %v5860_v37 = vrot.slane %v10434_v56, 5  ;;  %v5863_v19 = vrot.slane %v10468_v12, 5  ;;  %v5763_v36 = vsel %vm9034_vm0, %v6976_v24, %v5762_v11  ;;  %v8347_v24 = vld [vmem:[#allocation2 + $0x84] sm:$0xff]  }
 0x1b9   : > { %7690 = vmatmul.mubr.bf16.gmra.mrb[8].mxu1 %v8341_v47  ;;  %v5764_v47 = vrot.slane %v5762_v11, 4  ;;  %v10535_v25 = vsel %vm9034_vm0, %v5855_v20, %v5856_v34  ;;  %v5770_v38 = vsel %vm9034_vm0, %v6977_v58, %v5769_v54  ;;  %v6978_v33 = vrot.slane %v5692_v43, 9  ;;  %v8422_v11 = vld [vmem:[%s10696_s4 + $0x138] sm:$0xff]   ;;  %v8423_v34 = vld [vmem:[#allocation2 + $0x44] sm:$0x1] }
 0x1ba   : > { %7693 = vmatprep.mubr.bf16.mxu1 %v8342_v35  ;;  %7965 = vmatpush3.bf16.msra.mxu1 %v8414_v62  ;;  %v5771_v35 = vrot.slane %v5769_v54, 4  ;;  %v7021_v31 = vcombine.low %v10531_v23, %v10535_v25  ;;  %v8421_v62 = vld [vmem:[#allocation2 + $0x40] sm:$0xf]  ;;  %v10554_v56 = vsel %vm9034_vm0, %v6990_v18, %v5860_v37  ;;  %v5862_v12 = vrot.slane %v5860_v37, 4  ;;  %v8346_v20 = vld [vmem:[#allocation2 + $0x78] sm:$0xff]  }
 0x1bb   : > { %7958 = vmatprep.subr.bf16.mxu1 %v8417_v61  ;;  %v5776_v14 = vrot.slane %v8421_v62, 5  ;;  %v5766_v40 = vsel %vm9034_vm0, %v5764_v47, %v5765_v13  ;;  %v3320_v47 = vld [vmem:[#allocation2 + $0x6c] sm:$0xf]  ;;  %v8424_v58 = vld [vmem:[#allocation2 + $0x70] sm:$0xf] }
 0x1bc   : > { %v5773_v52 = vsel %vm9034_vm0, %v5771_v35, %v5772_v44  ;;  %v10561_v54 = vsel %vm9034_vm0, %v5862_v12, %v5863_v19  ;;  %v3537_v15 = vshrl.u32 %v3320_v47, 16  ;;  %v3546_v35 = vshll.u32 %v8424_v58, 16  ;;  %v8349_v19 = vld [vmem:[#allocation2 + $0x9c] sm:$0xff]  }
 0x1bd   : > { %v5778_v39 = vrot.slane %v5776_v14, 4  ;;  %v5777_v1 = vsel %vm9034_vm0, %v6978_v33, %v5776_v14  ;;  %v3550_v49 = vshrl.u32 %v8424_v58, 16  ;;  %v8425_v14 = vld [vmem:[#allocation2 + $0x74] sm:$0x1] }
 0x1be   : > { %7966 = vmatpush3.bf16.msra.mxu1 %v8417_v61  ;;  %7902 = vmatmul.mubr.bf16.gmra.mrb[28].mxu0 %v6966_v59  ;;  %v7008_v61 = vcombine.low %v5763_v36, %v5766_v40  ;;  %v5779_v59 = vrot.slane %v8423_v34, 5  ;;  %v3539_v43 = vrot.slane %v3537_v15, 4  ;;  %v3548_v18 = vrot.slane %v3546_v35, 5  ;;  %v3326_v36 = vld [vmem:[#allocation2 + $0x84] sm:$0xf]  ;;  %v8351_v15 = vld [vmem:[#allocation2 + $0xb4] sm:$0xff]  }
 0x1bf   : > { %7959 = vmatprep.subr.bf16.mxu1 %v8420_v0  ;;  %7921 = vmatprep.mubr.bf16.mxu0 %v7007_v28  ;;  %v7022_v28 = vcombine.low %v10554_v56, %v10561_v54  ;;  %v3552_v37 = vrot.slane %v3550_v49, 4  ;;  %v3556_v2 = vshll.u32 %v8425_v14, 16  ;;  %v10801_v40 = vcombine.low %v10234_v60, %v10246_v41  ;;  %v3329_v34 = vld [vmem:[#allocation2 + $0x90] sm:$0xf]  ;;  %v8427_v35 = vld [vmem:[#allocation2 + $0x94] sm:$0xf] }
 0x1c0   : > { %v5780_v13 = vsel %vm9034_vm0, %v5778_v39, %v5779_v59  ;;  %v3585_v12 = vshrl.u32 %v3326_v36, 16  ;;  %v3588_v33 = vshll.u32 %v3326_v36, 16  ;;  %v8350_v59 = vld [vmem:[#allocation2 + $0xa8] sm:$0xff]   ;;  %v3609_v41 = vshrl.u32 %v3329_v34, 16 }
 0x1c1   : > { %7694 = vmatmul.mubr.bf16.gmra.mrb[12].mxu1 %v8344_v22  ;;  %v7009_v22 = vcombine.low %v5770_v38, %v5773_v52  ;;  %v7010_v44 = vcombine.low %v5777_v1, %v5780_v13  ;;  %v3553_v52 = vor.u32 %v3552_v37, %v3548_v18  ;;  %v3332_v13 = vld [vmem:[#allocation2 + $0x9c] sm:$0xf]  ;;  %v3612_v58 = vshll.u32 %v3329_v34, 16  ;;  %v8428_v37 = vld [vmem:[#allocation2 + $0xa0] sm:$0xf] }
 0x1c2   : > { %7697 = vmatprep.mubr.bf16.mxu1 %v8345_v53  ;;  %7967 = vmatpush3.bf16.msra.mxu1 %v8420_v0  ;;  %v3540_v53 = vshll.u32 %v3320_v47, 16  ;;  %v8348_v0 = vld [vmem:[#allocation2 + $0x90] sm:$0xff]   ;;  %v3587_v47 = vrot.slane %v3585_v12, 4  ;;  %v3590_v1 = vrot.slane %v3588_v33, 5  ;;  %v3618_v49 = vshll.u32 %v8427_v35, 16 }
 0x1c3   : > { %7960 = vmatprep.subr.bf16.mxu1 %v8422_v11  ;;  %v3646_v36 = vshrl.u32 %v8428_v37, 16  ;;  %v10803_v14 = vcombine.low %v10261_v48, %v10288_v51  ;;  %v3611_v12 = vrot.slane %v3609_v41, 4  ;;  %v3614_v33 = vrot.slane %v3612_v58, 5 }
 0x1c4   : > { %v3542_v62 = vrot.slane %v3540_v53, 5 }
 0x1c5   : > { %v3648_v34 = vrot.slane %v3646_v36, 4 }
 0x1c6   : > { %7968 = vmatpush3.bf16.msra.mxu1 %v8422_v11  ;;  %7922 = vmatmul.mubr.bf16.vlgmr.msra.gmra.mrb[0].mxu0 %v7008_v61  ;;  %v3543_v38 = vor.u32 %v3542_v62, %v3539_v43  ;;  %v8426_v11 = vld [vmem:[#allocation2 + $0x88] sm:$0xf]  ;;  %v3633_v43 = vshrl.u32 %v3332_v13, 16  ;;  %v3636_v62 = vshll.u32 %v3332_v13, 16  ;;  %v3615_v13 = vor.u32 %v3614_v33, %v3611_v12 }
 0x1c7   : > { %7925 = vmatprep.mubr.bf16.mxu0 %v7009_v22  ;;  %v3594_v61 = vshll.u32 %v8426_v11, 16  ;;  %v3598_v39 = vshrl.u32 %v8426_v11, 16  ;;  %v10585_v11 = vrot.slane %v3618_v49, 5 }
 0x1c8   : > { %v3544_v22 = vrot.slane %v3543_v38, 4  ;;  %v8429_v38 = vld [vmem:[#allocation2 + $0x8c] sm:$0x1]  ;;  %v3638_v48 = vrot.slane %v3636_v62, 5 }
 0x1c9   : > { %7698 = vmatmul.mubr.bf16.gmra.mrb[16].mxu1 %v8346_v20  ;;  %v3558_v20 = vrot.slane %v3556_v2, 5  ;;  %v10572_v53 = vrot.slane %v3594_v61, 5  ;;  %v3600_v60 = vrot.slane %v3598_v39, 4  ;;  %v3635_v39 = vrot.slane %v3633_v43, 4  ;;  %v3338_v43 = vld [vmem:[#allocation2 + $0xb4] sm:$0xf] }
 0x1ca   : > { %7701 = vmatprep.mubr.bf16.mxu1 %v8347_v24  ;;  %v3554_v24 = vrot.slane %v3553_v52, 4  ;;  %v3549_v2 = vsel %vm8735_vm1, %v3544_v22, %v3548_v18  ;;  %v3604_v52 = vshll.u32 %v8429_v38, 16  ;;  %v8352_v18 = vld [vmem:[#allocation2 + $0xc0] sm:$0xff]  }
 0x1cc   : > { %v3606_v22 = vrot.slane %v3604_v52, 5  ;;  %v3681_v52 = vshrl.u32 %v3338_v43, 16 }
 0x1ce   : > { %7926 = vmatmul.mubr.bf16.gmra.mrb[4].mxu0 %v7010_v44  ;;  %v3622_v44 = vshrl.u32 %v8427_v35, 16  ;;  %v3639_v35 = vor.u32 %v3638_v48, %v3635_v39 }
 0x1cf   : > { %7929 = vmatprep.mubr.bf16.mxu0 %v10801_v40  ;;  %v3559_v40 = vsel %vm8735_vm1, %v3554_v24, %v3558_v20 }
 0x1d0   : > { %v3624_v61 = vrot.slane %v3622_v44, 4  ;;  %v8431_v44 = vld [vmem:[#allocation2 + $0xa4] sm:$0x1]  ;;  %v3640_v12 = vrot.slane %v3639_v35, 4 }
 0x1d1   : > { %7702 = vmatmul.mubr.bf16.gmra.mrb[20].mxu1 %v8348_v0  ;;  %v10802_v0 = vcombine.low %v10257_v9, %v10280_v42  ;;  %v3591_v9 = vor.u32 %v3590_v1, %v3587_v47  ;;  %v3601_v42 = vor.u32 %v3600_v60, %v10572_v53  ;;  %v3335_v1 = vld [vmem:[#allocation2 + $0xa8] sm:$0xf]  ;;  %v8435_v35 = vld [vmem:[#allocation2 + $0xc4] sm:$0xf] }
 0x1d2   : > { %7705 = vmatprep.mubr.bf16.mxu1 %v8349_v19  ;;  %v3642_v19 = vshll.u32 %v8428_v37, 16  ;;  %v10804_v60 = vld [vmem:[#allocation6_spill] sm:$0xff]  ;;  %v3625_v58 = vor.u32 %v3624_v61, %v10585_v11  ;;  %v3657_v62 = vshrl.u32 %v3335_v1, 16  ;;  %v3660_v37 = vshll.u32 %v3335_v1, 16 }
 0x1d3   : > { %v3592_v20 = vrot.slane %v3591_v9, 4  ;;  %v3602_v24 = vrot.slane %v3601_v42, 4  ;;  %v10805_v41 = vcombine.low %v10268_v21, %v10804_v60  ;;  %v3684_v9 = vshll.u32 %v3338_v43, 16  ;;  %v8433_v42 = vld [vmem:[#allocation2 + $0xb8] sm:$0xf] }
 0x1d4   : > { %v10587_v51 = vrot.slane %v3642_v19, 5  ;;  %v8432_v19 = vld [vmem:[#allocation2 + $0xac] sm:$0xf]  ;;  %v3690_v27 = vshll.u32 %v8433_v42, 16  ;;  %v3694_v3 = vshrl.u32 %v8433_v42, 16  ;;  %v3659_v39 = vrot.slane %v3657_v62, 4 }
 0x1d5   : > { %v3666_v36 = vshll.u32 %v8432_v19, 16  ;;  %v3597_v21 = vsel %vm8735_vm1, %v3592_v20, %v10572_v53  ;;  %v3662_v48 = vrot.slane %v3660_v37, 5  ;;  %v3683_v53 = vrot.slane %v3681_v52, 4  ;;  %v8434_v60 = vld [vmem:[#allocation2 + $0xb0] sm:$0x1] }
 0x1d6   : > { %7930 = vmatmul.mubr.bf16.gmra.mrb[8].mxu0 %v10802_v0  ;;  %v3649_v49 = vor.u32 %v3648_v34, %v10587_v51  ;;  %v3652_v0 = vshll.u32 %v8431_v44, 16  ;;  %v3686_v20 = vrot.slane %v3684_v9, 5  ;;  %v3645_v1 = vsel %vm8735_vm1, %v3640_v12, %v10587_v51 }
 0x1d7   : > { %7933 = vmatprep.mubr.bf16.mxu0 %v10803_v14  ;;  %v3670_v14 = vshrl.u32 %v8432_v19, 16  ;;  %v3668_v34 = vrot.slane %v3666_v36, 5  ;;  %v3663_v5 = vor.u32 %v3662_v48, %v3659_v39  ;;  %v3718_v44 = vshrl.u32 %v8435_v35, 16 }
 0x1d8   : > { %v3650_v33 = vrot.slane %v3649_v49, 4  ;;  %v3654_v61 = vrot.slane %v3652_v0, 5  ;;  %v3714_v49 = vshll.u32 %v8435_v35, 16  ;;  %v3687_v51 = vor.u32 %v3686_v20, %v3683_v53 }
 0x1d9   : > { %7706 = vmatmul.mubr.bf16.gmra.mrb[24].mxu1 %v8350_v59  ;;  %v6823_v59 = vcombine.low %v3549_v2, %v3559_v40  ;;  %v3607_v2 = vsel %vm8735_vm1, %v3602_v24, %v3606_v22  ;;  %v3616_v40 = vrot.slane %v3615_v13, 4  ;;  %v3696_v22 = vrot.slane %v3694_v3, 4  ;;  %v3341_v24 = vld [vmem:[#allocation2 + $0xc0] sm:$0xf]  ;;  %v8437_v3 = vld [vmem:[#allocation2 + $0xc8] sm:$0x1] }
 0x1da   : > { %7709 = vmatprep.mubr.bf16.mxu1 %v8351_v15  ;;  %v8430_v15 = vld [vmem:[#allocation2 + $0x98] sm:$0x1]  ;;  %v3655_v29 = vsel %vm8735_vm1, %v3650_v33, %v3654_v61  ;;  %v3664_v26 = vrot.slane %v3663_v5, 4 }
 0x1db   : > { %v3628_v47 = vshll.u32 %v8430_v15, 16  ;;  %v3692_v15 = vrot.slane %v3690_v27, 5  ;;  %v3621_v13 = vsel %vm8735_vm1, %v3616_v40, %v10585_v11  ;;  %v3676_v11 = vshll.u32 %v8434_v60, 16 }
 0x1dc   : > { %v6827_v16 = vcombine.low %v3645_v1, %v3655_v29  ;;  %v3669_v52 = vsel %vm8735_vm1, %v3664_v26, %v3668_v34 }
 0x1dd   : > { %v3630_v38 = vrot.slane %v3628_v47, 5  ;;  %v3697_v0 = vor.u32 %v3696_v22, %v3692_v15  ;;  %v3678_v37 = vrot.slane %v3676_v11, 5 }
 0x1de   : > { %7934 = vmatmul.mubr.bf16.gmra.mrb[12].mxu0 %v10805_v41  ;;  %v3705_v41 = vshrl.u32 %v3341_v24, 16 }
 0x1df   : > { %7937 = vmatprep.mubr.bf16.mxu0 %v7015_v6  ;;  %v3626_v6 = vrot.slane %v3625_v58, 4  ;;  %v3708_v58 = vshll.u32 %v3341_v24, 16  ;;  %v3698_v40 = vrot.slane %v3697_v0, 4 }
 0x1e0   : > { %v3707_v19 = vrot.slane %v3705_v41, 4 }
 0x1e1   : > { %7710 = vmatmul.mubr.bf16.gmra.mrb[28].mxu1 %v8352_v18  ;;  %v3672_v18 = vrot.slane %v3670_v14, 4  ;;  %v3631_v47 = vsel %vm8735_vm1, %v3626_v6, %v3630_v38  ;;  %v3710_v36 = vrot.slane %v3708_v58, 5  ;;  %v3716_v14 = vrot.slane %v3714_v49, 5 }
 0x1e2   : > { %7745 = vmatprep.mubr.bf16.mxu1 %v6823_v59  ;;  %v6825_v59 = vcombine.low %v3597_v21, %v3607_v2  ;;  %v6826_v62 = vcombine.low %v3621_v13, %v3631_v47  ;;  %v3720_v21 = vrot.slane %v3718_v44, 4  ;;  %v3688_v2 = vrot.slane %v3687_v51, 4 }
 0x1e3   : > { %v3711_v42 = vor.u32 %v3710_v36, %v3707_v19  ;;  %v3724_v6 = vshll.u32 %v8437_v3, 16 }
 0x1e4   : > { %v3721_v27 = vor.u32 %v3720_v21, %v3716_v14  ;;  %v3693_v4 = vsel %vm8735_vm1, %v3688_v2, %v3692_v15 }
 0x1e5   : > { %v3712_v7 = vrot.slane %v3711_v42, 4  ;;  %v3726_v12 = vrot.slane %v3724_v6, 5 }
 0x1e6   : > { %7938 = vmatmul.mubr.bf16.gmra.mrb[16].mxu0 %v7016_v17  ;;  %v3673_v17 = vor.u32 %v3672_v18, %v3668_v34 }
 0x1e7   : > { %7941 = vmatprep.mubr.bf16.mxu0 %v7017_v10  ;;  %v3717_v33 = vsel %vm8735_vm1, %v3712_v7, %v3716_v14 }
 0x1e8   : > { %v3674_v10 = vrot.slane %v3673_v17, 4 }
 0x1e9   : > { %7746 = vmatmul.mubr.bf16.vlgmr.msra.gmra.mrb[16].mxu1 %v10388_v57  ;;  %v8436_v57 = vld [vmem:[#allocation2 + $0xbc] sm:$0x1] }
 0x1ea   : > { %7749 = vmatprep.mubr.bf16.mxu1 %v6825_v59  ;;  %v3700_v43 = vshll.u32 %v8436_v57, 16  ;;  %v3679_v9 = vsel %vm8735_vm1, %v3674_v10, %v3678_v37 }
 0x1ec   : > { %v3702_v38 = vrot.slane %v3700_v43, 5 }
 0x1ee   : > { %7942 = vmatmul.mubr.bf16.gmra.mrb[20].mxu0 %v7018_v45  ;;  %v3703_v55 = vsel %vm8735_vm1, %v3698_v40, %v3702_v38  ;;  %v6828_v45 = vcombine.low %v3669_v52, %v3679_v9 }
 0x1ef   : > { %7945 = vmatprep.mubr.bf16.mxu0 %v7019_v32  ;;  %v6829_v46 = vcombine.low %v3693_v4, %v3703_v55  ;;  %v3722_v32 = vrot.slane %v3721_v27, 4 }
 0x1f1   : > { %7750 = vmatmul.mubr.bf16.gmra.mrb[20].mxu1 %v6826_v62  ;;  %v3727_v61 = vsel %vm8735_vm1, %v3722_v32, %v3726_v12 }
 0x1f2   : > { %7753 = vmatprep.mubr.bf16.mxu1 %v6827_v16  ;;  %v6830_v39 = vcombine.low %v3717_v33, %v3727_v61 }
 0x1f6   : > { %7946 = vmatmul.mubr.bf16.gmra.mrb[24].mxu0 %v7020_v8 }
 0x1f7   : > { %7949 = vmatprep.mubr.bf16.mxu0 %v7021_v31 }
 0x1f9   : > { %7754 = vmatmul.mubr.bf16.gmra.mrb[24].mxu1 %v6828_v45 }
 0x1fa   : > { %7757 = vmatprep.mubr.bf16.mxu1 %v6829_v46 }
 0x1fe   : > { %7950 = vmatmul.mubr.bf16.gmra.mrb[28].mxu0 %v7022_v28 }
 0x201   : > { %7758 = vmatmul.mubr.bf16.gmra.mrb[28].mxu1 %v6830_v39 }
 0x27c   : > { %v7683_v63 = vpop.f32.mrb[0].mxu1 }
 0x27d   : > { %v3137_v50 = vpop.f32.mrb[1].mxu1 }
 0x27e   : > { %v7684_v8 = vpop.f32.mrb[2].mxu1 }
 0x27f   : > { %v3140_v48 = vpop.f32.mrb[3].mxu1 }
 0x284   : > { %v7687_v34 = vpop.f32.mrb[4].mxu1 }
 0x285   : > { %v3153_v23 = vpop.f32.mrb[5].mxu1 }
 0x286   : > { %v7688_v25 = vpop.f32.mrb[6].mxu1 }
 0x287   : > { %v3156_v31 = vpop.f32.mrb[7].mxu1 }
 0x28c   : > { %v7691_v18 = vpop.f32.mrb[8].mxu1 }
 0x28d   : > { %v3169_v59 = vpop.f32.mrb[9].mxu1 }
 0x28e   : > { %v7692_v53 = vpop.f32.mrb[10].mxu1 }
 0x28f   : > { %v3172_v30 = vpop.f32.mrb[11].mxu1 }
 0x294   : > { %v10646_v20 = vpop.f32.mrb[12].mxu1 }
 0x295   : > { %v10648_v15 = vpop.f32.mrb[13].mxu1 }
 0x296   : > { %v10650_v56 = vpop.f32.mrb[14].mxu1 }
 0x297   : > { %v10652_v54 = vpop.f32.mrb[15].mxu1 }
 0x299   : > { %v7923_v28 = vpop.f32.mrb[0].mxu0 }
 0x29a   : > { %v7969_v22 = vadd.f32 %v7923_v28, %v7683_v63  ;;  %v6028_v24 = vpop.f32.mrb[1].mxu0 }
 0x29b   : > { %v7970_v13 = vadd.f32 %v6028_v24, %v3137_v50  ;;  %v7924_v47 = vpop.f32.mrb[2].mxu0 }
 0x29c   : > { %v7971_v1 = vadd.f32 %v7924_v47, %v7684_v8  ;;  %v6031_v29 = vpop.f32.mrb[3].mxu0  ;;  %v6227_v35 = vmul.f32 %v7969_v22, %v7969_v22 }
 0x29d   : > { %v7972_v5 = vadd.f32 %v6031_v29, %v3140_v48  ;;  %v6225_v60 = vmul.f32 %v7970_v13, %v7970_v13 }
 0x29e   : > { %v7203_v17 = vpack.c.bf16 %v7971_v1, %v7969_v22  ;;  %v6228_v43 = vmul.f32 %v7971_v1, %v7971_v1 }
 0x29f   : > { %v6187_v11 = vadd.f32 %v7972_v5, %v7970_v13  ;;  %v6226_v41 = vmul.f32 %v7972_v5, %v7972_v5  ;;  %v7198_v58 = vpack.c.bf16 %v7972_v5, %v7970_v13 }
 0x2a0   : > { %7290 = vst [vmem:[%s10659_s24 + $0x8] sm:$0xff] %v7203_v17  }
 0x2a1   : > { %v6188_v49 = vadd.f32 %v7969_v22, %v6187_v11  ;;  %v6257_v44 = vadd.f32 %v6226_v41, %v6225_v60  ;;  %7199 = vst [vmem:[%s10659_s24] sm:$0xff] %v7198_v58   ;;  %v7927_v51 = vpop.f32.mrb[4].mxu0 }
 0x2a2   : > { %v7973_v0 = vadd.f32 %v7927_v51, %v7687_v34  ;;  %v6044_v57 = vpop.f32.mrb[5].mxu0 }
 0x2a3   : > { %v6258_v62 = vadd.f32 %v6257_v44, %v6227_v35  ;;  %v7974_v16 = vadd.f32 %v6044_v57, %v3153_v23  ;;  %v6189_v26 = vadd.f32 %v7971_v1, %v6188_v49  ;;  %v7928_v10 = vpop.f32.mrb[6].mxu0 }
 0x2a4   : > { %v7975_v37 = vadd.f32 %v7928_v10, %v7688_v25  ;;  %v6047_v19 = vpop.f32.mrb[7].mxu0  ;;  %v6231_v27 = vmul.f32 %v7973_v0, %v7973_v0 }
 0x2a5   : > { %v6190_v36 = vadd.f32 %v7974_v16, %v6189_v26  ;;  %v6229_v14 = vmul.f32 %v7974_v16, %v7974_v16  ;;  %v6259_v21 = vadd.f32 %v6258_v62, %v6228_v43  ;;  %v7976_v2 = vadd.f32 %v6047_v19, %v3156_v31 }
 0x2a6   : > { %v7213_v40 = vpack.c.bf16 %v7975_v37, %v7973_v0  ;;  %v6232_v46 = vmul.f32 %v7975_v37, %v7975_v37 }
 0x2a7   : > { %v6260_v38 = vadd.f32 %v6259_v21, %v6229_v14  ;;  %v6191_v52 = vadd.f32 %v7976_v2, %v6190_v36  ;;  %v6230_v9 = vmul.f32 %v7976_v2, %v7976_v2  ;;  %v7208_v42 = vpack.c.bf16 %v7976_v2, %v7974_v16 }
 0x2a8   : > { %7292 = vst [vmem:[%s10659_s24 + $0x18] sm:$0xff] %v7213_v40  }
 0x2a9   : > { %v6192_v3 = vadd.f32 %v7973_v0, %v6191_v52  ;;  %v6261_v6 = vadd.f32 %v6260_v38, %v6230_v9  ;;  %7291 = vst [vmem:[%s10659_s24 + $0x10] sm:$0xff] %v7208_v42   ;;  %v7931_v4 = vpop.f32.mrb[8].mxu0 }
 0x2aa   : > { %v7977_v55 = vadd.f32 %v7931_v4, %v7691_v18  ;;  %v6060_v45 = vpop.f32.mrb[9].mxu0 }
 0x2ab   : > { %v6262_v7 = vadd.f32 %v6261_v6, %v6231_v27  ;;  %v7978_v32 = vadd.f32 %v6060_v45, %v3169_v59  ;;  %v6193_v12 = vadd.f32 %v7975_v37, %v6192_v3  ;;  %v7932_v33 = vpop.f32.mrb[10].mxu0 }
 0x2ac   : > { %v7979_v61 = vadd.f32 %v7932_v33, %v7692_v53  ;;  %v6063_v39 = vpop.f32.mrb[11].mxu0  ;;  %v6235_v18 = vmul.f32 %v7977_v55, %v7977_v55 }
 0x2ad   : > { %v6194_v63 = vadd.f32 %v7978_v32, %v6193_v12  ;;  %v6233_v50 = vmul.f32 %v7978_v32, %v7978_v32  ;;  %v6263_v8 = vadd.f32 %v6262_v7, %v6232_v46  ;;  %v7980_v48 = vadd.f32 %v6063_v39, %v3172_v30 }
 0x2ae   : > { %v7223_v34 = vpack.c.bf16 %v7979_v61, %v7977_v55  ;;  %v6236_v53 = vmul.f32 %v7979_v61, %v7979_v61 }
 0x2af   : > { %v6264_v23 = vadd.f32 %v6263_v8, %v6233_v50  ;;  %v6195_v25 = vadd.f32 %v7980_v48, %v6194_v63  ;;  %v6234_v31 = vmul.f32 %v7980_v48, %v7980_v48  ;;  %v7218_v28 = vpack.c.bf16 %v7980_v48, %v7978_v32 }
 0x2b0   : > { %7294 = vst [vmem:[%s10659_s24 + $0x28] sm:$0xff] %v7223_v34  }
 0x2b1   : > { %v6196_v22 = vadd.f32 %v7977_v55, %v6195_v25  ;;  %v6265_v24 = vadd.f32 %v6264_v23, %v6234_v31  ;;  %7293 = vst [vmem:[%s10659_s24 + $0x20] sm:$0xff] %v7218_v28   ;;  %v7935_v59 = vpop.f32.mrb[12].mxu0 }
 0x2b2   : > { %v7981_v13 = vadd.f32 %v7935_v59, %v10646_v20  ;;  %v6076_v47 = vpop.f32.mrb[13].mxu0 }
 0x2b3   : > { %v6266_v1 = vadd.f32 %v6265_v24, %v6235_v18  ;;  %v7982_v29 = vadd.f32 %v6076_v47, %v10648_v15  ;;  %v6197_v30 = vadd.f32 %v7979_v61, %v6196_v22  ;;  %v7936_v5 = vpop.f32.mrb[14].mxu0 }
 0x2b4   : > { %v7983_v17 = vadd.f32 %v7936_v5, %v10650_v56  ;;  %v6079_v60 = vpop.f32.mrb[15].mxu0  ;;  %v6239_v57 = vmul.f32 %v7981_v13, %v7981_v13 }
 0x2b5   : > { %v6198_v11 = vadd.f32 %v7982_v29, %v6197_v30  ;;  %v6237_v41 = vmul.f32 %v7982_v29, %v7982_v29  ;;  %v6267_v58 = vadd.f32 %v6266_v1, %v6236_v53  ;;  %v7984_v35 = vadd.f32 %v6079_v60, %v10652_v54 }
 0x2b6   : > { %v7233_v49 = vpack.c.bf16 %v7983_v17, %v7981_v13  ;;  %v6240_v56 = vmul.f32 %v7983_v17, %v7983_v17 }
 0x2b7   : > { %v6268_v44 = vadd.f32 %v6267_v58, %v6237_v41  ;;  %v6199_v20 = vadd.f32 %v7984_v35, %v6198_v11  ;;  %v6238_v51 = vmul.f32 %v7984_v35, %v7984_v35  ;;  %v7228_v0 = vpack.c.bf16 %v7984_v35, %v7982_v29 }
 0x2b8   : > { %7296 = vst [vmem:[%s10659_s24 + $0x38] sm:$0xff] %v7233_v49  }
 0x2b9   : > { %v6200_v43 = vadd.f32 %v7981_v13, %v6199_v20  ;;  %v6269_v15 = vadd.f32 %v6268_v44, %v6238_v51  ;;  %7295 = vst [vmem:[%s10659_s24 + $0x30] sm:$0xff] %v7228_v0   ;;  %v7939_v62 = vpop.f32.mrb[16].mxu0 }
 0x2ba   : > { %v6092_v26 = vpop.f32.mrb[17].mxu0 }
 0x2bb   : > { %v6270_v10 = vadd.f32 %v6269_v15, %v6239_v57  ;;  %v6201_v36 = vadd.f32 %v7983_v17, %v6200_v43  ;;  %v7940_v54 = vpop.f32.mrb[18].mxu0 }
 0x2bc   : > { %v7747_v16 = vpop.f32.mrb[16].mxu1  ;;  %v6095_v2 = vpop.f32.mrb[19].mxu0 }
 0x2bd   : > { %v7985_v37 = vadd.f32 %v7939_v62, %v7747_v16  ;;  %v3955_v19 = vpop.f32.mrb[17].mxu1  ;;  %v6271_v40 = vadd.f32 %v6270_v10, %v6240_v56 }
 0x2be   : > { %v7986_v14 = vadd.f32 %v6092_v26, %v3955_v19  ;;  %v7748_v21 = vpop.f32.mrb[18].mxu1 }
 0x2bf   : > { %v7987_v38 = vadd.f32 %v7940_v54, %v7748_v21  ;;  %v3958_v52 = vpop.f32.mrb[19].mxu1  ;;  %v6243_v7 = vmul.f32 %v7985_v37, %v7985_v37 }
 0x2c0   : > { %v6202_v9 = vadd.f32 %v7986_v14, %v6201_v36  ;;  %v6241_v42 = vmul.f32 %v7986_v14, %v7986_v14  ;;  %v7988_v27 = vadd.f32 %v6095_v2, %v3958_v52 }
 0x2c1   : > { %v7243_v3 = vpack.c.bf16 %v7987_v38, %v7985_v37  ;;  %v7943_v46 = vpop.f32.mrb[20].mxu0  ;;  %v6244_v8 = vmul.f32 %v7987_v38, %v7987_v38 }
 0x2c2   : > { %v6272_v6 = vadd.f32 %v6271_v40, %v6241_v42  ;;  %v6203_v4 = vadd.f32 %v7988_v27, %v6202_v9  ;;  %v6242_v55 = vmul.f32 %v7988_v27, %v7988_v27  ;;  %v7238_v45 = vpack.c.bf16 %v7988_v27, %v7986_v14  ;;  %v6108_v61 = vpop.f32.mrb[21].mxu0 }
 0x2c3   : > { %7298 = vst [vmem:[%s10659_s24 + $0x48] sm:$0xff] %v7243_v3   ;;  %v7944_v50 = vpop.f32.mrb[22].mxu0 }
 0x2c4   : > { %v6204_v32 = vadd.f32 %v7985_v37, %v6203_v4  ;;  %v6273_v12 = vadd.f32 %v6272_v6, %v6242_v55  ;;  %7297 = vst [vmem:[%s10659_s24 + $0x40] sm:$0xff] %v7238_v45   ;;  %v7751_v33 = vpop.f32.mrb[20].mxu1  ;;  %v6111_v31 = vpop.f32.mrb[23].mxu0 }
 0x2c5   : > { %v7989_v39 = vadd.f32 %v7943_v46, %v7751_v33  ;;  %v3971_v63 = vpop.f32.mrb[21].mxu1 }
 0x2c6   : > { %v6274_v48 = vadd.f32 %v6273_v12, %v6243_v7  ;;  %v7990_v34 = vadd.f32 %v6108_v61, %v3971_v63  ;;  %v6205_v23 = vadd.f32 %v7987_v38, %v6204_v32  ;;  %v7752_v25 = vpop.f32.mrb[22].mxu1 }
 0x2c7   : > { %v7991_v28 = vadd.f32 %v7944_v50, %v7752_v25  ;;  %v3974_v18 = vpop.f32.mrb[23].mxu1  ;;  %v6247_v17 = vmul.f32 %v7989_v39, %v7989_v39 }
 0x2c8   : > { %v6206_v22 = vadd.f32 %v7990_v34, %v6205_v23  ;;  %v6245_v24 = vmul.f32 %v7990_v34, %v7990_v34  ;;  %v6275_v59 = vadd.f32 %v6274_v48, %v6244_v8  ;;  %v7992_v13 = vadd.f32 %v6111_v31, %v3974_v18 }
 0x2c9   : > { %v7253_v47 = vpack.c.bf16 %v7991_v28, %v7989_v39  ;;  %v7947_v5 = vpop.f32.mrb[24].mxu0  ;;  %v6248_v20 = vmul.f32 %v7991_v28, %v7991_v28 }
 0x2ca   : > { %v6276_v53 = vadd.f32 %v6275_v59, %v6245_v24  ;;  %v6207_v1 = vadd.f32 %v7992_v13, %v6206_v22  ;;  %v6246_v29 = vmul.f32 %v7992_v13, %v7992_v13  ;;  %v7248_v30 = vpack.c.bf16 %v7992_v13, %v7990_v34  ;;  %v6124_v58 = vpop.f32.mrb[25].mxu0 }
 0x2cb   : > { %7300 = vst [vmem:[%s10659_s24 + $0x58] sm:$0xff] %v7253_v47   ;;  %v7948_v44 = vpop.f32.mrb[26].mxu0 }
 0x2cc   : > { %v6208_v60 = vadd.f32 %v7989_v39, %v6207_v1  ;;  %v6277_v11 = vadd.f32 %v6276_v53, %v6246_v29  ;;  %7299 = vst [vmem:[%s10659_s24 + $0x50] sm:$0xff] %v7248_v30   ;;  %v7755_v41 = vpop.f32.mrb[24].mxu1  ;;  %v6127_v15 = vpop.f32.mrb[27].mxu0 }
 0x2cd   : > { %v7993_v35 = vadd.f32 %v7947_v5, %v7755_v41  ;;  %v3987_v49 = vpop.f32.mrb[25].mxu1 }
 0x2ce   : > { %v6278_v51 = vadd.f32 %v6277_v11, %v6247_v17  ;;  %v7994_v0 = vadd.f32 %v6124_v58, %v3987_v49  ;;  %v6209_v57 = vadd.f32 %v7991_v28, %v6208_v60  ;;  %v7756_v43 = vpop.f32.mrb[26].mxu1 }
 0x2cf   : > { %v7995_v62 = vadd.f32 %v7948_v44, %v7756_v43  ;;  %v3990_v16 = vpop.f32.mrb[27].mxu1  ;;  %v6251_v40 = vmul.f32 %v7993_v35, %v7993_v35 }
 0x2d0   : > { %v6210_v26 = vadd.f32 %v7994_v0, %v6209_v57  ;;  %v6249_v56 = vmul.f32 %v7994_v0, %v7994_v0  ;;  %v6279_v10 = vadd.f32 %v6278_v51, %v6248_v20  ;;  %v7996_v37 = vadd.f32 %v6127_v15, %v3990_v16 }
 0x2d1   : > { %v7263_v19 = vpack.c.bf16 %v7995_v62, %v7993_v35  ;;  %v7951_v2 = vpop.f32.mrb[28].mxu0  ;;  %v6252_v4 = vmul.f32 %v7995_v62, %v7995_v62 }
 0x2d2   : > { %v6280_v36 = vadd.f32 %v6279_v10, %v6249_v56  ;;  %v6211_v54 = vadd.f32 %v7996_v37, %v6210_v26  ;;  %v6250_v14 = vmul.f32 %v7996_v37, %v7996_v37  ;;  %v7258_v21 = vpack.c.bf16 %v7996_v37, %v7994_v0  ;;  %v6140_v42 = vpop.f32.mrb[29].mxu0 }
 0x2d3   : > { %7302 = vst [vmem:[%s10659_s24 + $0x68] sm:$0xff] %v7263_v19   ;;  %v7952_v6 = vpop.f32.mrb[30].mxu0 }
 0x2d4   : > { %v6212_v38 = vadd.f32 %v7993_v35, %v6211_v54  ;;  %v6281_v52 = vadd.f32 %v6280_v36, %v6250_v14  ;;  %7301 = vst [vmem:[%s10659_s24 + $0x60] sm:$0xff] %v7258_v21   ;;  %v7759_v9 = vpop.f32.mrb[28].mxu1  ;;  %v6143_v32 = vpop.f32.mrb[31].mxu0 }
 0x2d5   : > { %v7997_v27 = vadd.f32 %v7951_v2, %v7759_v9  ;;  %v4003_v3 = vpop.f32.mrb[29].mxu1 }
 0x2d6   : > { %v6282_v55 = vadd.f32 %v6281_v52, %v6251_v40  ;;  %v7998_v45 = vadd.f32 %v6140_v42, %v4003_v3  ;;  %v6213_v46 = vadd.f32 %v7995_v62, %v6212_v38  ;;  %v7760_v7 = vpop.f32.mrb[30].mxu1 }
 0x2d7   : > { %v7999_v12 = vadd.f32 %v7952_v6, %v7760_v7  ;;  %v4006_v33 = vpop.f32.mrb[31].mxu1  ;;  %v6255_v31 = vmul.f32 %v7997_v27, %v7997_v27 }
 0x2d8   : > { %v6214_v61 = vadd.f32 %v7998_v45, %v6213_v46  ;;  %v6253_v39 = vmul.f32 %v7998_v45, %v7998_v45  ;;  %v6283_v63 = vadd.f32 %v6282_v55, %v6252_v4  ;;  %v8000_v50 = vadd.f32 %v6143_v32, %v4006_v33 }
 0x2d9   : > { %v7273_v8 = vpack.c.bf16 %v7999_v12, %v7997_v27  ;;  %v6256_v22 = vmul.f32 %v7999_v12, %v7999_v12 }
 0x2da   : > { %v6284_v48 = vadd.f32 %v6283_v63, %v6253_v39  ;;  %v6215_v34 = vadd.f32 %v8000_v50, %v6214_v61  ;;  %v6254_v23 = vmul.f32 %v8000_v50, %v8000_v50  ;;  %v7268_v25 = vpack.c.bf16 %v8000_v50, %v7998_v45 }
 0x2db   : > { %7304 = vst [vmem:[%s10659_s24 + $0x78] sm:$0xff] %v7273_v8  }
 0x2dc   : > { %v6216_v28 = vadd.f32 %v7997_v27, %v6215_v34  ;;  %v6285_v18 = vadd.f32 %v6284_v48, %v6254_v23  ;;  %7303 = vst [vmem:[%s10659_s24 + $0x70] sm:$0xff] %v7268_v25  }
 0x2de   : > { %v6217_v24 = vadd.f32 %v7999_v12, %v6216_v28  ;;  %v6286_v59 = vadd.f32 %v6285_v18, %v6255_v31 }
 0x2e0   : > { %v6218_v13 = vrot.slane %v6217_v24, 4  ;;  %v6287_v47 = vadd.f32 %v6286_v59, %v6256_v22 }
 0x2e2   : > { %v6219_v53 = vadd.f32 %v6218_v13, %v6217_v24  ;;  %v6288_v1 = vrot.slane %v6287_v47, 4 }
 0x2e4   : > { %v6220_v29 = vrot.slane %v6219_v53, 2  ;;  %v6289_v30 = vadd.f32 %v6288_v1, %v6287_v47 }
 0x2e6   : > { %v6221_v5 = vadd.f32 %v6220_v29, %v6219_v53  ;;  %v6290_v17 = vrot.slane %v6289_v30, 2 }
 0x2e8   : > { %v6222_v60 = vrot.slane %v6221_v5, 1  ;;  %v6291_v11 = vadd.f32 %v6290_v17, %v6289_v30 }
 0x2ea   : > { %v6223_v41 = vadd.f32 %v6222_v60, %v6221_v5  ;;  %v6292_v58 = vrot.slane %v6291_v11, 1 }
 0x2ec   : > { %6224 = vst [vmem:[%s293_s29] sm:$0x1] %v6223_v41  ;;  %v6293_v35 = vadd.f32 %v6292_v58, %v6291_v11 }
 0x2ee   : > { %6294 = vst [vmem:[%s296_s30] sm:$0x1] %v6293_v35 }
 0x2ef PF: > { %s19_s26 = sadd.s32 1, %s8444_s26  }
 0x2f0   : > { %p16_p4 = scmp.ge.s32.totalorder %s19_s26, 4  }
 0x2f2   :  { %18 = sbr.rel (!%p16_p4) target bundleno = 2 (0x2), region = 105 }

</bundles_post_ra>
